<compile_context>
chip_gen: v7x
topology: tpu7x:2x2x1
jax: 0.10.0
libtpu: 0.0.40
codegen_flags: <defaults>
</compile_context>

<pallas_src>
import math

import jax
import jax.numpy as jnp
from jax import lax
from jax.experimental import pallas as pl
from jax.experimental.pallas import tpu as pltpu


LRELU_SLOPE = 0.2
OUT_SCALE = 1.0 / math.sqrt(2.0)


def _leaky_relu(v):
    return jnp.where(v > 0, v, LRELU_SLOPE * v)


def _avg_pool_2x2(a):
    """Plain 2x2 average pool on an (H, W, C) array, done entirely on the VPU."""
    h, w, c = a.shape
    r = a.reshape(h // 2, 2, w, c)
    r = r[:, 0] + r[:, 1]                      # sum row pairs    -> (h//2, w, c)
    r = r.reshape(h // 2, w // 2, 2, c)
    r = r[:, :, 0] + r[:, :, 1]                # sum column pairs -> (h//2, w//2, c)
    return r * 0.25


def _disc_block_kernel(x_ref, w1_ref, b1_ref, w2_ref, b2_ref, wr_ref, br_ref,
                       out_ref, xp_ref, t1_ref):
    """One grid step = one batch element.

    x_ref  : (H, W, Cin)      f32  unpadded NHWC input block
    w1_ref : (9*Cin, Cin)     bf16 conv1 weight, rows ordered (kh, kw, cin)
    b1_ref : (1, Cin)         f32
    w2_ref : (9*Cin, Cout)    bf16 conv2 weight
    b2_ref : (1, Cout)        f32
    wr_ref : (Cin, Cout)      bf16 residual 1x1 conv weight
    br_ref : (1, Cout)        f32
    out_ref: (Hd*Wd, Cout)    f32  lane-dense output slab
    xp_ref : (H+2, W+2, Cin)  f32  VMEM scratch: zero-bordered input
    t1_ref : (H+2, W+2, Cin)  f32  VMEM scratch: zero-bordered conv1 activation
    """
    H, W, Cin = x_ref.shape
    Cout = out_ref.shape[1]
    Hd, Wd = H // 2, W // 2

    # Zero only the 1-px border of the padded scratches; the interiors are
    # fully overwritten every step.  (Not gated on program_id == 0 because with
    # a "parallel" batch axis each TensorCore has its own scratch copy.)
    zrow = jnp.zeros((1, W + 2, Cin), jnp.float32)
    zcol = jnp.zeros((H + 2, 1, Cin), jnp.float32)
    for ref in (xp_ref, t1_ref):
        ref[0:1, :, :] = zrow
        ref[H + 1:H + 2, :, :] = zrow
        ref[:, 0:1, :] = zcol
        ref[:, W + 1:W + 2, :] = zcol

    # In-kernel halo: copy the unpadded input into the padded scratch interior
    # (replaces the wrapper-side jnp.pad HBM round trip).
    xp_ref[1:H + 1, 1:W + 1, :] = x_ref[...]

    def im2col(p_ref):
        # (H*W, 9*Cin) patch matrix, columns ordered (kh, kw, cin); one bf16 cast.
        cols = [p_ref[kh:kh + H, kw:kw + W, :].reshape(H * W, Cin)
                for kh in range(3) for kw in range(3)]
        return jnp.concatenate(cols, axis=1).astype(jnp.bfloat16)

    # conv1: 3x3, Cin -> Cin, padding 1 — single fused matmul (bf16 MXU, f32 acc).
    a1 = jnp.dot(im2col(xp_ref), w1_ref[...],
                 preferred_element_type=jnp.float32) + b1_ref[...]
    a1 = _leaky_relu(a1)
    t1_ref[1:H + 1, 1:W + 1, :] = a1.reshape(H, W, Cin)

    # conv2: 3x3, Cin -> Cout, padding 1 — single fused matmul.
    a2 = jnp.dot(im2col(t1_ref), w2_ref[...],
                 preferred_element_type=jnp.float32) + b2_ref[...]
    a2 = _leaky_relu(a2)

    # Downsample both branches with a VPU 2x2 average pool (no pooling matmul).
    ds_out = _avg_pool_2x2(a2.reshape(H, W, Cout)).reshape(Hd * Wd, Cout)
    ds_x = _avg_pool_2x2(x_ref[...]).reshape(Hd * Wd, Cin)

    # Residual branch: 1x1 equalized conv on the downsampled input.
    res = jnp.dot(ds_x.astype(jnp.bfloat16), wr_ref[...],
                  preferred_element_type=jnp.float32) + br_ref[...]

    out_ref[...] = (ds_out + res) * OUT_SCALE


def _vmem_limit_bytes(H, W, Cin, Cout):
    """Rough per-step VMEM budget (double-buffered blocks + scratch + patches)."""
    f32, bf16 = 4, 2
    Hd, Wd = H // 2, W // 2
    blocks = (H * W * Cin + Hd * Wd * Cout) * f32
    weights = (9 * Cin * (Cin + Cout) + Cin * Cout) * bf16 + (Cin + 2 * Cout) * f32
    scratch = 2 * (H + 2) * (W + 2) * Cin * f32
    patches = H * W * 9 * Cin * (f32 + bf16)
    need = 2 * blocks + weights + scratch + 2 * patches + (4 << 20)
    return int(max(32 << 20, min(need, 100 << 20)))


def discriminator_block(x_nchw, params):
    """Pallas forward. x_nchw: (B, Cin, H, W) f32 -> (B, Cout, H//2, W//2) f32."""
    w1, b1, w2, b2, wr, br = (params[k] for k in ("w1", "b1", "w2", "b2", "wr", "br"))
    B, Cin, H, W = x_nchw.shape
    Cout = w2.shape[0]
    Hd, Wd = H // 2, W // 2
    k = w1.shape[2]  # kernel_size = 3

    # Equalized-LR scales baked into the weights.
    s_conv = 1.0 / math.sqrt(Cin * k * k)
    s_res = 1.0 / math.sqrt(Cin)

    # NCHW -> NHWC (no spatial padding here; the kernel pads in VMEM).
    x_nhwc = jnp.transpose(x_nchw, (0, 2, 3, 1)).astype(jnp.float32)

    # OIHW -> (kh*kw*cin, cout) row order (kh, kw, cin); scaled, cast once to bf16.
    w1_k = (jnp.transpose(w1, (2, 3, 1, 0)) * s_conv).reshape(9 * Cin, Cin)
    w2_k = (jnp.transpose(w2, (2, 3, 1, 0)) * s_conv).reshape(9 * Cin, Cout)
    wr_k = jnp.transpose(wr[:, :, 0, 0], (1, 0)) * s_res
    w1_k, w2_k, wr_k = (w.astype(jnp.bfloat16) for w in (w1_k, w2_k, wr_k))
    b1_k = b1.reshape(1, Cin).astype(jnp.float32)
    b2_k = b2.reshape(1, Cout).astype(jnp.float32)
    br_k = br.reshape(1, Cout).astype(jnp.float32)

    grid_spec = pltpu.PrefetchScalarGridSpec(
        num_scalar_prefetch=0,
        grid=(B,),
        in_specs=[
            pl.BlockSpec((None, H, W, Cin), lambda b: (b, 0, 0, 0)),
            pl.BlockSpec((9 * Cin, Cin), lambda b: (0, 0)),
            pl.BlockSpec((1, Cin), lambda b: (0, 0)),
            pl.BlockSpec((9 * Cin, Cout), lambda b: (0, 0)),
            pl.BlockSpec((1, Cout), lambda b: (0, 0)),
            pl.BlockSpec((Cin, Cout), lambda b: (0, 0)),
            pl.BlockSpec((1, Cout), lambda b: (0, 0)),
        ],
        out_specs=pl.BlockSpec((None, Hd * Wd, Cout), lambda b: (b, 0, 0)),
        scratch_shapes=[
            pltpu.VMEM((H + 2, W + 2, Cin), jnp.float32),   # padded input
            pltpu.VMEM((H + 2, W + 2, Cin), jnp.float32),   # padded conv1 act
        ],
    )

    out_2d = pl.pallas_call(
        _disc_block_kernel,
        out_shape=jax.ShapeDtypeStruct((B, Hd * Wd, Cout), jnp.float32),
        grid_spec=grid_spec,
        compiler_params=pltpu.CompilerParams(
            dimension_semantics=("parallel",),
            vmem_limit_bytes=_vmem_limit_bytes(H, W, Cin, Cout),
        ),
    )(x_nhwc, w1_k, b1_k, w2_k, b2_k, wr_k, br_k)

    # (B, Hd*Wd, Cout) lane-dense slab -> NCHW.
    return jnp.transpose(out_2d.reshape(B, Hd, Wd, Cout), (0, 3, 1, 2))


# ---------------------------- pure-JAX reference ----------------------------
def _reference_forward(x, params, mxu_dtype=jnp.bfloat16):
    """Reference forward. mxu_dtype=jnp.bfloat16 mirrors the kernel's MXU
    numerics (bf16 operands, f32 accumulation); pass jnp.float32 for the
    all-f32 module semantics."""
    w1, b1, w2, b2, wr, br = (params[k] for k in ("w1", "b1", "w2", "b2", "wr", "br"))
    Cin = x.shape[1]
    k = w1.shape[2]
    s_conv = 1.0 / math.sqrt(Cin * k * k)
    s_res = 1.0 / math.sqrt(Cin)

    def eq_conv(inp, w, b, scale, pad):
        y = lax.conv_general_dilated(
            inp.astype(mxu_dtype), (w * scale).astype(mxu_dtype), (1, 1),
            [(pad, pad), (pad, pad)],
            dimension_numbers=("NCHW", "OIHW", "NCHW"),
            preferred_element_type=jnp.float32)
        return y + b[None, :, None, None]

    def lrelu(v):
        return jnp.where(v > 0, v, LRELU_SLOPE * v)

    def down(v):
        B, C, H, W = v.shape
        return v.reshape(B, C, H // 2, 2, W // 2, 2).mean(axis=(3, 5))

    out = lrelu(eq_conv(x, w1, b1, s_conv, 1))
    out = lrelu(eq_conv(out, w2, b2, s_conv, 1))
    out = down(out)
    res = eq_conv(down(x), wr, br, s_res, 0)
    return (out + res) * OUT_SCALE


if __name__ == "__main__":
    B, Cin, Cout, H, W = 2, 4, 8, 16, 16
    key = jax.random.PRNGKey(0)
    kx, k1, k2, k3, k4, k5, k6 = jax.random.split(key, 7)

    x = jax.random.normal(kx, (B, Cin, H, W), jnp.float32)
    # Synthetic deterministic init (EqualizedConv2d: N(0,1) weights; biases given
    # small nonzero values so the bias path is exercised).
    params = {
        "w1": jax.random.normal(k1, (Cin, Cin, 3, 3), jnp.float32),
        "b1": 0.1 * jax.random.normal(k2, (Cin,), jnp.float32),
        "w2": jax.random.normal(k3, (Cout, Cin, 3, 3), jnp.float32),
        "b2": 0.1 * jax.random.normal(k4, (Cout,), jnp.float32),
        "wr": jax.random.normal(k5, (Cout, Cin, 1, 1), jnp.float32),
        "br": 0.1 * jax.random.normal(k6, (Cout,), jnp.float32),
    }

    out = jax.jit(discriminator_block)(x, params)
    out = jax.block_until_ready(out)
    assert out.shape == (B, Cout, H // 2, W // 2), out.shape

    # Tight check against a reference that mirrors the kernel's bf16 MXU numerics.
    ref_bf16 = _reference_forward(x, params, mxu_dtype=jnp.bfloat16)
    assert jnp.allclose(out, ref_bf16, rtol=1e-2, atol=1e-2), (
        float(jnp.max(jnp.abs(out - ref_bf16))))

    # Looser check against the pure-f32 module semantics (bf16 rounding slack).
    ref_f32 = _reference_forward(x, params, mxu_dtype=jnp.float32)
    assert jnp.allclose(out, ref_f32, rtol=5e-2, atol=5e-2), (
        float(jnp.max(jnp.abs(out - ref_f32))))

    print("KERNEL_OK")
</pallas_src>

<mosaic_0001>
module attributes {stable_mosaic.version = 11 : i64} {
  func.func @_disc_block_kernel(%arg0: i32, %arg1: memref<1x16x16x4xf32, #tpu.memory_space<vmem>>, %arg2: memref<36x4xbf16, #tpu.memory_space<vmem>>, %arg3: memref<1x4xf32, #tpu.memory_space<vmem>>, %arg4: memref<36x8xbf16, #tpu.memory_space<vmem>>, %arg5: memref<1x8xf32, #tpu.memory_space<vmem>>, %arg6: memref<4x8xbf16, #tpu.memory_space<vmem>>, %arg7: memref<1x8xf32, #tpu.memory_space<vmem>>, %arg8: memref<1x64x8xf32, #tpu.memory_space<vmem>>, %arg9: memref<18x18x4xf32, #tpu.memory_space<vmem>>, %arg10: memref<18x18x4xf32, #tpu.memory_space<vmem>>) attributes {dimension_semantics = [#tpu.dimension_semantics<parallel>], iteration_bounds = array<i64: 2>, scalar_prefetch = 0 : i64, scratch_operands = 2 : i64, tpu.core_type = #tpu.core_type<tc>, window_params = [{transform_indices = @transform_0, window_bounds = array<i64: 1, 16, 16, 4>}, {pipeline_mode = #tpu.pipeline_mode<synchronous>, transform_indices = @transform_1, window_bounds = array<i64: 36, 4>}, {pipeline_mode = #tpu.pipeline_mode<synchronous>, transform_indices = @transform_2, window_bounds = array<i64: 1, 4>}, {pipeline_mode = #tpu.pipeline_mode<synchronous>, transform_indices = @transform_3, window_bounds = array<i64: 36, 8>}, {pipeline_mode = #tpu.pipeline_mode<synchronous>, transform_indices = @transform_4, window_bounds = array<i64: 1, 8>}, {pipeline_mode = #tpu.pipeline_mode<synchronous>, transform_indices = @transform_5, window_bounds = array<i64: 4, 8>}, {pipeline_mode = #tpu.pipeline_mode<synchronous>, transform_indices = @transform_6, window_bounds = array<i64: 1, 8>}, {transform_indices = @transform_7, window_bounds = array<i64: 1, 64, 8>}]} {
    %cst = arith.constant 0.000000e+00 : f32
    %0 = vector.broadcast %cst : f32 to vector<1x18x4xf32>
    %cst_0 = arith.constant 0.000000e+00 : f32
    %1 = vector.broadcast %cst_0 : f32 to vector<18x1x4xf32>
    %c0 = arith.constant 0 : index
    %c0_1 = arith.constant 0 : index
    %c0_2 = arith.constant 0 : index
    %2 = vector.load %arg9[%c0, %c0_1, %c0_2] : memref<18x18x4xf32, #tpu.memory_space<vmem>>, vector<1x18x4xf32>
    tpu.vector_store %arg9[%c0, %c0_1, %c0_2], %0 {strides = array<i32>} : memref<18x18x4xf32, #tpu.memory_space<vmem>>, vector<1x18x4xf32>,
    %c17 = arith.constant 17 : index
    %c0_3 = arith.constant 0 : index
    %c0_4 = arith.constant 0 : index
    %3 = vector.load %arg9[%c17, %c0_3, %c0_4] : memref<18x18x4xf32, #tpu.memory_space<vmem>>, vector<1x18x4xf32>
    tpu.vector_store %arg9[%c17, %c0_3, %c0_4], %0 {strides = array<i32>} : memref<18x18x4xf32, #tpu.memory_space<vmem>>, vector<1x18x4xf32>,
    %c0_5 = arith.constant 0 : index
    %c0_6 = arith.constant 0 : index
    %c0_7 = arith.constant 0 : index
    %4 = vector.load %arg9[%c0_5, %c0_6, %c0_7] : memref<18x18x4xf32, #tpu.memory_space<vmem>>, vector<18x1x4xf32>
    tpu.vector_store %arg9[%c0_5, %c0_6, %c0_7], %1 {strides = array<i32>} : memref<18x18x4xf32, #tpu.memory_space<vmem>>, vector<18x1x4xf32>,
    %c0_8 = arith.constant 0 : index
    %c17_9 = arith.constant 17 : index
    %c0_10 = arith.constant 0 : index
    %5 = vector.load %arg9[%c0_8, %c17_9, %c0_10] : memref<18x18x4xf32, #tpu.memory_space<vmem>>, vector<18x1x4xf32>
    tpu.vector_store %arg9[%c0_8, %c17_9, %c0_10], %1 {strides = array<i32>} : memref<18x18x4xf32, #tpu.memory_space<vmem>>, vector<18x1x4xf32>,
    %c0_11 = arith.constant 0 : index
    %c0_12 = arith.constant 0 : index
    %c0_13 = arith.constant 0 : index
    %6 = vector.load %arg10[%c0_11, %c0_12, %c0_13] : memref<18x18x4xf32, #tpu.memory_space<vmem>>, vector<1x18x4xf32>
    tpu.vector_store %arg10[%c0_11, %c0_12, %c0_13], %0 {strides = array<i32>} : memref<18x18x4xf32, #tpu.memory_space<vmem>>, vector<1x18x4xf32>,
    %c17_14 = arith.constant 17 : index
    %c0_15 = arith.constant 0 : index
    %c0_16 = arith.constant 0 : index
    %7 = vector.load %arg10[%c17_14, %c0_15, %c0_16] : memref<18x18x4xf32, #tpu.memory_space<vmem>>, vector<1x18x4xf32>
    tpu.vector_store %arg10[%c17_14, %c0_15, %c0_16], %0 {strides = array<i32>} : memref<18x18x4xf32, #tpu.memory_space<vmem>>, vector<1x18x4xf32>,
    %c0_17 = arith.constant 0 : index
    %c0_18 = arith.constant 0 : index
    %c0_19 = arith.constant 0 : index
    %8 = vector.load %arg10[%c0_17, %c0_18, %c0_19] : memref<18x18x4xf32, #tpu.memory_space<vmem>>, vector<18x1x4xf32>
    tpu.vector_store %arg10[%c0_17, %c0_18, %c0_19], %1 {strides = array<i32>} : memref<18x18x4xf32, #tpu.memory_space<vmem>>, vector<18x1x4xf32>,
    %c0_20 = arith.constant 0 : index
    %c17_21 = arith.constant 17 : index
    %c0_22 = arith.constant 0 : index
    %9 = vector.load %arg10[%c0_20, %c17_21, %c0_22] : memref<18x18x4xf32, #tpu.memory_space<vmem>>, vector<18x1x4xf32>
    tpu.vector_store %arg10[%c0_20, %c17_21, %c0_22], %1 {strides = array<i32>} : memref<18x18x4xf32, #tpu.memory_space<vmem>>, vector<18x1x4xf32>,
    %c0_23 = arith.constant 0 : index
    %c0_24 = arith.constant 0 : index
    %c0_25 = arith.constant 0 : index
    %c0_26 = arith.constant 0 : index
    %10 = vector.load %arg1[%c0_23, %c0_24, %c0_25, %c0_26] : memref<1x16x16x4xf32, #tpu.memory_space<vmem>>, vector<1x16x16x4xf32>
    %11 = vector.shape_cast %10 : vector<1x16x16x4xf32> to vector<16x16x4xf32>
    %c1 = arith.constant 1 : index
    %c1_27 = arith.constant 1 : index
    %c0_28 = arith.constant 0 : index
    %12 = vector.load %arg9[%c1, %c1_27, %c0_28] : memref<18x18x4xf32, #tpu.memory_space<vmem>>, vector<16x16x4xf32>
    tpu.vector_store %arg9[%c1, %c1_27, %c0_28], %11 {strides = array<i32>} : memref<18x18x4xf32, #tpu.memory_space<vmem>>, vector<16x16x4xf32>,
    %c0_29 = arith.constant 0 : index
    %c0_30 = arith.constant 0 : index
    %c0_31 = arith.constant 0 : index
    %13 = vector.load %arg9[%c0_29, %c0_30, %c0_31] : memref<18x18x4xf32, #tpu.memory_space<vmem>>, vector<16x16x4xf32>
    %14 = vector.shape_cast %13 : vector<16x16x4xf32> to vector<256x4xf32>
    %c0_32 = arith.constant 0 : index
    %c1_33 = arith.constant 1 : index
    %c0_34 = arith.constant 0 : index
    %15 = vector.load %arg9[%c0_32, %c1_33, %c0_34] : memref<18x18x4xf32, #tpu.memory_space<vmem>>, vector<16x16x4xf32>
    %16 = vector.shape_cast %15 : vector<16x16x4xf32> to vector<256x4xf32>
    %c0_35 = arith.constant 0 : index
    %c2 = arith.constant 2 : index
    %c0_36 = arith.constant 0 : index
    %17 = vector.load %arg9[%c0_35, %c2, %c0_36] : memref<18x18x4xf32, #tpu.memory_space<vmem>>, vector<16x16x4xf32>
    %18 = vector.shape_cast %17 : vector<16x16x4xf32> to vector<256x4xf32>
    %c1_37 = arith.constant 1 : index
    %c0_38 = arith.constant 0 : index
    %c0_39 = arith.constant 0 : index
    %19 = vector.load %arg9[%c1_37, %c0_38, %c0_39] : memref<18x18x4xf32, #tpu.memory_space<vmem>>, vector<16x16x4xf32>
    %20 = vector.shape_cast %19 : vector<16x16x4xf32> to vector<256x4xf32>
    %c1_40 = arith.constant 1 : index
    %c1_41 = arith.constant 1 : index
    %c0_42 = arith.constant 0 : index
    %21 = vector.load %arg9[%c1_40, %c1_41, %c0_42] : memref<18x18x4xf32, #tpu.memory_space<vmem>>, vector<16x16x4xf32>
    %22 = vector.shape_cast %21 : vector<16x16x4xf32> to vector<256x4xf32>
    %c1_43 = arith.constant 1 : index
    %c2_44 = arith.constant 2 : index
    %c0_45 = arith.constant 0 : index
    %23 = vector.load %arg9[%c1_43, %c2_44, %c0_45] : memref<18x18x4xf32, #tpu.memory_space<vmem>>, vector<16x16x4xf32>
    %24 = vector.shape_cast %23 : vector<16x16x4xf32> to vector<256x4xf32>
    %c2_46 = arith.constant 2 : index
    %c0_47 = arith.constant 0 : index
    %c0_48 = arith.constant 0 : index
    %25 = vector.load %arg9[%c2_46, %c0_47, %c0_48] : memref<18x18x4xf32, #tpu.memory_space<vmem>>, vector<16x16x4xf32>
    %26 = vector.shape_cast %25 : vector<16x16x4xf32> to vector<256x4xf32>
    %c2_49 = arith.constant 2 : index
    %c1_50 = arith.constant 1 : index
    %c0_51 = arith.constant 0 : index
    %27 = vector.load %arg9[%c2_49, %c1_50, %c0_51] : memref<18x18x4xf32, #tpu.memory_space<vmem>>, vector<16x16x4xf32>
    %28 = vector.shape_cast %27 : vector<16x16x4xf32> to vector<256x4xf32>
    %c2_52 = arith.constant 2 : index
    %c2_53 = arith.constant 2 : index
    %c0_54 = arith.constant 0 : index
    %29 = vector.load %arg9[%c2_52, %c2_53, %c0_54] : memref<18x18x4xf32, #tpu.memory_space<vmem>>, vector<16x16x4xf32>
    %30 = vector.shape_cast %29 : vector<16x16x4xf32> to vector<256x4xf32>
    %31 = tpu.concatenate %14, %16, %18, %20, %22, %24, %26, %28, %30 in 1 : vector<256x4xf32>, vector<256x4xf32>, vector<256x4xf32>, vector<256x4xf32>, vector<256x4xf32>, vector<256x4xf32>, vector<256x4xf32>, vector<256x4xf32>, vector<256x4xf32> -> vector<256x36xf32>
    %32 = arith.truncf %31 : vector<256x36xf32> to vector<256x36xbf16>
    %c0_55 = arith.constant 0 : index
    %c0_56 = arith.constant 0 : index
    %33 = vector.load %arg2[%c0_55, %c0_56] : memref<36x4xbf16, #tpu.memory_space<vmem>>, vector<36x4xbf16>
    %cst_57 = arith.constant dense<0.000000e+00> : vector<256x4xf32>
    %34 = tpu.matmul %32, %33, %cst_57 {dimension_numbers = #tpu.dot_dimension_numbers<[1], [0], [0], [1], [0, 0, 1, 1], [], []>} : vector<256x36xbf16>, vector<36x4xbf16>, vector<256x4xf32> -> vector<256x4xf32>
    %c0_58 = arith.constant 0 : index
    %c0_59 = arith.constant 0 : index
    %35 = vector.load %arg3[%c0_58, %c0_59] : memref<1x4xf32, #tpu.memory_space<vmem>>, vector<1x4xf32>
    %36 = vector.broadcast %35 : vector<1x4xf32> to vector<256x4xf32>
    %37 = arith.addf %34, %36 : vector<256x4xf32>
    %cst_60 = arith.constant 0.000000e+00 : f32
    %38 = vector.broadcast %cst_60 : f32 to vector<256x4xf32>
    %39 = arith.cmpf ogt, %37, %38 : vector<256x4xf32>
    %cst_61 = arith.constant 2.000000e-01 : f32
    %40 = vector.broadcast %cst_61 : f32 to vector<256x4xf32>
    %41 = arith.mulf %40, %37 : vector<256x4xf32>
    %42 = arith.select %39, %37, %41 : vector<256x4xi1>, vector<256x4xf32>
    %43 = vector.shape_cast %42 : vector<256x4xf32> to vector<16x16x4xf32>
    %c1_62 = arith.constant 1 : index
    %c1_63 = arith.constant 1 : index
    %c0_64 = arith.constant 0 : index
    %44 = vector.load %arg10[%c1_62, %c1_63, %c0_64] : memref<18x18x4xf32, #tpu.memory_space<vmem>>, vector<16x16x4xf32>
    tpu.vector_store %arg10[%c1_62, %c1_63, %c0_64], %43 {strides = array<i32>} : memref<18x18x4xf32, #tpu.memory_space<vmem>>, vector<16x16x4xf32>,
    %c0_65 = arith.constant 0 : index
    %c0_66 = arith.constant 0 : index
    %c0_67 = arith.constant 0 : index
    %45 = vector.load %arg10[%c0_65, %c0_66, %c0_67] : memref<18x18x4xf32, #tpu.memory_space<vmem>>, vector<16x16x4xf32>
    %46 = vector.shape_cast %45 : vector<16x16x4xf32> to vector<256x4xf32>
    %c0_68 = arith.constant 0 : index
    %c1_69 = arith.constant 1 : index
    %c0_70 = arith.constant 0 : index
    %47 = vector.load %arg10[%c0_68, %c1_69, %c0_70] : memref<18x18x4xf32, #tpu.memory_space<vmem>>, vector<16x16x4xf32>
    %48 = vector.shape_cast %47 : vector<16x16x4xf32> to vector<256x4xf32>
    %c0_71 = arith.constant 0 : index
    %c2_72 = arith.constant 2 : index
    %c0_73 = arith.constant 0 : index
    %49 = vector.load %arg10[%c0_71, %c2_72, %c0_73] : memref<18x18x4xf32, #tpu.memory_space<vmem>>, vector<16x16x4xf32>
    %50 = vector.shape_cast %49 : vector<16x16x4xf32> to vector<256x4xf32>
    %c1_74 = arith.constant 1 : index
    %c0_75 = arith.constant 0 : index
    %c0_76 = arith.constant 0 : index
    %51 = vector.load %arg10[%c1_74, %c0_75, %c0_76] : memref<18x18x4xf32, #tpu.memory_space<vmem>>, vector<16x16x4xf32>
    %52 = vector.shape_cast %51 : vector<16x16x4xf32> to vector<256x4xf32>
    %c1_77 = arith.constant 1 : index
    %c1_78 = arith.constant 1 : index
    %c0_79 = arith.constant 0 : index
    %53 = vector.load %arg10[%c1_77, %c1_78, %c0_79] : memref<18x18x4xf32, #tpu.memory_space<vmem>>, vector<16x16x4xf32>
    %54 = vector.shape_cast %53 : vector<16x16x4xf32> to vector<256x4xf32>
    %c1_80 = arith.constant 1 : index
    %c2_81 = arith.constant 2 : index
    %c0_82 = arith.constant 0 : index
    %55 = vector.load %arg10[%c1_80, %c2_81, %c0_82] : memref<18x18x4xf32, #tpu.memory_space<vmem>>, vector<16x16x4xf32>
    %56 = vector.shape_cast %55 : vector<16x16x4xf32> to vector<256x4xf32>
    %c2_83 = arith.constant 2 : index
    %c0_84 = arith.constant 0 : index
    %c0_85 = arith.constant 0 : index
    %57 = vector.load %arg10[%c2_83, %c0_84, %c0_85] : memref<18x18x4xf32, #tpu.memory_space<vmem>>, vector<16x16x4xf32>
    %58 = vector.shape_cast %57 : vector<16x16x4xf32> to vector<256x4xf32>
    %c2_86 = arith.constant 2 : index
    %c1_87 = arith.constant 1 : index
    %c0_88 = arith.constant 0 : index
    %59 = vector.load %arg10[%c2_86, %c1_87, %c0_88] : memref<18x18x4xf32, #tpu.memory_space<vmem>>, vector<16x16x4xf32>
    %60 = vector.shape_cast %59 : vector<16x16x4xf32> to vector<256x4xf32>
    %c2_89 = arith.constant 2 : index
    %c2_90 = arith.constant 2 : index
    %c0_91 = arith.constant 0 : index
    %61 = vector.load %arg10[%c2_89, %c2_90, %c0_91] : memref<18x18x4xf32, #tpu.memory_space<vmem>>, vector<16x16x4xf32>
    %62 = vector.shape_cast %61 : vector<16x16x4xf32> to vector<256x4xf32>
    %63 = tpu.concatenate %46, %48, %50, %52, %54, %56, %58, %60, %62 in 1 : vector<256x4xf32>, vector<256x4xf32>, vector<256x4xf32>, vector<256x4xf32>, vector<256x4xf32>, vector<256x4xf32>, vector<256x4xf32>, vector<256x4xf32>, vector<256x4xf32> -> vector<256x36xf32>
    %64 = arith.truncf %63 : vector<256x36xf32> to vector<256x36xbf16>
    %c0_92 = arith.constant 0 : index
    %c0_93 = arith.constant 0 : index
    %65 = vector.load %arg4[%c0_92, %c0_93] : memref<36x8xbf16, #tpu.memory_space<vmem>>, vector<36x8xbf16>
    %cst_94 = arith.constant dense<0.000000e+00> : vector<256x8xf32>
    %66 = tpu.matmul %64, %65, %cst_94 {dimension_numbers = #tpu.dot_dimension_numbers<[1], [0], [0], [1], [0, 0, 1, 1], [], []>} : vector<256x36xbf16>, vector<36x8xbf16>, vector<256x8xf32> -> vector<256x8xf32>
    %c0_95 = arith.constant 0 : index
    %c0_96 = arith.constant 0 : index
    %67 = vector.load %arg5[%c0_95, %c0_96] : memref<1x8xf32, #tpu.memory_space<vmem>>, vector<1x8xf32>
    %68 = vector.broadcast %67 : vector<1x8xf32> to vector<256x8xf32>
    %69 = arith.addf %66, %68 : vector<256x8xf32>
    %cst_97 = arith.constant 0.000000e+00 : f32
    %70 = vector.broadcast %cst_97 : f32 to vector<256x8xf32>
    %71 = arith.cmpf ogt, %69, %70 : vector<256x8xf32>
    %cst_98 = arith.constant 2.000000e-01 : f32
    %72 = vector.broadcast %cst_98 : f32 to vector<256x8xf32>
    %73 = arith.mulf %72, %69 : vector<256x8xf32>
    %74 = arith.select %71, %69, %73 : vector<256x8xi1>, vector<256x8xf32>
    %75 = vector.shape_cast %74 : vector<256x8xf32> to vector<16x16x8xf32>
    %76 = vector.shape_cast %75 : vector<16x16x8xf32> to vector<8x2x16x8xf32>
    %77 = vector.extract_strided_slice %76 {offsets = [0, 0, 0, 0], sizes = [8, 1, 16, 8], strides = [1, 1, 1, 1]} : vector<8x2x16x8xf32> to vector<8x1x16x8xf32>
    %78 = vector.shape_cast %77 : vector<8x1x16x8xf32> to vector<8x16x8xf32>
    %79 = vector.extract_strided_slice %76 {offsets = [0, 1, 0, 0], sizes = [8, 1, 16, 8], strides = [1, 1, 1, 1]} : vector<8x2x16x8xf32> to vector<8x1x16x8xf32>
    %80 = vector.shape_cast %79 : vector<8x1x16x8xf32> to vector<8x16x8xf32>
    %81 = arith.addf %78, %80 : vector<8x16x8xf32>
    %82 = vector.shape_cast %81 : vector<8x16x8xf32> to vector<8x8x2x8xf32>
    %83 = vector.extract_strided_slice %82 {offsets = [0, 0, 0, 0], sizes = [8, 8, 1, 8], strides = [1, 1, 1, 1]} : vector<8x8x2x8xf32> to vector<8x8x1x8xf32>
    %84 = vector.shape_cast %83 : vector<8x8x1x8xf32> to vector<8x8x8xf32>
    %85 = vector.extract_strided_slice %82 {offsets = [0, 0, 1, 0], sizes = [8, 8, 1, 8], strides = [1, 1, 1, 1]} : vector<8x8x2x8xf32> to vector<8x8x1x8xf32>
    %86 = vector.shape_cast %85 : vector<8x8x1x8xf32> to vector<8x8x8xf32>
    %87 = arith.addf %84, %86 : vector<8x8x8xf32>
    %cst_99 = arith.constant 2.500000e-01 : f32
    %88 = vector.broadcast %cst_99 : f32 to vector<8x8x8xf32>
    %89 = arith.mulf %87, %88 : vector<8x8x8xf32>
    %90 = vector.shape_cast %89 : vector<8x8x8xf32> to vector<64x8xf32>
    %c0_100 = arith.constant 0 : index
    %c0_101 = arith.constant 0 : index
    %c0_102 = arith.constant 0 : index
    %c0_103 = arith.constant 0 : index
    %91 = vector.load %arg1[%c0_100, %c0_101, %c0_102, %c0_103] : memref<1x16x16x4xf32, #tpu.memory_space<vmem>>, vector<1x16x16x4xf32>
    %92 = vector.shape_cast %91 : vector<1x16x16x4xf32> to vector<16x16x4xf32>
    %93 = vector.shape_cast %92 : vector<16x16x4xf32> to vector<8x2x16x4xf32>
    %94 = vector.extract_strided_slice %93 {offsets = [0, 0, 0, 0], sizes = [8, 1, 16, 4], strides = [1, 1, 1, 1]} : vector<8x2x16x4xf32> to vector<8x1x16x4xf32>
    %95 = vector.shape_cast %94 : vector<8x1x16x4xf32> to vector<8x16x4xf32>
    %96 = vector.extract_strided_slice %93 {offsets = [0, 1, 0, 0], sizes = [8, 1, 16, 4], strides = [1, 1, 1, 1]} : vector<8x2x16x4xf32> to vector<8x1x16x4xf32>
    %97 = vector.shape_cast %96 : vector<8x1x16x4xf32> to vector<8x16x4xf32>
    %98 = arith.addf %95, %97 : vector<8x16x4xf32>
    %99 = vector.shape_cast %98 : vector<8x16x4xf32> to vector<8x8x2x4xf32>
    %100 = vector.extract_strided_slice %99 {offsets = [0, 0, 0, 0], sizes = [8, 8, 1, 4], strides = [1, 1, 1, 1]} : vector<8x8x2x4xf32> to vector<8x8x1x4xf32>
    %101 = vector.shape_cast %100 : vector<8x8x1x4xf32> to vector<8x8x4xf32>
    %102 = vector.extract_strided_slice %99 {offsets = [0, 0, 1, 0], sizes = [8, 8, 1, 4], strides = [1, 1, 1, 1]} : vector<8x8x2x4xf32> to vector<8x8x1x4xf32>
    %103 = vector.shape_cast %102 : vector<8x8x1x4xf32> to vector<8x8x4xf32>
    %104 = arith.addf %101, %103 : vector<8x8x4xf32>
    %cst_104 = arith.constant 2.500000e-01 : f32
    %105 = vector.broadcast %cst_104 : f32 to vector<8x8x4xf32>
    %106 = arith.mulf %104, %105 : vector<8x8x4xf32>
    %107 = vector.shape_cast %106 : vector<8x8x4xf32> to vector<64x4xf32>
    %108 = arith.truncf %107 : vector<64x4xf32> to vector<64x4xbf16>
    %c0_105 = arith.constant 0 : index
    %c0_106 = arith.constant 0 : index
    %109 = vector.load %arg6[%c0_105, %c0_106] : memref<4x8xbf16, #tpu.memory_space<vmem>>, vector<4x8xbf16>
    %cst_107 = arith.constant dense<0.000000e+00> : vector<64x8xf32>
    %110 = tpu.matmul %108, %109, %cst_107 {dimension_numbers = #tpu.dot_dimension_numbers<[1], [0], [0], [1], [0, 0, 1, 1], [], []>} : vector<64x4xbf16>, vector<4x8xbf16>, vector<64x8xf32> -> vector<64x8xf32>
    %c0_108 = arith.constant 0 : index
    %c0_109 = arith.constant 0 : index
    %111 = vector.load %arg7[%c0_108, %c0_109] : memref<1x8xf32, #tpu.memory_space<vmem>>, vector<1x8xf32>
    %112 = vector.broadcast %111 : vector<1x8xf32> to vector<64x8xf32>
    %113 = arith.addf %110, %112 : vector<64x8xf32>
    %114 = arith.addf %90, %113 : vector<64x8xf32>
    %cst_110 = arith.constant 0.707106769 : f32
    %115 = vector.broadcast %cst_110 : f32 to vector<64x8xf32>
    %116 = arith.mulf %114, %115 : vector<64x8xf32>
    %c0_111 = arith.constant 0 : index
    %c0_112 = arith.constant 0 : index
    %c0_113 = arith.constant 0 : index
    %117 = vector.load %arg8[%c0_111, %c0_112, %c0_113] : memref<1x64x8xf32, #tpu.memory_space<vmem>>, vector<1x64x8xf32>
    %118 = vector.shape_cast %117 : vector<1x64x8xf32> to vector<64x8xf32>
    %119 = vector.shape_cast %116 : vector<64x8xf32> to vector<1x64x8xf32>
    tpu.vector_store %arg8[%c0_111, %c0_112, %c0_113], %119 {strides = array<i32>} : memref<1x64x8xf32, #tpu.memory_space<vmem>>, vector<1x64x8xf32>,
    return
  }
  func.func @transform_0(%arg0: i32) -> (i32, i32, i32, i32) {
    %c0_i32 = arith.constant 0 : i32
    %c0_i32_0 = arith.constant 0 : i32
    %c0_i32_1 = arith.constant 0 : i32
    %c0_i32_2 = arith.constant 0 : i32
    return %arg0, %c0_i32, %c0_i32_0, %c0_i32_1 : i32, i32, i32, i32
  }
  func.func @transform_1(%arg0: i32) -> (i32, i32) {
    %c0_i32 = arith.constant 0 : i32
    %c0_i32_0 = arith.constant 0 : i32
    %c0_i32_1 = arith.constant 0 : i32
    return %c0_i32, %c0_i32_0 : i32, i32
  }
  func.func @transform_2(%arg0: i32) -> (i32, i32) {
    %c0_i32 = arith.constant 0 : i32
    %c0_i32_0 = arith.constant 0 : i32
    %c0_i32_1 = arith.constant 0 : i32
    return %c0_i32, %c0_i32_0 : i32, i32
  }
  func.func @transform_3(%arg0: i32) -> (i32, i32) {
    %c0_i32 = arith.constant 0 : i32
    %c0_i32_0 = arith.constant 0 : i32
    %c0_i32_1 = arith.constant 0 : i32
    return %c0_i32, %c0_i32_0 : i32, i32
  }
  func.func @transform_4(%arg0: i32) -> (i32, i32) {
    %c0_i32 = arith.constant 0 : i32
    %c0_i32_0 = arith.constant 0 : i32
    %c0_i32_1 = arith.constant 0 : i32
    return %c0_i32, %c0_i32_0 : i32, i32
  }
  func.func @transform_5(%arg0: i32) -> (i32, i32) {
    %c0_i32 = arith.constant 0 : i32
    %c0_i32_0 = arith.constant 0 : i32
    %c0_i32_1 = arith.constant 0 : i32
    return %c0_i32, %c0_i32_0 : i32, i32
  }
  func.func @transform_6(%arg0: i32) -> (i32, i32) {
    %c0_i32 = arith.constant 0 : i32
    %c0_i32_0 = arith.constant 0 : i32
    %c0_i32_1 = arith.constant 0 : i32
    return %c0_i32, %c0_i32_0 : i32, i32
  }
  func.func @transform_7(%arg0: i32) -> (i32, i32, i32) {
    %c0_i32 = arith.constant 0 : i32
    %c0_i32_0 = arith.constant 0 : i32
    %c0_i32_1 = arith.constant 0 : i32
    return %arg0, %c0_i32, %c0_i32_0 : i32, i32, i32
  }
}

</mosaic_0001>

<bundles_post_ra>
// kernel: discriminator_block.1
= control target key start
LH: loop header
LB: loop body
LE: loop exit
PB: predicated region body
PF: predicated region fallthrough
CT: control target
= control target key end

     0   :  { %s8637_s24 = smov 0   ;;  %s11967_s0 = inlined_call_operand.vmem [shape: f32[2,16,16,4], index: 0, kind: input, shape index: {}]   ;;  %s11968_s1 = inlined_call_operand.vmem [shape: bf16[36,4], index: 1, kind: input, shape index: {}]   ;;  %s11969_s2 = inlined_call_operand.vmem [shape: f32[1,4], index: 2, kind: input, shape index: {}]   ;;  %s11970_s3 = inlined_call_operand.vmem [shape: bf16[36,8], index: 3, kind: input, shape index: {}]   ;;  %s11971_s4 = inlined_call_operand.vmem [shape: f32[1,8], index: 4, kind: input, shape index: {}]   ;;  %s11972_s5 = inlined_call_operand.vmem [shape: bf16[4,8], index: 5, kind: input, shape index: {}]   ;;  %s11973_s6 = inlined_call_operand.vmem [shape: f32[1,8], index: 6, kind: input, shape index: {}]   ;;  %s11974_s7 = inlined_call_operand.vmem [shape: f32[2,64,8], index: 7, kind: output, shape index: {}]  }
   0x1 LB: > { %s6942_s25 = sadd.s32 4294967295, %s8585_s24   ;;  %p6946_p0 = scmp.ge.s32.totalorder %s8585_s24, 1  ;;  %s8585_s24 = sphi %s8637_s24, %s17_s24  }
   0x2   : > { %p237_p1 = scmp.lt.s32.totalorder %s8585_s24, 3 }
   0x4   : > { %p238_p2 = pnand %p6946_p0, %p237_p1 }
   0x6   : > { %241 = sbr.rel (%p238_p2) target bundleno = 1252 (0x4e4), region = 48 }
   0xd   : > { %vm280_vm0 = vcmask 31744   ;;  %vm283_vm1 = vcmask 25600   ;;  %vm289_vm2 = vcmask 24576   ;;  %p8647_p3 = scmp.lt.s32.totalorder %s6942_s25, 1  ;;  %v8587_v0 = vmov 0.0   ;;  %s8588_s8 = smov 4  }
   0xe   : > { %281 = vst.msk [vmem:[#allocation2] sm:$0xff] %vm280_vm0, %v8587_v0  ;;  %282 = vst.msk [vmem:[#allocation2 + $0x8] sm:$0xff] %vm280_vm0, %v8587_v0  ;;  %s8589_s9 = smov 8   ;;  %s8590_s10 = smov 12   ;;  %vm2102_vm3 = vcmask 1041408   ;;  %vm1779_vm4 = vcmask 64512  }
   0xf   : > { %284 = vst.msk [vmem:[#allocation2 + $0x10] sm:$0x3] %vm283_vm1, %v8587_v0  ;;  %288 = vst.msk [vmem:[#allocation2 + $0x1a8] sm:$0x3] %vm283_vm1, %v8587_v0  ;;  %s12184_s25 = smov (!%p8647_p3, %s6942_s25), 1  ;;  %s8591_s11 = smov 16  }
  0x10   : > { %286 = vst.msk [vmem:[#allocation2 + $0x198] sm:$0xff] %vm280_vm0, %v8587_v0  ;;  %287 = vst.msk [vmem:[#allocation2 + $0x1a0] sm:$0xff] %vm280_vm0, %v8587_v0  ;;  %s7126_s27 = sshll.u32 %s12184_s25, 8  ;;  %s8592_s12 = smov 20   ;;  %vm1812_vm5 = vcmask 97280   ;;  %vm1845_vm6 = vcmask 130048  }
  0x11   : > { %291 = vst.msk [vmem:[#allocation2 + $0x18] sm:$0x1] %vm289_vm2, %v8587_v0  ;;  %292 = vst.msk [vmem:[#allocation2 + $0x30] sm:$0x1] %vm289_vm2, %v8587_v0  ;;  %s8829_s30 = scalar_lea.vmem %s11967_s0, %s7126_s27  ;;  %s8593_s13 = smov 24   ;;  %vm1878_vm7 = vcmask 162816  }
  0x12   : > { %293 = vst.msk [vmem:[#allocation2 + $0x48] sm:$0x1] %vm289_vm2, %v8587_v0  ;;  %294 = vst.msk [vmem:[#allocation2 + $0x60] sm:$0x1] %vm289_vm2, %v8587_v0  ;;  %v371_v1 = vld [vmem:[%s8829_s30 + $0x10] sm:$0xff]  ;;  %v372_v2 = vld [vmem:[%s8829_s30 + $0x18] sm:$0xff] }
  0x13   : > { %295 = vst.msk [vmem:[#allocation2 + $0x78] sm:$0x1] %vm289_vm2, %v8587_v0  ;;  %296 = vst.msk [vmem:[#allocation2 + $0x90] sm:$0x1] %vm289_vm2, %v8587_v0  ;;  %v369_v3 = vld [vmem:[%s8829_s30] sm:$0xff]  ;;  %v370_v4 = vld [vmem:[%s8829_s30 + $0x8] sm:$0xff] }
  0x14   : > { %297 = vst.msk [vmem:[#allocation2 + $0xa8] sm:$0x1] %vm289_vm2, %v8587_v0  ;;  %298 = vst.msk [vmem:[#allocation2 + $0xc0] sm:$0x1] %vm289_vm2, %v8587_v0  ;;  %v373_v5 = vld [vmem:[%s8829_s30 + $0x20] sm:$0xff]  ;;  %v374_v6 = vld [vmem:[%s8829_s30 + $0x28] sm:$0xff] }
  0x15   : > { %299 = vst.msk [vmem:[#allocation2 + $0xd8] sm:$0x1] %vm289_vm2, %v8587_v0  ;;  %300 = vst.msk [vmem:[#allocation2 + $0xf0] sm:$0x1] %vm289_vm2, %v8587_v0  ;;  %v466_v7 = vld [vmem:[#allocation2 + $0x1] sm:$0xff]  ;;  %v375_v9 = vld [vmem:[%s8829_s30 + $0x30] sm:$0xff] }
  0x16   : > { %301 = vst.msk [vmem:[#allocation2 + $0x108] sm:$0x1] %vm289_vm2, %v8587_v0  ;;  %302 = vst.msk [vmem:[#allocation2 + $0x120] sm:$0x1] %vm289_vm2, %v8587_v0  ;;  %v467_v8 = vld [vmem:[#allocation2 + $0x9] sm:$0xff]  ;;  %v376_v11 = vld [vmem:[%s8829_s30 + $0x38] sm:$0xff] }
  0x17   : > { %303 = vst.msk [vmem:[#allocation2 + $0x138] sm:$0x1] %vm289_vm2, %v8587_v0  ;;  %304 = vst.msk [vmem:[#allocation2 + $0x150] sm:$0x1] %vm289_vm2, %v8587_v0  ;;  %v7281_v10 = vpack.i.bf16 %v467_v8, %v466_v7  ;;  %v377_v12 = vld [vmem:[%s8829_s30 + $0x40] sm:$0xff]  ;;  %v378_v13 = vld [vmem:[%s8829_s30 + $0x48] sm:$0xff] }
  0x18   : > { %305 = vst.msk [vmem:[#allocation2 + $0x168] sm:$0x1] %vm289_vm2, %v8587_v0  ;;  %306 = vst.msk [vmem:[#allocation2 + $0x180] sm:$0x1] %vm289_vm2, %v8587_v0  ;;  %v379_v14 = vld [vmem:[%s8829_s30 + $0x50] sm:$0xff]  ;;  %v380_v15 = vld [vmem:[%s8829_s30 + $0x58] sm:$0xff] }
  0x19   : > { %309 = vst.msk [vmem:[#allocation2 + $0x29] sm:$0x1] %vm289_vm2, %v8587_v0  ;;  %310 = vst.msk [vmem:[#allocation2 + $0x41] sm:$0x1] %vm289_vm2, %v8587_v0  ;;  %v381_v16 = vld [vmem:[%s8829_s30 + $0x60] sm:$0xff]  ;;  %7282 = vrot.lane.b32.xlu0 %v7281_v10, %s8588_s8  ;;  %v382_v17 = vld [vmem:[%s8829_s30 + $0x68] sm:$0xff] }
  0x1a   : > { %311 = vst.msk [vmem:[#allocation2 + $0x59] sm:$0x1] %vm289_vm2, %v8587_v0  ;;  %312 = vst.msk [vmem:[#allocation2 + $0x71] sm:$0x1] %vm289_vm2, %v8587_v0  ;;  %v383_v18 = vld [vmem:[%s8829_s30 + $0x70] sm:$0xff]  ;;  %v384_v19 = vld [vmem:[%s8829_s30 + $0x78] sm:$0xff] }
  0x1b   : > { %313 = vst.msk [vmem:[#allocation2 + $0x89] sm:$0x1] %vm289_vm2, %v8587_v0  ;;  %314 = vst.msk [vmem:[#allocation2 + $0xa1] sm:$0x1] %vm289_vm2, %v8587_v0  ;;  %v385_v20 = vld [vmem:[%s8829_s30 + $0x80] sm:$0xff]  ;;  %v386_v21 = vld [vmem:[%s8829_s30 + $0x88] sm:$0xff] }
  0x1c   : > { %315 = vst.msk [vmem:[#allocation2 + $0xb9] sm:$0x1] %vm289_vm2, %v8587_v0  ;;  %316 = vst.msk [vmem:[#allocation2 + $0xd1] sm:$0x1] %vm289_vm2, %v8587_v0  ;;  %v387_v22 = vld [vmem:[%s8829_s30 + $0x90] sm:$0xff]  ;;  %v388_v23 = vld [vmem:[%s8829_s30 + $0x98] sm:$0xff] }
  0x1d   : > { %317 = vst.msk [vmem:[#allocation2 + $0xe9] sm:$0x1] %vm289_vm2, %v8587_v0  ;;  %318 = vst.msk [vmem:[#allocation2 + $0x101] sm:$0x1] %vm289_vm2, %v8587_v0  ;;  %v389_v24 = vld [vmem:[%s8829_s30 + $0xa0] sm:$0xff]  ;;  %v390_v25 = vld [vmem:[%s8829_s30 + $0xa8] sm:$0xff] }
  0x1e   : > { %319 = vst.msk [vmem:[#allocation2 + $0x119] sm:$0x1] %vm289_vm2, %v8587_v0  ;;  %320 = vst.msk [vmem:[#allocation2 + $0x131] sm:$0x1] %vm289_vm2, %v8587_v0  ;;  %v391_v35 = vld [vmem:[%s8829_s30 + $0xb0] sm:$0xff]  ;;  %v392_v36 = vld [vmem:[%s8829_s30 + $0xb8] sm:$0xff] }
  0x1f   : > { %321 = vst.msk [vmem:[#allocation2 + $0x149] sm:$0x1] %vm289_vm2, %v8587_v0  ;;  %322 = vst.msk [vmem:[#allocation2 + $0x161] sm:$0x1] %vm289_vm2, %v8587_v0  ;;  %v393_v50 = vld [vmem:[%s8829_s30 + $0xc0] sm:$0xff]  ;;  %v394_v51 = vld [vmem:[%s8829_s30 + $0xc8] sm:$0xff] }
  0x20   : > { %323 = vst.msk [vmem:[#allocation2 + $0x179] sm:$0x1] %vm289_vm2, %v8587_v0  ;;  %324 = vst.msk [vmem:[#allocation2 + $0x191] sm:$0x1] %vm289_vm2, %v8587_v0  ;;  %v395_v52 = vld [vmem:[%s8829_s30 + $0xd0] sm:$0xff]  ;;  %v396_v53 = vld [vmem:[%s8829_s30 + $0xd8] sm:$0xff] }
  0x21   : > { %326 = vst.msk [vmem:[#allocation3] sm:$0xff] %vm280_vm0, %v8587_v0  ;;  %327 = vst.msk [vmem:[#allocation3 + $0x8] sm:$0xff] %vm280_vm0, %v8587_v0  ;;  %v397_v54 = vld [vmem:[%s8829_s30 + $0xe0] sm:$0xff]  ;;  %v398_v55 = vld [vmem:[%s8829_s30 + $0xe8] sm:$0xff]  ;;  %s8594_s20 = smov 28   ;;  %s8595_s21 = smov 32  }
  0x22   : > { %328 = vst.msk [vmem:[#allocation3 + $0x10] sm:$0x3] %vm283_vm1, %v8587_v0  ;;  %332 = vst.msk [vmem:[#allocation3 + $0x1a8] sm:$0x3] %vm283_vm1, %v8587_v0  ;;  %vm1911_vm8 = vcmask 195584   ;;  %vm1944_vm9 = vcmask 228352  }
  0x23   : > { %330 = vst.msk [vmem:[#allocation3 + $0x198] sm:$0xff] %vm280_vm0, %v8587_v0  ;;  %331 = vst.msk [vmem:[#allocation3 + $0x1a0] sm:$0xff] %vm280_vm0, %v8587_v0  ;;  %vm1977_vm10 = vcmask 261120   ;;  %vm2053_vm11 = vcmask 293888  }
  0x24   : > { %334 = vst.msk [vmem:[#allocation3 + $0x18] sm:$0x1] %vm289_vm2, %v8587_v0  ;;  %335 = vst.msk [vmem:[#allocation3 + $0x30] sm:$0x1] %vm289_vm2, %v8587_v0 }
  0x25   : > { %336 = vst.msk [vmem:[#allocation3 + $0x48] sm:$0x1] %vm289_vm2, %v8587_v0  ;;  %337 = vst.msk [vmem:[#allocation3 + $0x60] sm:$0x1] %vm289_vm2, %v8587_v0 }
  0x26   : > { %338 = vst.msk [vmem:[#allocation3 + $0x78] sm:$0x1] %vm289_vm2, %v8587_v0  ;;  %339 = vst.msk [vmem:[#allocation3 + $0x90] sm:$0x1] %vm289_vm2, %v8587_v0 }
  0x27   : > { %340 = vst.msk [vmem:[#allocation3 + $0xa8] sm:$0x1] %vm289_vm2, %v8587_v0  ;;  %341 = vst.msk [vmem:[#allocation3 + $0xc0] sm:$0x1] %vm289_vm2, %v8587_v0 }
  0x28   : > { %342 = vst.msk [vmem:[#allocation3 + $0xd8] sm:$0x1] %vm289_vm2, %v8587_v0  ;;  %343 = vst.msk [vmem:[#allocation3 + $0xf0] sm:$0x1] %vm289_vm2, %v8587_v0 }
  0x29   : > { %344 = vst.msk [vmem:[#allocation3 + $0x108] sm:$0x1] %vm289_vm2, %v8587_v0  ;;  %345 = vst.msk [vmem:[#allocation3 + $0x120] sm:$0x1] %vm289_vm2, %v8587_v0 }
  0x2a   : > { %346 = vst.msk [vmem:[#allocation3 + $0x138] sm:$0x1] %vm289_vm2, %v8587_v0  ;;  %347 = vst.msk [vmem:[#allocation3 + $0x150] sm:$0x1] %vm289_vm2, %v8587_v0 }
  0x2b   : > { %348 = vst.msk [vmem:[#allocation3 + $0x168] sm:$0x1] %vm289_vm2, %v8587_v0  ;;  %349 = vst.msk [vmem:[#allocation3 + $0x180] sm:$0x1] %vm289_vm2, %v8587_v0 }
  0x2c   : > { %352 = vst.msk [vmem:[#allocation3 + $0x29] sm:$0x1] %vm289_vm2, %v8587_v0  ;;  %353 = vst.msk [vmem:[#allocation3 + $0x41] sm:$0x1] %vm289_vm2, %v8587_v0 }
  0x2d   : > { %354 = vst.msk [vmem:[#allocation3 + $0x59] sm:$0x1] %vm289_vm2, %v8587_v0  ;;  %355 = vst.msk [vmem:[#allocation3 + $0x71] sm:$0x1] %vm289_vm2, %v8587_v0 }
  0x2e   : > { %356 = vst.msk [vmem:[#allocation3 + $0x89] sm:$0x1] %vm289_vm2, %v8587_v0  ;;  %357 = vst.msk [vmem:[#allocation3 + $0xa1] sm:$0x1] %vm289_vm2, %v8587_v0 }
  0x2f   : > { %358 = vst.msk [vmem:[#allocation3 + $0xb9] sm:$0x1] %vm289_vm2, %v8587_v0  ;;  %359 = vst.msk [vmem:[#allocation3 + $0xd1] sm:$0x1] %vm289_vm2, %v8587_v0 }
  0x30   : > { %360 = vst.msk [vmem:[#allocation3 + $0xe9] sm:$0x1] %vm289_vm2, %v8587_v0  ;;  %361 = vst.msk [vmem:[#allocation3 + $0x101] sm:$0x1] %vm289_vm2, %v8587_v0 }
  0x31   : > { %362 = vst.msk [vmem:[#allocation3 + $0x119] sm:$0x1] %vm289_vm2, %v8587_v0  ;;  %363 = vst.msk [vmem:[#allocation3 + $0x131] sm:$0x1] %vm289_vm2, %v8587_v0 }
  0x32   : > { %364 = vst.msk [vmem:[#allocation3 + $0x149] sm:$0x1] %vm289_vm2, %v8587_v0  ;;  %365 = vst.msk [vmem:[#allocation3 + $0x161] sm:$0x1] %vm289_vm2, %v8587_v0 }
  0x33   : > { %366 = vst.msk [vmem:[#allocation3 + $0x179] sm:$0x1] %vm289_vm2, %v8587_v0  ;;  %367 = vst.msk [vmem:[#allocation3 + $0x191] sm:$0x1] %vm289_vm2, %v8587_v0 }
  0x34   : > { %308 = vst.msk [vmem:[#allocation2 + $0x11] sm:$0x1] %vm289_vm2, %v8587_v0  ;;  %290 = vst.msk [vmem:[#allocation2] sm:$0x1] %vm289_vm2, %v8587_v0 }
  0x35   : > { %307 = vst.msk [vmem:[#allocation2 + $0x198] sm:$0x1] %vm289_vm2, %v8587_v0  ;;  %325 = vst.msk [vmem:[#allocation2 + $0x1a9] sm:$0x1] %vm289_vm2, %v8587_v0 }
  0x36   : > { %333 = vst.msk [vmem:[#allocation3] sm:$0x1] %vm289_vm2, %v8587_v0  ;;  %350 = vst.msk [vmem:[#allocation3 + $0x198] sm:$0x1] %vm289_vm2, %v8587_v0 }
  0x37   : > { %351 = vst.msk [vmem:[#allocation3 + $0x11] sm:$0x1] %vm289_vm2, %v8587_v0  ;;  %368 = vst.msk [vmem:[#allocation3 + $0x1a9] sm:$0x1] %vm289_vm2, %v8587_v0 }
  0x38   : > { %404 = vst.msk [vmem:[#allocation2 + $0x31] sm:$0xff] %vm280_vm0, %v371_v1  ;;  %405 = vst.msk [vmem:[#allocation2 + $0x39] sm:$0xff] %vm280_vm0, %v372_v2 }
  0x39   : > { %402 = vst.msk [vmem:[#allocation2 + $0x19] sm:$0xff] %vm280_vm0, %v369_v3  ;;  %403 = vst.msk [vmem:[#allocation2 + $0x21] sm:$0xff] %vm280_vm0, %v370_v4 }
  0x3a   : > { %406 = vst.msk [vmem:[#allocation2 + $0x49] sm:$0xff] %vm280_vm0, %v373_v5  ;;  %407 = vst.msk [vmem:[#allocation2 + $0x51] sm:$0xff] %vm280_vm0, %v374_v6 }
  0x3b   : > { %408 = vst.msk [vmem:[#allocation2 + $0x61] sm:$0xff] %vm280_vm0, %v375_v9  ;;  %409 = vst.msk [vmem:[#allocation2 + $0x69] sm:$0xff] %vm280_vm0, %v376_v11 }
  0x3c   : > { %410 = vst.msk [vmem:[#allocation2 + $0x79] sm:$0xff] %vm280_vm0, %v377_v12  ;;  %411 = vst.msk [vmem:[#allocation2 + $0x81] sm:$0xff] %vm280_vm0, %v378_v13 }
  0x3d   : > { %412 = vst.msk [vmem:[#allocation2 + $0x91] sm:$0xff] %vm280_vm0, %v379_v14  ;;  %413 = vst.msk [vmem:[#allocation2 + $0x99] sm:$0xff] %vm280_vm0, %v380_v15  ;;  %v498_v14 = vld [vmem:[#allocation2 + $0x2] sm:$0xff]  ;;  %v499_v15 = vld [vmem:[#allocation2 + $0xa] sm:$0xff] }
  0x3e   : > { %414 = vst.msk [vmem:[#allocation2 + $0xa9] sm:$0xff] %vm280_vm0, %v381_v16  ;;  %415 = vst.msk [vmem:[#allocation2 + $0xb1] sm:$0xff] %vm280_vm0, %v382_v17  ;;  %v7361_v17 = vpack.i.bf16 %v499_v15, %v498_v14 }
  0x3f   : > { %416 = vst.msk [vmem:[#allocation2 + $0xc1] sm:$0xff] %vm280_vm0, %v383_v18  ;;  %417 = vst.msk [vmem:[#allocation2 + $0xc9] sm:$0xff] %vm280_vm0, %v384_v19  ;;  %v470_v26 = vld [vmem:[#allocation2 + $0x31] sm:$0xff]  ;;  %v471_v27 = vld [vmem:[#allocation2 + $0x39] sm:$0xff] }
  0x40   : > { %418 = vst.msk [vmem:[#allocation2 + $0xd9] sm:$0xff] %vm280_vm0, %v385_v20  ;;  %419 = vst.msk [vmem:[#allocation2 + $0xe1] sm:$0xff] %vm280_vm0, %v386_v21  ;;  %v468_v28 = vld [vmem:[#allocation2 + $0x19] sm:$0xff]  ;;  %v8876_v29 = vpack.i.bf16 %v471_v27, %v470_v26  ;;  %v469_v30 = vld [vmem:[#allocation2 + $0x21] sm:$0xff] }
  0x41   : > { %420 = vst.msk [vmem:[#allocation2 + $0xf1] sm:$0xff] %vm280_vm0, %v387_v22  ;;  %421 = vst.msk [vmem:[#allocation2 + $0xf9] sm:$0xff] %vm280_vm0, %v388_v23  ;;  %v472_v31 = vld [vmem:[#allocation2 + $0x49] sm:$0xff]  ;;  %v473_v32 = vld [vmem:[#allocation2 + $0x51] sm:$0xff]  ;;  %v8878_v33 = vpack.i.bf16 %v469_v30, %v468_v28 }
  0x42   : > { %422 = vst.msk [vmem:[#allocation2 + $0x109] sm:$0xff] %vm280_vm0, %v389_v24  ;;  %423 = vst.msk [vmem:[#allocation2 + $0x111] sm:$0xff] %vm280_vm0, %v390_v25  ;;  %v474_v34 = vld [vmem:[#allocation2 + $0x61] sm:$0xff]  ;;  %7292 = vrot.lane.b32.xlu1 %v8876_v29, %s8588_s8  ;;  %v8884_v37 = vpack.i.bf16 %v473_v32, %v472_v31  ;;  %v475_v38 = vld [vmem:[#allocation2 + $0x69] sm:$0xff] }
  0x43   : > { %424 = vst.msk [vmem:[#allocation2 + $0x121] sm:$0xff] %vm280_vm0, %v391_v35  ;;  %425 = vst.msk [vmem:[#allocation2 + $0x129] sm:$0xff] %vm280_vm0, %v392_v36  ;;  %7287 = vrot.lane.b32.xlu0 %v8878_v33, %s8588_s8  ;;  %v8890_v39 = vpack.i.bf16 %v475_v38, %v474_v34  ;;  %v476_v40 = vld [vmem:[#allocation2 + $0x79] sm:$0xff]  ;;  %v477_v41 = vld [vmem:[#allocation2 + $0x81] sm:$0xff] }
  0x44   : > { %v478_v42 = vld [vmem:[#allocation2 + $0x91] sm:$0xff]  ;;  %v479_v43 = vld [vmem:[#allocation2 + $0x99] sm:$0xff]  ;;  %v8894_v45 = vpack.i.bf16 %v477_v41, %v476_v40  ;;  %426 = vst.msk [vmem:[#allocation2 + $0x139] sm:$0xff] %vm280_vm0, %v393_v50  ;;  %427 = vst.msk [vmem:[#allocation2 + $0x141] sm:$0xff] %vm280_vm0, %v394_v51 }
  0x45   : > { %v480_v44 = vld [vmem:[#allocation2 + $0xa9] sm:$0xff]  ;;  %v481_v46 = vld [vmem:[#allocation2 + $0xb1] sm:$0xff]  ;;  %v8898_v49 = vpack.i.bf16 %v479_v43, %v478_v42  ;;  %428 = vst.msk [vmem:[#allocation2 + $0x151] sm:$0xff] %vm280_vm0, %v395_v52  ;;  %429 = vst.msk [vmem:[#allocation2 + $0x159] sm:$0xff] %vm280_vm0, %v396_v53 }
  0x46   : > { %7297 = vrot.lane.b32.xlu1 %v8884_v37, %s8588_s8  ;;  %v482_v47 = vld [vmem:[#allocation2 + $0xc1] sm:$0xff]  ;;  %v483_v48 = vld [vmem:[#allocation2 + $0xc9] sm:$0xff]  ;;  %430 = vst.msk [vmem:[#allocation2 + $0x169] sm:$0xff] %vm280_vm0, %v397_v54  ;;  %431 = vst.msk [vmem:[#allocation2 + $0x171] sm:$0xff] %vm280_vm0, %v398_v55  ;;  %v8914_v56 = vpack.i.bf16 %v481_v46, %v480_v44 }
  0x47   : > { %7302 = vrot.lane.b32.xlu0 %v8890_v39, %s8588_s8  ;;  %v8918_v57 = vpack.i.bf16 %v483_v48, %v482_v47  ;;  %v484_v58 = vld [vmem:[#allocation2 + $0xd9] sm:$0xff]  ;;  %v485_v59 = vld [vmem:[#allocation2 + $0xe1] sm:$0xff]  ;;  %v504_v24 = vld [vmem:[#allocation2 + $0x4a] sm:$0xff] }
  0x48   : > { %v486_v60 = vld [vmem:[#allocation2 + $0xf1] sm:$0xff]  ;;  %v487_v61 = vld [vmem:[#allocation2 + $0xf9] sm:$0xff]  ;;  %v8922_v62 = vpack.i.bf16 %v485_v59, %v484_v58  ;;  %v501_v19 = vld [vmem:[#allocation2 + $0x22] sm:$0xff] }
  0x49   : > { %v8926_v63 = vpack.i.bf16 %v487_v61, %v486_v60  ;;  %v488_v0 = vld [vmem:[#allocation2 + $0x109] sm:$0xff]  ;;  %v489_v1 = vld [vmem:[#allocation2 + $0x111] sm:$0xff]  ;;  %v500_v18 = vld [vmem:[#allocation2 + $0x1a] sm:$0xff] }
  0x4a   : > { %7307 = vrot.lane.b32.xlu1 %v8894_v45, %s8588_s8  ;;  %v490_v2 = vld [vmem:[#allocation2 + $0x121] sm:$0xff]  ;;  %v491_v3 = vld [vmem:[#allocation2 + $0x129] sm:$0xff]  ;;  %v8930_v4 = vpack.i.bf16 %v489_v1, %v488_v0  ;;  %v502_v20 = vld [vmem:[#allocation2 + $0x32] sm:$0xff]  ;;  %v8952_v22 = vpack.i.bf16 %v501_v19, %v500_v18 }
  0x4b   : > { %7312 = vrot.lane.b32.xlu0 %v8898_v49, %s8588_s8  ;;  %v8934_v5 = vpack.i.bf16 %v491_v3, %v490_v2  ;;  %v492_v6 = vld [vmem:[#allocation2 + $0x139] sm:$0xff]  ;;  %v493_v7 = vld [vmem:[#allocation2 + $0x141] sm:$0xff]  ;;  %v507_v27 = vld [vmem:[#allocation2 + $0x6a] sm:$0xff] }
  0x4c   : > { %v494_v8 = vld [vmem:[#allocation2 + $0x151] sm:$0xff]  ;;  %v495_v9 = vld [vmem:[#allocation2 + $0x159] sm:$0xff]  ;;  %v8938_v10 = vpack.i.bf16 %v493_v7, %v492_v6  ;;  %v506_v26 = vld [vmem:[#allocation2 + $0x62] sm:$0xff] }
  0x4d   : > { %v8942_v11 = vpack.i.bf16 %v495_v9, %v494_v8  ;;  %v496_v12 = vld [vmem:[#allocation2 + $0x169] sm:$0xff]  ;;  %v497_v13 = vld [vmem:[#allocation2 + $0x171] sm:$0xff]  ;;  %v503_v21 = vld [vmem:[#allocation2 + $0x3a] sm:$0xff]  ;;  %v8967_v32 = vpack.i.bf16 %v507_v27, %v506_v26 }
  0x4e   : > { %7317 = vrot.lane.b32.xlu1 %v8914_v56, %s8588_s8  ;;  %v8946_v16 = vpack.i.bf16 %v497_v13, %v496_v12  ;;  %v8955_v23 = vpack.i.bf16 %v503_v21, %v502_v20  ;;  %v505_v25 = vld [vmem:[#allocation2 + $0x52] sm:$0xff]  ;;  %v508_v34 = vld [vmem:[#allocation2 + $0x7a] sm:$0xff]  ;;  %v509_v35 = vld [vmem:[#allocation2 + $0x82] sm:$0xff] }
  0x4f   : > { %7322 = vrot.lane.b32.xlu0 %v8918_v57, %s8588_s8  ;;  %v399_v28 = vld [vmem:[%s8829_s30 + $0xf0] sm:$0xff]  ;;  %v400_v30 = vld [vmem:[%s8829_s30 + $0xf8] sm:$0xff]  ;;  %v8963_v31 = vpack.i.bf16 %v505_v25, %v504_v24  ;;  %v8971_v40 = vpack.i.bf16 %v509_v35, %v508_v34  ;;  %v514_v44 = vld [vmem:[#allocation2 + $0xc2] sm:$0xff] }
  0x50   : > { %432 = vst.msk [vmem:[#allocation2 + $0x181] sm:$0xff] %vm280_vm0, %v399_v28  ;;  %433 = vst.msk [vmem:[#allocation2 + $0x189] sm:$0xff] %vm280_vm0, %v400_v30  ;;  %v510_v36 = vld [vmem:[#allocation2 + $0x92] sm:$0xff]  ;;  %v511_v38 = vld [vmem:[#allocation2 + $0x9a] sm:$0xff] }
  0x51   : > { %v8975_v41 = vpack.i.bf16 %v511_v38, %v510_v36  ;;  %v512_v42 = vld [vmem:[#allocation2 + $0xaa] sm:$0xff]  ;;  %v513_v43 = vld [vmem:[#allocation2 + $0xb2] sm:$0xff]  ;;  %v516_v50 = vld [vmem:[#allocation2 + $0xda] sm:$0xff] }
  0x52   : > { %7327 = vrot.lane.b32.xlu1 %v8922_v62, %s8588_s8  ;;  %v515_v46 = vld [vmem:[#allocation2 + $0xca] sm:$0xff]  ;;  %v8979_v47 = vpack.i.bf16 %v513_v43, %v512_v42  ;;  %v517_v51 = vld [vmem:[#allocation2 + $0xe2] sm:$0xff]  ;;  %v518_v52 = vld [vmem:[#allocation2 + $0xf2] sm:$0xff] }
  0x53   : > { %7332 = vrot.lane.b32.xlu0 %v8926_v63, %s8588_s8  ;;  %v8983_v48 = vpack.i.bf16 %v515_v46, %v514_v44  ;;  %v519_v53 = vld [vmem:[#allocation2 + $0xfa] sm:$0xff]  ;;  %v8987_v54 = vpack.i.bf16 %v517_v51, %v516_v50  ;;  %v520_v58 = vld [vmem:[#allocation2 + $0x10a] sm:$0xff]  ;;  %v521_v59 = vld [vmem:[#allocation2 + $0x112] sm:$0xff] }
  0x54   : > { %v8991_v55 = vpack.i.bf16 %v519_v53, %v518_v52  ;;  %v522_v60 = vld [vmem:[#allocation2 + $0x122] sm:$0xff]  ;;  %v523_v61 = vld [vmem:[#allocation2 + $0x12a] sm:$0xff]  ;;  %v8995_v0 = vpack.i.bf16 %v521_v59, %v520_v58  ;;  %v524_v2 = vld [vmem:[#allocation2 + $0x13a] sm:$0xff] }
  0x55   : > { %v8999_v1 = vpack.i.bf16 %v523_v61, %v522_v60  ;;  %v525_v3 = vld [vmem:[#allocation2 + $0x142] sm:$0xff]  ;;  %v526_v6 = vld [vmem:[#allocation2 + $0x152] sm:$0xff]  ;;  %v527_v7 = vld [vmem:[#allocation2 + $0x15a] sm:$0xff] }
  0x56   : > { %7337 = vrot.lane.b32.xlu1 %v8930_v4, %s8588_s8  ;;  %v9003_v8 = vpack.i.bf16 %v525_v3, %v524_v2  ;;  %v9007_v9 = vpack.i.bf16 %v527_v7, %v526_v6  ;;  %v528_v12 = vld [vmem:[#allocation2 + $0x16a] sm:$0xff]  ;;  %v529_v13 = vld [vmem:[#allocation2 + $0x172] sm:$0xff]  ;;  %v9011_v15 = vld [vmem:[#allocation2 + $0x20] sm:$0xff] }
  0x57   : > { %7342 = vrot.lane.b32.xlu0 %v8934_v5, %s8588_s8  ;;  %v9009_v14 = vld [vmem:[#allocation2 + $0x18] sm:$0xff]  ;;  %v9021_v19 = vld [vmem:[#allocation2 + $0x30] sm:$0xff]  ;;  %v9025_v21 = vld [vmem:[#allocation2 + $0x48] sm:$0xff] }
  0x58   : > { %v7441_v18 = vpack.i.bf16 %v9011_v15, %v9009_v14  ;;  %v9023_v20 = vld [vmem:[#allocation2 + $0x38] sm:$0xff]  ;;  %v9027_v24 = vld [vmem:[#allocation2 + $0x50] sm:$0xff]  ;;  %v9040_v27 = vld [vmem:[#allocation2 + $0x60] sm:$0xff] }
  0x59   : > { %v9033_v25 = vpack.i.bf16 %v9023_v20, %v9021_v19  ;;  %v9038_v26 = vpack.i.bf16 %v9027_v24, %v9025_v21  ;;  %v9042_v28 = vld [vmem:[#allocation2 + $0x68] sm:$0xff]  ;;  %v9044_v30 = vld [vmem:[#allocation2 + $0x78] sm:$0xff]  ;;  %v9046_v34 = vld [vmem:[#allocation2 + $0x80] sm:$0xff] }
  0x5a   : > { %7347 = vrot.lane.b32.xlu1 %v8938_v10, %s8588_s8  ;;  %v9052_v35 = vpack.i.bf16 %v9042_v28, %v9040_v27  ;;  %v9058_v36 = vpack.i.bf16 %v9046_v34, %v9044_v30  ;;  %v9060_v38 = vld [vmem:[#allocation2 + $0x90] sm:$0xff]  ;;  %v9062_v42 = vld [vmem:[#allocation2 + $0x98] sm:$0xff]  ;;  %v9064_v43 = vld [vmem:[#allocation2 + $0xa8] sm:$0xff] }
  0x5b   : > { %7352 = vrot.lane.b32.xlu0 %v8942_v11, %s8588_s8  ;;  %12035 = vst [vmem:[#allocation4_spill] sm:$0xff] %v9064_v43  ;;  %v9066_v44 = vld [vmem:[#allocation2 + $0xb0] sm:$0xff]  ;;  %v9072_v46 = vpack.i.bf16 %v9062_v42, %v9060_v38  ;;  %v9080_v51 = vld [vmem:[#allocation2 + $0xc0] sm:$0xff]  ;;  %v9082_v52 = vld [vmem:[#allocation2 + $0xc8] sm:$0xff] }
  0x5c   : > { %v9078_v50 = vpack.i.bf16 %v9066_v44, %v9064_v43  ;;  %12036 = vst [vmem:[#allocation5_spill] sm:$0xff] %v9080_v51  ;;  %12037 = vst [vmem:[#allocation6_spill] sm:$0xff] %v9082_v52  ;;  %v9084_v53 = vld [vmem:[#allocation2 + $0xd8] sm:$0xff]  ;;  %v9086_v58 = vld [vmem:[#allocation2 + $0xe0] sm:$0xff]  ;;  %v9092_v59 = vpack.i.bf16 %v9082_v52, %v9080_v51 }
  0x5d   : > { %12038 = vst [vmem:[#allocation7_spill] sm:$0xff] %v9084_v53  ;;  %12039 = vst [vmem:[#allocation8_spill] sm:$0xff] %v9086_v58  ;;  %v9098_v60 = vpack.i.bf16 %v9086_v58, %v9084_v53  ;;  %v9100_v61 = vld [vmem:[#allocation2 + $0xf0] sm:$0xff]  ;;  %v9102_v2 = vld [vmem:[#allocation2 + $0xf8] sm:$0xff] }
  0x5e   : > { %7357 = vrot.lane.b32.xlu1 %v8946_v16, %s8588_s8  ;;  %12040 = vst [vmem:[#allocation9_spill] sm:$0xff] %v9100_v61  ;;  %12041 = vst [vmem:[#allocation10_spill] sm:$0xff] %v9102_v2  ;;  %v9104_v3 = vld [vmem:[#allocation2 + $0x108] sm:$0xff]  ;;  %v9106_v6 = vld [vmem:[#allocation2 + $0x110] sm:$0xff]  ;;  %v9112_v7 = vpack.i.bf16 %v9102_v2, %v9100_v61 }
  0x5f   : > { %7362 = vrot.lane.b32.xlu0 %v7361_v17, %s8589_s9  ;;  %v9015_v17 = vpack.i.bf16 %v529_v13, %v528_v12  ;;  %12042 = vst [vmem:[#allocation11_spill] sm:$0xff] %v9104_v3  ;;  %12043 = vst [vmem:[#allocation12_spill] sm:$0xff] %v9106_v6  ;;  %v9118_v12 = vpack.i.bf16 %v9106_v6, %v9104_v3  ;;  %v9120_v13 = vld [vmem:[#allocation2 + $0x120] sm:$0xff]  ;;  %v9124_v53 = vld [vmem:[#allocation2 + $0x138] sm:$0xff] }
  0x60   : > { %12044 = vst [vmem:[#allocation13_spill] sm:$0xff] %v9120_v13  ;;  %12046 = vst [vmem:[#allocation15_spill] sm:$0xff] %v9124_v53  ;;  %v9126_v58 = vld [vmem:[#allocation2 + $0x140] sm:$0xff]  ;;  %v9138_v6 = vld [vmem:[#allocation2 + $0x150] sm:$0xff] }
  0x61   : > { %12047 = vst [vmem:[#allocation16_spill] sm:$0xff] %v9126_v58  ;;  %v7501_v3 = vpack.i.bf16 %v9126_v58, %v9124_v53  ;;  %v9140_v2 = vld [vmem:[#allocation2 + $0x158] sm:$0xff]  ;;  %v9142_v51 = vld [vmem:[#allocation2 + $0x168] sm:$0xff]  ;;  %v9144_v52 = vld [vmem:[#allocation2 + $0x170] sm:$0xff] }
  0x62   : > { %7367 = vrot.lane.b32.xlu1 %v8952_v22, %s8589_s9  ;;  %v560_v53 = vld [vmem:[#allocation2 + $0x180] sm:$0xff]  ;;  %v561_v58 = vld [vmem:[#allocation2 + $0x188] sm:$0xff] }
  0x63   : > { %7372 = vrot.lane.b32.xlu0 %v8955_v23, %s8589_s9  ;;  %v7516_v43 = vpack.i.bf16 %v561_v58, %v560_v53 }
  0x66   : > { %7377 = vrot.lane.b32.xlu1 %v8963_v31, %s8589_s9 }
  0x67   : > { %7382 = vrot.lane.b32.xlu0 %v8967_v32, %s8589_s9 }
  0x6a   : > { %7387 = vrot.lane.b32.xlu1 %v8971_v40, %s8589_s9 }
  0x6b   : > { %7392 = vrot.lane.b32.xlu0 %v8975_v41, %s8589_s9 }
  0x6e   : > { %7397 = vrot.lane.b32.xlu1 %v8979_v47, %s8589_s9 }
  0x6f   : > { %7402 = vrot.lane.b32.xlu0 %v8983_v48, %s8589_s9 }
  0x72   : > { %7407 = vrot.lane.b32.xlu1 %v8987_v54, %s8589_s9 }
  0x73   : > { %7412 = vrot.lane.b32.xlu0 %v8991_v55, %s8589_s9 }
  0x76   : > { %7417 = vrot.lane.b32.xlu1 %v8995_v0, %s8589_s9 }
  0x77   : > { %7422 = vrot.lane.b32.xlu0 %v8999_v1, %s8589_s9 }
  0x7a   : > { %7427 = vrot.lane.b32.xlu1 %v9003_v8, %s8589_s9 }
  0x7b   : > { %7432 = vrot.lane.b32.xlu0 %v9007_v9, %s8589_s9 }
  0x7e   : > { %7437 = vrot.lane.b32.xlu1 %v9015_v17, %s8589_s9 }
  0x7f   : > { %7442 = vrot.lane.b32.xlu0 %v7441_v18, %s8590_s10  ;;  %v9122_v18 = vld [vmem:[#allocation2 + $0x128] sm:$0xff] }
  0x80   : > { %12045 = vst [vmem:[#allocation14_spill] sm:$0xff] %v9122_v18  ;;  %v9132_v61 = vpack.i.bf16 %v9122_v18, %v9120_v13  ;;  %v7506_v13 = vpack.i.bf16 %v9140_v2, %v9138_v6  ;;  %v7511_v18 = vpack.i.bf16 %v9144_v52, %v9142_v51 }
  0x82   : > { %7447 = vrot.lane.b32.xlu1 %v9033_v25, %s8590_s10 }
  0x83   : > { %7452 = vrot.lane.b32.xlu0 %v9038_v26, %s8590_s10 }
  0x86   : > { %7457 = vrot.lane.b32.xlu1 %v9052_v35, %s8590_s10 }
  0x87   : > { %7462 = vrot.lane.b32.xlu0 %v9058_v36, %s8590_s10 }
  0x8a   : > { %7467 = vrot.lane.b32.xlu1 %v9072_v46, %s8590_s10 }
  0x8b   : > { %7472 = vrot.lane.b32.xlu0 %v9078_v50, %s8590_s10 }
  0x8e   : > { %7477 = vrot.lane.b32.xlu1 %v9092_v59, %s8590_s10 }
  0x8f   : > { %7482 = vrot.lane.b32.xlu0 %v9098_v60, %s8590_s10 }
  0x92   : > { %7487 = vrot.lane.b32.xlu1 %v9112_v7, %s8590_s10 }
  0x93   : > { %7492 = vrot.lane.b32.xlu0 %v9118_v12, %s8590_s10 }
  0x96   : > { %7497 = vrot.lane.b32.xlu1 %v9132_v61, %s8590_s10 }
  0x97   : > { %7502 = vrot.lane.b32.xlu0 %v7501_v3, %s8590_s10 }
  0x9a   : > { %7507 = vrot.lane.b32.xlu1 %v7506_v13, %s8590_s10  ;;  %v659_v13 = vld [vmem:[#allocation2 + $0x31] sm:$0xff] }
  0x9b   : > { %7512 = vrot.lane.b32.xlu0 %v7511_v18, %s8590_s10  ;;  %v660_v18 = vld [vmem:[#allocation2 + $0x39] sm:$0xff] }
  0x9e   : > { %7517 = vrot.lane.b32.xlu1 %v7516_v43, %s8590_s10 }
  0x9f   : > { %7522 = vrot.lane.b32.xlu0 %v8878_v33, %s8591_s11 }
  0xa2   : > { %7527 = vrot.lane.b32.xlu1 %v8876_v29, %s8591_s11  ;;  %v9174_v29 = vpop.permute.xlu0 %7282 }
  0xa3   : > { %7532 = vrot.lane.b32.xlu0 %v8884_v37, %s8591_s11 }
  0xa6   : > { %7537 = vrot.lane.b32.xlu1 %v8890_v39, %s8591_s11  ;;  %v592_v39 = vld [vmem:[#allocation2 + $0x181] sm:$0xff] }
  0xa7   : > { %7542 = vrot.lane.b32.xlu0 %v8894_v45, %s8591_s11  ;;  %v593_v45 = vld [vmem:[#allocation2 + $0x189] sm:$0xff] }
  0xaa   : > { %7547 = vrot.lane.b32.xlu1 %v8898_v49, %s8591_s11 }
  0xab   : > { %7552 = vrot.lane.b32.xlu0 %v8914_v56, %s8591_s11 }
  0xae   : > { %7557 = vrot.lane.b32.xlu1 %v8918_v57, %s8591_s11  ;;  %v7596_v57 = vpack.i.bf16 %v593_v45, %v592_v39  ;;  %v661_v39 = vld [vmem:[#allocation2 + $0x49] sm:$0xff]  ;;  %v662_v45 = vld [vmem:[#allocation2 + $0x51] sm:$0xff] }
  0xaf   : > { %7562 = vrot.lane.b32.xlu0 %v8922_v62, %s8591_s11 }
  0xb2   : > { %7567 = vrot.lane.b32.xlu1 %v8926_v63, %s8591_s11 }
  0xb3   : > { %7572 = vrot.lane.b32.xlu0 %v8930_v4, %s8591_s11 }
  0xb4   : > { %v9180_v33 = vpop.permute.xlu1 %7292 }
  0xb5   : > { %v9182_v37 = vpop.permute.xlu0 %7287 }
  0xb6   : > { %7577 = vrot.lane.b32.xlu1 %v8934_v5, %s8591_s11 }
  0xb7   : > { %7582 = vrot.lane.b32.xlu0 %v8938_v10, %s8591_s11 }
  0xb8   : > { %v9188_v49 = vpop.permute.xlu1 %7297 }
  0xb9   : > { %v9190_v56 = vpop.permute.xlu0 %7302 }
  0xba   : > { %7587 = vrot.lane.b32.xlu1 %v8942_v11, %s8591_s11 }
  0xbb   : > { %7592 = vrot.lane.b32.xlu0 %v8946_v16, %s8591_s11 }
  0xbc   : > { %v9196_v62 = vpop.permute.xlu1 %7307 }
  0xbd   : > { %v9198_v63 = vpop.permute.xlu0 %7312 }
  0xbe   : > { %7597 = vrot.lane.b32.xlu1 %v7596_v57, %s8591_s11 }
  0xbf   : > { %7602 = vrot.lane.b32.xlu0 %v8952_v22, %s8592_s12 }
  0xc0   : > { %v9203_v4 = vpop.permute.xlu1 %7317 }
  0xc1   : > { %v9205_v5 = vpop.permute.xlu0 %7322 }
  0xc2   : > { %7607 = vrot.lane.b32.xlu1 %v8955_v23, %s8592_s12 }
  0xc3   : > { %7612 = vrot.lane.b32.xlu0 %v8963_v31, %s8592_s12 }
  0xc4   : > { %v9211_v10 = vpop.permute.xlu1 %7327 }
  0xc5   : > { %v9213_v11 = vpop.permute.xlu0 %7332 }
  0xc6   : > { %7617 = vrot.lane.b32.xlu1 %v8967_v32, %s8592_s12 }
  0xc7   : > { %7622 = vrot.lane.b32.xlu0 %v8971_v40, %s8592_s12 }
  0xc8   : > { %v9219_v16 = vpop.permute.xlu1 %7337 }
  0xc9   : > { %v9221_v22 = vpop.permute.xlu0 %7342 }
  0xca   : > { %7627 = vrot.lane.b32.xlu1 %v8975_v41, %s8592_s12 }
  0xcb   : > { %7632 = vrot.lane.b32.xlu0 %v8979_v47, %s8592_s12 }
  0xcc   : > { %v9227_v23 = vpop.permute.xlu1 %7347 }
  0xcd   : > { %v9229_v31 = vpop.permute.xlu0 %7352 }
  0xce   : > { %7637 = vrot.lane.b32.xlu1 %v8983_v48, %s8592_s12  ;;  %v624_v48 = vld [vmem:[#allocation2 + $0x182] sm:$0xff] }
  0xcf   : > { %7642 = vrot.lane.b32.xlu0 %v8987_v54, %s8592_s12  ;;  %v625_v54 = vld [vmem:[#allocation2 + $0x18a] sm:$0xff] }
  0xd0   : > { %v9235_v32 = vpop.permute.xlu1 %7357 }
  0xd1   : > { %v9237_v40 = vpop.permute.xlu0 %7362 }
  0xd2   : > { %7647 = vrot.lane.b32.xlu1 %v8991_v55, %s8592_s12  ;;  %v9257_v55 = vpack.i.bf16 %v625_v54, %v624_v48  ;;  %v691_v54 = vld [vmem:[#allocation2 + $0x32] sm:$0xff] }
  0xd3   : > { %7652 = vrot.lane.b32.xlu0 %v8995_v0, %s8592_s12 }
  0xd4   : > { %v9243_v41 = vpop.permute.xlu1 %7367 }
  0xd5   : > { %v9245_v47 = vpop.permute.xlu0 %7372 }
  0xd6   : > { %7657 = vrot.lane.b32.xlu1 %v8999_v1, %s8592_s12 }
  0xd7   : > { %7662 = vrot.lane.b32.xlu0 %v9003_v8, %s8592_s12 }
  0xd8   : > { %v9251_v43 = vpop.permute.xlu1 %7377 }
  0xd9   : > { %v9253_v53 = vpop.permute.xlu0 %7382 }
  0xda   : > { %7667 = vrot.lane.b32.xlu1 %v9007_v9, %s8592_s12 }
  0xdb   : > { %7672 = vrot.lane.b32.xlu0 %v9015_v17, %s8592_s12 }
  0xdc   : > { %v9261_v0 = vpop.permute.xlu1 %7387 }
  0xdd   : > { %v9263_v1 = vpop.permute.xlu0 %7392 }
  0xde   : > { %7677 = vrot.lane.b32.xlu1 %v9257_v55, %s8592_s12 }
  0xdf   : > { %7682 = vrot.lane.b32.xlu0 %v9033_v25, %s8593_s13  ;;  %v8561_v25 = vld [vmem:[%s11968_s1] sm:$0xff]  }
  0xe0   : > { %v9269_v8 = vpop.permute.xlu1 %7397  ;;  %7171 = vmatprep.subr.bf16.mxu0 %v8561_v25 }
  0xe1   : > { %v9271_v58 = vpop.permute.xlu0 %7402  ;;  %7172 = vmatpush3.bf16.msra.mxu0 %v8561_v25  ;;  %v692_v25 = vld [vmem:[#allocation2 + $0x3a] sm:$0xff] }
  0xe2   : > { %12048 = vst [vmem:[#allocation17_spill] sm:$0xff] %v9271_v58  ;;  %7687 = vrot.lane.b32.xlu1 %v9038_v26, %s8593_s13  ;;  %v7305_v58 = vunpack.i.h.bf16 %v9190_v56 }
  0xe3   : > { %7692 = vrot.lane.b32.xlu0 %v9052_v35, %s8593_s13  ;;  %v8562_v35 = vld [vmem:[%s11968_s1 + $0x8] sm:$0xff]  }
  0xe4   : > { %v9277_v9 = vpop.permute.xlu1 %7407  ;;  %7173 = vmatprep.subr.bf16.mxu0 %v8562_v35 }
  0xe5   : > { %12049 = vst [vmem:[#allocation18_spill] sm:$0xff] %v9277_v9  ;;  %v9279_v17 = vpop.permute.xlu0 %7412  ;;  %7174 = vmatpush3.bf16.msra.mxu0 %v8562_v35  ;;  %v7300_v9 = vunpack.i.h.bf16 %v9188_v49 }
  0xe6   : > { %12050 = vst [vmem:[#allocation19_spill] sm:$0xff] %v9279_v17  ;;  %7697 = vrot.lane.b32.xlu1 %v9058_v36, %s8593_s13  ;;  %v688_v17 = vld [vmem:[#allocation2 + $0x189] sm:$0xff] }
  0xe7   : > { %7702 = vrot.lane.b32.xlu0 %v9072_v46, %s8593_s13 }
  0xe8   : > { %v9288_v3 = vpop.permute.xlu1 %7417 }
  0xe9   : > { %12051 = vst [vmem:[#allocation20_spill] sm:$0xff] %v9288_v3  ;;  %v9290_v26 = vpop.permute.xlu0 %7422  ;;  %v7290_v3 = vunpack.i.h.bf16 %v9182_v37 }
  0xea   : > { %12052 = vst [vmem:[#allocation21_spill] sm:$0xff] %v9290_v26  ;;  %7707 = vrot.lane.b32.xlu1 %v9078_v50, %s8593_s13  ;;  %v8563_v50 = vld [vmem:[%s11968_s1 + $0x10] ss:$0 sps:$4 sm:$0x33]  }
  0xeb   : > { %7712 = vrot.lane.b32.xlu0 %v9092_v59, %s8593_s13  ;;  %7259 = vmatprep.subr.msk.bf16.mxu0 %vm2102_vm3, %v8563_v50  ;;  %v2104_v57 = vsel %vm2102_vm3, %v8563_v50, 0  ;;  %v7746_v50 = vpack.i.bf16 %v692_v25, %v691_v54  ;;  %v696_v54 = vld [vmem:[#allocation2 + $0x6a] sm:$0xff] }
  0xec   : > { %v9299_v36 = vpop.permute.xlu1 %7427  ;;  %7176 = vmatpush3.bf16.msra.mxu0 %v2104_v57 }
  0xed   : > { %12053 = vst [vmem:[#allocation22_spill] sm:$0xff] %v9299_v36  ;;  %v9301_v46 = vpop.permute.xlu0 %7432 }
  0xee   : > { %12054 = vst [vmem:[#allocation23_spill] sm:$0xff] %v9301_v46  ;;  %7717 = vrot.lane.b32.xlu1 %v9098_v60, %s8593_s13  ;;  %v7736_v60 = vpack.i.bf16 %v660_v18, %v659_v13  ;;  %v694_v46 = vld [vmem:[#allocation2 + $0x52] sm:$0xff]  ;;  %v663_v13 = vld [vmem:[#allocation2 + $0x61] sm:$0xff]  ;;  %v664_v18 = vld [vmem:[#allocation2 + $0x69] sm:$0xff] }
  0xef   : > { %7722 = vrot.lane.b32.xlu0 %v9112_v7, %s8593_s13  ;;  %v7741_v7 = vpack.i.bf16 %v662_v45, %v661_v39  ;;  %v666_v39 = vld [vmem:[#allocation2 + $0x81] sm:$0xff] }
  0xf0   : > { %v9310_v59 = vpop.permute.xlu1 %7437 }
  0xf1   : > { %12055 = vst [vmem:[#allocation24_spill] sm:$0xff] %v9310_v59  ;;  %v9314_v48 = vpop.permute.xlu0 %7442  ;;  %v693_v59 = vld [vmem:[#allocation2 + $0x4a] sm:$0xff] }
  0xf2   : > { %12056 = vst [vmem:[#allocation25_spill] sm:$0xff] %v9314_v48  ;;  %7727 = vrot.lane.b32.xlu1 %v9118_v12, %s8593_s13  ;;  %v7751_v12 = vpack.i.bf16 %v694_v46, %v693_v59  ;;  %v697_v46 = vld [vmem:[#allocation2 + $0x7a] sm:$0xff]  ;;  %v698_v59 = vld [vmem:[#allocation2 + $0x82] sm:$0xff]  ;;  %v667_v48 = vld [vmem:[#allocation2 + $0x91] sm:$0xff] }
  0xf3   : > { %7732 = vrot.lane.b32.xlu0 %v9132_v61, %s8593_s13  ;;  %v665_v61 = vld [vmem:[#allocation2 + $0x79] sm:$0xff] }
  0xf4   : > { %v9320_v35 = vpop.permute.xlu1 %7447 }
  0xf5   : > { %12057 = vst [vmem:[#allocation26_spill] sm:$0xff] %v9320_v35  ;;  %v9322_v36 = vpop.permute.xlu0 %7452  ;;  %v7756_v35 = vpack.i.bf16 %v664_v18, %v663_v13  ;;  %v670_v18 = vld [vmem:[#allocation2 + $0xb1] sm:$0xff] }
  0xf6   : > { %12058 = vst [vmem:[#allocation27_spill] sm:$0xff] %v9322_v36  ;;  %7737 = vrot.lane.b32.xlu1 %v7736_v60, %s8594_s20  ;;  %v7761_v36 = vpack.i.bf16 %v666_v39, %v665_v61  ;;  %v695_v60 = vld [vmem:[#allocation2 + $0x62] sm:$0xff] }
  0xf7   : > { %7742 = vrot.lane.b32.xlu0 %v7741_v7, %s8594_s20 }
  0xf8   : > { %v9326_v57 = vpop.permute.xlu1 %7457 }
  0xf9   : > { %12059 = vst [vmem:[#allocation28_spill] sm:$0xff] %v9326_v57  ;;  %v9328_v45 = vpop.permute.xlu0 %7462  ;;  %v7766_v57 = vpack.i.bf16 %v696_v54, %v695_v60  ;;  %v702_v54 = vld [vmem:[#allocation2 + $0xb2] sm:$0xff] }
  0xfa   : > { %12060 = vst [vmem:[#allocation29_spill] sm:$0xff] %v9328_v45  ;;  %7747 = vrot.lane.b32.xlu1 %v7746_v50, %s8595_s21  ;;  %v7771_v45 = vpack.i.bf16 %v698_v59, %v697_v46  ;;  %v668_v50 = vld [vmem:[#allocation2 + $0x99] sm:$0xff] }
  0xfb   : > { %7752 = vrot.lane.b32.xlu0 %v7751_v12, %s8595_s21  ;;  %v669_v12 = vld [vmem:[#allocation2 + $0xa9] sm:$0xff]  ;;  %v7776_v39 = vpack.i.bf16 %v668_v50, %v667_v48  ;;  %v674_v50 = vld [vmem:[#allocation2 + $0xe1] sm:$0xff] }
  0xfc   : > { %v9332_v25 = vpop.permute.xlu1 %7467 }
  0xfd   : > { %12061 = vst [vmem:[#allocation30_spill] sm:$0xff] %v9332_v25  ;;  %v9334_v7 = vpop.permute.xlu0 %7472  ;;  %v699_v25 = vld [vmem:[#allocation2 + $0x92] sm:$0xff] }
  0xfe   : > { %12062 = vst [vmem:[#allocation31_spill] sm:$0xff] %v9334_v7  ;;  %7757 = vrot.lane.b32.xlu1 %v7756_v35, %s8594_s20  ;;  %v7781_v7 = vpack.i.bf16 %v670_v18, %v669_v12  ;;  %v700_v35 = vld [vmem:[#allocation2 + $0x9a] sm:$0xff] }
  0xff   : > { %7762 = vrot.lane.b32.xlu0 %v7761_v36, %s8594_s20  ;;  %v701_v36 = vld [vmem:[#allocation2 + $0xaa] sm:$0xff]  ;;  %v7786_v59 = vpack.i.bf16 %v700_v35, %v699_v25  ;;  %v706_v35 = vld [vmem:[#allocation2 + $0xe2] sm:$0xff] }
 0x100   : > { %v9338_v13 = vpop.permute.xlu1 %7477 }
 0x101   : > { %12063 = vst [vmem:[#allocation32_spill] sm:$0xff] %v9338_v13  ;;  %v9340_v61 = vpop.permute.xlu0 %7482  ;;  %v671_v13 = vld [vmem:[#allocation2 + $0xc1] sm:$0xff] }
 0x102   : > { %12064 = vst [vmem:[#allocation33_spill] sm:$0xff] %v9340_v61  ;;  %7767 = vrot.lane.b32.xlu1 %v7766_v57, %s8595_s21  ;;  %v7791_v61 = vpack.i.bf16 %v702_v54, %v701_v36  ;;  %v672_v57 = vld [vmem:[#allocation2 + $0xc9] sm:$0xff] }
 0x103   : > { %7772 = vrot.lane.b32.xlu0 %v7771_v45, %s8595_s21  ;;  %v673_v45 = vld [vmem:[#allocation2 + $0xd9] sm:$0xff]  ;;  %v7796_v18 = vpack.i.bf16 %v672_v57, %v671_v13  ;;  %v678_v57 = vld [vmem:[#allocation2 + $0x111] sm:$0xff] }
 0x104   : > { %v9344_v60 = vpop.permute.xlu1 %7487 }
 0x105   : > { %12065 = vst [vmem:[#allocation34_spill] sm:$0xff] %v9344_v60  ;;  %v9346_v46 = vpop.permute.xlu0 %7492  ;;  %v703_v60 = vld [vmem:[#allocation2 + $0xc2] sm:$0xff] }
 0x106   : > { %12066 = vst [vmem:[#allocation35_spill] sm:$0xff] %v9346_v46  ;;  %7777 = vrot.lane.b32.xlu1 %v7776_v39, %s8594_s20  ;;  %v7801_v46 = vpack.i.bf16 %v674_v50, %v673_v45  ;;  %v704_v39 = vld [vmem:[#allocation2 + $0xca] sm:$0xff] }
 0x107   : > { %7782 = vrot.lane.b32.xlu0 %v7781_v7, %s8594_s20  ;;  %v705_v7 = vld [vmem:[#allocation2 + $0xda] sm:$0xff]  ;;  %v7806_v54 = vpack.i.bf16 %v704_v39, %v703_v60  ;;  %v710_v39 = vld [vmem:[#allocation2 + $0x112] sm:$0xff] }
 0x108   : > { %v9350_v48 = vpop.permute.xlu1 %7497 }
 0x109   : > { %12067 = vst [vmem:[#allocation36_spill] sm:$0xff] %v9350_v48  ;;  %v9352_v12 = vpop.permute.xlu0 %7502  ;;  %v675_v48 = vld [vmem:[#allocation2 + $0xf1] sm:$0xff] }
 0x10a   : > { %12068 = vst [vmem:[#allocation37_spill] sm:$0xff] %v9352_v12  ;;  %7787 = vrot.lane.b32.xlu1 %v7786_v59, %s8595_s21  ;;  %v7811_v12 = vpack.i.bf16 %v706_v35, %v705_v7  ;;  %v676_v59 = vld [vmem:[#allocation2 + $0xf9] sm:$0xff] }
 0x10b   : > { %7792 = vrot.lane.b32.xlu0 %v7791_v61, %s8595_s21  ;;  %v677_v61 = vld [vmem:[#allocation2 + $0x109] sm:$0xff]  ;;  %v7816_v50 = vpack.i.bf16 %v676_v59, %v675_v48 }
 0x10c   : > { %v9356_v25 = vpop.permute.xlu1 %7507  ;;  %v680_v59 = vld [vmem:[#allocation2 + $0x129] sm:$0xff] }
 0x10d   : > { %12069 = vst [vmem:[#allocation38_spill] sm:$0xff] %v9356_v25  ;;  %v9358_v36 = vpop.permute.xlu0 %7512  ;;  %v707_v25 = vld [vmem:[#allocation2 + $0xf2] sm:$0xff] }
 0x10e   : > { %12070 = vst [vmem:[#allocation39_spill] sm:$0xff] %v9358_v36  ;;  %7797 = vrot.lane.b32.xlu1 %v7796_v18, %s8594_s20  ;;  %v7821_v36 = vpack.i.bf16 %v678_v57, %v677_v61  ;;  %v708_v18 = vld [vmem:[#allocation2 + $0xfa] sm:$0xff] }
 0x10f   : > { %7802 = vrot.lane.b32.xlu0 %v7801_v46, %s8594_s20  ;;  %v709_v46 = vld [vmem:[#allocation2 + $0x10a] sm:$0xff]  ;;  %v7826_v35 = vpack.i.bf16 %v708_v18, %v707_v25 }
 0x110   : > { %v9362_v13 = vpop.permute.xlu1 %7517  ;;  %v712_v18 = vld [vmem:[#allocation2 + $0x12a] sm:$0xff] }
 0x111   : > { %12071 = vst [vmem:[#allocation40_spill] sm:$0xff] %v9362_v13  ;;  %v9364_v45 = vpop.permute.xlu0 %7522  ;;  %v7831_v13 = vpack.i.bf16 %v710_v39, %v709_v46 }
 0x112   : > { %12072 = vst [vmem:[#allocation41_spill] sm:$0xff] %v9364_v45  ;;  %7807 = vrot.lane.b32.xlu1 %v7806_v54, %s8595_s21  ;;  %v649_v45 = vld [vmem:[#allocation2 + $0x138] sm:$0xff]  ;;  %v650_v54 = vld [vmem:[#allocation2 + $0x140] sm:$0xff] }
 0x113   : > { %7812 = vrot.lane.b32.xlu0 %v7811_v12, %s8595_s21  ;;  %v679_v12 = vld [vmem:[#allocation2 + $0x121] sm:$0xff]  ;;  %v7836_v57 = vpack.i.bf16 %v650_v54, %v649_v45  ;;  %v652_v54 = vld [vmem:[#allocation2 + $0x158] sm:$0xff] }
 0x114   : > { %v9368_v60 = vpop.permute.xlu1 %7527 }
 0x115   : > { %12073 = vst [vmem:[#allocation42_spill] sm:$0xff] %v9368_v60  ;;  %v9370_v7 = vpop.permute.xlu0 %7532  ;;  %v681_v60 = vld [vmem:[#allocation2 + $0x139] sm:$0xff] }
 0x116   : > { %12074 = vst [vmem:[#allocation43_spill] sm:$0xff] %v9370_v7  ;;  %7817 = vrot.lane.b32.xlu1 %v7816_v50, %s8594_s20  ;;  %v7841_v7 = vpack.i.bf16 %v680_v59, %v679_v12  ;;  %v682_v50 = vld [vmem:[#allocation2 + $0x141] sm:$0xff] }
 0x117   : > { %7822 = vrot.lane.b32.xlu0 %v7821_v36, %s8594_s20  ;;  %v711_v36 = vld [vmem:[#allocation2 + $0x122] sm:$0xff]  ;;  %v7846_v39 = vpack.i.bf16 %v682_v50, %v681_v60  ;;  %v684_v50 = vld [vmem:[#allocation2 + $0x159] sm:$0xff] }
 0x118   : > { %v9374_v48 = vpop.permute.xlu1 %7537 }
 0x119   : > { %12075 = vst [vmem:[#allocation44_spill] sm:$0xff] %v9374_v48  ;;  %v9376_v61 = vpop.permute.xlu0 %7542  ;;  %v713_v48 = vld [vmem:[#allocation2 + $0x13a] sm:$0xff] }
 0x11a   : > { %12076 = vst [vmem:[#allocation45_spill] sm:$0xff] %v9376_v61  ;;  %7827 = vrot.lane.b32.xlu1 %v7826_v35, %s8595_s21  ;;  %v7851_v61 = vpack.i.bf16 %v712_v18, %v711_v36  ;;  %v714_v35 = vld [vmem:[#allocation2 + $0x142] sm:$0xff] }
 0x11b   : > { %7832 = vrot.lane.b32.xlu0 %v7831_v13, %s8595_s21  ;;  %v651_v13 = vld [vmem:[#allocation2 + $0x150] sm:$0xff]  ;;  %v7856_v59 = vpack.i.bf16 %v714_v35, %v713_v48  ;;  %v716_v35 = vld [vmem:[#allocation2 + $0x15a] sm:$0xff] }
 0x11c   : > { %v9380_v25 = vpop.permute.xlu1 %7547 }
 0x11d   : > { %12077 = vst [vmem:[#allocation46_spill] sm:$0xff] %v9380_v25  ;;  %v9382_v46 = vpop.permute.xlu0 %7552  ;;  %v653_v25 = vld [vmem:[#allocation2 + $0x168] sm:$0xff] }
 0x11e   : > { %12078 = vst [vmem:[#allocation47_spill] sm:$0xff] %v9382_v46  ;;  %7837 = vrot.lane.b32.xlu1 %v7836_v57, %s8593_s13  ;;  %v7861_v46 = vpack.i.bf16 %v652_v54, %v651_v13  ;;  %v654_v57 = vld [vmem:[#allocation2 + $0x170] sm:$0xff] }
 0x11f   : > { %7842 = vrot.lane.b32.xlu0 %v7841_v7, %s8594_s20  ;;  %v683_v7 = vld [vmem:[#allocation2 + $0x151] sm:$0xff]  ;;  %v7866_v18 = vpack.i.bf16 %v654_v57, %v653_v25 }
 0x120   : > { %v9386_v45 = vpop.permute.xlu1 %7557  ;;  %v717_v25 = vld [vmem:[#allocation2 + $0x16a] sm:$0xff]  ;;  %v718_v57 = vld [vmem:[#allocation2 + $0x172] sm:$0xff] }
 0x121   : > { %12079 = vst [vmem:[#allocation48_spill] sm:$0xff] %v9386_v45  ;;  %v9388_v12 = vpop.permute.xlu0 %7562  ;;  %v685_v45 = vld [vmem:[#allocation2 + $0x169] sm:$0xff] }
 0x122   : > { %12080 = vst [vmem:[#allocation49_spill] sm:$0xff] %v9388_v12  ;;  %7847 = vrot.lane.b32.xlu1 %v7846_v39, %s8594_s20  ;;  %v7871_v12 = vpack.i.bf16 %v684_v50, %v683_v7  ;;  %v686_v39 = vld [vmem:[#allocation2 + $0x171] sm:$0xff]  ;;  %v655_v50 = vld [vmem:[#allocation2 + $0x180] sm:$0xff] }
 0x123   : > { %7852 = vrot.lane.b32.xlu0 %v7851_v61, %s8595_s21  ;;  %v715_v61 = vld [vmem:[#allocation2 + $0x152] sm:$0xff]  ;;  %v7876_v54 = vpack.i.bf16 %v686_v39, %v685_v45  ;;  %v7294_v45 = vunpack.i.l.bf16 %v9180_v33  ;;  %v7289_v39 = vunpack.i.l.bf16 %v9182_v37  ;;  %v7310_v37 = vunpack.i.h.bf16 %v9196_v62 }
 0x124   : > { %v9392_v60 = vpop.permute.xlu1 %7567 }
 0x125   : > { %12081 = vst [vmem:[#allocation50_spill] sm:$0xff] %v9392_v60  ;;  %v9394_v36 = vpop.permute.xlu0 %7572  ;;  %v7285_v60 = vunpack.i.h.bf16 %v9174_v29 }
 0x126   : > { %12082 = vst [vmem:[#allocation51_spill] sm:$0xff] %v9394_v36  ;;  %7857 = vrot.lane.b32.xlu1 %v7856_v59, %s8595_s21  ;;  %v7881_v59 = vpack.i.bf16 %v716_v35, %v715_v61  ;;  %v656_v36 = vld [vmem:[#allocation2 + $0x188] sm:$0xff]  ;;  %v657_v61 = vld [vmem:[#allocation2 + $0x198] sm:$0xff]  ;;  %v658_v35 = vld [vmem:[#allocation2 + $0x1a0] sm:$0xff] }
 0x127   : > { %7862 = vrot.lane.b32.xlu0 %v7861_v46, %s8593_s13  ;;  %v435_v46 = vld [vmem:[#allocation2 + $0x8] sm:$0xff] }
 0x128   : > { %v9398_v48 = vpop.permute.xlu1 %7577 }
 0x129   : > { %12083 = vst [vmem:[#allocation52_spill] sm:$0xff] %v9398_v48  ;;  %v9400_v13 = vpop.permute.xlu0 %7582  ;;  %v7284_v48 = vunpack.i.l.bf16 %v9174_v29  ;;  %v7891_v29 = vpack.i.bf16 %v656_v36, %v655_v50  ;;  %v7309_v36 = vunpack.i.l.bf16 %v9196_v62  ;;  %v7896_v50 = vpack.i.bf16 %v658_v35, %v657_v61  ;;  %v722_v62 = vld [vmem:[#allocation2 + $0x1a2] sm:$0xff] }
 0x12a   : > { %12084 = vst [vmem:[#allocation53_spill] sm:$0xff] %v9400_v13  ;;  %7867 = vrot.lane.b32.xlu1 %v7866_v18, %s8593_s13  ;;  %v434_v13 = vld [vmem:[#allocation2] sm:$0xff]  ;;  %v7295_v18 = vunpack.i.h.bf16 %v9180_v33  ;;  %v7299_v33 = vunpack.i.l.bf16 %v9188_v49  ;;  %v9434_v49 = vsel %vm280_vm0, %v9021_v19, %v7294_v45  ;;  %v9447_v61 = vsel %vm280_vm0, %v9011_v15, %v7290_v3 }
 0x12b   : > { %7872 = vrot.lane.b32.xlu0 %v7871_v12, %s8594_s20  ;;  %v7886_v12 = vpack.i.bf16 %v718_v57, %v717_v25  ;;  %v689_v57 = vld [vmem:[#allocation2 + $0x199] sm:$0xff]  ;;  %v7315_v19 = vunpack.i.h.bf16 %v9198_v63  ;;  %v7314_v45 = vunpack.i.l.bf16 %v9198_v63  ;;  %v9472_v3 = vsel %vm280_vm0, %v9046_v34, %v7310_v37 }
 0x12c   : > { %v9405_v7 = vpop.permute.xlu1 %7587  ;;  %v7340_v35 = vunpack.i.h.bf16 %v9219_v16 }
 0x12d   : > { %12085 = vst [vmem:[#allocation54_spill] sm:$0xff] %v9405_v7  ;;  %v9408_v26 = vpop.permute.xlu0 %7592  ;;  %v9415_v7 = vsel %vm280_vm0, %v435_v46, %v7285_v60  ;;  %v690_v60 = vld [vmem:[#allocation2 + $0x1a1] sm:$0xff]  ;;  %v9426_v46 = vsel %vm280_vm0, %v434_v13, %v7284_v48  ;;  %v9488_v34 = vsel %vm280_vm0, %v9062_v42, %v7315_v19  ;;  %v7345_v42 = vunpack.i.h.bf16 %v9221_v22 }
 0x12e   : > { %12086 = vst [vmem:[#allocation55_spill] sm:$0xff] %v9408_v26  ;;  %7877 = vrot.lane.b32.xlu1 %v7876_v54, %s8594_s20  ;;  %v687_v26 = vld [vmem:[#allocation2 + $0x181] sm:$0xff]  ;;  %v7304_v54 = vunpack.i.l.bf16 %v9190_v56  ;;  %v9438_v56 = vsel %vm280_vm0, %v9023_v20, %v7295_v18  ;;  %v7906_v20 = vpack.i.bf16 %v690_v60, %v689_v57  ;;  %v7324_v18 = vunpack.i.l.bf16 %v9205_v5 }
 0x12f   : > { %7882 = vrot.lane.b32.xlu0 %v7881_v59, %s8595_s21  ;;  %v7901_v48 = vpack.i.bf16 %v688_v17, %v687_v26  ;;  %v721_v13 = vld [vmem:[#allocation2 + $0x19a] sm:$0xff]  ;;  %v9458_v17 = vsel %vm280_vm0, %v9025_v21, %v7299_v33  ;;  %v9462_v26 = vsel %vm280_vm0, %v9042_v28, %v7305_v58  ;;  %v7320_v21 = vunpack.i.h.bf16 %v9203_v4 }
 0x130   : > { %v9423_v25 = vpop.permute.xlu1 %7597  ;;  %v9466_v15 = vsel %vm280_vm0, %v9040_v27, %v7304_v54  ;;  %v7916_v28 = vpack.i.bf16 %v722_v62, %v721_v13  ;;  %v7319_v58 = vunpack.i.l.bf16 %v9203_v4  ;;  %v7325_v27 = vunpack.i.h.bf16 %v9205_v5  ;;  %v12093_v62 = vld [vmem:[#allocation10_spill] sm:$0xff] }
 0x131   : > { %12087 = vst [vmem:[#allocation56_spill] sm:$0xff] %v9423_v25  ;;  %v9430_v59 = vpop.permute.xlu0 %7602  ;;  %v9442_v25 = vsel %vm280_vm0, %v9009_v14, %v7289_v39  ;;  %v9454_v14 = vsel %vm280_vm0, %v9027_v24, %v7300_v9  ;;  %v9476_v24 = vsel %vm280_vm0, %v9044_v30, %v7309_v36  ;;  %v7330_v39 = vunpack.i.h.bf16 %v9211_v10 }
 0x132   : > { %7887 = vrot.lane.b32.xlu1 %v7886_v12, %s8595_s21  ;;  %v9492_v30 = vsel %vm280_vm0, %v9060_v38, %v7314_v45  ;;  %v7329_v12 = vunpack.i.l.bf16 %v9211_v10  ;;  %v7335_v4 = vunpack.i.h.bf16 %v9213_v11  ;;  %v7334_v5 = vunpack.i.l.bf16 %v9213_v11  ;;  %v12088_v11 = vld [vmem:[#allocation4_spill] sm:$0xff] }
 0x133   : > { %7892 = vrot.lane.b32.xlu0 %v7891_v29, %s8593_s13  ;;  %v7339_v29 = vunpack.i.l.bf16 %v9219_v16  ;;  %v9505_v38 = vsel %vm280_vm0, %v9066_v44, %v7320_v21  ;;  %v7344_v10 = vunpack.i.l.bf16 %v9221_v22  ;;  %v7350_v54 = vunpack.i.h.bf16 %v9227_v23  ;;  %v12089_v16 = vld [vmem:[#allocation6_spill] sm:$0xff] }
 0x134   : > { %v9468_v63 = vpop.permute.xlu1 %7607  ;;  %v7349_v57 = vunpack.i.l.bf16 %v9227_v23  ;;  %v9514_v37 = vsel %vm280_vm0, %v12088_v11, %v7319_v58  ;;  %v9518_v36 = vsel %vm280_vm0, %v12089_v16, %v7325_v27  ;;  %v12092_v23 = vld [vmem:[#allocation7_spill] sm:$0xff]  ;;  %v9535_v19 = vsel %vm280_vm0, %v12093_v62, %v7335_v4  ;;  %v12094_v58 = vld [vmem:[#allocation9_spill] sm:$0xff]  ;;  %v12097_v4 = vld [vmem:[#allocation14_spill] sm:$0xff] }
 0x135   : > { %v9479_v9 = vpop.permute.xlu0 %7612  ;;  %v9531_v13 = vsel %vm280_vm0, %v12092_v23, %v7329_v12  ;;  %v7355_v45 = vunpack.i.h.bf16 %v9229_v31  ;;  %v7354_v21 = vunpack.i.l.bf16 %v9229_v31  ;;  %v9543_v27 = vsel %vm280_vm0, %v12094_v58, %v7334_v5  ;;  %v12098_v16 = vld [vmem:[#allocation13_spill] sm:$0xff]  ;;  %v12099_v5 = vld [vmem:[#allocation16_spill] sm:$0xff] }
 0x136   : > { %7897 = vrot.lane.b32.xlu1 %v7896_v50, %s8593_s13  ;;  %v12090_v50 = vld [vmem:[#allocation5_spill] sm:$0xff]  ;;  %v9555_v11 = vsel %vm280_vm0, %v12097_v4, %v7345_v42  ;;  %v7359_v42 = vunpack.i.l.bf16 %v9235_v32  ;;  %v7365_v62 = vunpack.i.h.bf16 %v9237_v40  ;;  %v7364_v58 = vunpack.i.l.bf16 %v9237_v40 }
 0x137   : > { %7902 = vrot.lane.b32.xlu0 %v7901_v48, %s8594_s20  ;;  %v9522_v44 = vsel %vm280_vm0, %v12090_v50, %v7324_v18  ;;  %v12091_v48 = vld [vmem:[#allocation8_spill] sm:$0xff]  ;;  %v9565_v50 = vsel %vm280_vm0, %v12099_v5, %v7350_v54  ;;  %v9581_v54 = vsel %vm280_vm0, %v9140_v2, %v7355_v45  ;;  %v7380_v40 = vunpack.i.h.bf16 %v9251_v43 }
 0x138   : > { %v9501_v33 = vpop.permute.xlu1 %7617  ;;  %v9526_v22 = vsel %vm280_vm0, %v12091_v48, %v7330_v39  ;;  %v12096_v39 = vld [vmem:[#allocation11_spill] sm:$0xff]  ;;  %v7379_v4 = vunpack.i.l.bf16 %v9251_v43  ;;  %v7389_v45 = vunpack.i.l.bf16 %v9261_v0  ;;  %v9610_v43 = vsel %vm1779_vm4, %v9415_v7, %v7365_v62 }
 0x139   : > { %v9510_v60 = vpop.permute.xlu0 %7622  ;;  %v9551_v12 = vsel %vm280_vm0, %v12096_v39, %v7339_v29  ;;  %v7360_v29 = vunpack.i.h.bf16 %v9235_v32  ;;  %v7375_v32 = vunpack.i.h.bf16 %v9245_v47  ;;  %v7374_v39 = vunpack.i.l.bf16 %v9245_v47 }
 0x13a   : > { %7907 = vrot.lane.b32.xlu1 %v7906_v20, %s8594_s20  ;;  %v12095_v20 = vld [vmem:[#allocation12_spill] sm:$0xff]  ;;  %v9606_v47 = vsel %vm280_vm0, %v9142_v51, %v7359_v42  ;;  %v7395_v5 = vunpack.i.h.bf16 %v9263_v1  ;;  %v7394_v7 = vunpack.i.l.bf16 %v9263_v1  ;;  %v12103_v42 = vld [vmem:[#allocation17_spill] sm:$0xff] }
 0x13b   : > { %7912 = vrot.lane.b32.xlu0 %v9257_v55, %s8595_s21  ;;  %v9547_v18 = vsel %vm280_vm0, %v12095_v20, %v7340_v35  ;;  %v9561_v55 = vsel %vm280_vm0, %v12098_v16, %v7344_v10  ;;  %v12100_v35 = vld [vmem:[#allocation15_spill] sm:$0xff]  ;;  %v7369_v10 = vunpack.i.l.bf16 %v9243_v41  ;;  %v7370_v20 = vunpack.i.h.bf16 %v9243_v41  ;;  %12102 = vst [vmem:[#allocation6_spill] sm:$0xff] %v9606_v47 }
 0x13c   : > { %v9557_v31 = vpop.permute.xlu1 %7627  ;;  %v9569_v48 = vsel %vm280_vm0, %v12100_v35, %v7349_v57  ;;  %v9585_v57 = vsel %vm280_vm0, %v9138_v6, %v7354_v21  ;;  %v9597_v2 = vsel %vm280_vm0, %v9144_v52, %v7360_v29  ;;  %v7385_v6 = vunpack.i.h.bf16 %v9253_v53 }
 0x13d   : > { %v9572_v23 = vpop.permute.xlu0 %7632  ;;  %12101 = vst [vmem:[#allocation4_spill] sm:$0xff] %v9597_v2  ;;  %v7390_v41 = vunpack.i.h.bf16 %v9261_v0  ;;  %v9614_v52 = vsel %vm1779_vm4, %v9426_v46, %v7364_v58  ;;  %v9622_v0 = vsel %vm1779_vm4, %v9447_v61, %v7370_v20  ;;  %v9626_v51 = vsel %vm1779_vm4, %v9438_v56, %v7375_v32  ;;  %v12105_v32 = vld [vmem:[#allocation19_spill] sm:$0xff] }
 0x13e   : > { %7917 = vrot.lane.b32.xlu1 %v7916_v28, %s8595_s21  ;;  %v7384_v28 = vunpack.i.l.bf16 %v9253_v53  ;;  %v9618_v53 = vsel %vm1779_vm4, %v9442_v25, %v7369_v10  ;;  %v9632_v46 = vsel %vm1779_vm4, %v9434_v49, %v7374_v39  ;;  %v9636_v25 = vsel %vm1779_vm4, %v9454_v14, %v7380_v40  ;;  %v12106_v40 = vld [vmem:[#allocation20_spill] sm:$0xff] }
 0x13f   : > { %v9640_v61 = vsel %vm1779_vm4, %v9458_v17, %v7379_v4  ;;  %v9650_v1 = vsel %vm1779_vm4, %v9462_v26, %v7385_v6  ;;  %v9654_v49 = vsel %vm1779_vm4, %v9472_v3, %v7390_v41  ;;  %v9658_v14 = vsel %vm1779_vm4, %v9476_v24, %v7389_v45  ;;  %v12104_v26 = vld [vmem:[#allocation18_spill] sm:$0xff]  ;;  %v12107_v6 = vld [vmem:[#allocation21_spill] sm:$0xff] }
 0x140   : > { %v9593_v16 = vpop.permute.xlu1 %7637  ;;  %v9644_v56 = vsel %vm1779_vm4, %v9466_v15, %v7384_v28  ;;  %v7400_v17 = vunpack.i.h.bf16 %v9269_v8  ;;  %v7399_v15 = vunpack.i.l.bf16 %v9269_v8  ;;  %v7405_v62 = vunpack.i.h.bf16 %v12103_v42 }
 0x141   : > { %v9602_v21 = vpop.permute.xlu0 %7642  ;;  %v7404_v58 = vunpack.i.l.bf16 %v12103_v42  ;;  %v7410_v10 = vunpack.i.h.bf16 %v12104_v26  ;;  %v9669_v3 = vsel %vm1779_vm4, %v9492_v30, %v7394_v7  ;;  %v9673_v24 = vsel %vm1779_vm4, %v9488_v34, %v7395_v5  ;;  %v12109_v5 = vld [vmem:[#allocation22_spill] sm:$0xff] }
 0x142   : > { %v7409_v20 = vunpack.i.l.bf16 %v12104_v26  ;;  %v7414_v39 = vunpack.i.l.bf16 %v12105_v32  ;;  %v7415_v8 = vunpack.i.h.bf16 %v12105_v32  ;;  %v7420_v4 = vunpack.i.h.bf16 %v12106_v40 }
 0x143   : > { %v7419_v28 = vunpack.i.l.bf16 %v12106_v40  ;;  %v7424_v41 = vunpack.i.l.bf16 %v12107_v6  ;;  %v9685_v30 = vsel %vm1779_vm4, %v9505_v38, %v7400_v17  ;;  %v7425_v34 = vunpack.i.h.bf16 %v12107_v6 }
 0x144   : > { %v9646_v35 = vpop.permute.xlu1 %7647  ;;  %v7430_v7 = vunpack.i.h.bf16 %v12109_v5  ;;  %v7429_v42 = vunpack.i.l.bf16 %v12109_v5  ;;  %v9694_v32 = vsel %vm1779_vm4, %v9514_v37, %v7399_v15  ;;  %v9698_v40 = vsel %vm1779_vm4, %v9522_v44, %v7404_v58  ;;  %v12111_v15 = vld [vmem:[#allocation23_spill] sm:$0xff] }
 0x145   : > { %v9661_v29 = vpop.permute.xlu0 %7652  ;;  %v9702_v38 = vsel %vm1779_vm4, %v9518_v36, %v7405_v62  ;;  %v9706_v17 = vsel %vm1779_vm4, %v9526_v22, %v7410_v10  ;;  %v9710_v6 = vsel %vm1779_vm4, %v9531_v13, %v7409_v20  ;;  %v9714_v37 = vsel %vm1779_vm4, %v9543_v27, %v7414_v39  ;;  %v12117_v39 = vld [vmem:[#allocation26_spill] sm:$0xff] }
 0x146   : > { %v7435_v5 = vunpack.i.h.bf16 %v12111_v15  ;;  %v7434_v44 = vunpack.i.l.bf16 %v12111_v15  ;;  %v9720_v36 = vsel %vm1779_vm4, %v9535_v19, %v7415_v8  ;;  %v9724_v22 = vsel %vm1779_vm4, %v9547_v18, %v7420_v4 }
 0x147   : > { %v9728_v13 = vsel %vm1779_vm4, %v9551_v12, %v7419_v28  ;;  %v9732_v27 = vsel %vm1779_vm4, %v9561_v55, %v7424_v41  ;;  %v9738_v58 = vsel %vm1779_vm4, %v9555_v11, %v7425_v34  ;;  %v9742_v19 = vsel %vm1779_vm4, %v9565_v50, %v7430_v7  ;;  %v12115_v12 = vld [vmem:[#allocation25_spill] sm:$0xff]  ;;  %v12118_v11 = vld [vmem:[#allocation27_spill] sm:$0xff]  ;;  %v12121_v34 = vld [vmem:[#allocation28_spill] sm:$0xff] }
 0x148   : > { %v9681_v45 = vpop.permute.xlu1 %7657  ;;  %12113 = vst [vmem:[#allocation10_spill] sm:$0xff] %v9742_v19  ;;  %v9746_v18 = vsel %vm1779_vm4, %v9569_v48, %v7429_v42  ;;  %v7444_v10 = vunpack.i.l.bf16 %v12115_v12  ;;  %v7445_v55 = vunpack.i.h.bf16 %v12115_v12  ;;  %v7450_v8 = vunpack.i.h.bf16 %v12117_v39  ;;  %v12132_v42 = vld [vmem:[#allocation37_spill] sm:$0xff] }
 0x149   : > { %12108 = vst [vmem:[#allocation5_spill] sm:$0xff] %v9681_v45  ;;  %v9690_v26 = vpop.permute.xlu0 %7662  ;;  %12114 = vst [vmem:[#allocation9_spill] sm:$0xff] %v9746_v18  ;;  %v7449_v4 = vunpack.i.l.bf16 %v12117_v39  ;;  %v7454_v28 = vunpack.i.l.bf16 %v12118_v11  ;;  %v9757_v50 = vsel %vm1779_vm4, %v9585_v57, %v7434_v44  ;;  %v9761_v48 = vsel %vm1779_vm4, %v9581_v54, %v7435_v5  ;;  %v12125_v5 = vld [vmem:[#allocation30_spill] sm:$0xff] }
 0x14a   : > { %12110 = vst [vmem:[#allocation8_spill] sm:$0xff] %v9690_v26  ;;  %12119 = vst [vmem:[#allocation11_spill] sm:$0xff] %v9757_v50  ;;  %v7455_v41 = vunpack.i.h.bf16 %v12118_v11  ;;  %v7459_v7 = vunpack.i.l.bf16 %v12121_v34  ;;  %v7460_v12 = vunpack.i.h.bf16 %v12121_v34  ;;  %v1813_v54 = vsel %vm1812_vm5, %v9614_v52, %v7444_v10 }
 0x14b   : > { %12120 = vst [vmem:[#allocation14_spill] sm:$0xff] %v9761_v48  ;;  %v7470_v44 = vunpack.i.h.bf16 %v12125_v5  ;;  %v7469_v11 = vunpack.i.l.bf16 %v12125_v5  ;;  %v1814_v34 = vsel %vm1812_vm5, %v9610_v43, %v7445_v55  ;;  %v1815_v15 = vsel %vm1812_vm5, %v9618_v53, %v7449_v4  ;;  %v12126_v5 = vld [vmem:[#allocation31_spill] sm:$0xff] }
 0x14c   : > { %v9734_v62 = vpop.permute.xlu1 %7667  ;;  %v1817_v57 = vsel %vm1812_vm5, %v9632_v46, %v7454_v28  ;;  %v9788_v52 = vsel %vm1812_vm5, %v9626_v51, %v7455_v41  ;;  %v9792_v10 = vsel %vm1812_vm5, %v9640_v61, %v7459_v7  ;;  %v7475_v43 = vunpack.i.h.bf16 %v12126_v5  ;;  %v12127_v46 = vld [vmem:[#allocation32_spill] sm:$0xff]  ;;  %v12129_v7 = vld [vmem:[#allocation34_spill] sm:$0xff] }
 0x14d   : > { %12112 = vst [vmem:[#allocation7_spill] sm:$0xff] %v9734_v62  ;;  %v9749_v20 = vpop.permute.xlu0 %7672  ;;  %v7474_v55 = vunpack.i.l.bf16 %v12126_v5  ;;  %v9798_v53 = vsel %vm1812_vm5, %v9636_v25, %v7460_v12  ;;  %v9813_v4 = vsel %vm1812_vm5, %v9658_v14, %v7469_v11  ;;  %v9817_v25 = vsel %vm1812_vm5, %v9654_v49, %v7470_v44  ;;  %v12130_v5 = vld [vmem:[#allocation35_spill] sm:$0xff]  ;;  %v12131_v11 = vld [vmem:[#allocation36_spill] sm:$0xff] }
 0x14e   : > { %12116 = vst [vmem:[#allocation12_spill] sm:$0xff] %v9749_v20  ;;  %v12123_v20 = vld [vmem:[#allocation29_spill] sm:$0xff]  ;;  %v7480_v28 = vunpack.i.h.bf16 %v12127_v46  ;;  %v7490_v12 = vunpack.i.h.bf16 %v12129_v7  ;;  %v1826_v49 = vsel %vm1812_vm5, %v9673_v24, %v7475_v43  ;;  %v7495_v44 = vunpack.i.h.bf16 %v12130_v5 }
 0x14f   : > { %v7465_v39 = vunpack.i.h.bf16 %v12123_v20  ;;  %v7464_v47 = vunpack.i.l.bf16 %v12123_v20  ;;  %v1816_v20 = vsel %vm1812_vm5, %v9622_v0, %v7450_v8  ;;  %v7479_v8 = vunpack.i.l.bf16 %v12127_v46  ;;  %v12133_v43 = vld [vmem:[#allocation41_spill] sm:$0xff] }
 0x150   : > { %v9769_v2 = vpop.permute.xlu1 %7677  ;;  %v1825_v14 = vsel %vm1812_vm5, %v9669_v3, %v7474_v55  ;;  %v7499_v46 = vunpack.i.l.bf16 %v12131_v11  ;;  %v7505_v62 = vunpack.i.h.bf16 %v12132_v42  ;;  %v1828_v3 = vsel %vm1812_vm5, %v9685_v30, %v7480_v28 }
 0x151   : > { %12124 = vst [vmem:[#allocation13_spill] sm:$0xff] %v9769_v2  ;;  %v9776_v48 = vpop.permute.xlu0 %7682  ;;  %v9802_v0 = vsel %vm1812_vm5, %v9644_v56, %v7464_v47  ;;  %v9806_v51 = vsel %vm1812_vm5, %v9650_v1, %v7465_v39  ;;  %v12128_v47 = vld [vmem:[#allocation33_spill] sm:$0xff]  ;;  %v7489_v39 = vunpack.i.l.bf16 %v12129_v7  ;;  %v7494_v2 = vunpack.i.l.bf16 %v12130_v5 }
 0x152   : > { %v7484_v56 = vunpack.i.l.bf16 %v12128_v47  ;;  %v7485_v1 = vunpack.i.h.bf16 %v12128_v47  ;;  %v1827_v50 = vsel %vm1812_vm5, %v9694_v32, %v7479_v8  ;;  %v7500_v47 = vunpack.i.h.bf16 %v12131_v11 }
 0x153   : > { %v7504_v7 = vunpack.i.l.bf16 %v12132_v42  ;;  %v7525_v55 = vunpack.i.h.bf16 %v12133_v43  ;;  %v7524_v5 = vunpack.i.l.bf16 %v12133_v43  ;;  %v9852_v42 = vsel %vm1812_vm5, %v9710_v6, %v7489_v39 }
 0x154   : > { %v9809_v61 = vpop.permute.xlu1 %7687  ;;  %v1829_v24 = vsel %vm1812_vm5, %v9698_v40, %v7484_v56  ;;  %v1830_v32 = vsel %vm1812_vm5, %v9702_v38, %v7485_v1  ;;  %v9856_v8 = vsel %vm1812_vm5, %v9706_v17, %v7490_v12  ;;  %v9860_v30 = vsel %vm1812_vm5, %v9714_v37, %v7494_v2  ;;  %v12135_v38 = vld [vmem:[#allocation42_spill] sm:$0xff] }
 0x155   : > { %v9821_v41 = vpop.permute.xlu0 %7692  ;;  %v9864_v40 = vsel %vm1812_vm5, %v9720_v36, %v7495_v44  ;;  %v9868_v28 = vsel %vm1812_vm5, %v9728_v13, %v7499_v46  ;;  %v7530_v56 = vunpack.i.h.bf16 %v12135_v38  ;;  %v7529_v6 = vunpack.i.l.bf16 %v12135_v38  ;;  %v12139_v36 = vld [vmem:[#allocation43_spill] sm:$0xff]  ;;  %v12140_v44 = vld [vmem:[#allocation44_spill] sm:$0xff] }
 0x156   : > { %12134 = vst [vmem:[#allocation16_spill] sm:$0xff] %v9868_v28  ;;  %v9874_v17 = vsel %vm1812_vm5, %v9724_v22, %v7500_v47  ;;  %v9878_v2 = vsel %vm1812_vm5, %v9732_v27, %v7504_v7  ;;  %v9882_v37 = vsel %vm1812_vm5, %v9738_v58, %v7505_v62  ;;  %v7534_v1 = vunpack.i.l.bf16 %v12139_v36  ;;  %v12141_v47 = vld [vmem:[#allocation45_spill] sm:$0xff]  ;;  %v12142_v7 = vld [vmem:[#allocation46_spill] sm:$0xff] }
 0x157   : > { %12136 = vst [vmem:[#allocation15_spill] sm:$0xff] %v9874_v17  ;;  %12137 = vst [vmem:[#allocation17_spill] sm:$0xff] %v9878_v2  ;;  %v1846_v12 = vsel %vm1845_vm6, %v1813_v54, %v7524_v5  ;;  %v1847_v39 = vsel %vm1845_vm6, %v1814_v34, %v7525_v55  ;;  %v7535_v22 = vunpack.i.h.bf16 %v12139_v36  ;;  %v7539_v11 = vunpack.i.l.bf16 %v12140_v44  ;;  %v12143_v55 = vld [vmem:[#allocation47_spill] sm:$0xff]  ;;  %v12144_v2 = vld [vmem:[#allocation48_spill] sm:$0xff] }
 0x158   : > { %v9838_v19 = vpop.permute.xlu1 %7697  ;;  %12138 = vst [vmem:[#allocation18_spill] sm:$0xff] %v9882_v37  ;;  %v7540_v27 = vunpack.i.h.bf16 %v12140_v44  ;;  %v7545_v62 = vunpack.i.h.bf16 %v12141_v47  ;;  %v7544_v58 = vunpack.i.l.bf16 %v12141_v47  ;;  %v7549_v43 = vunpack.i.l.bf16 %v12142_v7 }
 0x159   : > { %v9846_v26 = vpop.permute.xlu0 %7702  ;;  %v1848_v38 = vsel %vm1845_vm6, %v1815_v15, %v7529_v6  ;;  %v1849_v54 = vsel %vm1845_vm6, %v1816_v20, %v7530_v56  ;;  %v7550_v34 = vunpack.i.h.bf16 %v12142_v7  ;;  %v7554_v5 = vunpack.i.l.bf16 %v12143_v55  ;;  %v12145_v20 = vld [vmem:[#allocation49_spill] sm:$0xff]  ;;  %v12147_v7 = vld [vmem:[#allocation51_spill] sm:$0xff] }
 0x15a   : > { %v1850_v36 = vsel %vm1845_vm6, %v1817_v57, %v7534_v1  ;;  %v7555_v37 = vunpack.i.h.bf16 %v12143_v55  ;;  %v7560_v44 = vunpack.i.h.bf16 %v12144_v2  ;;  %v7559_v18 = vunpack.i.l.bf16 %v12144_v2 }
 0x15b   : > { %v1851_v47 = vsel %vm1845_vm6, %v9788_v52, %v7535_v22  ;;  %v1852_v15 = vsel %vm1845_vm6, %v9792_v10, %v7539_v11  ;;  %v7565_v56 = vunpack.i.h.bf16 %v12145_v20  ;;  %v7564_v6 = vunpack.i.l.bf16 %v12145_v20 }
 0x15c   : > { %v9885_v13 = vpop.permute.xlu1 %7707  ;;  %v1853_v1 = vsel %vm1845_vm6, %v9798_v53, %v7540_v27  ;;  %v9919_v2 = vsel %vm1845_vm6, %v9802_v0, %v7544_v58  ;;  %v9923_v52 = vsel %vm1845_vm6, %v9806_v51, %v7545_v62  ;;  %v9927_v10 = vsel %vm1845_vm6, %v9813_v4, %v7549_v43 }
 0x15d   : > { %v9891_v46 = vpop.permute.xlu0 %7712  ;;  %v9931_v22 = vsel %vm1845_vm6, %v9817_v25, %v7550_v34  ;;  %v9934_v11 = vsel %vm1845_vm6, %v1825_v14, %v7554_v5  ;;  %v7605_v53 = vunpack.i.h.bf16 %v9430_v59  ;;  %v7604_v0 = vunpack.i.l.bf16 %v9430_v59 }
 0x15e   : > { %v9939_v27 = vsel %vm1845_vm6, %v1826_v49, %v7555_v37  ;;  %v9942_v51 = vsel %vm1845_vm6, %v1827_v50, %v7559_v18  ;;  %v9945_v4 = vsel %vm1845_vm6, %v1828_v3, %v7560_v44  ;;  %v7609_v25 = vunpack.i.l.bf16 %v9468_v63  ;;  %v12146_v50 = vld [vmem:[#allocation50_spill] sm:$0xff] }
 0x15f   : > { %v9951_v14 = vsel %vm1845_vm6, %v1829_v24, %v7564_v6  ;;  %v9954_v59 = vsel %vm1845_vm6, %v1830_v32, %v7565_v56  ;;  %v7610_v49 = vunpack.i.h.bf16 %v9468_v63  ;;  %v7614_v37 = vunpack.i.l.bf16 %v9479_v9 }
 0x160   : > { %v9905_v17 = vpop.permute.xlu1 %7717  ;;  %v7615_v34 = vunpack.i.h.bf16 %v9479_v9  ;;  %v1879_v55 = vsel %vm1878_vm7, %v1846_v12, %v7604_v0  ;;  %v1880_v32 = vsel %vm1878_vm7, %v1847_v39, %v7605_v53  ;;  %v7619_v63 = vunpack.i.l.bf16 %v9501_v33 }
 0x161   : > { %v9913_v57 = vpop.permute.xlu0 %7722  ;;  %v1881_v5 = vsel %vm1878_vm7, %v1848_v38, %v7609_v25  ;;  %v7620_v44 = vunpack.i.h.bf16 %v9501_v33  ;;  %v7685_v20 = vunpack.i.h.bf16 %v9776_v48  ;;  %v7684_v56 = vunpack.i.l.bf16 %v9776_v48 }
 0x162   : > { %v1882_v9 = vsel %vm1878_vm7, %v1849_v54, %v7610_v49  ;;  %v1883_v43 = vsel %vm1878_vm7, %v1850_v36, %v7614_v37  ;;  %v7690_v12 = vunpack.i.h.bf16 %v9809_v61  ;;  %v7689_v39 = vunpack.i.l.bf16 %v9809_v61 }
 0x163   : > { %v1884_v0 = vsel %vm1878_vm7, %v1851_v47, %v7615_v34  ;;  %v7625_v38 = vunpack.i.h.bf16 %v9510_v60  ;;  %v1885_v24 = vsel %vm1878_vm7, %v1852_v15, %v7619_v63  ;;  %v7624_v48 = vunpack.i.l.bf16 %v9510_v60 }
 0x164   : > { %v9948_v62 = vpop.permute.xlu1 %7727  ;;  %v1886_v54 = vsel %vm1878_vm7, %v1853_v1, %v7620_v44  ;;  %v7695_v36 = vunpack.i.h.bf16 %v9821_v41  ;;  %v1912_v61 = vsel %vm1911_vm8, %v1879_v55, %v7684_v56  ;;  %v1913_v37 = vsel %vm1911_vm8, %v1880_v32, %v7685_v20 }
 0x165   : > { %v9958_v18 = vpop.permute.xlu0 %7732  ;;  %v1914_v47 = vsel %vm1911_vm8, %v1881_v5, %v7689_v39  ;;  %v1915_v34 = vsel %vm1911_vm8, %v1882_v9, %v7690_v12  ;;  %v7694_v5 = vunpack.i.l.bf16 %v9821_v41  ;;  %v1887_v39 = vsel %vm1878_vm7, %v9919_v2, %v7624_v48 }
 0x166   : > { %v7630_v41 = vunpack.i.h.bf16 %v9557_v31 }
 0x168   : > { %v7738_v6 = vpop.permute.xlu1 %7737 }
 0x169   : > { %v7743_v53 = vpop.permute.xlu0 %7742  ;;  %v7740_v25 = vunpack.i.h.bf16 %v7738_v6  ;;  %v7739_v33 = vunpack.i.l.bf16 %v7738_v6 }
 0x16a   : > { %v7745_v3 = vunpack.i.h.bf16 %v7743_v53  ;;  %v7744_v58 = vunpack.i.l.bf16 %v7743_v53 }
 0x16b   : > { %v1945_v53 = vsel %vm1944_vm9, %v1912_v61, %v7739_v33  ;;  %v1946_v1 = vsel %vm1944_vm9, %v1913_v37, %v7740_v25  ;;  %v7700_v25 = vunpack.i.h.bf16 %v9838_v19  ;;  %v7635_v37 = vunpack.i.h.bf16 %v9572_v23 }
 0x16c   : > { %v7748_v49 = vpop.permute.xlu1 %7747  ;;  %v1947_v44 = vsel %vm1944_vm9, %v1914_v47, %v7744_v58  ;;  %v1948_v45 = vsel %vm1944_vm9, %v1915_v34, %v7745_v3  ;;  %v7699_v58 = vunpack.i.l.bf16 %v9838_v19  ;;  %v7634_v19 = vunpack.i.l.bf16 %v9572_v23 }
 0x16d   : > { %v7750_v6 = vunpack.i.h.bf16 %v7748_v49  ;;  %v7749_v28 = vunpack.i.l.bf16 %v7748_v49  ;;  %v7753_v15 = vpop.permute.xlu0 %7752  ;;  %v1916_v47 = vsel %vm1911_vm8, %v1883_v43, %v7694_v5 }
 0x16e   : > { %v7755_v63 = vunpack.i.h.bf16 %v7753_v15  ;;  %v7754_v60 = vunpack.i.l.bf16 %v7753_v15  ;;  %v1919_v15 = vsel %vm1911_vm8, %v1886_v54, %v7700_v25 }
 0x16f   : > { %v1978_v55 = vsel %vm1977_vm10, %v1945_v53, %v7749_v28  ;;  %v1979_v32 = vsel %vm1977_vm10, %v1946_v1, %v7750_v6  ;;  %v1888_v28 = vsel %vm1878_vm7, %v9923_v52, %v7625_v38  ;;  %v1917_v52 = vsel %vm1911_vm8, %v1884_v0, %v7695_v36 }
 0x170   : > { %v1980_v20 = vsel %vm1977_vm10, %v1947_v44, %v7754_v60  ;;  %v1981_v56 = vsel %vm1977_vm10, %v1948_v45, %v7755_v63  ;;  %v7758_v9 = vpop.permute.xlu1 %7757  ;;  %v2010_v12 = vpack.c.bf16 %v1979_v32, %v1978_v55  ;;  %v7629_v45 = vunpack.i.l.bf16 %v9557_v31 }
 0x171   : > { %v7763_v3 = vpop.permute.xlu0 %7762  ;;  %v2011_v33 = vpack.c.bf16 %v1981_v56, %v1980_v20  ;;  %v7760_v49 = vunpack.i.h.bf16 %v7758_v9  ;;  %v7759_v61 = vunpack.i.l.bf16 %v7758_v9  ;;  %v7705_v38 = vunpack.i.h.bf16 %v9846_v26 }
 0x172   : > { %7177 = vmatprep.mubr.msk.bf16.mxu0 %vm2053_vm11, %v2010_v12  ;;  %v7765_v2 = vunpack.i.h.bf16 %v7763_v3  ;;  %v7764_v48 = vunpack.i.l.bf16 %v7763_v3  ;;  %v1918_v6 = vsel %vm1911_vm8, %v1885_v24, %v7699_v58  ;;  %v7704_v24 = vunpack.i.l.bf16 %v9846_v26 }
 0x173   : > { %7178 = vmatmul.mubr.msk.bf16.vlgmr.msra.gmra.mrb[0].mxu0 %vm2053_vm11, %v2011_v33  ;;  %v1949_v53 = vsel %vm1944_vm9, %v1916_v47, %v7759_v61  ;;  %v1950_v1 = vsel %vm1944_vm9, %v1917_v52, %v7760_v49  ;;  %v1889_v56 = vsel %vm1878_vm7, %v9927_v10, %v7629_v45  ;;  %v7710_v9 = vunpack.i.h.bf16 %v9885_v13 }
 0x174   : > { %v7768_v34 = vpop.permute.xlu1 %7767  ;;  %v1952_v43 = vsel %vm1944_vm9, %v1919_v15, %v7765_v2  ;;  %v1951_v0 = vsel %vm1944_vm9, %v1918_v6, %v7764_v48  ;;  %v7709_v12 = vunpack.i.l.bf16 %v9885_v13  ;;  %v1890_v3 = vsel %vm1878_vm7, %v9931_v22, %v7630_v41 }
 0x175   : > { %v7770_v31 = vunpack.i.h.bf16 %v7768_v34  ;;  %v7769_v63 = vunpack.i.l.bf16 %v7768_v34  ;;  %v7773_v60 = vpop.permute.xlu0 %7772  ;;  %v1891_v26 = vsel %vm1878_vm7, %v9934_v11, %v7634_v19  ;;  %v1892_v61 = vsel %vm1878_vm7, %v9939_v27, %v7635_v37 }
 0x176   : > { %v7775_v44 = vunpack.i.h.bf16 %v7773_v60  ;;  %v7774_v23 = vunpack.i.l.bf16 %v7773_v60  ;;  %v7640_v10 = vunpack.i.h.bf16 %v9593_v16  ;;  %v7639_v13 = vunpack.i.l.bf16 %v9593_v16 }
 0x177   : > { %v1982_v36 = vsel %vm1977_vm10, %v1949_v53, %v7769_v63  ;;  %v1983_v55 = vsel %vm1977_vm10, %v1950_v1, %v7770_v31  ;;  %v1920_v22 = vsel %vm1911_vm8, %v1887_v39, %v7704_v24  ;;  %v1921_v41 = vsel %vm1911_vm8, %v1888_v28, %v7705_v38 }
 0x178   : > { %v1984_v54 = vsel %vm1977_vm10, %v1951_v0, %v7774_v23  ;;  %v1985_v32 = vsel %vm1977_vm10, %v1952_v43, %v7775_v44  ;;  %v7778_v5 = vpop.permute.xlu1 %7777  ;;  %v2012_v20 = vpack.c.bf16 %v1983_v55, %v1982_v36  ;;  %v7715_v11 = vunpack.i.h.bf16 %v9891_v46 }
 0x179   : > { %v7783_v25 = vpop.permute.xlu0 %7782  ;;  %v2013_v58 = vpack.c.bf16 %v1985_v32, %v1984_v54  ;;  %v7780_v33 = vunpack.i.h.bf16 %v7778_v5  ;;  %v7779_v49 = vunpack.i.l.bf16 %v7778_v5  ;;  %v1922_v19 = vsel %vm1911_vm8, %v1889_v56, %v7709_v12 }
 0x17a   : > { %7181 = vmatprep.mubr.msk.bf16.mxu0 %vm2053_vm11, %v2012_v20  ;;  %v7785_v45 = vunpack.i.h.bf16 %v7783_v25  ;;  %v7784_v2 = vunpack.i.l.bf16 %v7783_v25  ;;  %v1923_v47 = vsel %vm1911_vm8, %v1890_v3, %v7710_v9  ;;  %v7714_v63 = vunpack.i.l.bf16 %v9891_v46 }
 0x17b   : > { %7182 = vmatmul.mubr.msk.bf16.gmra.mrb[4].mxu0 %vm2053_vm11, %v2013_v58  ;;  %v1953_v34 = vsel %vm1944_vm9, %v1920_v22, %v7779_v49  ;;  %v1954_v6 = vsel %vm1944_vm9, %v1921_v41, %v7780_v33  ;;  %v7645_v23 = vunpack.i.h.bf16 %v9602_v21  ;;  %v7720_v43 = vunpack.i.h.bf16 %v9905_v17 }
 0x17c   : > { %v7788_v48 = vpop.permute.xlu1 %7787  ;;  %v1956_v39 = vsel %vm1944_vm9, %v1923_v47, %v7785_v45  ;;  %v1955_v28 = vsel %vm1944_vm9, %v1922_v19, %v7784_v2  ;;  %v7719_v0 = vunpack.i.l.bf16 %v9905_v17  ;;  %v1893_v24 = vsel %vm1878_vm7, %v9942_v51, %v7639_v13 }
 0x17d   : > { %v7790_v27 = vunpack.i.h.bf16 %v7788_v48  ;;  %v7789_v37 = vunpack.i.l.bf16 %v7788_v48  ;;  %v7793_v52 = vpop.permute.xlu0 %7792  ;;  %v7644_v54 = vunpack.i.l.bf16 %v9602_v21  ;;  %v1894_v5 = vsel %vm1878_vm7, %v9945_v4, %v7640_v10 }
 0x17e   : > { %v7795_v15 = vunpack.i.h.bf16 %v7793_v52  ;;  %v7794_v16 = vunpack.i.l.bf16 %v7793_v52  ;;  %v7650_v20 = vunpack.i.h.bf16 %v9646_v35  ;;  %v7649_v17 = vunpack.i.l.bf16 %v9646_v35 }
 0x17f   : > { %v1986_v38 = vsel %vm1977_vm10, %v1953_v34, %v7789_v37  ;;  %v1987_v31 = vsel %vm1977_vm10, %v1954_v6, %v7790_v27  ;;  %v1924_v12 = vsel %vm1911_vm8, %v1891_v26, %v7714_v63  ;;  %v1925_v51 = vsel %vm1911_vm8, %v1892_v61, %v7715_v11 }
 0x180   : > { %v1988_v60 = vsel %vm1977_vm10, %v1955_v28, %v7794_v16  ;;  %v1989_v53 = vsel %vm1977_vm10, %v1956_v39, %v7795_v15  ;;  %v7798_v1 = vpop.permute.xlu1 %7797  ;;  %v2014_v44 = vpack.c.bf16 %v1987_v31, %v1986_v38  ;;  %v7725_v21 = vunpack.i.h.bf16 %v9913_v57 }
 0x181   : > { %v7803_v36 = vpop.permute.xlu0 %7802  ;;  %v2015_v55 = vpack.c.bf16 %v1989_v53, %v1988_v60  ;;  %v7800_v46 = vunpack.i.h.bf16 %v7798_v1  ;;  %v7799_v32 = vunpack.i.l.bf16 %v7798_v1  ;;  %v1926_v58 = vsel %vm1911_vm8, %v1893_v24, %v7719_v0 }
 0x182   : > { %7185 = vmatprep.mubr.msk.bf16.mxu0 %vm2053_vm11, %v2014_v44  ;;  %v7805_v56 = vunpack.i.h.bf16 %v7803_v36  ;;  %v7804_v9 = vunpack.i.l.bf16 %v7803_v36  ;;  %v1927_v3 = vsel %vm1911_vm8, %v1894_v5, %v7720_v43  ;;  %v7724_v41 = vunpack.i.l.bf16 %v9913_v57 }
 0x183   : > { %7186 = vmatmul.mubr.msk.bf16.gmra.mrb[8].mxu0 %vm2053_vm11, %v2015_v55  ;;  %v1957_v10 = vsel %vm1944_vm9, %v1924_v12, %v7799_v32  ;;  %v1958_v45 = vsel %vm1944_vm9, %v1925_v51, %v7800_v46  ;;  %v12148_v27 = vunpack.i.l.bf16 %v12146_v50  ;;  %v7730_v52 = vunpack.i.h.bf16 %v9948_v62  ;;  %v12150_v51 = vld [vmem:[#allocation52_spill] sm:$0xff] }
 0x184   : > { %v7808_v25 = vpop.permute.xlu1 %7807  ;;  %v1960_v26 = vsel %vm1944_vm9, %v1927_v3, %v7805_v56  ;;  %v1959_v61 = vsel %vm1944_vm9, %v1926_v58, %v7804_v9  ;;  %v7729_v34 = vunpack.i.l.bf16 %v9948_v62  ;;  %v12149_v16 = vunpack.i.h.bf16 %v12146_v50 }
 0x185   : > { %v7810_v4 = vunpack.i.h.bf16 %v7808_v25  ;;  %v7809_v33 = vunpack.i.l.bf16 %v7808_v25  ;;  %v7813_v49 = vpop.permute.xlu0 %7812  ;;  %v1864_v37 = vsel %vm1845_vm6, %v9852_v42, %v12148_v27  ;;  %v1895_v39 = vsel %vm1878_vm7, %v9951_v14, %v7644_v54 }
 0x186   : > { %v7815_v2 = vunpack.i.h.bf16 %v7813_v49  ;;  %v7814_v35 = vunpack.i.l.bf16 %v7813_v49  ;;  %v1865_v57 = vsel %vm1845_vm6, %v9856_v8, %v12149_v16  ;;  %v1896_v42 = vsel %vm1878_vm7, %v9954_v59, %v7645_v23 }
 0x187   : > { %v1990_v13 = vsel %vm1977_vm10, %v1957_v10, %v7809_v33  ;;  %v1991_v22 = vsel %vm1977_vm10, %v1958_v45, %v7810_v4  ;;  %v7655_v31 = vunpack.i.h.bf16 %v9661_v29  ;;  %v1897_v50 = vsel %vm1878_vm7, %v1864_v37, %v7649_v17  ;;  %v12151_v33 = vld [vmem:[#allocation38_spill] sm:$0xff] }
 0x188   : > { %v1992_v11 = vsel %vm1977_vm10, %v1959_v61, %v7814_v35  ;;  %v1993_v48 = vsel %vm1977_vm10, %v1960_v26, %v7815_v2  ;;  %v7818_v19 = vpop.permute.xlu1 %7817  ;;  %v2016_v47 = vpack.c.bf16 %v1991_v22, %v1990_v13  ;;  %v1898_v8 = vsel %vm1878_vm7, %v1865_v57, %v7650_v20  ;;  %v12154_v26 = vld [vmem:[#allocation5_spill] sm:$0xff]  ;;  %v12156_v57 = vld [vmem:[#allocation15_spill] sm:$0xff] }
 0x189   : > { %v7823_v6 = vpop.permute.xlu0 %7822  ;;  %v2017_v15 = vpack.c.bf16 %v1993_v48, %v1992_v11  ;;  %v7820_v28 = vunpack.i.h.bf16 %v7818_v19  ;;  %v7819_v38 = vunpack.i.l.bf16 %v7818_v19  ;;  %v1928_v60 = vsel %vm1911_vm8, %v1895_v39, %v7724_v41  ;;  %v12155_v19 = vld [vmem:[#allocation16_spill] sm:$0xff] }
 0x18a   : > { %7189 = vmatprep.mubr.msk.bf16.mxu0 %vm2053_vm11, %v2016_v47  ;;  %v7825_v62 = vunpack.i.h.bf16 %v7823_v6  ;;  %v7824_v63 = vunpack.i.l.bf16 %v7823_v6  ;;  %v1929_v14 = vsel %vm1911_vm8, %v1896_v42, %v7725_v21  ;;  %v1930_v1 = vsel %vm1911_vm8, %v1897_v50, %v7729_v34 }
 0x18b   : > { %7190 = vmatmul.mubr.msk.bf16.gmra.mrb[12].mxu0 %vm2053_vm11, %v2017_v15  ;;  %v1931_v44 = vsel %vm1911_vm8, %v1898_v8, %v7730_v52  ;;  %v1961_v0 = vsel %vm1944_vm9, %v1928_v60, %v7819_v38  ;;  %v1962_v36 = vsel %vm1944_vm9, %v1929_v14, %v7820_v28  ;;  %v7654_v20 = vunpack.i.l.bf16 %v9661_v29 }
 0x18c   : > { %v7828_v53 = vpop.permute.xlu1 %7827  ;;  %v1964_v54 = vsel %vm1944_vm9, %v1931_v44, %v7825_v62  ;;  %v1963_v46 = vsel %vm1944_vm9, %v1930_v1, %v7824_v63  ;;  %v7579_v21 = vunpack.i.l.bf16 %v12150_v51  ;;  %v7735_v25 = vunpack.i.h.bf16 %v9958_v18 }
 0x18d   : > { %v7830_v59 = vunpack.i.h.bf16 %v7828_v53  ;;  %v7829_v23 = vunpack.i.l.bf16 %v7828_v53  ;;  %v7833_v43 = vpop.permute.xlu0 %7832  ;;  %v7734_v58 = vunpack.i.l.bf16 %v9958_v18  ;;  %v7510_v49 = vunpack.i.h.bf16 %v12151_v33 }
 0x18e   : > { %v7835_v55 = vunpack.i.h.bf16 %v7833_v43  ;;  %v7834_v24 = vunpack.i.l.bf16 %v7833_v43  ;;  %v7509_v10 = vunpack.i.l.bf16 %v12151_v33  ;;  %v12152_v29 = vunpack.i.l.bf16 %v12147_v7 }
 0x18f   : > { %v1994_v32 = vsel %vm1977_vm10, %v1961_v0, %v7829_v23  ;;  %v1995_v5 = vsel %vm1977_vm10, %v1962_v36, %v7830_v59  ;;  %v12153_v2 = vunpack.i.h.bf16 %v12147_v7  ;;  %v7580_v18 = vunpack.i.h.bf16 %v12150_v51  ;;  %v12157_v59 = vld [vmem:[#allocation53_spill] sm:$0xff] }
 0x190   : > { %v1996_v56 = vsel %vm1977_vm10, %v1963_v46, %v7834_v24  ;;  %v1997_v9 = vsel %vm1977_vm10, %v1964_v54, %v7835_v55  ;;  %v7838_v17 = vpop.permute.xlu1 %7837  ;;  %v2018_v12 = vpack.c.bf16 %v1995_v5, %v1994_v32  ;;  %v1866_v45 = vsel %vm1845_vm6, %v9860_v30, %v12152_v29  ;;  %v12158_v55 = vld [vmem:[#allocation39_spill] sm:$0xff]  ;;  %v12159_v5 = vld [vmem:[#allocation9_spill] sm:$0xff] }
 0x191   : > { %v7843_v3 = vpop.permute.xlu0 %7842  ;;  %v2019_v4 = vpack.c.bf16 %v1997_v9, %v1996_v56  ;;  %v1867_v35 = vsel %vm1845_vm6, %v9864_v40, %v12153_v2  ;;  %v7659_v61 = vunpack.i.l.bf16 %v12154_v26  ;;  %v1899_v41 = vsel %vm1878_vm7, %v1866_v45, %v7654_v20  ;;  %v12160_v56 = vld [vmem:[#allocation8_spill] sm:$0xff] }
 0x192   : > { %7193 = vmatprep.mubr.msk.bf16.mxu0 %vm2053_vm11, %v2018_v12  ;;  %v7845_v13 = vunpack.i.h.bf16 %v7843_v3  ;;  %v7844_v22 = vunpack.i.l.bf16 %v7843_v3  ;;  %v1900_v11 = vsel %vm1878_vm7, %v1867_v35, %v7655_v31  ;;  %v7660_v30 = vunpack.i.h.bf16 %v12154_v26  ;;  %v12163_v45 = vld [vmem:[#allocation40_spill] sm:$0xff]  ;;  %v12165_v26 = vld [vmem:[#allocation18_spill] sm:$0xff] }
 0x193   : > { %7194 = vmatmul.mubr.msk.bf16.gmra.mrb[16].mxu0 %vm2053_vm11, %v2019_v4  ;;  %v7839_v7 = vunpack.i.l.bf16 %v7838_v17  ;;  %v1868_v40 = vsel %vm1845_vm6, %v12155_v19, %v7579_v21  ;;  %v1932_v47 = vsel %vm1911_vm8, %v1899_v41, %v7734_v58  ;;  %v1933_v27 = vsel %vm1911_vm8, %v1900_v11, %v7735_v25  ;;  %v12161_v21 = vld [vmem:[#allocation10_spill] sm:$0xff] }
 0x194   : > { %v7848_v48 = vpop.permute.xlu1 %7847  ;;  %v7840_v37 = vunpack.i.h.bf16 %v7838_v17  ;;  %v1869_v39 = vsel %vm1845_vm6, %v12156_v57, %v7580_v18  ;;  %v1901_v28 = vsel %vm1878_vm7, %v1868_v40, %v7659_v61  ;;  %v1965_v38 = vsel %vm1944_vm9, %v1932_v47, %v7844_v22  ;;  %v12162_v58 = vld [vmem:[#allocation54_spill] sm:$0xff]  ;;  %v12164_v18 = vld [vmem:[#allocation17_spill] sm:$0xff] }
 0x195   : > { %v7853_v52 = vpop.permute.xlu0 %7852  ;;  %v7850_v34 = vunpack.i.h.bf16 %v7848_v48  ;;  %v7849_v6 = vunpack.i.l.bf16 %v7848_v48  ;;  %v1966_v42 = vsel %vm1944_vm9, %v1933_v27, %v7845_v13  ;;  %v1902_v31 = vsel %vm1878_vm7, %v1869_v39, %v7660_v30 }
 0x196   : > { %v7855_v15 = vunpack.i.h.bf16 %v7853_v52  ;;  %v7854_v16 = vunpack.i.l.bf16 %v7853_v52  ;;  %v1934_v62 = vsel %vm1911_vm8, %v1901_v28, %v7839_v7  ;;  %v1935_v60 = vsel %vm1911_vm8, %v1902_v31, %v7840_v37 }
 0x197   : > { %v7585_v23 = vunpack.i.h.bf16 %v12157_v59  ;;  %v7584_v43 = vunpack.i.l.bf16 %v12157_v59  ;;  %v1967_v0 = vsel %vm1944_vm9, %v1934_v62, %v7849_v6  ;;  %v1968_v36 = vsel %vm1944_vm9, %v1935_v60, %v7850_v34  ;;  %v12167_v59 = vld [vmem:[#allocation55_spill] sm:$0xff] }
 0x198   : > { %v1998_v63 = vsel %vm1977_vm10, %v1965_v38, %v7854_v16  ;;  %v1999_v50 = vsel %vm1977_vm10, %v1966_v42, %v7855_v15  ;;  %v7858_v8 = vpop.permute.xlu1 %7857  ;;  %v7515_v24 = vunpack.i.h.bf16 %v12158_v55  ;;  %v7514_v54 = vunpack.i.l.bf16 %v12158_v55 }
 0x199   : > { %v7860_v14 = vunpack.i.h.bf16 %v7858_v8  ;;  %v7859_v53 = vunpack.i.l.bf16 %v7858_v8  ;;  %v7863_v1 = vpop.permute.xlu0 %7862  ;;  %v2020_v44 = vpack.c.bf16 %v1999_v50, %v1998_v63  ;;  %v1839_v20 = vsel %vm1812_vm5, %v12159_v5, %v7509_v10  ;;  %v12170_v5 = vld [vmem:[#allocation4_spill] sm:$0xff] }
 0x19a   : > { %v7665_v9 = vunpack.i.h.bf16 %v12160_v56  ;;  %v7664_v17 = vunpack.i.l.bf16 %v12160_v56  ;;  %v1840_v25 = vsel %vm1812_vm5, %v12161_v21, %v7510_v49  ;;  %v7589_v3 = vunpack.i.l.bf16 %v12162_v58  ;;  %v12166_v49 = vld [vmem:[#allocation7_spill] sm:$0xff] }
 0x19b   : > { %v2000_v46 = vsel %vm1977_vm10, %v1967_v0, %v7859_v53  ;;  %v2001_v32 = vsel %vm1977_vm10, %v1968_v36, %v7860_v14  ;;  %7197 = vmatprep.mubr.msk.bf16.mxu0 %vm2053_vm11, %v2020_v44  ;;  %v7865_v4 = vunpack.i.h.bf16 %v7863_v1  ;;  %v7864_v33 = vunpack.i.l.bf16 %v7863_v1  ;;  %v12173_v21 = vld [vmem:[#allocation11_spill] sm:$0xff] }
 0x19c   : > { %v7868_v12 = vpop.permute.xlu1 %7867  ;;  %v2021_v51 = vpack.c.bf16 %v2001_v32, %v2000_v46  ;;  %v7520_v2 = vunpack.i.h.bf16 %v12163_v45  ;;  %v7519_v35 = vunpack.i.l.bf16 %v12163_v45  ;;  %v1870_v10 = vsel %vm1845_vm6, %v12164_v18, %v7584_v43  ;;  %v12168_v46 = vld [vmem:[#allocation24_spill] sm:$0xff]  ;;  %v12175_v45 = vld [vmem:[#allocation14_spill] sm:$0xff] }
 0x19d   : > { %v7873_v29 = vpop.permute.xlu0 %7872  ;;  %v1871_v61 = vsel %vm1845_vm6, %v12165_v26, %v7585_v23  ;;  %v7590_v13 = vunpack.i.h.bf16 %v12162_v58  ;;  %v7669_v22 = vunpack.i.l.bf16 %v12166_v49  ;;  %v1903_v30 = vsel %vm1878_vm7, %v1870_v10, %v7664_v17  ;;  %v12174_v58 = vld [vmem:[#allocation12_spill] sm:$0xff] }
 0x19e   : > { %7198 = vmatmul.mubr.msk.bf16.gmra.mrb[20].mxu0 %vm2053_vm11, %v2021_v51  ;;  %v7875_v41 = vunpack.i.h.bf16 %v7873_v29  ;;  %v7874_v11 = vunpack.i.l.bf16 %v7873_v29  ;;  %v1904_v7 = vsel %vm1878_vm7, %v1871_v61, %v7665_v9  ;;  %v7670_v48 = vunpack.i.h.bf16 %v12166_v49  ;;  %v12172_v9 = vld [vmem:[#allocation6_spill] sm:$0xff]  ;;  %v12176_v10 = vld [vmem:[#allocation56_spill] sm:$0xff] }
 0x19f   : > { %v7869_v19 = vunpack.i.l.bf16 %v7868_v12  ;;  %v1872_v47 = vsel %vm1845_vm6, %v1839_v20, %v7589_v3  ;;  %v1936_v27 = vsel %vm1911_vm8, %v1903_v30, %v7864_v33  ;;  %v1937_v37 = vsel %vm1911_vm8, %v1904_v7, %v7865_v4  ;;  %v12177_v30 = vld [vmem:[#allocation13_spill] sm:$0xff] }
 0x1a0   : > { %v7878_v40 = vpop.permute.xlu1 %7877  ;;  %v7870_v52 = vunpack.i.h.bf16 %v7868_v12  ;;  %v1873_v39 = vsel %vm1845_vm6, %v1840_v25, %v7590_v13  ;;  %v1905_v28 = vsel %vm1878_vm7, %v1872_v47, %v7669_v22  ;;  %v1969_v38 = vsel %vm1944_vm9, %v1936_v27, %v7874_v11 }
 0x1a1   : > { %v7883_v34 = vpop.permute.xlu0 %7882  ;;  %v7880_v6 = vunpack.i.h.bf16 %v7878_v40  ;;  %v7879_v15 = vunpack.i.l.bf16 %v7878_v40  ;;  %v1970_v42 = vsel %vm1944_vm9, %v1937_v37, %v7875_v41  ;;  %v1906_v31 = vsel %vm1878_vm7, %v1873_v39, %v7670_v48 }
 0x1a2   : > { %v7885_v16 = vunpack.i.h.bf16 %v7883_v34  ;;  %v7884_v57 = vunpack.i.l.bf16 %v7883_v34  ;;  %v1938_v62 = vsel %vm1911_vm8, %v1905_v28, %v7869_v19  ;;  %v1939_v60 = vsel %vm1911_vm8, %v1906_v31, %v7870_v52 }
 0x1a3   : > { %v7595_v23 = vunpack.i.h.bf16 %v12167_v59  ;;  %v7594_v43 = vunpack.i.l.bf16 %v12167_v59  ;;  %v1971_v0 = vsel %vm1944_vm9, %v1938_v62, %v7879_v15  ;;  %v1972_v36 = vsel %vm1944_vm9, %v1939_v60, %v7880_v6 }
 0x1a4   : > { %v2002_v63 = vsel %vm1977_vm10, %v1969_v38, %v7884_v57  ;;  %v2003_v50 = vsel %vm1977_vm10, %v1970_v42, %v7885_v16  ;;  %v7888_v8 = vpop.permute.xlu1 %7887  ;;  %v12169_v32 = vunpack.i.h.bf16 %v12168_v46  ;;  %v12171_v56 = vunpack.i.l.bf16 %v12168_v46  ;;  %v2428_v46 = vld [vmem:[#allocation3 + $0x1] sm:$0xff] }
 0x1a5   : > { %v7890_v14 = vunpack.i.h.bf16 %v7888_v8  ;;  %v7889_v53 = vunpack.i.l.bf16 %v7888_v8  ;;  %v7893_v1 = vpop.permute.xlu0 %7892  ;;  %v2022_v44 = vpack.c.bf16 %v2003_v50, %v2002_v63  ;;  %v1841_v25 = vsel %vm1812_vm5, %v12173_v21, %v7514_v54 }
 0x1a6   : > { %v1811_v20 = vsel %vm1779_vm4, %v12170_v5, %v12169_v32  ;;  %v1810_v17 = vsel %vm1779_vm4, %v12172_v9, %v12171_v56  ;;  %v7675_v3 = vunpack.i.h.bf16 %v12174_v58  ;;  %v7674_v4 = vunpack.i.l.bf16 %v12174_v58  ;;  %v2429_v32 = vld [vmem:[#allocation3 + $0x9] sm:$0xff] }
 0x1a7   : > { %v2004_v12 = vsel %vm1977_vm10, %v1971_v0, %v7889_v53  ;;  %v2005_v51 = vsel %vm1977_vm10, %v1972_v36, %v7890_v14  ;;  %7201 = vmatprep.mubr.msk.bf16.mxu0 %vm2053_vm11, %v2022_v44  ;;  %v1842_v18 = vsel %vm1812_vm5, %v12175_v45, %v7515_v24  ;;  %v7599_v26 = vunpack.i.l.bf16 %v12176_v10  ;;  %v2461_v56 = vld [vmem:[#allocation3 + $0xa] sm:$0xff] }
 0x1a8   : > { %v7898_v33 = vpop.permute.xlu1 %7897  ;;  %v2023_v29 = vpack.c.bf16 %v2005_v51, %v2004_v12  ;;  %v7895_v61 = vunpack.i.h.bf16 %v7893_v1  ;;  %v7894_v13 = vunpack.i.l.bf16 %v7893_v1  ;;  %v1843_v22 = vsel %vm1812_vm5, %v1810_v17, %v7519_v35  ;;  %v10238_v17 = vld [vmem:[%s11969_s2] ss:$0 sm:$0xff] }
 0x1a9   : > { %v7903_v49 = vpop.permute.xlu0 %7902  ;;  %v1844_v54 = vsel %vm1812_vm5, %v1811_v20, %v7520_v2  ;;  %v1874_v41 = vsel %vm1845_vm6, %v1841_v25, %v7594_v43  ;;  %v1875_v11 = vsel %vm1845_vm6, %v1842_v18, %v7595_v23  ;;  %v7600_v55 = vunpack.i.h.bf16 %v12176_v10  ;;  %v2460_v20 = vld [vmem:[#allocation3 + $0x2] sm:$0xff] }
 0x1aa   : > { %7202 = vmatmul.mubr.msk.bf16.gmra.mrb[24].mxu0 %vm2053_vm11, %v2023_v29  ;;  %v7679_v7 = vunpack.i.l.bf16 %v12177_v30  ;;  %v7905_v24 = vunpack.i.h.bf16 %v7903_v49  ;;  %v7904_v48 = vunpack.i.l.bf16 %v7903_v49  ;;  %v1907_v19 = vsel %vm1878_vm7, %v1874_v41, %v7674_v4 }
 0x1ab   : > { %v1908_v40 = vsel %vm1878_vm7, %v1875_v11, %v7675_v3  ;;  %v7680_v35 = vunpack.i.h.bf16 %v12177_v30  ;;  %v7899_v47 = vunpack.i.l.bf16 %v7898_v33  ;;  %v1876_v27 = vsel %vm1845_vm6, %v1843_v22, %v7599_v26 }
 0x1ac   : > { %v7908_v2 = vpop.permute.xlu1 %7907  ;;  %v1940_v37 = vsel %vm1911_vm8, %v1907_v19, %v7894_v13  ;;  %v1941_v52 = vsel %vm1911_vm8, %v1908_v40, %v7895_v61  ;;  %v7900_v34 = vunpack.i.h.bf16 %v7898_v33  ;;  %v1877_v28 = vsel %vm1845_vm6, %v1844_v54, %v7600_v55 }
 0x1ad   : > { %v7913_v6 = vpop.permute.xlu0 %7912  ;;  %v7910_v15 = vunpack.i.h.bf16 %v7908_v2  ;;  %v7909_v16 = vunpack.i.l.bf16 %v7908_v2  ;;  %v1909_v38 = vsel %vm1878_vm7, %v1876_v27, %v7679_v7  ;;  %v1973_v42 = vsel %vm1944_vm9, %v1940_v37, %v7904_v48 }
 0x1ae   : > { %v7915_v57 = vunpack.i.h.bf16 %v7913_v6  ;;  %v7914_v39 = vunpack.i.l.bf16 %v7913_v6  ;;  %v1974_v31 = vsel %vm1944_vm9, %v1941_v52, %v7905_v24  ;;  %v1910_v62 = vsel %vm1878_vm7, %v1877_v28, %v7680_v35 }
 0x1af   : > { %v1942_v63 = vsel %vm1911_vm8, %v1909_v38, %v7899_v47  ;;  %v1943_v14 = vsel %vm1911_vm8, %v1910_v62, %v7900_v34  ;;  %v7921_v5 = vpack.i.bf16 %v2429_v32, %v2428_v46  ;;  %v7926_v9 = vpack.i.bf16 %v2461_v56, %v2460_v20 }
 0x1b0   : > { %v2006_v50 = vsel %vm1977_vm10, %v1973_v42, %v7914_v39  ;;  %v2007_v8 = vsel %vm1977_vm10, %v1974_v31, %v7915_v57  ;;  %v7918_v60 = vpop.permute.xlu1 %7917  ;;  %v1975_v59 = vsel %vm1944_vm9, %v1942_v63, %v7909_v16  ;;  %v1976_v23 = vsel %vm1944_vm9, %v1943_v14, %v7910_v15 }
 0x1b1   : > { %v7920_v53 = vunpack.i.h.bf16 %v7918_v60  ;;  %v7919_v1 = vunpack.i.l.bf16 %v7918_v60  ;;  %v2024_v44 = vpack.c.bf16 %v2007_v8, %v2006_v50  ;;  %7922 = vrot.lane.b32.xlu0 %v7921_v5, %s8588_s8 }
 0x1b3   : > { %v2008_v43 = vsel %vm1977_vm10, %v1975_v59, %v7919_v1  ;;  %v2009_v0 = vsel %vm1977_vm10, %v1976_v23, %v7920_v53  ;;  %7205 = vmatprep.mubr.msk.bf16.mxu0 %vm2053_vm11, %v2024_v44 }
 0x1b4   : > { %v2025_v36 = vpack.c.bf16 %v2009_v0, %v2008_v43 }
 0x1b5   : > { %7927 = vrot.lane.b32.xlu0 %v7926_v9, %s8589_s9 }
 0x1b6   : > { %7206 = vmatmul.mubr.msk.bf16.gmra.mrb[28].mxu0 %vm2053_vm11, %v2025_v36 }
 0x246   : > { %v7179_v12 = vpop.f32.mrb[0].mxu0 }
 0x247   : > { %v2149_v51 = vadd.f32 %v7179_v12, %v10238_v17  ;;  %v2140_v21 = vpop.f32.mrb[1].mxu0 }
 0x248   : > { %v2141_v25 = vadd.f32 %v10238_v17, %v2140_v21  ;;  %v7180_v58 = vpop.f32.mrb[2].mxu0 }
 0x249   : > { %vm2269_vm12 = vcmp.gt.f32.partialorder %v2149_v51, 0.0  ;;  %v2301_v3 = vmul.f32 0.2, %v2149_v51  ;;  %v2152_v4 = vadd.f32 %v7180_v58, %v10238_v17  ;;  %v2143_v33 = vpop.f32.mrb[3].mxu0 }
 0x24a   : > { %vm2267_vm13 = vcmp.gt.f32.partialorder %v2141_v25, 0.0  ;;  %v2299_v29 = vmul.f32 0.2, %v2141_v25  ;;  %v2144_v45 = vadd.f32 %v10238_v17, %v2143_v33 }
 0x24b   : > { %v2333_v18 = vsel %vm2269_vm12, %v2149_v51, %v2301_v3  ;;  %vm2270_vm14 = vcmp.gt.f32.partialorder %v2152_v4, 0.0  ;;  %v2302_v10 = vmul.f32 0.2, %v2152_v4 }
 0x24c   : > { %2366 = vst.msk [vmem:[#allocation3 + $0x31] sm:$0xff] %vm280_vm0, %v2333_v18  ;;  %v2331_v26 = vsel %vm2267_vm13, %v2141_v25, %v2299_v29  ;;  %vm2268_vm15 = vcmp.gt.f32.partialorder %v2144_v45, 0.0  ;;  %v2300_v61 = vmul.f32 0.2, %v2144_v45 }
 0x24d   : > { %2364 = vst.msk [vmem:[#allocation3 + $0x19] sm:$0xff] %vm280_vm0, %v2331_v26  ;;  %v2334_v13 = vsel %vm2270_vm14, %v2152_v4, %v2302_v10 }
 0x24e   : > { %2367 = vst.msk [vmem:[#allocation3 + $0x39] sm:$0xff] %vm280_vm0, %v2334_v13  ;;  %v2332_v49 = vsel %vm2268_vm15, %v2144_v45, %v2300_v61  ;;  %v7183_v22 = vpop.f32.mrb[4].mxu0 }
 0x24f   : > { %2365 = vst.msk [vmem:[#allocation3 + $0x21] sm:$0xff] %vm280_vm0, %v2332_v49  ;;  %v2165_v54 = vadd.f32 %v7183_v22, %v10238_v17  ;;  %v2156_v41 = vpop.f32.mrb[5].mxu0 }
 0x250   : > { %v2157_v11 = vadd.f32 %v10238_v17, %v2156_v41  ;;  %v7184_v55 = vpop.f32.mrb[6].mxu0 }
 0x251   : > { %vm2273_vm1 = vcmp.gt.f32.partialorder %v2165_v54, 0.0  ;;  %v2305_v30 = vmul.f32 0.2, %v2165_v54  ;;  %v2168_v7 = vadd.f32 %v7184_v55, %v10238_v17  ;;  %v2159_v24 = vpop.f32.mrb[7].mxu0 }
 0x252   : > { %vm2271_vm2 = vcmp.gt.f32.partialorder %v2157_v11, 0.0  ;;  %v2303_v48 = vmul.f32 0.2, %v2157_v11  ;;  %v2160_v19 = vadd.f32 %v10238_v17, %v2159_v24 }
 0x253   : > { %v2337_v40 = vsel %vm2273_vm1, %v2165_v54, %v2305_v30  ;;  %vm2274_vm12 = vcmp.gt.f32.partialorder %v2168_v7, 0.0  ;;  %v2306_v35 = vmul.f32 0.2, %v2168_v7  ;;  %v2494_v27 = vld [vmem:[#allocation3 + $0x30] sm:$0xff] }
 0x254   : > { %2370 = vst.msk [vmem:[#allocation3 + $0x61] sm:$0xff] %vm280_vm0, %v2337_v40  ;;  %v2335_v47 = vsel %vm2271_vm2, %v2157_v11, %v2303_v48  ;;  %vm2272_vm13 = vcmp.gt.f32.partialorder %v2160_v19, 0.0  ;;  %v2304_v2 = vmul.f32 0.2, %v2160_v19  ;;  %v2432_v34 = vld [vmem:[#allocation3 + $0x31] sm:$0xff]  ;;  %v2430_v26 = vld [vmem:[#allocation3 + $0x19] sm:$0xff] }
 0x255   : > { %2368 = vst.msk [vmem:[#allocation3 + $0x49] sm:$0xff] %vm280_vm0, %v2335_v47  ;;  %v2338_v37 = vsel %vm2274_vm12, %v2168_v7, %v2306_v35  ;;  %v2495_v52 = vld [vmem:[#allocation3 + $0x38] sm:$0xff] }
 0x256   : > { %v2433_v6 = vld [vmem:[#allocation3 + $0x39] sm:$0xff]  ;;  %2371 = vst.msk [vmem:[#allocation3 + $0x69] sm:$0xff] %vm280_vm0, %v2338_v37  ;;  %v2336_v15 = vsel %vm2272_vm13, %v2160_v19, %v2304_v2  ;;  %v7187_v16 = vpop.f32.mrb[8].mxu0  ;;  %v7941_v57 = vpack.i.bf16 %v2495_v52, %v2494_v27  ;;  %v2431_v33 = vld [vmem:[#allocation3 + $0x21] sm:$0xff] }
 0x257   : > { %v7931_v39 = vpack.i.bf16 %v2433_v6, %v2432_v34  ;;  %2369 = vst.msk [vmem:[#allocation3 + $0x51] sm:$0xff] %vm280_vm0, %v2336_v15  ;;  %v2181_v28 = vadd.f32 %v7187_v16, %v10238_v17  ;;  %v2172_v38 = vpop.f32.mrb[9].mxu0  ;;  %v2464_v42 = vld [vmem:[#allocation3 + $0x32] sm:$0xff]  ;;  %v2465_v31 = vld [vmem:[#allocation3 + $0x3a] sm:$0xff]  ;;  %v7971_v22 = vpack.i.bf16 %v2431_v33, %v2430_v26  ;;  %v2463_v41 = vld [vmem:[#allocation3 + $0x22] sm:$0xff] }
 0x258   : > { %v2173_v62 = vadd.f32 %v10238_v17, %v2172_v38  ;;  %7942 = vrot.lane.b32.xlu1 %v7941_v57, %s8590_s10  ;;  %v7188_v63 = vpop.f32.mrb[10].mxu0  ;;  %v7936_v1 = vpack.i.bf16 %v2465_v31, %v2464_v42  ;;  %v2493_v4 = vld [vmem:[#allocation3 + $0x20] sm:$0xff]  ;;  %v2492_v10 = vld [vmem:[#allocation3 + $0x18] sm:$0xff]  ;;  %v8596_v42 = vmov 1983009808  }
 0x259   : > { %7932 = vrot.lane.b32.xlu0 %v7931_v39, %s8588_s8  ;;  %vm2277_vm14 = vcmp.gt.f32.partialorder %v2181_v28, 0.0  ;;  %v2309_v50 = vmul.f32 0.2, %v2181_v28  ;;  %v2184_v8 = vadd.f32 %v7188_v63, %v10238_v17  ;;  %v2175_v60 = vpop.f32.mrb[11].mxu0  ;;  %v7981_v49 = vpack.i.bf16 %v2493_v4, %v2492_v10  ;;  %v2462_v54 = vld [vmem:[#allocation3 + $0x1a] sm:$0xff] }
 0x25a   : > { %vm2275_vm15 = vcmp.gt.f32.partialorder %v2173_v62, 0.0  ;;  %v2307_v14 = vmul.f32 0.2, %v2173_v62  ;;  %v2176_v53 = vadd.f32 %v10238_v17, %v2175_v60  ;;  %v7976_v47 = vpack.i.bf16 %v2463_v41, %v2462_v54 }
 0x25b   : > { %v2341_v44 = vsel %vm2277_vm14, %v2181_v28, %v2309_v50  ;;  %vm2278_vm1 = vcmp.gt.f32.partialorder %v2184_v8, 0.0  ;;  %v2310_v59 = vmul.f32 0.2, %v2184_v8  ;;  %v2436_v35 = vld [vmem:[#allocation3 + $0x61] sm:$0xff]  ;;  %v4350_v31 = vunpack.c.l.s4 %v8596_v42 }
 0x25c   : > { %2374 = vst.msk [vmem:[#allocation3 + $0x91] sm:$0xff] %vm280_vm0, %v2341_v44  ;;  %v2339_v23 = vsel %vm2275_vm15, %v2173_v62, %v2307_v14  ;;  %vm2276_vm2 = vcmp.gt.f32.partialorder %v2176_v53, 0.0  ;;  %v2308_v43 = vmul.f32 0.2, %v2176_v53  ;;  %7957 = vrot.lane.b32.xlu1 %v7941_v57, %s8593_s13  ;;  %v2498_v62 = vld [vmem:[#allocation3 + $0x60] sm:$0xff]  ;;  %v2496_v50 = vld [vmem:[#allocation3 + $0x48] sm:$0xff]  ;;  %v4352_v14 = vlaneseq }
 0x25d   : > { %7937 = vrot.lane.b32.xlu0 %v7936_v1, %s8589_s9  ;;  %2372 = vst.msk [vmem:[#allocation3 + $0x79] sm:$0xff] %vm280_vm0, %v2339_v23  ;;  %v2342_v0 = vsel %vm2278_vm1, %v2184_v8, %v2310_v59  ;;  %v2437_v30 = vld [vmem:[#allocation3 + $0x69] sm:$0xff]  ;;  %v4351_v59 = vunpack.c.0.s8 %v4350_v31 }
 0x25e   : > { %2375 = vst.msk [vmem:[#allocation3 + $0x99] sm:$0xff] %vm280_vm0, %v2342_v0  ;;  %v2340_v36 = vsel %vm2276_vm2, %v2176_v53, %v2308_v43  ;;  %v7191_v46 = vpop.f32.mrb[12].mxu0  ;;  %v10286_v37 = vpack.i.bf16 %v2437_v30, %v2436_v35  ;;  %v2468_v6 = vld [vmem:[#allocation3 + $0x62] sm:$0xff]  ;;  %v2469_v15 = vld [vmem:[#allocation3 + $0x6a] sm:$0xff]  ;;  %v10300_v0 = vshrl.u32 %v4352_v14, 7 }
 0x25f   : > { %2373 = vst.msk [vmem:[#allocation3 + $0x81] sm:$0xff] %vm280_vm0, %v2340_v36  ;;  %v2197_v32 = vadd.f32 %v7191_v46, %v10238_v17  ;;  %v2188_v5 = vpop.f32.mrb[13].mxu0  ;;  %v10294_v38 = vpack.i.bf16 %v2469_v15, %v2468_v6  ;;  %v2499_v63 = vld [vmem:[#allocation3 + $0x68] sm:$0xff]  ;;  %v2497_v8 = vld [vmem:[#allocation3 + $0x50] sm:$0xff]  ;;  %v5006_v46 = vld [vmem:[%s8829_s30 + $0x10] sm:$0xff] }
 0x260   : > { %v2189_v20 = vadd.f32 %v10238_v17, %v2188_v5  ;;  %7962 = vrot.lane.b32.xlu1 %v7931_v39, %s8594_s20  ;;  %v7192_v56 = vpop.f32.mrb[14].mxu0  ;;  %v2624_v60 = vld [vmem:[#allocation3 + $0x51] sm:$0xff]  ;;  %v2623_v43 = vld [vmem:[#allocation3 + $0x49] sm:$0xff] }
 0x261   : > { %7947 = vrot.lane.b32.xlu0 %v7931_v39, %s8591_s11  ;;  %vm2281_vm12 = vcmp.gt.f32.partialorder %v2197_v32, 0.0  ;;  %v2313_v9 = vmul.f32 0.2, %v2197_v32  ;;  %v2200_v12 = vadd.f32 %v7192_v56, %v10238_v17  ;;  %v2191_v51 = vpop.f32.mrb[15].mxu0  ;;  %v2655_v53 = vld [vmem:[#allocation3 + $0x4a] sm:$0xff]  ;;  %v10307_v56 = vpack.i.bf16 %v2497_v8, %v2496_v50  ;;  %v5005_v8 = vld [vmem:[%s8829_s30 + $0x8] sm:$0xff] }
 0x262   : > { %vm2279_vm13 = vcmp.gt.f32.partialorder %v2189_v20, 0.0  ;;  %v2311_v21 = vmul.f32 0.2, %v2189_v20  ;;  %v2192_v25 = vadd.f32 %v10238_v17, %v2191_v51  ;;  %v5004_v36 = vld [vmem:[%s8829_s30] sm:$0xff]  ;;  %v5010_v51 = vld [vmem:[%s8829_s30 + $0x30] sm:$0xff] }
 0x263   : > { %v2345_v58 = vsel %vm2281_vm12, %v2197_v32, %v2313_v9  ;;  %vm2282_vm14 = vcmp.gt.f32.partialorder %v2200_v12, 0.0  ;;  %v2314_v3 = vmul.f32 0.2, %v2200_v12  ;;  %v2440_v9 = vld [vmem:[#allocation3 + $0x91] sm:$0xff] }
 0x264   : > { %2378 = vst.msk [vmem:[#allocation3 + $0xc1] sm:$0xff] %vm280_vm0, %v2345_v58  ;;  %v2343_v29 = vsel %vm2279_vm13, %v2189_v20, %v2311_v21  ;;  %vm2280_vm15 = vcmp.gt.f32.partialorder %v2192_v25, 0.0  ;;  %v2312_v45 = vmul.f32 0.2, %v2192_v25  ;;  %7967 = vrot.lane.b32.xlu1 %v7936_v1, %s8595_s21  ;;  %v10305_v20 = vpack.i.bf16 %v2499_v63, %v2498_v62  ;;  %v2597_v54 = vld [vmem:[#allocation3 + $0x90] sm:$0xff]  ;;  %v2500_v41 = vld [vmem:[#allocation3 + $0x78] sm:$0xff] }
 0x265   : > { %7952 = vrot.lane.b32.xlu0 %v7936_v1, %s8592_s12  ;;  %2376 = vst.msk [vmem:[#allocation3 + $0xa9] sm:$0xff] %vm280_vm0, %v2343_v29  ;;  %v2346_v18 = vsel %vm2282_vm14, %v2200_v12, %v2314_v3  ;;  %v2656_v1 = vld [vmem:[#allocation3 + $0x52] sm:$0xff]  ;;  %v10311_v21 = vadd.f32 %v5006_v46, %v5004_v36  ;;  %v10314_v3 = vpack.i.bf16 %v2624_v60, %v2623_v43  ;;  %v2473_v26 = vld [vmem:[#allocation3 + $0x9a] sm:$0xff]  ;;  %v5007_v60 = vld [vmem:[%s8829_s30 + $0x18] sm:$0xff] }
 0x266   : > { %2379 = vst.msk [vmem:[#allocation3 + $0xc9] sm:$0xff] %vm280_vm0, %v2346_v18  ;;  %v2344_v61 = vsel %vm2280_vm15, %v2192_v25, %v2312_v45  ;;  %v7195_v13 = vpop.f32.mrb[16].mxu0  ;;  %v2441_v44 = vld [vmem:[#allocation3 + $0x99] sm:$0xff]  ;;  %v5008_v12 = vld [vmem:[%s8829_s30 + $0x20] sm:$0xff]  ;;  %v10316_v4 = vpack.i.bf16 %v2656_v1, %v2655_v53 }
 0x267   : > { %2377 = vst.msk [vmem:[#allocation3 + $0xb1] sm:$0xff] %vm280_vm0, %v2344_v61  ;;  %v2213_v11 = vadd.f32 %v7195_v13, %v10238_v17  ;;  %v2204_v55 = vpop.f32.mrb[17].mxu0  ;;  %v10318_v33 = vpack.i.bf16 %v2441_v44, %v2440_v9  ;;  %v2472_v29 = vld [vmem:[#allocation3 + $0x92] sm:$0xff]  ;;  %v10325_v13 = vsub.s32 %v4351_v59, %v10300_v0  ;;  %v2470_v30 = vld [vmem:[#allocation3 + $0x7a] sm:$0xff]  ;;  %v5011_v59 = vld [vmem:[%s8829_s30 + $0x38] sm:$0xff] }
 0x268   : > { %v2205_v7 = vadd.f32 %v10238_v17, %v2204_v55  ;;  %v7196_v24 = vpop.f32.mrb[18].mxu0  ;;  %7972 = vrot.lane.b32.xlu1 %v7971_v22, %s8588_s8  ;;  %v2598_v61 = vld [vmem:[#allocation3 + $0x98] sm:$0xff]  ;;  %v2439_v55 = vld [vmem:[#allocation3 + $0x81] sm:$0xff] }
 0x269   : > { %7982 = vrot.lane.b32.xlu0 %v7981_v49, %s8590_s10  ;;  %vm2285_vm1 = vcmp.gt.f32.partialorder %v2213_v11, 0.0  ;;  %v2317_v48 = vmul.f32 0.2, %v2213_v11  ;;  %v2216_v19 = vadd.f32 %v7196_v24, %v10238_v17  ;;  %v2207_v40 = vpop.f32.mrb[19].mxu0  ;;  %v10346_v42 = vpack.i.bf16 %v2598_v61, %v2597_v54  ;;  %v8565_v1 = vld [vmem:[%s11970_s3 + $0x8] sm:$0xff]  }
 0x26a   : > { %vm2283_vm2 = vcmp.gt.f32.partialorder %v2205_v7, 0.0  ;;  %v2315_v2 = vmul.f32 0.2, %v2205_v7  ;;  %v2208_v27 = vadd.f32 %v10238_v17, %v2207_v40  ;;  %v2471_v40 = vld [vmem:[#allocation3 + $0x82] sm:$0xff]  ;;  %v5009_v44 = vld [vmem:[%s8829_s30 + $0x28] sm:$0xff]  ;;  %v10363_v43 = vrot.slane %v10311_v21, %v10325_v13 }
 0x26b   : > { %v2349_v52 = vsel %vm2285_vm1, %v2213_v11, %v2317_v48  ;;  %vm2286_vm12 = vcmp.gt.f32.partialorder %v2216_v19, 0.0  ;;  %v2318_v34 = vmul.f32 0.2, %v2216_v19  ;;  %v2501_v11 = vld [vmem:[#allocation3 + $0x80] sm:$0xff]  ;;  %v10366_v36 = vpack.i.bf16 %v2471_v40, %v2470_v30 }
 0x26c   : > { %2382 = vst.msk [vmem:[#allocation3 + $0xf1] sm:$0xff] %vm280_vm0, %v2349_v52  ;;  %v2347_v16 = vsel %vm2283_vm2, %v2205_v7, %v2315_v2  ;;  %vm2284_vm13 = vcmp.gt.f32.partialorder %v2208_v27, 0.0  ;;  %v2316_v57 = vmul.f32 0.2, %v2208_v27  ;;  %7977 = vrot.lane.b32.xlu1 %v7976_v47, %s8589_s9  ;;  %v10328_v7 = vadd.f32 %v5010_v51, %v5008_v12  ;;  %v2506_v62 = vld [vmem:[#allocation3 + $0xc0] sm:$0xff]  ;;  %v5012_v12 = vld [vmem:[%s8829_s30 + $0x40] sm:$0xff] }
 0x26d   : > { %7997 = vrot.lane.b32.xlu0 %v10286_v37, %s8588_s8  ;;  %2380 = vst.msk [vmem:[#allocation3 + $0xd9] sm:$0xff] %vm280_vm0, %v2347_v16  ;;  %v2350_v39 = vsel %vm2286_vm12, %v2216_v19, %v2318_v34  ;;  %v2438_v19 = vld [vmem:[#allocation3 + $0x79] sm:$0xff]  ;;  %v2507_v35 = vld [vmem:[#allocation3 + $0xc8] sm:$0xff]  ;;  %v5068_v2 = vcombine.high %v10311_v21, %v10311_v21  ;;  %v10335_v34 = vpack.i.bf16 %v2473_v26, %v2472_v29 }
 0x26e   : > { %2383 = vst.msk [vmem:[#allocation3 + $0xf9] sm:$0xff] %vm280_vm0, %v2350_v39  ;;  %v2348_v28 = vsel %vm2284_vm13, %v2208_v27, %v2316_v57  ;;  %v2570_v6 = vld [vmem:[#allocation3 + $0xc2] sm:$0xff]  ;;  %v2571_v15 = vld [vmem:[#allocation3 + $0xca] sm:$0xff]  ;;  %v10348_v31 = vpack.i.bf16 %v2501_v11, %v2500_v41  ;;  %v2475_v50 = vld [vmem:[#allocation3 + $0xb2] sm:$0xff]  ;;  %v10354_v53 = vpack.i.bf16 %v2439_v55, %v2438_v19  ;;  %v5102_v9 = vcombine.high %v10328_v7, %v10328_v7 }
 0x26f   : > { %2381 = vst.msk [vmem:[#allocation3 + $0xe1] sm:$0xff] %vm280_vm0, %v2348_v28  ;;  %v2443_v16 = vld [vmem:[#allocation3 + $0xb1] sm:$0xff]  ;;  %v2538_v63 = vld [vmem:[#allocation3 + $0xc1] sm:$0xff]  ;;  %v2442_v21 = vld [vmem:[#allocation3 + $0xa9] sm:$0xff]  ;;  %v10399_v41 = vcombine.high %v10363_v43, %v10363_v43 }
 0x270   : > { %7987 = vrot.lane.b32.xlu1 %v7971_v22, %s8591_s11  ;;  %v2474_v57 = vld [vmem:[#allocation3 + $0xaa] sm:$0xff]  ;;  %v5014_v51 = vld [vmem:[%s8829_s30 + $0x50] sm:$0xff]  ;;  %v10413_v19 = vrot.slane %v5102_v9, %v10325_v13 }
 0x271   : > { %8002 = vrot.lane.b32.xlu0 %v10294_v38, %s8589_s9  ;;  %v7199_v23 = vpop.f32.mrb[20].mxu0  ;;  %v8564_v39 = vld [vmem:[%s11970_s3] sm:$0xff]   ;;  %v10390_v26 = vpack.i.bf16 %v2475_v50, %v2474_v57  ;;  %v2599_v61 = vld [vmem:[#allocation3 + $0xa8] sm:$0xff]  ;;  %v8566_v54 = vld [vmem:[%s11970_s3 + $0x10] ss:$0 sps:$4 sm:$0x33]  }
 0x272   : > { %v2229_v32 = vadd.f32 %v7199_v23, %v10238_v17  ;;  %v2220_v5 = vpop.f32.mrb[21].mxu0  ;;  %7209 = vmatprep.subr.bf16.mxu1 %v8564_v39  ;;  %v5037_v23 = vadd.f32 %v5007_v60, %v5005_v8  ;;  %v2600_v46 = vld [vmem:[#allocation3 + $0xb0] sm:$0xff]  ;;  %v5118_v60 = vcombine.high %v10413_v19, %v10413_v19 }
 0x273   : > { %v2221_v25 = vadd.f32 %v10238_v17, %v2220_v5  ;;  %v7200_v58 = vpop.f32.mrb[22].mxu0  ;;  %7210 = vmatpush3.bf16.msra.mxu1 %v8564_v39  ;;  %v10369_v5 = vrot.slane %v5068_v2, %v10325_v13 }
 0x274   : > { %vm2289_vm14 = vcmp.gt.f32.partialorder %v2229_v32, 0.0  ;;  %v2321_v45 = vmul.f32 0.2, %v2229_v32  ;;  %v2232_v18 = vadd.f32 %v7200_v58, %v10238_v17  ;;  %v2223_v10 = vpop.f32.mrb[23].mxu0  ;;  %7992 = vrot.lane.b32.xlu1 %v7976_v47, %s8592_s12  ;;  %v2539_v47 = vld [vmem:[#allocation3 + $0xc9] sm:$0xff]  ;;  %7211 = vmatprep.subr.bf16.mxu1 %v8565_v1  ;;  %v5085_v29 = vcombine.high %v5037_v23, %v5037_v23 }
 0x275   : > { %8012 = vrot.lane.b32.xlu0 %v10286_v37, %s8591_s11  ;;  %vm2287_vm15 = vcmp.gt.f32.partialorder %v2221_v25, 0.0  ;;  %v2319_v49 = vmul.f32 0.2, %v2221_v25  ;;  %v2224_v22 = vadd.f32 %v10238_v17, %v2223_v10  ;;  %v10377_v58 = vpack.i.bf16 %v2539_v47, %v2538_v63 }
 0x276   : > { %v2353_v24 = vsel %vm2289_vm14, %v2229_v32, %v2321_v45  ;;  %vm2290_vm1 = vcmp.gt.f32.partialorder %v2232_v18, 0.0  ;;  %v2322_v48 = vmul.f32 0.2, %v2232_v18  ;;  %v5039_v32 = vadd.f32 %v5011_v59, %v5009_v44 }
 0x277   : > { %2386 = vst.msk [vmem:[#allocation3 + $0x121] sm:$0xff] %vm280_vm0, %v2353_v24  ;;  %v2351_v27 = vsel %vm2287_vm15, %v2221_v25, %v2319_v49  ;;  %vm2288_vm2 = vcmp.gt.f32.partialorder %v2224_v22, 0.0  ;;  %v2320_v52 = vmul.f32 0.2, %v2224_v22  ;;  %v10375_v25 = vpack.i.bf16 %v2507_v35, %v2506_v62  ;;  %7212 = vmatpush3.bf16.msra.mxu1 %v8565_v1 }
 0x278   : > { %2384 = vst.msk [vmem:[#allocation3 + $0x109] sm:$0xff] %vm280_vm0, %v2351_v27  ;;  %v2354_v28 = vsel %vm2290_vm1, %v2232_v18, %v2322_v48  ;;  %8007 = vrot.lane.b32.xlu1 %v10305_v20, %s8590_s10  ;;  %v10380_v45 = vrot.slane %v5037_v23, %v10325_v13  ;;  %v10386_v18 = vpack.i.bf16 %v2571_v15, %v2570_v6  ;;  %v4057_v47 = vsel %vm2102_vm3, %v8566_v54, 0 }
 0x279   : > { %8017 = vrot.lane.b32.xlu0 %v10294_v38, %s8592_s12  ;;  %2387 = vst.msk [vmem:[#allocation3 + $0x129] sm:$0xff] %vm280_vm0, %v2354_v28  ;;  %v2352_v14 = vsel %vm2288_vm2, %v2224_v22, %v2320_v52  ;;  %v10388_v10 = vpack.i.bf16 %v2443_v16, %v2442_v21  ;;  %v10392_v22 = vpack.i.bf16 %v2600_v46, %v2599_v61  ;;  %v7055_v1 = vrot.slane %v10363_v43, 9 }
 0x27a   : > { %2385 = vst.msk [vmem:[#allocation3 + $0x111] sm:$0xff] %vm280_vm0, %v2352_v14  ;;  %v5119_v11 = vcombine.high %v5039_v32, %v5039_v32  ;;  %v10406_v24 = vcombine.high %v10369_v5, %v10369_v5  ;;  %v10410_v48 = vrot.slane %v10328_v7, %v10325_v13  ;;  %7260 = vmatprep.subr.msk.bf16.mxu1 %vm2102_vm3, %v8566_v54  ;;  %v7056_v23 = vrot.slane %v10399_v41, 9 }
 0x27b   : > { %v10419_v2 = vrot.slane %v5085_v29, %v10325_v13  ;;  %v10423_v27 = vcombine.high %v10380_v45, %v10380_v45  ;;  %v10431_v15 = vrot.slane %v5039_v32, %v10325_v13  ;;  %7214 = vmatpush3.bf16.msra.mxu1 %v4057_v47  ;;  %v7059_v32 = vrot.slane %v10380_v45, 9 }
 0x27c   : > { %8022 = vrot.lane.b32.xlu1 %v10305_v20, %s8593_s13  ;;  %v10401_v20 = vadd.f32 %v5014_v51, %v5012_v12  ;;  %v10435_v39 = vrot.slane %v5119_v11, %v10325_v13  ;;  %v7058_v46 = vrot.slane %v10406_v24, 9  ;;  %v7063_v21 = vrot.slane %v10410_v48, 9 }
 0x27d   : > { %8047 = vrot.lane.b32.xlu0 %v10307_v56, %s8590_s10  ;;  %v7203_v49 = vpop.f32.mrb[24].mxu0  ;;  %v5101_v50 = vcombine.high %v10419_v2, %v10419_v2  ;;  %v10451_v14 = vcombine.high %v10431_v15, %v10431_v15  ;;  %v7060_v9 = vrot.slane %v10423_v27, 9  ;;  %v7061_v12 = vrot.slane %v10419_v2, 9 }
 0x27e   : > { %v2245_v55 = vadd.f32 %v7203_v49, %v10238_v17  ;;  %v2236_v30 = vpop.f32.mrb[25].mxu0  ;;  %v10457_v59 = vcombine.high %v10435_v39, %v10435_v39  ;;  %v7065_v61 = vrot.slane %v10413_v19, 9  ;;  %v7066_v49 = vrot.slane %v5118_v60, 9 }
 0x27f   : > { %v2237_v40 = vadd.f32 %v10238_v17, %v2236_v30  ;;  %v7204_v35 = vpop.f32.mrb[26].mxu0  ;;  %v7062_v51 = vrot.slane %v5101_v50, 9  ;;  %v7067_v54 = vrot.slane %v10431_v15, 9  ;;  %v7068_v11 = vrot.slane %v10451_v14, 9 }
 0x280   : > { %vm2293_vm12 = vcmp.gt.f32.partialorder %v2245_v55, 0.0  ;;  %v2325_v7 = vmul.f32 0.2, %v2245_v55  ;;  %v2248_v52 = vadd.f32 %v7204_v35, %v10238_v17  ;;  %v2239_v6 = vpop.f32.mrb[27].mxu0  ;;  %8027 = vrot.lane.b32.xlu1 %v10286_v37, %s8594_s20  ;;  %v7070_v35 = vrot.slane %v10457_v59, 9 }
 0x281   : > { %8052 = vrot.lane.b32.xlu0 %v10307_v56, %s8593_s13  ;;  %vm2291_vm13 = vcmp.gt.f32.partialorder %v2237_v40, 0.0  ;;  %v2323_v16 = vmul.f32 0.2, %v2237_v40  ;;  %v2240_v57 = vadd.f32 %v10238_v17, %v2239_v6  ;;  %v5117_v56 = vcombine.high %v10410_v48, %v10410_v48 }
 0x282   : > { %v2357_v28 = vsel %vm2293_vm12, %v2245_v55, %v2325_v7  ;;  %vm2294_vm14 = vcmp.gt.f32.partialorder %v2248_v52, 0.0  ;;  %v2326_v62 = vmul.f32 0.2, %v2248_v52  ;;  %v7069_v55 = vrot.slane %v10435_v39, 9 }
 0x283   : > { %2390 = vst.msk [vmem:[#allocation3 + $0x151] sm:$0xff] %vm280_vm0, %v2357_v28  ;;  %v2355_v37 = vsel %vm2291_vm13, %v2237_v40, %v2323_v16  ;;  %vm2292_vm15 = vcmp.gt.f32.partialorder %v2240_v57, 0.0  ;;  %v2324_v63 = vmul.f32 0.2, %v2240_v57  ;;  %v7064_v29 = vrot.slane %v5117_v56, 9 }
 0x284   : > { %2388 = vst.msk [vmem:[#allocation3 + $0x139] sm:$0xff] %vm280_vm0, %v2355_v37  ;;  %v2358_v8 = vsel %vm2294_vm14, %v2248_v52, %v2326_v62  ;;  %8032 = vrot.lane.b32.xlu1 %v10294_v38, %s8595_s21  ;;  %v7057_v38 = vrot.slane %v10369_v5, 9  ;;  %v5788_v40 = vld [vmem:[%s11972_s5] sm:$0x3]  ;;  %v5596_v47 = vadd.f32 %v7055_v1, %v10363_v43  ;;  %v5597_v7 = vadd.f32 %v7056_v23, %v10399_v41 }
 0x285   : > { %8057 = vrot.lane.b32.xlu0 %v10314_v3, %s8594_s20  ;;  %2391 = vst.msk [vmem:[#allocation3 + $0x159] sm:$0xff] %vm280_vm0, %v2358_v8  ;;  %v2356_v44 = vsel %vm2292_vm15, %v2240_v57, %v2324_v63  ;;  %7261 = vmatprep.subr.msk.bf16.mxu0 %vm2102_vm3, %v5788_v40  ;;  %v10485_v57 = vsel %vm2102_vm3, %v5788_v40, 0  ;;  %v5599_v28 = vadd.f32 %v7058_v46, %v10406_v24  ;;  %vm5925_vm13 = vcmask 1041409  }
 0x286   : > { %2389 = vst.msk [vmem:[#allocation3 + $0x141] sm:$0xff] %vm280_vm0, %v2356_v44  ;;  %v5598_v52 = vadd.f32 %v7057_v38, %v10369_v5  ;;  %v5600_v62 = vadd.f32 %v7059_v32, %v10380_v45  ;;  %7262 = vmatprep.subr.msk.bf16.mxu1 %vm2102_vm3, %v5788_v40  ;;  %7248 = vmatpush3.bf16.msra.mxu0 %v10485_v57  ;;  %vm5928_vm14 = vcmask 1042434   ;;  %vm5931_vm15 = vcmask 1043459  }
 0x287   : > { %v5601_v5 = vadd.f32 %v7060_v9, %v10423_v27  ;;  %v5602_v41 = vadd.f32 %v7061_v12, %v10419_v2  ;;  %v5603_v63 = vadd.f32 %v7062_v51, %v5101_v50  ;;  %v5604_v45 = vadd.f32 %v7063_v21, %v10410_v48 }
 0x288   : > { %8037 = vrot.lane.b32.xlu1 %v10314_v3, %s8588_s8  ;;  %v5605_v23 = vadd.f32 %v7064_v29, %v5117_v56  ;;  %v5606_v38 = vadd.f32 %v7065_v61, %v10413_v19  ;;  %v5607_v9 = vadd.f32 %v7066_v49, %v5118_v60  ;;  %v5609_v48 = vadd.f32 %v7068_v11, %v10451_v14 }
 0x289   : > { %8062 = vrot.lane.b32.xlu0 %v10316_v4, %s8595_s21  ;;  %v7207_v30 = vpop.f32.mrb[28].mxu0  ;;  %v5610_v56 = vadd.f32 %v7069_v55, %v10435_v39  ;;  %v5611_v60 = vadd.f32 %v7070_v35, %v10457_v59  ;;  %v5660_v51 = vmul.f32 0.25, %v5596_v47  ;;  %v5661_v21 = vmul.f32 0.25, %v5597_v7 }
 0x28a   : > { %v2261_v6 = vadd.f32 %v7207_v30, %v10238_v17  ;;  %v2252_v16 = vpop.f32.mrb[29].mxu0  ;;  %v5662_v29 = vmul.f32 0.25, %v5598_v52  ;;  %v5663_v61 = vmul.f32 0.25, %v5599_v28  ;;  %v5664_v49 = vmul.f32 0.25, %v5600_v62 }
 0x28b   : > { %v2253_v43 = vadd.f32 %v10238_v17, %v2252_v16  ;;  %v7208_v37 = vpop.f32.mrb[30].mxu0  ;;  %v5665_v30 = vmul.f32 0.25, %v5601_v5  ;;  %v5667_v40 = vmul.f32 0.25, %v5603_v63  ;;  %v5669_v39 = vmul.f32 0.25, %v5605_v23 }
 0x28c   : > { %vm2297_vm1 = vcmp.gt.f32.partialorder %v2261_v6, 0.0  ;;  %v2329_v8 = vmul.f32 0.2, %v2261_v6  ;;  %v2264_v1 = vadd.f32 %v7208_v37, %v10238_v17  ;;  %v2255_v44 = vpop.f32.mrb[31].mxu0  ;;  %8042 = vrot.lane.b32.xlu1 %v10316_v4, %s8589_s9  ;;  %v5670_v14 = vmul.f32 0.25, %v5606_v38 }
 0x28d   : > { %8077 = vrot.lane.b32.xlu0 %v10318_v33, %s8588_s8  ;;  %vm2295_vm3 = vcmp.gt.f32.partialorder %v2253_v43, 0.0  ;;  %v2327_v24 = vmul.f32 0.2, %v2253_v43  ;;  %v2256_v27 = vadd.f32 %v10238_v17, %v2255_v44  ;;  %v5608_v17 = vadd.f32 %v7067_v54, %v10431_v15 }
 0x28e   : > { %v2361_v2 = vsel %vm2297_vm1, %v2261_v6, %v2329_v8  ;;  %vm2298_vm2 = vcmp.gt.f32.partialorder %v2264_v1, 0.0  ;;  %v2330_v50 = vmul.f32 0.2, %v2264_v1  ;;  %v5668_v15 = vmul.f32 0.25, %v5604_v45 }
 0x28f   : > { %2394 = vst.msk [vmem:[#allocation3 + $0x181] sm:$0xff] %vm280_vm0, %v2361_v2  ;;  %v2359_v46 = vsel %vm2295_vm3, %v2253_v43, %v2327_v24  ;;  %vm2296_vm12 = vcmp.gt.f32.partialorder %v2256_v27, 0.0  ;;  %v2328_v32 = vmul.f32 0.2, %v2256_v27  ;;  %v5671_v59 = vmul.f32 0.25, %v5607_v9 }
 0x290   : > { %2392 = vst.msk [vmem:[#allocation3 + $0x169] sm:$0xff] %vm280_vm0, %v2359_v46  ;;  %v2362_v12 = vsel %vm2298_vm2, %v2264_v1, %v2330_v50  ;;  %8067 = vrot.lane.b32.xlu1 %v10314_v3, %s8591_s11  ;;  %v5666_v3 = vmul.f32 0.25, %v5602_v41  ;;  %v5672_v54 = vmul.f32 0.25, %v5608_v17  ;;  %v5673_v11 = vmul.f32 0.25, %v5609_v48 }
 0x291   : > { %8082 = vrot.lane.b32.xlu0 %v10335_v34, %s8589_s9  ;;  %2395 = vst.msk [vmem:[#allocation3 + $0x189] sm:$0xff] %vm280_vm0, %v2362_v12  ;;  %v2360_v19 = vsel %vm2296_vm12, %v2256_v27, %v2328_v32  ;;  %v5674_v55 = vmul.f32 0.25, %v5610_v56  ;;  %v5675_v35 = vmul.f32 0.25, %v5611_v60  ;;  %v5724_v47 = vpack.c.bf16 %v5660_v51, %v5660_v51 }
 0x292   : > { %2393 = vst.msk [vmem:[#allocation3 + $0x171] sm:$0xff] %vm280_vm0, %v2360_v19  ;;  %v5725_v7 = vpack.c.bf16 %v5661_v21, %v5661_v21  ;;  %v5726_v52 = vpack.c.bf16 %v5662_v29, %v5662_v29  ;;  %v5727_v6 = vpack.c.bf16 %v5663_v61, %v5663_v61  ;;  %v5728_v16 = vpack.c.bf16 %v5664_v49, %v5664_v49 }
 0x293   : > { %v5729_v28 = vpack.c.bf16 %v5665_v30, %v5665_v30  ;;  %v5730_v62 = vpack.c.bf16 %v5666_v3, %v5666_v3  ;;  %v5731_v43 = vpack.c.bf16 %v5667_v40, %v5667_v40  ;;  %v5732_v37 = vpack.c.bf16 %v5668_v15, %v5668_v15  ;;  %v5013_v40 = vld [vmem:[%s8829_s30 + $0x48] sm:$0xff]  ;;  %v5015_v15 = vld [vmem:[%s8829_s30 + $0x58] sm:$0xff] }
 0x294   : > { %8072 = vrot.lane.b32.xlu1 %v10316_v4, %s8592_s12  ;;  %v5733_v4 = vpack.c.bf16 %v5669_v39, %v5669_v39  ;;  %v5734_v5 = vpack.c.bf16 %v5670_v14, %v5670_v14  ;;  %v5735_v41 = vpack.c.bf16 %v5671_v59, %v5671_v59  ;;  %v5736_v63 = vpack.c.bf16 %v5672_v54, %v5672_v54  ;;  %v5016_v39 = vld [vmem:[%s8829_s30 + $0x60] sm:$0xff] }
 0x295   : > { %8102 = vrot.lane.b32.xlu0 %v10346_v42, %s8593_s13  ;;  %v5737_v8 = vpack.c.bf16 %v5673_v11, %v5673_v11  ;;  %v5738_v1 = vpack.c.bf16 %v5674_v55, %v5674_v55  ;;  %v5739_v44 = vpack.c.bf16 %v5675_v35, %v5675_v35  ;;  %v5860_v45 = vunpack.c.l.b16 %v5724_v47  ;;  %v5017_v11 = vld [vmem:[%s8829_s30 + $0x68] sm:$0xff]  ;;  %v5018_v55 = vld [vmem:[%s8829_s30 + $0x70] sm:$0xff]  ;;  %v5019_v35 = vld [vmem:[%s8829_s30 + $0x78] sm:$0xff] }
 0x296   : > { %v5861_v24 = vunpack.c.l.b16 %v5725_v7  ;;  %v5862_v27 = vunpack.c.l.b16 %v5726_v52  ;;  %v5863_v23 = vunpack.c.l.b16 %v5727_v6  ;;  %v5864_v2 = vunpack.c.l.b16 %v5728_v16 }
 0x297   : > { %v5865_v50 = vunpack.c.l.b16 %v5729_v28  ;;  %v5866_v38 = vunpack.c.l.b16 %v5730_v62  ;;  %v5867_v46 = vunpack.c.l.b16 %v5731_v43  ;;  %v5869_v32 = vunpack.c.l.b16 %v5733_v4 }
 0x298   : > { %8087 = vrot.lane.b32.xlu1 %v10346_v42, %s8590_s10  ;;  %v5868_v42 = vunpack.c.l.b16 %v5732_v37  ;;  %v5870_v9 = vunpack.c.l.b16 %v5734_v5  ;;  %v5871_v12 = vunpack.c.l.b16 %v5735_v41  ;;  %v5872_v17 = vunpack.c.l.b16 %v5736_v63 }
 0x299   : > { %8107 = vrot.lane.b32.xlu0 %v10318_v33, %s8594_s20  ;;  %v5873_v48 = vunpack.c.l.b16 %v5737_v8  ;;  %v5874_v19 = vunpack.c.l.b16 %v5738_v1  ;;  %v10526_v56 = vunpack.c.l.b16 %v5739_v44  ;;  %v5924_v60 = vrot.slane %v5861_v24, 7 }
 0x29a   : > { %v5927_v51 = vrot.slane %v5862_v27, 6  ;;  %v5930_v21 = vrot.slane %v5863_v23, 5  ;;  %v5933_v29 = vrot.slane %v5864_v2, 4  ;;  %vm5934_vm1 = vcmask 1044484  }
 0x29b   : > { %v5936_v61 = vrot.slane %v5865_v50, 3  ;;  %vm5937_vm3 = vcmask 1045509   ;;  %v5939_v49 = vrot.slane %v5866_v38, 2  ;;  %vm5940_vm2 = vcmask 1046534  }
 0x29c   : > { %8092 = vrot.lane.b32.xlu1 %v10318_v33, %s8591_s11  ;;  %v5926_v33 = vsel %vm5925_vm13, %v5924_v60, %v5860_v45  ;;  %v5942_v3 = vrot.slane %v5867_v46, 1  ;;  %vm5943_vm12 = vcmask 1047559   ;;  %v5945_v59 = vrot.slane %v5869_v32, 7 }
 0x29d   : > { %8112 = vrot.lane.b32.xlu0 %v10335_v34, %s8595_s21  ;;  %v5929_v30 = vsel %vm5928_vm14, %v5927_v51, %v5926_v33  ;;  %v5949_v54 = vrot.slane %v5871_v12, 5  ;;  %v5951_v7 = vrot.slane %v5872_v17, 4  ;;  %v5953_v52 = vrot.slane %v5873_v48, 3 }
 0x29e   : > { %v5932_v14 = vsel %vm5931_vm15, %v5930_v21, %v5929_v30  ;;  %v5955_v6 = vrot.slane %v5874_v19, 2  ;;  %v5946_v28 = vsel %vm5925_vm13, %v5945_v59, %v5868_v42  ;;  %v5957_v62 = vrot.slane %v10526_v56, 1 }
 0x29f   : > { %v5935_v47 = vsel %vm5934_vm1, %v5933_v29, %v5932_v14  ;;  %v5041_v43 = vadd.f32 %v5015_v15, %v5013_v40  ;;  %v5042_v5 = vadd.f32 %v5018_v55, %v5016_v39  ;;  %v5043_v41 = vadd.f32 %v5019_v35, %v5017_v11 }
 0x2a0   : > { %8097 = vrot.lane.b32.xlu1 %v10335_v34, %s8592_s12  ;;  %v5947_v34 = vrot.slane %v5870_v9, 6  ;;  %v5938_v16 = vsel %vm5937_vm3, %v5936_v61, %v5935_v47  ;;  %v5136_v8 = vcombine.high %v10401_v20, %v10401_v20  ;;  %v5143_v1 = vrot.slane %v10401_v20, %v10325_v13 }
 0x2a1   : > { %8127 = vrot.lane.b32.xlu0 %v10348_v31, %s8590_s10  ;;  %v5941_v37 = vsel %vm5940_vm2, %v5939_v49, %v5938_v16  ;;  %v5153_v45 = vcombine.high %v5041_v43, %v5041_v43  ;;  %v5160_v24 = vrot.slane %v5041_v43, %v10325_v13  ;;  %v5170_v27 = vcombine.high %v5042_v5, %v5042_v5 }
 0x2a2   : > { %v5948_v4 = vsel %vm5928_vm14, %v5947_v34, %v5946_v28  ;;  %v5944_v63 = vsel %vm5943_vm12, %v5942_v3, %v5941_v37  ;;  %v5150_v2 = vrot.slane %v5136_v8, %v10325_v13  ;;  %v5151_v50 = vcombine.high %v5143_v1, %v5143_v1 }
 0x2a3   : > { %v7071_v38 = vrot.slane %v5143_v1, 9  ;;  %v5167_v46 = vrot.slane %v5153_v45, %v10325_v13  ;;  %v5168_v42 = vcombine.high %v5160_v24, %v5160_v24  ;;  %v5177_v32 = vrot.slane %v5042_v5, %v10325_v13 }
 0x2a4   : > { %8117 = vrot.lane.b32.xlu1 %v10354_v53, %s8588_s8  ;;  %v5152_v12 = vcombine.high %v5150_v2, %v5150_v2  ;;  %v5184_v17 = vrot.slane %v5170_v27, %v10325_v13  ;;  %v5187_v48 = vcombine.high %v5043_v41, %v5043_v41  ;;  %v5194_v51 = vrot.slane %v5043_v41, %v10325_v13 }
 0x2a5   : > { %8132 = vrot.lane.b32.xlu0 %v10348_v31, %s8593_s13  ;;  %v5950_v31 = vsel %vm5931_vm15, %v5949_v54, %v5948_v4  ;;  %v5169_v56 = vcombine.high %v5167_v46, %v5167_v46  ;;  %v5185_v60 = vcombine.high %v5177_v32, %v5177_v32  ;;  %v7072_v33 = vrot.slane %v5151_v50, 9 }
 0x2a6   : > { %v5952_v44 = vsel %vm5934_vm1, %v5951_v7, %v5950_v31  ;;  %v5186_v21 = vcombine.high %v5184_v17, %v5184_v17  ;;  %v5201_v29 = vrot.slane %v5187_v48, %v10325_v13  ;;  %v7073_v61 = vrot.slane %v5150_v2, 9 }
 0x2a7   : > { %v5954_v23 = vsel %vm5937_vm3, %v5953_v52, %v5952_v44  ;;  %v5202_v49 = vcombine.high %v5194_v51, %v5194_v51  ;;  %v7074_v30 = vrot.slane %v5152_v12, 9  ;;  %v7075_v3 = vrot.slane %v5160_v24, 9 }
 0x2a8   : > { %8122 = vrot.lane.b32.xlu1 %v10366_v36, %s8589_s9  ;;  %v5956_v20 = vsel %vm5940_vm2, %v5955_v6, %v5954_v23  ;;  %v7076_v40 = vrot.slane %v5168_v42, 9  ;;  %v5203_v15 = vcombine.high %v5201_v29, %v5201_v29  ;;  %v7077_v39 = vrot.slane %v5167_v46, 9 }
 0x2a9   : > { %8137 = vrot.lane.b32.xlu0 %v10354_v53, %s8594_s20  ;;  %v5958_v9 = vsel %vm5943_vm12, %v5957_v62, %v5956_v20  ;;  %v7078_v14 = vrot.slane %v5169_v56, 9  ;;  %v7079_v59 = vrot.slane %v5177_v32, 9  ;;  %v7080_v34 = vrot.slane %v5185_v60, 9 }
 0x2aa   : > { %v6043_v19 = vpack.c.b16 %v5958_v9, %v5944_v63  ;;  %v7081_v54 = vrot.slane %v5184_v17, 9  ;;  %v7082_v11 = vrot.slane %v5186_v21, 9  ;;  %v7083_v55 = vrot.slane %v5194_v51, 9 }
 0x2ab   : > { %v7084_v35 = vrot.slane %v5202_v49, 9  ;;  %v7085_v47 = vrot.slane %v5201_v29, 9  ;;  %v7086_v7 = vrot.slane %v5203_v15, 9  ;;  %v5612_v52 = vadd.f32 %v7071_v38, %v5143_v1 }
 0x2ac   : > { %8167 = vrot.lane.b32.xlu1 %v10375_v25, %s8590_s10  ;;  %7249 = vmatprep.mubr.msk.bf16.mxu0 %vm280_vm0, %v6043_v19  ;;  %v5613_v6 = vadd.f32 %v7072_v33, %v5151_v50  ;;  %v5614_v16 = vadd.f32 %v7073_v61, %v5150_v2  ;;  %v5615_v28 = vadd.f32 %v7074_v30, %v5152_v12 }
 0x2ad   : > { %8142 = vrot.lane.b32.xlu0 %v10366_v36, %s8595_s21  ;;  %v5616_v62 = vadd.f32 %v7075_v3, %v5160_v24  ;;  %v5617_v43 = vadd.f32 %v7076_v40, %v5168_v42  ;;  %v5618_v37 = vadd.f32 %v7077_v39, %v5167_v46  ;;  %v5619_v4 = vadd.f32 %v7078_v14, %v5169_v56 }
 0x2ae   : > { %v5620_v5 = vadd.f32 %v7079_v59, %v5177_v32  ;;  %v5621_v41 = vadd.f32 %v7080_v34, %v5185_v60  ;;  %v5622_v63 = vadd.f32 %v7081_v54, %v5184_v17  ;;  %v5623_v31 = vadd.f32 %v7082_v11, %v5186_v21 }
 0x2af   : > { %v5624_v8 = vadd.f32 %v7083_v55, %v5194_v51  ;;  %v5626_v1 = vadd.f32 %v7085_v47, %v5201_v29  ;;  %v5627_v44 = vadd.f32 %v7086_v7, %v5203_v15  ;;  %v5676_v45 = vmul.f32 0.25, %v5612_v52 }
 0x2b0   : > { %8172 = vrot.lane.b32.xlu1 %v10377_v58, %s8591_s11  ;;  %v5677_v27 = vmul.f32 0.25, %v5613_v6  ;;  %v5678_v24 = vmul.f32 0.25, %v5614_v16  ;;  %v5679_v23 = vmul.f32 0.25, %v5615_v28  ;;  %v5680_v2 = vmul.f32 0.25, %v5616_v62 }
 0x2b1   : > { %8147 = vrot.lane.b32.xlu0 %v10354_v53, %s8591_s11  ;;  %v5625_v53 = vadd.f32 %v7084_v35, %v5202_v49  ;;  %v5681_v50 = vmul.f32 0.25, %v5617_v43  ;;  %v5682_v38 = vmul.f32 0.25, %v5618_v37  ;;  %v5683_v20 = vmul.f32 0.25, %v5619_v4  ;;  %v10593_v35 = vpop.permute.xlu0 %7922 }
 0x2b2   : > { %v5684_v46 = vmul.f32 0.25, %v5620_v5  ;;  %v5685_v42 = vmul.f32 0.25, %v5621_v41  ;;  %v5686_v32 = vmul.f32 0.25, %v5622_v63  ;;  %v5687_v9 = vmul.f32 0.25, %v5623_v31 }
 0x2b3   : > { %v5688_v12 = vmul.f32 0.25, %v5624_v8  ;;  %v5690_v17 = vmul.f32 0.25, %v5626_v1  ;;  %v5691_v48 = vmul.f32 0.25, %v5627_v44  ;;  %v5740_v19 = vpack.c.bf16 %v5676_v45, %v5676_v45 }
 0x2b4   : > { %8177 = vrot.lane.b32.xlu1 %v10386_v18, %s8592_s12  ;;  %v5741_v56 = vpack.c.bf16 %v5677_v27, %v5677_v27  ;;  %v5742_v60 = vpack.c.bf16 %v5678_v24, %v5678_v24  ;;  %v5743_v51 = vpack.c.bf16 %v5679_v23, %v5679_v23  ;;  %v5744_v21 = vpack.c.bf16 %v5680_v2, %v5680_v2 }
 0x2b5   : > { %8152 = vrot.lane.b32.xlu0 %v10366_v36, %s8592_s12  ;;  %v5689_v36 = vmul.f32 0.25, %v5625_v53  ;;  %v5745_v29 = vpack.c.bf16 %v5681_v50, %v5681_v50  ;;  %v5746_v33 = vpack.c.bf16 %v5682_v38, %v5682_v38  ;;  %v5747_v61 = vpack.c.bf16 %v5683_v20, %v5683_v20  ;;  %v10605_v50 = vpop.permute.xlu0 %7927 }
 0x2b6   : > { %v5748_v49 = vpack.c.bf16 %v5684_v46, %v5684_v46  ;;  %v5749_v30 = vpack.c.bf16 %v5685_v42, %v5685_v42  ;;  %v5750_v3 = vpack.c.bf16 %v5686_v32, %v5686_v32  ;;  %v5751_v40 = vpack.c.bf16 %v5687_v9, %v5687_v9 }
 0x2b7   : > { %v5752_v15 = vpack.c.bf16 %v5688_v12, %v5688_v12  ;;  %v5753_v39 = vpack.c.bf16 %v5689_v36, %v5689_v36  ;;  %v5754_v14 = vpack.c.bf16 %v5690_v17, %v5690_v17  ;;  %v5755_v59 = vpack.c.bf16 %v5691_v48, %v5691_v48  ;;  %v2447_v48 = vld [vmem:[#allocation3 + $0xe1] sm:$0xff] }
 0x2b8   : > { %8197 = vrot.lane.b32.xlu1 %v10388_v10, %s8588_s8  ;;  %v5877_v34 = vunpack.c.l.b16 %v5741_v56  ;;  %v5878_v54 = vunpack.c.l.b16 %v5742_v60  ;;  %v5879_v11 = vunpack.c.l.b16 %v5743_v51  ;;  %v5880_v55 = vunpack.c.l.b16 %v5744_v21  ;;  %v2446_v51 = vld [vmem:[#allocation3 + $0xd9] sm:$0xff] }
 0x2b9   : > { %8157 = vrot.lane.b32.xlu0 %v10377_v58, %s8588_s8  ;;  %v5876_v47 = vunpack.c.l.b16 %v5740_v19  ;;  %v5881_v7 = vunpack.c.l.b16 %v5745_v29  ;;  %v5882_v52 = vunpack.c.l.b16 %v5746_v33  ;;  %v5883_v6 = vunpack.c.l.b16 %v5747_v61 }
 0x2ba   : > { %v5885_v16 = vunpack.c.l.b16 %v5749_v30  ;;  %v5886_v28 = vunpack.c.l.b16 %v5750_v3  ;;  %v5887_v62 = vunpack.c.l.b16 %v5751_v40  ;;  %v5888_v43 = vunpack.c.l.b16 %v5752_v15  ;;  %v2478_v3 = vld [vmem:[#allocation3 + $0xda] sm:$0xff] }
 0x2bb   : > { %v5884_v37 = vunpack.c.l.b16 %v5748_v49  ;;  %v5889_v4 = vunpack.c.l.b16 %v5753_v39  ;;  %v5890_v5 = vunpack.c.l.b16 %v5754_v14  ;;  %v5959_v41 = vrot.slane %v5877_v34, 7 }
 0x2bc   : > { %8202 = vrot.lane.b32.xlu1 %v10390_v26, %s8589_s9  ;;  %v5891_v63 = vunpack.c.l.b16 %v5755_v59  ;;  %v5961_v31 = vrot.slane %v5878_v54, 6  ;;  %v5963_v8 = vrot.slane %v5879_v11, 5  ;;  %v5965_v53 = vrot.slane %v5880_v55, 4  ;;  %v2604_v59 = vld [vmem:[#allocation3 + $0xe0] sm:$0xff] }
 0x2bd   : > { %8162 = vrot.lane.b32.xlu0 %v10386_v18, %s8589_s9  ;;  %v5960_v1 = vsel %vm5925_vm13, %v5959_v41, %v5876_v47  ;;  %v5967_v44 = vrot.slane %v5881_v7, 3  ;;  %v5969_v45 = vrot.slane %v5882_v52, 2  ;;  %v5973_v27 = vrot.slane %v5885_v16, 7  ;;  %v2449_v55 = vld [vmem:[#allocation3 + $0xf9] sm:$0xff]  ;;  %v2448_v47 = vld [vmem:[#allocation3 + $0xf1] sm:$0xff] }
 0x2be   : > { %v5962_v24 = vsel %vm5928_vm14, %v5961_v31, %v5960_v1  ;;  %v5975_v23 = vrot.slane %v5886_v28, 6  ;;  %v5979_v2 = vrot.slane %v5888_v43, 4  ;;  %v5981_v46 = vrot.slane %v5889_v4, 3  ;;  %v2481_v16 = vld [vmem:[#allocation3 + $0xfa] sm:$0xff]  ;;  %v2453_v43 = vld [vmem:[#allocation3 + $0x129] sm:$0xff] }
 0x2bf   : > { %v5964_v38 = vsel %vm5931_vm15, %v5963_v8, %v5962_v24  ;;  %v5974_v20 = vsel %vm5925_vm13, %v5973_v27, %v5884_v37  ;;  %v5971_v32 = vrot.slane %v5883_v6, 1  ;;  %v5983_v12 = vrot.slane %v5890_v5, 2  ;;  %v2480_v6 = vld [vmem:[#allocation3 + $0xf2] sm:$0xff]  ;;  %v2452_v4 = vld [vmem:[#allocation3 + $0x121] sm:$0xff]  ;;  %v2450_v5 = vld [vmem:[#allocation3 + $0x109] sm:$0xff] }
 0x2c0   : > { %8207 = vrot.lane.b32.xlu1 %v10392_v22, %s8593_s13  ;;  %v5966_v42 = vsel %vm5934_vm1, %v5965_v53, %v5964_v38  ;;  %v5976_v9 = vsel %vm5928_vm14, %v5975_v23, %v5974_v20  ;;  %v5985_v17 = vrot.slane %v5891_v63, 1  ;;  %v10626_v49 = vpack.i.bf16 %v2447_v48, %v2446_v51  ;;  %v2451_v37 = vld [vmem:[#allocation3 + $0x111] sm:$0xff]  ;;  %v2484_v53 = vld [vmem:[#allocation3 + $0x122] sm:$0xff] }
 0x2c1   : > { %8182 = vrot.lane.b32.xlu0 %v10375_v25, %s8593_s13  ;;  %v5977_v25 = vrot.slane %v5887_v62, 5  ;;  %v5968_v36 = vsel %vm5937_vm3, %v5967_v44, %v5966_v42  ;;  %v10658_v52 = vpack.i.bf16 %v2449_v55, %v2448_v47  ;;  %v10666_v62 = vpack.i.bf16 %v2481_v16, %v2480_v6  ;;  %v2482_v27 = vld [vmem:[#allocation3 + $0x10a] sm:$0xff]  ;;  %v2483_v24 = vld [vmem:[#allocation3 + $0x112] sm:$0xff]  ;;  %v2396_v23 = vld [vmem:[#allocation3] sm:$0xff] }
 0x2c2   : > { %v5970_v19 = vsel %vm5940_vm2, %v5969_v45, %v5968_v36  ;;  %v8271_v31 = vpack.i.bf16 %v2453_v43, %v2452_v4  ;;  %v10676_v8 = vpack.i.bf16 %v2451_v37, %v2450_v5  ;;  %v7925_v1 = vunpack.i.h.bf16 %v10593_v35  ;;  %v2485_v45 = vld [vmem:[#allocation3 + $0x12a] sm:$0xff] }
 0x2c3   : > { %v5972_v21 = vsel %vm5943_vm12, %v5971_v32, %v5970_v19  ;;  %v7924_v44 = vunpack.i.l.bf16 %v10593_v35  ;;  %v7929_v38 = vunpack.i.l.bf16 %v10605_v50  ;;  %v8276_v42 = vpack.i.bf16 %v2485_v45, %v2484_v53 }
 0x2c4   : > { %8212 = vrot.lane.b32.xlu1 %v10388_v10, %s8594_s20  ;;  %v10687_v32 = vpack.i.bf16 %v2483_v24, %v2482_v27 }
 0x2c5   : > { %8187 = vrot.lane.b32.xlu0 %v10377_v58, %s8594_s20  ;;  %v5978_v58 = vsel %vm5931_vm15, %v5977_v25, %v5976_v9  ;;  %v2397_v25 = vld [vmem:[#allocation3 + $0x8] sm:$0xff]  ;;  %v3709_v9 = vsel %vm280_vm0, %v2396_v23, %v7924_v44 }
 0x2c6   : > { %v5980_v56 = vsel %vm5934_vm1, %v5979_v2, %v5978_v58  ;;  %v7930_v2 = vunpack.i.h.bf16 %v10605_v50  ;;  %v3710_v35 = vsel %vm280_vm0, %v2397_v25, %v7925_v1  ;;  %v2457_v58 = vld [vmem:[#allocation3 + $0x159] sm:$0xff]  ;;  %v2456_v50 = vld [vmem:[#allocation3 + $0x151] sm:$0xff] }
 0x2c7   : > { %v5982_v60 = vsel %vm5937_vm3, %v5981_v46, %v5980_v56  ;;  %v2510_v56 = vld [vmem:[#allocation3 + $0xf0] sm:$0xff] }
 0x2c8   : > { %8217 = vrot.lane.b32.xlu1 %v10390_v26, %s8595_s21  ;;  %v5984_v29 = vsel %vm5940_vm2, %v5983_v12, %v5982_v60  ;;  %v3741_v60 = vsel %vm1779_vm4, %v3709_v9, %v7929_v38  ;;  %v3742_v51 = vsel %vm1779_vm4, %v3710_v35, %v7930_v2 }
 0x2c9   : > { %8192 = vrot.lane.b32.xlu0 %v10386_v18, %s8595_s21  ;;  %v5986_v30 = vsel %vm5943_vm12, %v5985_v17, %v5984_v29  ;;  %v2479_v18 = vld [vmem:[#allocation3 + $0xe2] sm:$0xff]  ;;  %v2511_v17 = vld [vmem:[#allocation3 + $0xf8] sm:$0xff] }
 0x2ca   : > { %v10622_v33 = vpop.permute.xlu1 %7942  ;;  %v6044_v40 = vpack.c.b16 %v5986_v30, %v5972_v21  ;;  %v10637_v14 = vpack.i.bf16 %v2479_v18, %v2478_v3  ;;  %v8291_v30 = vpack.i.bf16 %v2457_v58, %v2456_v50  ;;  %v10698_v3 = vpack.i.bf16 %v2511_v17, %v2510_v56  ;;  %v2488_v18 = vld [vmem:[#allocation3 + $0x152] sm:$0xff]  ;;  %v8568_v58 = vld [vmem:[#allocation3 + $0x20] sm:$0xff] }
 0x2cb   : > { %v10624_v61 = vpop.permute.xlu0 %7932  ;;  %v7945_v50 = vunpack.i.h.bf16 %v10622_v33  ;;  %v7944_v56 = vunpack.i.l.bf16 %v10622_v33 }
 0x2cc   : > { %8247 = vrot.lane.b32.xlu1 %v10626_v49, %s8588_s8  ;;  %7250 = vmatmul.mubr.msk.bf16.vlgmr.msra.gmra.mrb[32].mxu0 %vm280_vm0, %v6044_v40  ;;  %v2489_v40 = vld [vmem:[#allocation3 + $0x15a] sm:$0xff] }
 0x2cd   : > { %8222 = vrot.lane.b32.xlu0 %v10392_v22, %s8590_s10  ;;  %v2603_v22 = vld [vmem:[#allocation3 + $0xd8] sm:$0xff]  ;;  %v8296_v5 = vpack.i.bf16 %v2489_v40, %v2488_v18  ;;  %v2487_v40 = vld [vmem:[#allocation3 + $0x142] sm:$0xff] }
 0x2ce   : > { %v10633_v15 = vpop.permute.xlu1 %7957  ;;  %v10648_v11 = vpack.i.bf16 %v2604_v59, %v2603_v22  ;;  %v2486_v18 = vld [vmem:[#allocation3 + $0x13a] sm:$0xff] }
 0x2cf   : > { %v10635_v39 = vpop.permute.xlu0 %7937  ;;  %v7960_v6 = vunpack.i.h.bf16 %v10633_v15  ;;  %v7959_v16 = vunpack.i.l.bf16 %v10633_v15 }
 0x2d0   : > { %8252 = vrot.lane.b32.xlu1 %v10637_v14, %s8589_s9 }
 0x2d1   : > { %8227 = vrot.lane.b32.xlu0 %v10388_v10, %s8591_s11 }
 0x2d2   : > { %v10644_v34 = vpop.permute.xlu1 %7962 }
 0x2d3   : > { %v10646_v54 = vpop.permute.xlu0 %7947  ;;  %v7964_v53 = vunpack.i.l.bf16 %v10644_v34 }
 0x2d4   : > { %8257 = vrot.lane.b32.xlu1 %v10648_v11, %s8593_s13 }
 0x2d5   : > { %8232 = vrot.lane.b32.xlu0 %v10390_v26, %s8592_s12 }
 0x2d6   : > { %v10654_v7 = vpop.permute.xlu1 %7967 }
 0x2d7   : > { %v10656_v10 = vpop.permute.xlu0 %7952  ;;  %v7970_v27 = vunpack.i.h.bf16 %v10654_v7  ;;  %v7969_v24 = vunpack.i.l.bf16 %v10654_v7 }
 0x2d8   : > { %8262 = vrot.lane.b32.xlu1 %v10626_v49, %s8594_s20 }
 0x2d9   : > { %8237 = vrot.lane.b32.xlu0 %v10658_v52, %s8588_s8 }
 0x2da   : > { %v10664_v26 = vpop.permute.xlu1 %7972 }
 0x2db   : > { %v7983_v28 = vpop.permute.xlu0 %7982  ;;  %v7975_v23 = vunpack.i.h.bf16 %v10664_v26  ;;  %v7974_v25 = vunpack.i.l.bf16 %v10664_v26 }
 0x2dc   : > { %8267 = vrot.lane.b32.xlu1 %v10637_v14, %s8595_s21  ;;  %v7985_v12 = vunpack.i.h.bf16 %v7983_v28  ;;  %v7984_v36 = vunpack.i.l.bf16 %v7983_v28 }
 0x2dd   : > { %8242 = vrot.lane.b32.xlu0 %v10666_v62, %s8589_s9  ;;  %v3712_v17 = vsel %vm280_vm0, %v8568_v58, %v7975_v23 }
 0x2de   : > { %v10674_v63 = vpop.permute.xlu1 %7977  ;;  %v3774_v59 = vsel %vm1812_vm5, %v3742_v51, %v7985_v12  ;;  %v3773_v22 = vsel %vm1812_vm5, %v3741_v60, %v7984_v36  ;;  %v8567_v12 = vld [vmem:[#allocation3 + $0x18] sm:$0xff] }
 0x2df   : > { %v10672_v41 = vpop.permute.xlu0 %7997  ;;  %v7980_v38 = vunpack.i.h.bf16 %v10674_v63  ;;  %v3711_v36 = vsel %vm280_vm0, %v8567_v12, %v7974_v25 }
 0x2e0   : > { %8282 = vrot.lane.b32.xlu1 %v10676_v8, %s8588_s8 }
 0x2e1   : > { %8272 = vrot.lane.b32.xlu0 %v8271_v31, %s8588_s8  ;;  %v7965_v31 = vunpack.i.h.bf16 %v10644_v34 }
 0x2e2   : > { %v7988_v46 = vpop.permute.xlu1 %7987 }
 0x2e3   : > { %v10685_v20 = vpop.permute.xlu0 %8002  ;;  %v7990_v48 = vunpack.i.h.bf16 %v7988_v46  ;;  %v7989_v19 = vunpack.i.l.bf16 %v7988_v46  ;;  %v7979_v46 = vunpack.i.l.bf16 %v10674_v63  ;;  %v2455_v63 = vld [vmem:[#allocation3 + $0x141] sm:$0xff] }
 0x2e4   : > { %8287 = vrot.lane.b32.xlu1 %v10687_v32, %s8589_s9 }
 0x2e5   : > { %8277 = vrot.lane.b32.xlu0 %v8276_v42, %s8589_s9  ;;  %v3806_v28 = vsel %vm1845_vm6, %v3774_v59, %v7990_v48  ;;  %v3805_v43 = vsel %vm1845_vm6, %v3773_v22, %v7989_v19  ;;  %v3743_v48 = vsel %vm1779_vm4, %v3711_v36, %v7979_v46  ;;  %v3744_v19 = vsel %vm1779_vm4, %v3712_v17, %v7980_v38  ;;  %v2490_v46 = vld [vmem:[#allocation3 + $0x16a] sm:$0xff] }
 0x2e6   : > { %v7993_v29 = vpop.permute.xlu1 %7992  ;;  %v3776_v59 = vsel %vm1812_vm5, %v3744_v19, %v7945_v50  ;;  %v7950_v22 = vunpack.i.h.bf16 %v10646_v54  ;;  %v7934_v50 = vunpack.i.l.bf16 %v10624_v61 }
 0x2e7   : > { %v10696_v21 = vpop.permute.xlu0 %8012  ;;  %v7995_v55 = vunpack.i.h.bf16 %v7993_v29  ;;  %v7994_v47 = vunpack.i.l.bf16 %v7993_v29  ;;  %v2454_v29 = vld [vmem:[#allocation3 + $0x139] sm:$0xff] }
 0x2e8   : > { %8307 = vrot.lane.b32.xlu1 %v10698_v3, %s8590_s10 }
 0x2e9   : > { %8292 = vrot.lane.b32.xlu0 %v8291_v30, %s8588_s8  ;;  %v3837_v37 = vsel %vm1878_vm7, %v3805_v43, %v7994_v47  ;;  %v3838_v4 = vsel %vm1878_vm7, %v3806_v28, %v7995_v55  ;;  %v8336_v30 = vpack.i.bf16 %v2455_v63, %v2454_v29  ;;  %v7949_v55 = vunpack.i.l.bf16 %v10646_v54  ;;  %v2458_v54 = vld [vmem:[#allocation3 + $0x169] sm:$0xff] }
 0x2ea   : > { %v10715_v15 = vpop.permute.xlu1 %8007  ;;  %v3869_v44 = vsel %vm1911_vm8, %v3837_v37, %v7959_v16  ;;  %v3870_v45 = vsel %vm1911_vm8, %v3838_v4, %v7960_v6  ;;  %v8341_v6 = vpack.i.bf16 %v2487_v40, %v2486_v18  ;;  %v3808_v37 = vsel %vm1845_vm6, %v3776_v59, %v7950_v22  ;;  %v2459_v4 = vld [vmem:[#allocation3 + $0x171] sm:$0xff] }
 0x2eb   : > { %v10713_v1 = vpop.permute.xlu0 %8017  ;;  %v3901_v34 = vsel %vm1944_vm9, %v3869_v44, %v7964_v53  ;;  %v3902_v2 = vsel %vm1944_vm9, %v3870_v45, %v7965_v31  ;;  %v8346_v23 = vpack.i.bf16 %v2459_v4, %v2458_v54  ;;  %v2608_v63 = vld [vmem:[#allocation3 + $0x110] sm:$0xff]  ;;  %v7939_v29 = vunpack.i.l.bf16 %v10635_v39 }
 0x2ec   : > { %8317 = vrot.lane.b32.xlu1 %v10658_v52, %s8591_s11  ;;  %v3933_v42 = vsel %vm1977_vm10, %v3901_v34, %v7969_v24  ;;  %v3934_v7 = vsel %vm1977_vm10, %v3902_v2, %v7970_v27 }
 0x2ed   : > { %8297 = vrot.lane.b32.xlu0 %v8296_v5, %s8589_s9  ;;  %v3965_v9 = vpack.c.bf16 %v3934_v7, %v3933_v42  ;;  %v7955_v5 = vunpack.i.h.bf16 %v10656_v10  ;;  %v2491_v42 = vld [vmem:[#allocation3 + $0x172] sm:$0xff] }
 0x2ee   : > { %v10734_v26 = vpop.permute.xlu1 %8022  ;;  %v8351_v17 = vpack.i.bf16 %v2491_v42, %v2490_v46 }
 0x2ef   : > { %v10732_v35 = vpop.permute.xlu0 %8047  ;;  %7215 = vmatprep.mubr.msk.bf16.mxu1 %vm2053_vm11, %v3965_v9  ;;  %v3840_v45 = vsel %vm1878_vm7, %v3808_v37, %v7955_v5 }
 0x2f0   : > { %8327 = vrot.lane.b32.xlu1 %v10666_v62, %s8592_s12 }
 0x2f1   : > { %8302 = vrot.lane.b32.xlu0 %v10648_v11, %s8590_s10  ;;  %v3775_v11 = vsel %vm1812_vm5, %v3743_v48, %v7944_v56  ;;  %v2607_v56 = vld [vmem:[#allocation3 + $0x108] sm:$0xff] }
 0x2f2   : > { %v10747_v51 = vpop.permute.xlu1 %8027  ;;  %v3807_v43 = vsel %vm1845_vm6, %v3775_v11, %v7949_v55  ;;  %v8356_v40 = vpack.i.bf16 %v2608_v63, %v2607_v56  ;;  %v8049_v11 = vunpack.i.l.bf16 %v10732_v35  ;;  %v8569_v55 = vld [vmem:[#allocation3 + $0x98] sm:$0xff] }
 0x2f3   : > { %v8053_v60 = vpop.permute.xlu0 %8052  ;;  %v8030_v42 = vunpack.i.h.bf16 %v10747_v51 }
 0x2f4   : > { %8337 = vrot.lane.b32.xlu1 %v8336_v30, %s8588_s8  ;;  %v8055_v16 = vunpack.i.h.bf16 %v8053_v60  ;;  %v8054_v28 = vunpack.i.l.bf16 %v8053_v60  ;;  %v7940_v60 = vunpack.i.h.bf16 %v10635_v39  ;;  %v8571_v39 = vld [vmem:[#allocation3 + $0x30] sm:$0xff] }
 0x2f5   : > { %8312 = vrot.lane.b32.xlu0 %v10626_v49, %s8591_s11  ;;  %v7954_v49 = vunpack.i.l.bf16 %v10656_v10 }
 0x2f6   : > { %v10756_v47 = vpop.permute.xlu1 %8032  ;;  %v3872_v10 = vsel %vm1911_vm8, %v3840_v45, %v8055_v16 }
 0x2f7   : > { %v8058_v33 = vpop.permute.xlu0 %8057  ;;  %v3839_v44 = vsel %vm1878_vm7, %v3807_v43, %v7954_v49  ;;  %v8572_v43 = vld [vmem:[#allocation3 + $0x38] sm:$0xff]  ;;  %v8034_v63 = vunpack.i.l.bf16 %v10756_v47 }
 0x2f8   : > { %v8060_v31 = vunpack.i.h.bf16 %v8058_v33  ;;  %v8059_v53 = vunpack.i.l.bf16 %v8058_v33  ;;  %8342 = vrot.lane.b32.xlu1 %v8341_v6, %s8589_s9  ;;  %v3871_v25 = vsel %vm1911_vm8, %v3839_v44, %v8054_v28  ;;  %v8570_v33 = vld [vmem:[#allocation3 + $0x90] sm:$0xff] }
 0x2f9   : > { %8322 = vrot.lane.b32.xlu0 %v10637_v14, %s8592_s12 }
 0x2fa   : > { %v10767_v24 = vpop.permute.xlu1 %8037  ;;  %v3903_v38 = vsel %vm1944_vm9, %v3871_v25, %v8059_v53  ;;  %v3904_v14 = vsel %vm1944_vm9, %v3872_v10, %v8060_v31  ;;  %v2545_v53 = vld [vmem:[#allocation3 + $0x111] sm:$0xff]  ;;  %v8024_v25 = vunpack.i.l.bf16 %v10734_v26 }
 0x2fb   : > { %v8063_v27 = vpop.permute.xlu0 %8062 }
 0x2fc   : > { %v8065_v34 = vunpack.i.h.bf16 %v8063_v27  ;;  %v8064_v2 = vunpack.i.l.bf16 %v8063_v27  ;;  %8347 = vrot.lane.b32.xlu1 %v8346_v23, %s8588_s8  ;;  %v8025_v23 = vunpack.i.h.bf16 %v10734_v26 }
 0x2fd   : > { %8332 = vrot.lane.b32.xlu0 %v10698_v3, %s8593_s13  ;;  %v7935_v3 = vunpack.i.h.bf16 %v10624_v61 }
 0x2fe   : > { %v3935_v7 = vsel %vm1977_vm10, %v3903_v38, %v8064_v2  ;;  %v3936_v9 = vsel %vm1977_vm10, %v3904_v14, %v8065_v34  ;;  %v10778_v36 = vpop.permute.xlu1 %8042  ;;  %v2544_v2 = vld [vmem:[#allocation3 + $0x109] sm:$0xff] }
 0x2ff   : > { %v8078_v12 = vpop.permute.xlu0 %8077  ;;  %v3966_v58 = vpack.c.bf16 %v3936_v9, %v3935_v7  ;;  %v3714_v37 = vsel %vm280_vm0, %v8572_v43, %v7935_v3  ;;  %v8391_v46 = vpack.i.bf16 %v2545_v53, %v2544_v2  ;;  %v8029_v7 = vunpack.i.l.bf16 %v10747_v51  ;;  %v10832_v3 = vld [vmem:[#allocation3 + $0x128] sm:$0xff] }
 0x300   : > { %v8080_v48 = vunpack.i.h.bf16 %v8078_v12  ;;  %v8079_v19 = vunpack.i.l.bf16 %v8078_v12  ;;  %8352 = vrot.lane.b32.xlu1 %v8351_v17, %s8589_s9  ;;  %v3746_v49 = vsel %vm1779_vm4, %v3714_v37, %v7940_v60  ;;  %v8035_v17 = vunpack.i.h.bf16 %v10756_v47  ;;  %v2579_v43 = vld [vmem:[#allocation3 + $0x12a] sm:$0xff] }
 0x301   : > { %8362 = vrot.lane.b32.xlu0 %v10658_v52, %s8594_s20  ;;  %7216 = vmatmul.mubr.msk.bf16.vlgmr.msra.gmra.mrb[0].mxu1 %vm2053_vm11, %v3966_v58  ;;  %v8050_v52 = vunpack.i.h.bf16 %v10732_v35 }
 0x302   : > { %v8068_v18 = vpop.permute.xlu1 %8067  ;;  %7258 = vmatpush3.bf16.msra.mxu1 %v10485_v57  ;;  %v3722_v61 = vsel %vm280_vm0, %v8569_v55, %v8080_v48  ;;  %v3721_v6 = vsel %vm280_vm0, %v8570_v33, %v8079_v19  ;;  %v3713_v57 = vsel %vm280_vm0, %v8571_v39, %v7934_v50  ;;  %v2576_v48 = vld [vmem:[#allocation3 + $0x10a] sm:$0xff]  ;;  %v2577_v19 = vld [vmem:[#allocation3 + $0x112] sm:$0xff]  ;;  %v2546_v33 = vld [vmem:[#allocation3 + $0x121] sm:$0xff] }
 0x303   : > { %v8083_v30 = vpop.permute.xlu0 %8082  ;;  %v8070_v16 = vunpack.i.h.bf16 %v8068_v18  ;;  %v8069_v28 = vunpack.i.l.bf16 %v8068_v18  ;;  %v3745_v5 = vsel %vm1779_vm4, %v3713_v57, %v7939_v29  ;;  %v3778_v54 = vsel %vm1812_vm5, %v3746_v49, %v8050_v52  ;;  %v10842_v18 = vld [vmem:[#allocation3 + $0x120] sm:$0xff] }
 0x304   : > { %v8085_v59 = vunpack.i.h.bf16 %v8083_v30  ;;  %v8084_v22 = vunpack.i.l.bf16 %v8083_v30  ;;  %8357 = vrot.lane.b32.xlu1 %v8356_v40, %s8593_s13  ;;  %v3777_v44 = vsel %vm1812_vm5, %v3745_v5, %v8049_v11  ;;  %v8401_v30 = vpack.i.bf16 %v2577_v19, %v2576_v48  ;;  %v2578_v57 = vld [vmem:[#allocation3 + $0x122] sm:$0xff] }
 0x305   : > { %8372 = vrot.lane.b32.xlu0 %v10666_v62, %s8595_s21  ;;  %v3810_v10 = vsel %vm1845_vm6, %v3778_v54, %v8070_v16  ;;  %v3809_v34 = vsel %vm1845_vm6, %v3777_v44, %v8069_v28  ;;  %v8040_v52 = vunpack.i.h.bf16 %v10767_v24  ;;  %v8039_v11 = vunpack.i.l.bf16 %v10767_v24  ;;  %v8573_v16 = vld [vmem:[#allocation3 + $0x50] sm:$0xff]  ;;  %v8574_v28 = vld [vmem:[#allocation3 + $0x48] sm:$0xff]  ;;  %v10867_v44 = vld [vmem:[#allocation3 + $0x140] sm:$0xff] }
 0x306   : > { %v10798_v35 = vsel %vm1779_vm4, %v3721_v6, %v8084_v22  ;;  %v10801_v4 = vsel %vm1779_vm4, %v3722_v61, %v8085_v59  ;;  %v8073_v62 = vpop.permute.xlu1 %8072  ;;  %v8045_v59 = vunpack.i.h.bf16 %v10778_v36  ;;  %v8044_v22 = vunpack.i.l.bf16 %v10778_v36 }
 0x307   : > { %v10806_v31 = vpop.permute.xlu0 %8102  ;;  %v8075_v45 = vunpack.i.h.bf16 %v8073_v62  ;;  %v8074_v27 = vunpack.i.l.bf16 %v8073_v62  ;;  %v3716_v24 = vsel %vm280_vm0, %v8573_v16, %v8040_v52  ;;  %v3715_v39 = vsel %vm280_vm0, %v8574_v28, %v8039_v11  ;;  %v2675_v11 = vld [vmem:[#allocation3 + $0x13a] sm:$0xff] }
 0x308   : > { %8367 = vrot.lane.b32.xlu1 %v10676_v8, %s8594_s20  ;;  %v3747_v36 = vsel %vm1779_vm4, %v3715_v39, %v8044_v22  ;;  %v3748_v37 = vsel %vm1779_vm4, %v3716_v24, %v8045_v59  ;;  %v8010_v5 = vunpack.i.h.bf16 %v10715_v15  ;;  %v8009_v49 = vunpack.i.l.bf16 %v10715_v15 }
 0x309   : > { %8382 = vrot.lane.b32.xlu0 %v8356_v40, %s8590_s10  ;;  %v3841_v38 = vsel %vm1878_vm7, %v3809_v34, %v8074_v27  ;;  %v3842_v14 = vsel %vm1878_vm7, %v3810_v10, %v8075_v45  ;;  %v8386_v40 = vpack.i.bf16 %v10832_v3, %v10842_v18  ;;  %v8406_v54 = vpack.i.bf16 %v2579_v43, %v2578_v57  ;;  %v10875_v10 = vld [vmem:[#allocation3 + $0x138] sm:$0xff] }
 0x30a   : > { %v3873_v26 = vsel %vm1911_vm8, %v3841_v38, %v8024_v25  ;;  %v3874_v9 = vsel %vm1911_vm8, %v3842_v14, %v8025_v23  ;;  %v10825_v58 = vpop.permute.xlu1 %8087  ;;  %v3779_v45 = vsel %vm1812_vm5, %v3747_v36, %v8009_v49  ;;  %v3780_v27 = vsel %vm1812_vm5, %v3748_v37, %v8010_v5 }
 0x30b   : > { %v10823_v12 = vpop.permute.xlu0 %8107  ;;  %v3905_v8 = vsel %vm1944_vm9, %v3873_v26, %v8029_v7  ;;  %v3906_v51 = vsel %vm1944_vm9, %v3874_v9, %v8030_v42  ;;  %v8015_v23 = vunpack.i.h.bf16 %v10696_v21  ;;  %v8014_v25 = vunpack.i.l.bf16 %v10696_v21  ;;  %v2644_v7 = vld [vmem:[#allocation3 + $0x141] sm:$0xff] }
 0x30c   : > { %8377 = vrot.lane.b32.xlu1 %v10687_v32, %s8595_s21  ;;  %v3937_v50 = vsel %vm1977_vm10, %v3905_v8, %v8034_v63  ;;  %v3938_v56 = vsel %vm1977_vm10, %v3906_v51, %v8035_v17  ;;  %v2547_v32 = vld [vmem:[#allocation3 + $0x129] sm:$0xff]  ;;  %v8416_v2 = vpack.i.bf16 %v10867_v44, %v10875_v10  ;;  %v8020_v26 = vunpack.i.h.bf16 %v10713_v1  ;;  %v2643_v63 = vld [vmem:[#allocation3 + $0x139] sm:$0xff] }
 0x30d   : > { %8392 = vrot.lane.b32.xlu0 %v8391_v46, %s8591_s11  ;;  %v3967_v29 = vpack.c.bf16 %v3938_v56, %v3937_v50  ;;  %v8396_v6 = vpack.i.bf16 %v2547_v32, %v2546_v33  ;;  %v3811_v46 = vsel %vm1845_vm6, %v3779_v45, %v8014_v25  ;;  %v3812_v42 = vsel %vm1845_vm6, %v3780_v27, %v8015_v23  ;;  %v2676_v32 = vld [vmem:[#allocation3 + $0x142] sm:$0xff]  ;;  %v10914_v27 = vld [vmem:[#allocation3 + $0x150] sm:$0xff] }
 0x30e   : > { %v10840_v47 = vpop.permute.xlu1 %8092  ;;  %v8019_v21 = vunpack.i.l.bf16 %v10713_v1  ;;  %v3844_v19 = vsel %vm1878_vm7, %v3812_v42, %v8020_v26  ;;  %v8426_v50 = vpack.i.bf16 %v2644_v7, %v2643_v63  ;;  %v8000_v59 = vunpack.i.h.bf16 %v10672_v41  ;;  %v2550_v63 = vld [vmem:[#allocation3 + $0x151] sm:$0xff] }
 0x30f   : > { %v10838_v60 = vpop.permute.xlu0 %8112  ;;  %7219 = vmatprep.mubr.msk.bf16.mxu1 %vm2053_vm11, %v3967_v29  ;;  %v7999_v22 = vunpack.i.l.bf16 %v10672_v41  ;;  %v8005_v16 = vunpack.i.h.bf16 %v10685_v20  ;;  %v8004_v24 = vunpack.i.l.bf16 %v10685_v20  ;;  %v8436_v37 = vpack.i.bf16 %v2676_v32, %v2675_v11  ;;  %v10907_v41 = vld [vmem:[#allocation3 + $0x158] sm:$0xff] }
 0x310   : > { %8387 = vrot.lane.b32.xlu1 %v8386_v40, %s8590_s10  ;;  %v3843_v48 = vsel %vm1878_vm7, %v3811_v46, %v8019_v21  ;;  %v8105_v26 = vunpack.i.h.bf16 %v10806_v31  ;;  %v8104_v21 = vunpack.i.l.bf16 %v10806_v31 }
 0x311   : > { %8402 = vrot.lane.b32.xlu0 %v8401_v30, %s8592_s12 }
 0x312   : > { %v10855_v61 = vpop.permute.xlu1 %8097 }
 0x313   : > { %v10853_v55 = vpop.permute.xlu0 %8127 }
 0x314   : > { %8397 = vrot.lane.b32.xlu1 %v8396_v6, %s8591_s11  ;;  %v8130_v43 = vunpack.i.h.bf16 %v10853_v55  ;;  %v8129_v36 = vunpack.i.l.bf16 %v10853_v55 }
 0x315   : > { %8412 = vrot.lane.b32.xlu0 %v8386_v40, %s8593_s13 }
 0x316   : > { %v10865_v53 = vpop.permute.xlu1 %8117 }
 0x317   : > { %v8133_v62 = vpop.permute.xlu0 %8132  ;;  %v8120_v11 = vunpack.i.h.bf16 %v10865_v53  ;;  %v8119_v32 = vunpack.i.l.bf16 %v10865_v53 }
 0x318   : > { %8407 = vrot.lane.b32.xlu1 %v8406_v54, %s8592_s12  ;;  %v8135_v38 = vunpack.i.h.bf16 %v8133_v62  ;;  %v8134_v14 = vunpack.i.l.bf16 %v8133_v62  ;;  %v8575_v62 = vld [vmem:[#allocation3 + $0x68] sm:$0xff] }
 0x319   : > { %8422 = vrot.lane.b32.xlu0 %v8396_v6, %s8594_s20  ;;  %v3718_v20 = vsel %vm280_vm0, %v8575_v62, %v8000_v59  ;;  %v2413_v62 = vld [vmem:[#allocation3 + $0xc8] sm:$0xff] }
 0x31a   : > { %v10877_v34 = vpop.permute.xlu1 %8122  ;;  %v3875_v56 = vsel %vm1911_vm8, %v3843_v48, %v8134_v14  ;;  %v3876_v29 = vsel %vm1911_vm8, %v3844_v19, %v8135_v38  ;;  %v3750_v23 = vsel %vm1779_vm4, %v3718_v20, %v8005_v16  ;;  %v2551_v38 = vld [vmem:[#allocation3 + $0x159] sm:$0xff] }
 0x31b   : > { %v8138_v15 = vpop.permute.xlu0 %8137  ;;  %v3782_v46 = vsel %vm1812_vm5, %v3750_v23, %v8130_v43  ;;  %v2583_v16 = vld [vmem:[#allocation3 + $0x15a] sm:$0xff] }
 0x31c   : > { %v8140_v9 = vunpack.i.h.bf16 %v8138_v15  ;;  %v8139_v17 = vunpack.i.l.bf16 %v8138_v15  ;;  %8417 = vrot.lane.b32.xlu1 %v8416_v2, %s8593_s13 }
 0x31d   : > { %8432 = vrot.lane.b32.xlu0 %v8406_v54, %s8595_s21  ;;  %v8576_v54 = vld [vmem:[#allocation3 + $0x60] sm:$0xff] }
 0x31e   : > { %v10889_v51 = vpop.permute.xlu1 %8167  ;;  %v3907_v40 = vsel %vm1944_vm9, %v3875_v56, %v8139_v17  ;;  %v3908_v52 = vsel %vm1944_vm9, %v3876_v29, %v8140_v9  ;;  %v3717_v45 = vsel %vm280_vm0, %v8576_v54, %v7999_v22  ;;  %v8109_v56 = vunpack.i.l.bf16 %v10823_v12 }
 0x31f   : > { %v8143_v8 = vpop.permute.xlu0 %8142  ;;  %v3749_v55 = vsel %vm1779_vm4, %v3717_v45, %v8004_v24  ;;  %v8125_v24 = vunpack.i.h.bf16 %v10877_v34 }
 0x320   : > { %v8145_v1 = vunpack.i.h.bf16 %v8143_v8  ;;  %v8144_v30 = vunpack.i.l.bf16 %v8143_v8  ;;  %8427 = vrot.lane.b32.xlu1 %v8426_v50, %s8594_s20  ;;  %v3781_v14 = vsel %vm1812_vm5, %v3749_v55, %v8129_v36  ;;  %v8456_v8 = vpack.i.bf16 %v2551_v38, %v2550_v63 }
 0x321   : > { %8442 = vrot.lane.b32.xlu0 %v8416_v2, %s8590_s10  ;;  %v8446_v2 = vpack.i.bf16 %v10907_v41, %v10914_v27 }
 0x322   : > { %v3939_v33 = vsel %vm1977_vm10, %v3907_v40, %v8144_v30  ;;  %v3940_v6 = vsel %vm1977_vm10, %v3908_v52, %v8145_v1  ;;  %v10903_v57 = vpop.permute.xlu1 %8172  ;;  %v8115_v40 = vunpack.i.h.bf16 %v10838_v60  ;;  %v8114_v52 = vunpack.i.l.bf16 %v10838_v60  ;;  %v2407_v60 = vld [vmem:[#allocation3 + $0x80] sm:$0xff] }
 0x323   : > { %v3968_v28 = vpack.c.bf16 %v3940_v6, %v3939_v33  ;;  %v8148_v39 = vpop.permute.xlu0 %8147  ;;  %v2582_v6 = vld [vmem:[#allocation3 + $0x152] sm:$0xff] }
 0x324   : > { %v8150_v5 = vunpack.i.h.bf16 %v8148_v39  ;;  %v8149_v49 = vunpack.i.l.bf16 %v8148_v39  ;;  %8437 = vrot.lane.b32.xlu1 %v8436_v37, %s8595_s21  ;;  %v8466_v45 = vpack.i.bf16 %v2583_v16, %v2582_v6 }
 0x325   : > { %8452 = vrot.lane.b32.xlu0 %v8426_v50, %s8591_s11  ;;  %7220 = vmatmul.mubr.msk.bf16.gmra.mrb[4].mxu1 %vm2053_vm11, %v3968_v28  ;;  %v8110_v50 = vunpack.i.h.bf16 %v10823_v12  ;;  %v8124_v28 = vunpack.i.l.bf16 %v10877_v34 }
 0x326   : > { %v10918_v15 = vpop.permute.xlu1 %8177  ;;  %v3813_v9 = vsel %vm1845_vm6, %v3781_v14, %v8149_v49  ;;  %v3814_v17 = vsel %vm1845_vm6, %v3782_v46, %v8150_v5  ;;  %v3720_v5 = vsel %vm280_vm0, %v2407_v60, %v8120_v11  ;;  %v2412_v49 = vld [vmem:[#allocation3 + $0xc0] sm:$0xff] }
 0x327   : > { %v8153_v25 = vpop.permute.xlu0 %8152  ;;  %v3752_v14 = vsel %vm1779_vm4, %v3720_v5, %v8125_v24 }
 0x328   : > { %v8155_v42 = vunpack.i.h.bf16 %v8153_v25  ;;  %v8154_v7 = vunpack.i.l.bf16 %v8153_v25  ;;  %8447 = vrot.lane.b32.xlu1 %v8446_v2, %s8590_s10 }
 0x329   : > { %8462 = vrot.lane.b32.xlu0 %v8436_v37, %s8592_s12  ;;  %v2406_v37 = vld [vmem:[#allocation3 + $0x78] sm:$0xff] }
 0x32a   : > { %v3845_v48 = vsel %vm1878_vm7, %v3813_v9, %v8154_v7  ;;  %v3846_v19 = vsel %vm1878_vm7, %v3814_v17, %v8155_v42  ;;  %v10936_v30 = vpop.permute.xlu1 %8197  ;;  %v3719_v34 = vsel %vm280_vm0, %v2406_v37, %v8119_v32  ;;  %v8090_v7 = vunpack.i.h.bf16 %v10825_v58  ;;  %v10973_v17 = vld [vmem:[#allocation3 + $0x168] sm:$0xff] }
 0x32b   : > { %v3877_v31 = vsel %vm1911_vm8, %v3845_v48, %v8104_v21  ;;  %v3878_v29 = vsel %vm1911_vm8, %v3846_v19, %v8105_v26  ;;  %v8158_v1 = vpop.permute.xlu0 %8157  ;;  %v3751_v38 = vsel %vm1779_vm4, %v3719_v34, %v8124_v28  ;;  %v8089_v26 = vunpack.i.l.bf16 %v10825_v58  ;;  %v2648_v48 = vld [vmem:[#allocation3 + $0x171] sm:$0xff] }
 0x32c   : > { %v8160_v59 = vunpack.i.h.bf16 %v8158_v1  ;;  %v8159_v22 = vunpack.i.l.bf16 %v8158_v1  ;;  %v3909_v12 = vsel %vm1944_vm9, %v3877_v31, %v8109_v56  ;;  %v3910_v33 = vsel %vm1944_vm9, %v3878_v29, %v8110_v50  ;;  %8457 = vrot.lane.b32.xlu1 %v8456_v8, %s8591_s11  ;;  %v2647_v56 = vld [vmem:[#allocation3 + $0x169] sm:$0xff] }
 0x32d   : > { %8472 = vrot.lane.b32.xlu0 %v8446_v2, %s8593_s13  ;;  %v3941_v53 = vsel %vm1977_vm10, %v3909_v12, %v8114_v52  ;;  %v3942_v36 = vsel %vm1977_vm10, %v3910_v33, %v8115_v40  ;;  %v10957_v2 = vld [vmem:[#allocation3 + $0x170] sm:$0xff]  ;;  %v3783_v19 = vsel %vm1812_vm5, %v3751_v38, %v8089_v26  ;;  %v8095_v50 = vunpack.i.h.bf16 %v10840_v47  ;;  %v2522_v38 = vld [vmem:[#allocation3 + $0x180] sm:$0xff] }
 0x32e   : > { %v10948_v43 = vpop.permute.xlu1 %8202  ;;  %v3726_v55 = vsel %vm280_vm0, %v2413_v62, %v8160_v59  ;;  %v3725_v23 = vsel %vm280_vm0, %v2412_v49, %v8159_v22  ;;  %v3969_v25 = vpack.c.bf16 %v3942_v36, %v3941_v53  ;;  %v8476_v63 = vpack.i.bf16 %v10957_v2, %v10973_v17  ;;  %v2679_v59 = vld [vmem:[#allocation3 + $0x16a] sm:$0xff]  ;;  %v2680_v22 = vld [vmem:[#allocation3 + $0x172] sm:$0xff] }
 0x32f   : > { %v8163_v39 = vpop.permute.xlu0 %8162  ;;  %v8094_v58 = vunpack.i.l.bf16 %v10840_v47  ;;  %v8486_v1 = vpack.i.bf16 %v2648_v48, %v2647_v56  ;;  %v8100_v12 = vunpack.i.h.bf16 %v10855_v61  ;;  %v8099_v33 = vunpack.i.l.bf16 %v10855_v61  ;;  %v2523_v62 = vld [vmem:[#allocation3 + $0x188] sm:$0xff]  ;;  %v2411_v48 = vld [vmem:[#allocation3 + $0xb0] sm:$0xff] }
 0x330   : > { %v8165_v20 = vunpack.i.h.bf16 %v8163_v39  ;;  %v8164_v54 = vunpack.i.l.bf16 %v8163_v39  ;;  %8467 = vrot.lane.b32.xlu1 %v8466_v45, %s8592_s12  ;;  %7223 = vmatprep.mubr.msk.bf16.mxu1 %vm2053_vm11, %v3969_v25  ;;  %v8496_v39 = vpack.i.bf16 %v2680_v22, %v2679_v59  ;;  %v8199_v34 = vunpack.i.l.bf16 %v10936_v30 }
 0x331   : > { %8482 = vrot.lane.b32.xlu0 %v8456_v8, %s8594_s20  ;;  %v3784_v8 = vsel %vm1812_vm5, %v3752_v14, %v8090_v7  ;;  %v3815_v11 = vsel %vm1845_vm6, %v3783_v19, %v8094_v58  ;;  %v8205_v14 = vunpack.i.h.bf16 %v10948_v43  ;;  %v8204_v7 = vunpack.i.l.bf16 %v10948_v43  ;;  %v2586_v19 = vld [vmem:[#allocation3 + $0x182] sm:$0xff] }
 0x332   : > { %v10962_v46 = vsel %vm1779_vm4, %v3725_v23, %v8164_v54  ;;  %v10965_v42 = vsel %vm1779_vm4, %v3726_v55, %v8165_v20  ;;  %v8208_v9 = vpop.permute.xlu1 %8207  ;;  %v3816_v32 = vsel %vm1845_vm6, %v3784_v8, %v8095_v50  ;;  %v3847_v16 = vsel %vm1878_vm7, %v3815_v11, %v8099_v33 }
 0x333   : > { %v10971_v21 = vpop.permute.xlu0 %8182  ;;  %v8210_v40 = vunpack.i.h.bf16 %v8208_v9  ;;  %v8209_v52 = vunpack.i.l.bf16 %v8208_v9  ;;  %v3848_v24 = vsel %vm1878_vm7, %v3816_v32, %v8100_v12  ;;  %v8506_v26 = vpack.i.bf16 %v2523_v62, %v2522_v38  ;;  %v2555_v9 = vld [vmem:[#allocation3 + $0x189] sm:$0xff] }
 0x334   : > { %8477 = vrot.lane.b32.xlu1 %v8476_v63, %s8593_s13  ;;  %v8170_v22 = vunpack.i.h.bf16 %v10889_v51  ;;  %v8169_v12 = vunpack.i.l.bf16 %v10889_v51 }
 0x335   : > { %8492 = vrot.lane.b32.xlu0 %v8466_v45, %s8595_s21  ;;  %v3879_v53 = vsel %vm1911_vm8, %v3847_v16, %v8209_v52  ;;  %v3880_v36 = vsel %vm1911_vm8, %v3848_v24, %v8210_v40  ;;  %v8200_v45 = vunpack.i.h.bf16 %v10936_v30  ;;  %v2554_v30 = vld [vmem:[#allocation3 + $0x181] sm:$0xff]  ;;  %v8174_v16 = vunpack.i.l.bf16 %v10903_v57 }
 0x336   : > { %v8213_v29 = vpop.permute.xlu1 %8212  ;;  %v8516_v43 = vpack.i.bf16 %v2555_v9, %v2554_v30  ;;  %v2620_v40 = vld [vmem:[#allocation3 + $0x1a0] sm:$0xff] }
 0x337   : > { %v10983_v31 = vpop.permute.xlu0 %8187  ;;  %v8215_v47 = vunpack.i.h.bf16 %v8213_v29  ;;  %v8214_v6 = vunpack.i.l.bf16 %v8213_v29  ;;  %v3724_v8 = vsel %vm280_vm0, %v2411_v48, %v8200_v45  ;;  %v2587_v29 = vld [vmem:[#allocation3 + $0x18a] sm:$0xff]  ;;  %v2651_v9 = vld [vmem:[#allocation3 + $0x199] sm:$0xff] }
 0x338   : > { %8487 = vrot.lane.b32.xlu1 %v8486_v1, %s8594_s20  ;;  %v3756_v11 = vsel %vm1779_vm4, %v3724_v8, %v8205_v14  ;;  %v8526_v24 = vpack.i.bf16 %v2587_v29, %v2586_v19 }
 0x339   : > { %8502 = vrot.lane.b32.xlu0 %v8476_v63, %s8590_s10  ;;  %v3911_v5 = vsel %vm1944_vm9, %v3879_v53, %v8214_v6  ;;  %v3912_v49 = vsel %vm1944_vm9, %v3880_v36, %v8215_v47  ;;  %v2410_v63 = vld [vmem:[#allocation3 + $0xa8] sm:$0xff]  ;;  %v8175_v6 = vunpack.i.h.bf16 %v10903_v57  ;;  %v8179_v53 = vunpack.i.l.bf16 %v10918_v15 }
 0x33a   : > { %v8218_v60 = vpop.permute.xlu1 %8217  ;;  %v3723_v50 = vsel %vm280_vm0, %v2410_v63, %v8199_v34  ;;  %v3788_v51 = vsel %vm1812_vm5, %v3756_v11, %v8170_v22  ;;  %v2652_v63 = vld [vmem:[#allocation3 + $0x1a1] sm:$0xff] }
 0x33b   : > { %v10993_v28 = vpop.permute.xlu0 %8192  ;;  %v8220_v37 = vunpack.i.h.bf16 %v8218_v60  ;;  %v8219_v61 = vunpack.i.l.bf16 %v8218_v60  ;;  %v3755_v52 = vsel %vm1779_vm4, %v3723_v50, %v8204_v7  ;;  %v8546_v29 = vpack.i.bf16 %v2652_v63, %v2651_v9 }
 0x33c   : > { %8497 = vrot.lane.b32.xlu1 %v8496_v39, %s8595_s21  ;;  %v3787_v36 = vsel %vm1812_vm5, %v3755_v52, %v8169_v12  ;;  %v8195_v48 = vunpack.i.h.bf16 %v10993_v28  ;;  %v8194_v30 = vunpack.i.l.bf16 %v10993_v28 }
 0x33d   : > { %8512 = vrot.lane.b32.xlu0 %v8486_v1, %s8591_s11  ;;  %v3943_v20 = vsel %vm1977_vm10, %v3911_v5, %v8219_v61  ;;  %v3944_v54 = vsel %vm1977_vm10, %v3912_v49, %v8220_v37  ;;  %v2619_v1 = vld [vmem:[#allocation3 + $0x198] sm:$0xff] }
 0x33e   : > { %v3970_v55 = vpack.c.bf16 %v3944_v54, %v3943_v20  ;;  %v11005_v25 = vpop.permute.xlu1 %8247  ;;  %v8536_v60 = vpack.i.bf16 %v2620_v40, %v2619_v1  ;;  %v8185_v20 = vunpack.i.h.bf16 %v10971_v21  ;;  %v8184_v54 = vunpack.i.l.bf16 %v10971_v21  ;;  %v2683_v1 = vld [vmem:[#allocation3 + $0x19a] sm:$0xff]  ;;  %v2684_v40 = vld [vmem:[#allocation3 + $0x1a2] sm:$0xff] }
 0x33f   : > { %v8223_v23 = vpop.permute.xlu0 %8222  ;;  %v8189_v21 = vunpack.i.l.bf16 %v10983_v31 }
 0x340   : > { %7224 = vmatmul.mubr.msk.bf16.gmra.mrb[8].mxu1 %vm2053_vm11, %v3970_v55  ;;  %8507 = vrot.lane.b32.xlu1 %v8506_v26, %s8590_s10  ;;  %v8225_v32 = vunpack.i.h.bf16 %v8223_v23  ;;  %v8224_v59 = vunpack.i.l.bf16 %v8223_v23  ;;  %v8190_v23 = vunpack.i.h.bf16 %v10983_v31 }
 0x341   : > { %8522 = vrot.lane.b32.xlu0 %v8496_v39, %s8592_s12  ;;  %v8180_v39 = vunpack.i.h.bf16 %v10918_v15 }
 0x342   : > { %v11014_v56 = vpop.permute.xlu1 %8252  ;;  %v3785_v5 = vsel %vm1812_vm5, %v10798_v35, %v8224_v59  ;;  %v3786_v57 = vsel %vm1812_vm5, %v10801_v4, %v8225_v32  ;;  %v3819_v35 = vsel %vm1845_vm6, %v3787_v36, %v8174_v16  ;;  %v3820_v4 = vsel %vm1845_vm6, %v3788_v51, %v8175_v6 }
 0x343   : > { %v8228_v58 = vpop.permute.xlu0 %8227  ;;  %v3851_v52 = vsel %vm1878_vm7, %v3819_v35, %v8179_v53  ;;  %v3852_v11 = vsel %vm1878_vm7, %v3820_v4, %v8180_v39  ;;  %v8556_v53 = vpack.i.bf16 %v2684_v40, %v2683_v1  ;;  %v8250_v39 = vunpack.i.h.bf16 %v11005_v25  ;;  %v2417_v4 = vld [vmem:[#allocation3 + $0xf8] sm:$0xff]  ;;  %v5020_v40 = vld [vmem:[%s8829_s30 + $0x80] sm:$0xff] }
 0x344   : > { %v8230_v33 = vunpack.i.h.bf16 %v8228_v58  ;;  %v8229_v47 = vunpack.i.l.bf16 %v8228_v58  ;;  %8517 = vrot.lane.b32.xlu1 %v8516_v43, %s8591_s11  ;;  %v8249_v36 = vunpack.i.l.bf16 %v11005_v25  ;;  %v2414_v25 = vld [vmem:[#allocation3 + $0xd8] sm:$0xff]  ;;  %s7127_s11 = sshll.u32 %s12184_s25, 6 }
 0x345   : > { %8532 = vrot.lane.b32.xlu0 %v8506_v26, %s8593_s13  ;;  %s11616_s18 = scalar_lea.vmem %s11974_s7, %s7127_s11 }
 0x346   : > { %v8258_v61 = vpop.permute.xlu1 %8257  ;;  %v3817_v15 = vsel %vm1845_vm6, %v3785_v5, %v8229_v47  ;;  %v3818_v45 = vsel %vm1845_vm6, %v3786_v57, %v8230_v33  ;;  %v8254_v5 = vunpack.i.l.bf16 %v11014_v56 }
 0x347   : > { %v8233_v37 = vpop.permute.xlu0 %8232  ;;  %v8260_v19 = vunpack.i.h.bf16 %v8258_v61  ;;  %v8259_v8 = vunpack.i.l.bf16 %v8258_v61  ;;  %v8255_v61 = vunpack.i.h.bf16 %v11014_v56  ;;  %v3727_v56 = vsel %vm280_vm0, %v2414_v25, %v8249_v36 }
 0x348   : > { %v8235_v49 = vunpack.i.h.bf16 %v8233_v37  ;;  %v8234_v62 = vunpack.i.l.bf16 %v8233_v37  ;;  %8527 = vrot.lane.b32.xlu1 %v8526_v24, %s8592_s12 }
 0x349   : > { %8542 = vrot.lane.b32.xlu0 %v8516_v43, %s8594_s20  ;;  %v3883_v12 = vsel %vm1911_vm8, %v3851_v52, %v8259_v8  ;;  %v3884_v33 = vsel %vm1911_vm8, %v3852_v11, %v8260_v19  ;;  %v2418_v19 = vld [vmem:[#allocation3 + $0x108] sm:$0xff]  ;;  %v5021_v52 = vld [vmem:[%s8829_s30 + $0x88] sm:$0xff]  ;;  %v5022_v11 = vld [vmem:[%s8829_s30 + $0x90] sm:$0xff] }
 0x34a   : > { %v3849_v34 = vsel %vm1878_vm7, %v3817_v15, %v8234_v62  ;;  %v3850_v55 = vsel %vm1878_vm7, %v3818_v45, %v8235_v49  ;;  %v8263_v26 = vpop.permute.xlu1 %8262  ;;  %v2415_v15 = vld [vmem:[#allocation3 + $0xe0] sm:$0xff] }
 0x34b   : > { %v3881_v38 = vsel %vm1911_vm8, %v3849_v34, %v8184_v54  ;;  %v3882_v14 = vsel %vm1911_vm8, %v3850_v55, %v8185_v20  ;;  %v11046_v7 = vpop.permute.xlu0 %8237  ;;  %v8265_v50 = vunpack.i.h.bf16 %v8263_v26  ;;  %v8264_v58 = vunpack.i.l.bf16 %v8263_v26 }
 0x34c   : > { %v3913_v31 = vsel %vm1944_vm9, %v3881_v38, %v8189_v21  ;;  %v3914_v43 = vsel %vm1944_vm9, %v3882_v14, %v8190_v23  ;;  %8537 = vrot.lane.b32.xlu1 %v8536_v60, %s8593_s13  ;;  %v8240_v57 = vunpack.i.h.bf16 %v11046_v7  ;;  %v8239_v54 = vunpack.i.l.bf16 %v11046_v7  ;;  %v2416_v7 = vld [vmem:[#allocation3 + $0xf0] sm:$0xff] }
 0x34d   : > { %8552 = vrot.lane.b32.xlu0 %v8526_v24, %s8595_s21  ;;  %v3945_v59 = vsel %vm1977_vm10, %v3913_v31, %v8194_v30  ;;  %v3946_v22 = vsel %vm1977_vm10, %v3914_v43, %v8195_v48  ;;  %v3915_v16 = vsel %vm1944_vm9, %v3883_v12, %v8264_v58  ;;  %v3916_v24 = vsel %vm1944_vm9, %v3884_v33, %v8265_v50  ;;  %v5024_v12 = vld [vmem:[%s8829_s30 + $0xa0] sm:$0xff] }
 0x34e   : > { %v8268_v32 = vpop.permute.xlu1 %8267  ;;  %v3971_v60 = vpack.c.bf16 %v3946_v22, %v3945_v59  ;;  %v3728_v35 = vsel %vm280_vm0, %v2415_v15, %v8250_v39  ;;  %v3759_v38 = vsel %vm1779_vm4, %v3727_v56, %v8254_v5  ;;  %v3730_v26 = vsel %vm280_vm0, %v2417_v4, %v8240_v57 }
 0x34f   : > { %v8243_v28 = vpop.permute.xlu0 %8242  ;;  %v8270_v47 = vunpack.i.h.bf16 %v8268_v32  ;;  %v8269_v6 = vunpack.i.l.bf16 %v8268_v32  ;;  %v3760_v14 = vsel %vm1779_vm4, %v3728_v35, %v8255_v61  ;;  %v3729_v30 = vsel %vm280_vm0, %v2416_v7, %v8239_v54  ;;  %v2419_v32 = vld [vmem:[#allocation3 + $0x110] sm:$0xff] }
 0x350   : > { %8547 = vrot.lane.b32.xlu1 %v8546_v29, %s8594_s20  ;;  %7227 = vmatprep.mubr.msk.bf16.mxu1 %vm2053_vm11, %v3971_v60  ;;  %v8244_v45 = vunpack.i.l.bf16 %v8243_v28  ;;  %v8245_v23 = vunpack.i.h.bf16 %v8243_v28  ;;  %v5026_v60 = vld [vmem:[%s8829_s30 + $0xb0] sm:$0xff]  ;;  %v5044_v39 = vadd.f32 %v5022_v11, %v5020_v40 }
 0x351   : > { %v3947_v51 = vsel %vm1977_vm10, %v3915_v16, %v8269_v6  ;;  %v3948_v37 = vsel %vm1977_vm10, %v3916_v24, %v8270_v47  ;;  %v5025_v24 = vld [vmem:[%s8829_s30 + $0xa8] sm:$0xff] }
 0x352   : > { %v3972_v49 = vpack.c.bf16 %v3948_v37, %v3947_v51  ;;  %v8283_v20 = vpop.permute.xlu1 %8282  ;;  %v11081_v31 = vsel %vm1779_vm4, %v3729_v30, %v8244_v45  ;;  %v11091_v28 = vsel %vm1779_vm4, %v3730_v26, %v8245_v23 }
 0x353   : > { %v8273_v62 = vpop.permute.xlu0 %8272  ;;  %v8284_v21 = vunpack.i.l.bf16 %v8283_v20  ;;  %v8285_v9 = vunpack.i.h.bf16 %v8283_v20  ;;  %v11113_v20 = vrot.slane %v5044_v39, %v10325_v13 }
 0x354   : > { %v8275_v34 = vunpack.i.h.bf16 %v8273_v62  ;;  %v8274_v55 = vunpack.i.l.bf16 %v8273_v62  ;;  %7228 = vmatmul.mubr.msk.bf16.gmra.mrb[12].mxu1 %vm2053_vm11, %v3972_v49  ;;  %8557 = vrot.lane.b32.xlu1 %v8556_v53, %s8595_s21  ;;  %v5027_v53 = vld [vmem:[%s8829_s30 + $0xb8] sm:$0xff]  ;;  %v5046_v49 = vadd.f32 %v5026_v60, %v5024_v12  ;;  %v5204_v62 = vcombine.high %v5044_v39, %v5044_v39 }
 0x355   : > { %v3731_v59 = vsel %vm280_vm0, %v2418_v19, %v8284_v21  ;;  %v3732_v33 = vsel %vm280_vm0, %v2419_v32, %v8285_v9  ;;  %v5047_v45 = vadd.f32 %v5027_v53, %v5025_v24 }
 0x356   : > { %v8288_v48 = vpop.permute.xlu1 %8287  ;;  %v3734_v43 = vsel %vm280_vm0, %v10832_v3, %v8275_v34  ;;  %v3733_v29 = vsel %vm280_vm0, %v10842_v18, %v8274_v55  ;;  %v5023_v18 = vld [vmem:[%s8829_s30 + $0x98] sm:$0xff]  ;;  %v11122_v56 = vrot.slane %v5204_v62, %v10325_v13  ;;  %v5238_v9 = vcombine.high %v5046_v49, %v5046_v49 }
 0x357   : > { %v8278_v63 = vpop.permute.xlu0 %8277  ;;  %v8289_v58 = vunpack.i.l.bf16 %v8288_v48  ;;  %v8290_v1 = vunpack.i.h.bf16 %v8288_v48  ;;  %v5045_v36 = vadd.f32 %v5023_v18, %v5021_v52  ;;  %v11161_v32 = vrot.slane %v5047_v45, %v10325_v13 }
 0x358   : > { %v8280_v8 = vunpack.i.h.bf16 %v8278_v63  ;;  %v8279_v50 = vunpack.i.l.bf16 %v8278_v63 }
 0x359   : > { %v11104_v47 = vsel %vm1779_vm4, %v3731_v59, %v8289_v58  ;;  %v11110_v57 = vsel %vm1779_vm4, %v3732_v33, %v8290_v1  ;;  %v5221_v4 = vcombine.high %v5045_v36, %v5045_v36  ;;  %v11125_v23 = vrot.slane %v5045_v36, %v10325_v13 }
 0x35a   : > { %v11095_v22 = vsel %vm1779_vm4, %v3733_v29, %v8279_v50  ;;  %v11098_v3 = vsel %vm1779_vm4, %v3734_v43, %v8280_v8  ;;  %v8308_v16 = vpop.permute.xlu1 %8307  ;;  %v11151_v58 = vrot.slane %v5046_v49, %v10325_v13  ;;  %v11154_v43 = vrot.slane %v5238_v9, %v10325_v13 }
 0x35b   : > { %v8293_v6 = vpop.permute.xlu0 %8292  ;;  %v8310_v61 = vunpack.i.h.bf16 %v8308_v16  ;;  %v8309_v5 = vunpack.i.l.bf16 %v8308_v16  ;;  %v11147_v19 = vcombine.high %v11125_v23, %v11125_v23  ;;  %v5255_v29 = vcombine.high %v5047_v45, %v5047_v45 }
 0x35c   : > { %v8295_v51 = vunpack.i.h.bf16 %v8293_v6  ;;  %v8294_v37 = vunpack.i.l.bf16 %v8293_v6  ;;  %v11165_v12 = vcombine.high %v11151_v58, %v11151_v58  ;;  %v7087_v33 = vrot.slane %v11113_v20, 9 }
 0x35d   : > { %v3791_v15 = vsel %vm1812_vm5, %v3759_v38, %v8309_v5  ;;  %v3792_v34 = vsel %vm1812_vm5, %v3760_v14, %v8310_v61  ;;  %v11133_v38 = vcombine.high %v11122_v56, %v11122_v56  ;;  %v11136_v14 = vrot.slane %v5221_v4, %v10325_v13 }
 0x35e   : > { %v3738_v54 = vsel %vm280_vm0, %v10907_v41, %v8295_v51  ;;  %v3737_v25 = vsel %vm280_vm0, %v10914_v27, %v8294_v37  ;;  %v8318_v35 = vpop.permute.xlu1 %8317  ;;  %v11129_v27 = vcombine.high %v11113_v20, %v11113_v20  ;;  %v11174_v24 = vcombine.high %v11154_v43, %v11154_v43 }
 0x35f   : > { %v8298_v55 = vpop.permute.xlu0 %8297  ;;  %v8320_v41 = vunpack.i.h.bf16 %v8318_v35  ;;  %v8319_v26 = vunpack.i.l.bf16 %v8318_v35  ;;  %v11158_v11 = vcombine.high %v11136_v14, %v11136_v14  ;;  %v11177_v60 = vrot.slane %v5255_v29, %v10325_v13 }
 0x360   : > { %v8300_v21 = vunpack.i.h.bf16 %v8298_v55  ;;  %v8299_v7 = vunpack.i.l.bf16 %v8298_v55  ;;  %v7089_v49 = vrot.slane %v11122_v56, 9  ;;  %v7092_v55 = vrot.slane %v11147_v19, 9 }
 0x361   : > { %v3823_v30 = vsel %vm1845_vm6, %v3791_v15, %v8319_v26  ;;  %v3824_v8 = vsel %vm1845_vm6, %v3792_v34, %v8320_v41  ;;  %v11192_v5 = vcombine.high %v11177_v60, %v11177_v60  ;;  %v7091_v15 = vrot.slane %v11125_v23, 9 }
 0x362   : > { %v11139_v63 = vsel %vm1779_vm4, %v3737_v25, %v8299_v7  ;;  %v11142_v48 = vsel %vm1779_vm4, %v3738_v54, %v8300_v21  ;;  %v8328_v52 = vpop.permute.xlu1 %8327  ;;  %v7090_v25 = vrot.slane %v11133_v38, 9  ;;  %v7093_v35 = vrot.slane %v11136_v14, 9 }
 0x363   : > { %v8303_v50 = vpop.permute.xlu0 %8302  ;;  %v8330_v59 = vunpack.i.h.bf16 %v8328_v52  ;;  %v8329_v18 = vunpack.i.l.bf16 %v8328_v52  ;;  %v7094_v41 = vrot.slane %v11158_v11, 9  ;;  %v7095_v26 = vrot.slane %v11151_v58, 9 }
 0x364   : > { %v8305_v1 = vunpack.i.h.bf16 %v8303_v50  ;;  %v8304_v40 = vunpack.i.l.bf16 %v8303_v50  ;;  %v7096_v50 = vrot.slane %v11165_v12, 9  ;;  %v7097_v29 = vrot.slane %v11154_v43, 9 }
 0x365   : > { %v11180_v53 = vsel %vm1878_vm7, %v3823_v30, %v8329_v18  ;;  %v11183_v39 = vsel %vm1878_vm7, %v3824_v8, %v8330_v59  ;;  %v7098_v52 = vrot.slane %v11174_v24, 9 }
 0x366   : > { %v3789_v6 = vsel %vm1812_vm5, %v10962_v46, %v8304_v40  ;;  %v3790_v16 = vsel %vm1812_vm5, %v10965_v42, %v8305_v1  ;;  %v11187_v46 = vcombine.high %v11161_v32, %v11161_v32  ;;  %v7088_v42 = vrot.slane %v11129_v27, 9  ;;  %v8338_v61 = vpop.permute.xlu1 %8337 }
 0x367   : > { %v8313_v36 = vpop.permute.xlu0 %8312  ;;  %v8340_v62 = vunpack.i.h.bf16 %v8338_v61  ;;  %v8339_v54 = vunpack.i.l.bf16 %v8338_v61  ;;  %v5628_v61 = vadd.f32 %v7087_v33, %v11113_v20  ;;  %v5634_v20 = vadd.f32 %v7093_v35, %v11136_v14 }
 0x368   : > { %v8315_v51 = vunpack.i.h.bf16 %v8313_v36  ;;  %v8314_v37 = vunpack.i.l.bf16 %v8313_v36  ;;  %v7100_v18 = vrot.slane %v11187_v46, 9  ;;  %v5639_v35 = vadd.f32 %v7098_v52, %v11174_v24 }
 0x369   : > { %v3736_v4 = vsel %vm280_vm0, %v10867_v44, %v8340_v62  ;;  %v3735_v21 = vsel %vm280_vm0, %v10875_v10, %v8339_v54  ;;  %v7099_v44 = vrot.slane %v11161_v32, 9  ;;  %v11252_v24 = vmul.f32 0.25, %v5628_v61 }
 0x36a   : > { %v3821_v45 = vsel %vm1845_vm6, %v3789_v6, %v8314_v37  ;;  %v3822_v34 = vsel %vm1845_vm6, %v3790_v16, %v8315_v51  ;;  %v8343_v8 = vpop.permute.xlu1 %8342  ;;  %v7101_v6 = vrot.slane %v11177_v60, 9  ;;  %v7102_v37 = vrot.slane %v11192_v5, 9 }
 0x36b   : > { %v8323_v7 = vpop.permute.xlu0 %8322  ;;  %v8345_v1 = vunpack.i.h.bf16 %v8343_v8  ;;  %v8344_v40 = vunpack.i.l.bf16 %v8343_v8  ;;  %v5632_v8 = vadd.f32 %v7091_v15, %v11125_v23  ;;  %v5637_v15 = vadd.f32 %v7096_v50, %v11165_v12 }
 0x36c   : > { %v8325_v9 = vunpack.i.h.bf16 %v8323_v7  ;;  %v8324_v30 = vunpack.i.l.bf16 %v8323_v7  ;;  %v5630_v7 = vadd.f32 %v7089_v49, %v11122_v56 }
 0x36d   : > { %v11216_v16 = vsel %vm1779_vm4, %v3735_v21, %v8344_v40  ;;  %v11219_v36 = vsel %vm1779_vm4, %v3736_v4, %v8345_v1  ;;  %v5631_v21 = vadd.f32 %v7090_v25, %v11133_v38  ;;  %v5633_v40 = vadd.f32 %v7092_v55, %v11147_v19 }
 0x36e   : > { %v3853_v10 = vsel %vm1878_vm7, %v3821_v45, %v8324_v30  ;;  %v3854_v59 = vsel %vm1878_vm7, %v3822_v34, %v8325_v9  ;;  %v8348_v45 = vpop.permute.xlu1 %8347  ;;  %v5629_v34 = vadd.f32 %v7088_v42, %v11129_v27  ;;  %v5635_v42 = vadd.f32 %v7094_v41, %v11158_v11 }
 0x36f   : > { %v8333_v51 = vpop.permute.xlu0 %8332  ;;  %v8350_v9 = vunpack.i.h.bf16 %v8348_v45  ;;  %v8349_v30 = vunpack.i.l.bf16 %v8348_v45  ;;  %v5636_v38 = vadd.f32 %v7095_v26, %v11151_v58  ;;  %v5638_v19 = vadd.f32 %v7097_v29, %v11154_v43 }
 0x370   : > { %v8335_v62 = vunpack.i.h.bf16 %v8333_v51  ;;  %v8334_v54 = vunpack.i.l.bf16 %v8333_v51  ;;  %v5641_v11 = vadd.f32 %v7100_v18, %v11187_v46  ;;  %v5642_v58 = vadd.f32 %v7101_v6, %v11177_v60 }
 0x371   : > { %v3740_v33 = vsel %vm280_vm0, %v10957_v2, %v8350_v9  ;;  %v3739_v56 = vsel %vm280_vm0, %v10973_v17, %v8349_v30  ;;  %v5640_v2 = vadd.f32 %v7099_v44, %v11161_v32  ;;  %v5643_v26 = vadd.f32 %v7102_v37, %v11192_v5 }
 0x372   : > { %v3885_v4 = vsel %vm1911_vm8, %v3853_v10, %v8334_v54  ;;  %v3886_v1 = vsel %vm1911_vm8, %v3854_v59, %v8335_v62  ;;  %v8353_v25 = vpop.permute.xlu1 %8352  ;;  %v11254_v52 = vmul.f32 0.25, %v5629_v34  ;;  %v11256_v44 = vmul.f32 0.25, %v5630_v7 }
 0x373   : > { %v8363_v27 = vpop.permute.xlu0 %8362  ;;  %v8355_v55 = vunpack.i.h.bf16 %v8353_v25  ;;  %v8354_v14 = vunpack.i.l.bf16 %v8353_v25  ;;  %v11258_v59 = vmul.f32 0.25, %v5631_v21  ;;  %v11260_v18 = vmul.f32 0.25, %v5632_v8 }
 0x374   : > { %v8365_v23 = vunpack.i.h.bf16 %v8363_v27  ;;  %v8364_v49 = vunpack.i.l.bf16 %v8363_v27  ;;  %v11264_v5 = vmul.f32 0.25, %v5633_v40  ;;  %v11266_v37 = vmul.f32 0.25, %v5634_v20 }
 0x375   : > { %v11246_v41 = vsel %vm1779_vm4, %v3739_v56, %v8354_v14  ;;  %v11249_v12 = vsel %vm1779_vm4, %v3740_v33, %v8355_v55  ;;  %v11272_v34 = vmul.f32 0.25, %v5635_v42  ;;  %v11274_v21 = vmul.f32 0.25, %v5636_v38 }
 0x376   : > { %v3917_v17 = vsel %vm1944_vm9, %v3885_v4, %v8364_v49  ;;  %v3918_v10 = vsel %vm1944_vm9, %v3886_v1, %v8365_v23  ;;  %v8358_v29 = vpop.permute.xlu1 %8357  ;;  %v11276_v8 = vmul.f32 0.25, %v5637_v15  ;;  %v11279_v40 = vmul.f32 0.25, %v5638_v19 }
 0x377   : > { %v8373_v43 = vpop.permute.xlu0 %8372  ;;  %v8360_v46 = vunpack.i.h.bf16 %v8358_v29  ;;  %v8359_v60 = vunpack.i.l.bf16 %v8358_v29  ;;  %v11287_v33 = vmul.f32 0.25, %v5640_v2  ;;  %v11289_v56 = vmul.f32 0.25, %v5641_v11 }
 0x378   : > { %v8375_v32 = vunpack.i.h.bf16 %v8373_v43  ;;  %v8374_v50 = vunpack.i.l.bf16 %v8373_v43  ;;  %v11293_v23 = vmul.f32 0.25, %v5642_v58  ;;  %v11295_v49 = vmul.f32 0.25, %v5643_v26 }
 0x379   : > { %v3887_v62 = vsel %vm1911_vm8, %v11180_v53, %v8359_v60  ;;  %v3888_v54 = vsel %vm1911_vm8, %v11183_v39, %v8360_v46  ;;  %v11281_v53 = vmul.f32 0.25, %v5639_v35  ;;  %v5758_v35 = vpack.c.bf16 %v11256_v44, %v11256_v44 }
 0x37a   : > { %v3949_v6 = vsel %vm1977_vm10, %v3917_v17, %v8374_v50  ;;  %v3950_v51 = vsel %vm1977_vm10, %v3918_v10, %v8375_v32  ;;  %v8368_v30 = vpop.permute.xlu1 %8367  ;;  %v5759_v2 = vpack.c.bf16 %v11258_v59, %v11258_v59  ;;  %v5760_v11 = vpack.c.bf16 %v11260_v18, %v11260_v18 }
 0x37b   : > { %v3973_v61 = vpack.c.bf16 %v3950_v51, %v3949_v6  ;;  %v8383_v45 = vpop.permute.xlu0 %8382  ;;  %v8370_v4 = vunpack.i.h.bf16 %v8368_v30  ;;  %v8369_v1 = vunpack.i.l.bf16 %v8368_v30  ;;  %v5761_v58 = vpack.c.bf16 %v11264_v5, %v11264_v5 }
 0x37c   : > { %v8385_v7 = vunpack.i.h.bf16 %v8383_v45  ;;  %v8384_v9 = vunpack.i.l.bf16 %v8383_v45  ;;  %v5762_v32 = vpack.c.bf16 %v11266_v37, %v11266_v37  ;;  %v5763_v50 = vpack.c.bf16 %v11272_v34, %v11272_v34 }
 0x37d   : > { %7231 = vmatprep.mubr.msk.bf16.mxu1 %vm2053_vm11, %v3973_v61  ;;  %v3919_v27 = vsel %vm1944_vm9, %v3887_v62, %v8369_v1  ;;  %v3920_v42 = vsel %vm1944_vm9, %v3888_v54, %v8370_v4  ;;  %v5764_v60 = vpack.c.bf16 %v11274_v21, %v11274_v21  ;;  %v5765_v6 = vpack.c.bf16 %v11276_v8, %v11276_v8 }
 0x37e   : > { %v3793_v39 = vsel %vm1812_vm5, %v11081_v31, %v8384_v9  ;;  %v3794_v20 = vsel %vm1812_vm5, %v11091_v28, %v8385_v7  ;;  %v8378_v19 = vpop.permute.xlu1 %8377  ;;  %v5756_v31 = vpack.c.bf16 %v11252_v24, %v11252_v24  ;;  %v5757_v28 = vpack.c.bf16 %v11254_v52, %v11254_v52 }
 0x37f   : > { %v8393_v38 = vpop.permute.xlu0 %8392  ;;  %v8380_v55 = vunpack.i.h.bf16 %v8378_v19  ;;  %v8379_v14 = vunpack.i.l.bf16 %v8378_v19  ;;  %v5766_v51 = vpack.c.bf16 %v11279_v40, %v11279_v40  ;;  %v5767_v61 = vpack.c.bf16 %v11281_v53, %v11281_v53 }
 0x380   : > { %v8395_v25 = vunpack.i.h.bf16 %v8393_v38  ;;  %v8394_v15 = vunpack.i.l.bf16 %v8393_v38  ;;  %v5768_v62 = vpack.c.bf16 %v11287_v33, %v11287_v33  ;;  %v5769_v7 = vpack.c.bf16 %v11289_v56, %v11289_v56 }
 0x381   : > { %v3951_v43 = vsel %vm1977_vm10, %v3919_v27, %v8379_v14  ;;  %v3952_v26 = vsel %vm1977_vm10, %v3920_v42, %v8380_v55  ;;  %v5770_v9 = vpack.c.bf16 %v11293_v23, %v11293_v23  ;;  %v5771_v4 = vpack.c.bf16 %v11295_v49, %v11295_v49 }
 0x382   : > { %v3825_v17 = vsel %vm1845_vm6, %v3793_v39, %v8394_v15  ;;  %v3826_v10 = vsel %vm1845_vm6, %v3794_v20, %v8395_v25  ;;  %v3974_v29 = vpack.c.bf16 %v3952_v26, %v3951_v43  ;;  %v8388_v46 = vpop.permute.xlu1 %8387  ;;  %v5892_v1 = vunpack.c.l.b16 %v5756_v31 }
 0x383   : > { %v8403_v24 = vpop.permute.xlu0 %8402  ;;  %v8390_v59 = vunpack.i.h.bf16 %v8388_v46  ;;  %v8389_v18 = vunpack.i.l.bf16 %v8388_v46  ;;  %v5894_v39 = vunpack.c.l.b16 %v5758_v35  ;;  %v5895_v33 = vunpack.c.l.b16 %v5759_v2 }
 0x384   : > { %v8405_v52 = vunpack.i.h.bf16 %v8403_v24  ;;  %v8404_v44 = vunpack.i.l.bf16 %v8403_v24  ;;  %7232 = vmatmul.mubr.msk.bf16.gmra.mrb[16].mxu1 %vm2053_vm11, %v3974_v29  ;;  %v5896_v56 = vunpack.c.l.b16 %v5760_v11  ;;  %v5897_v23 = vunpack.c.l.b16 %v5761_v58 }
 0x385   : > { %v3795_v54 = vsel %vm1812_vm5, %v11104_v47, %v8389_v18  ;;  %v3796_v45 = vsel %vm1812_vm5, %v11110_v57, %v8390_v59  ;;  %v5893_v47 = vunpack.c.l.b16 %v5757_v28  ;;  %v5898_v25 = vunpack.c.l.b16 %v5762_v32 }
 0x386   : > { %v3857_v5 = vsel %vm1878_vm7, %v3825_v17, %v8404_v44  ;;  %v3858_v37 = vsel %vm1878_vm7, %v3826_v10, %v8405_v52  ;;  %v8398_v8 = vpop.permute.xlu1 %8397  ;;  %v11344_v31 = vunpack.c.l.b16 %v5763_v50  ;;  %v5900_v28 = vunpack.c.l.b16 %v5764_v60 }
 0x387   : > { %v8413_v34 = vpop.permute.xlu0 %8412  ;;  %v8400_v40 = vunpack.i.h.bf16 %v8398_v8  ;;  %v8399_v53 = vunpack.i.l.bf16 %v8398_v8  ;;  %v5901_v35 = vunpack.c.l.b16 %v5765_v6  ;;  %v5902_v17 = vunpack.c.l.b16 %v5766_v51 }
 0x388   : > { %v8415_v30 = vunpack.i.h.bf16 %v8413_v34  ;;  %v8414_v21 = vunpack.i.l.bf16 %v8413_v34  ;;  %v5903_v11 = vunpack.c.l.b16 %v5767_v61  ;;  %v11348_v43 = vunpack.c.l.b16 %v5768_v62 }
 0x389   : > { %v3827_v27 = vsel %vm1845_vm6, %v3795_v54, %v8399_v53  ;;  %v3828_v42 = vsel %vm1845_vm6, %v3796_v45, %v8400_v40  ;;  %v11352_v32 = vunpack.c.l.b16 %v5769_v7  ;;  %v11354_v50 = vunpack.c.l.b16 %v5770_v9 }
 0x38a   : > { %v3889_v57 = vsel %vm1911_vm8, %v3857_v5, %v8414_v21  ;;  %v3890_v20 = vsel %vm1911_vm8, %v3858_v37, %v8415_v30  ;;  %v8408_v19 = vpop.permute.xlu1 %8407  ;;  %v5987_v46 = vrot.slane %v5893_v47, 7  ;;  %v5989_v60 = vrot.slane %v5894_v39, 6 }
 0x38b   : > { %v8423_v38 = vpop.permute.xlu0 %8422  ;;  %v8410_v55 = vunpack.i.h.bf16 %v8408_v19  ;;  %v8409_v14 = vunpack.i.l.bf16 %v8408_v19  ;;  %v5991_v6 = vrot.slane %v5895_v33, 5  ;;  %v5993_v51 = vrot.slane %v5896_v56, 4 }
 0x38c   : > { %v8425_v15 = vunpack.i.h.bf16 %v8423_v38  ;;  %v8424_v49 = vunpack.i.l.bf16 %v8423_v38  ;;  %v5988_v61 = vsel %vm5925_vm13, %v5987_v46, %v5892_v1  ;;  %v5995_v62 = vrot.slane %v5897_v23, 3 }
 0x38d   : > { %v3859_v58 = vsel %vm1878_vm7, %v3827_v27, %v8409_v14  ;;  %v3860_v26 = vsel %vm1878_vm7, %v3828_v42, %v8410_v55  ;;  %v11360_v7 = vunpack.c.l.b16 %v5771_v4  ;;  %v5990_v9 = vsel %vm5928_vm14, %v5989_v60, %v5988_v61 }
 0x38e   : > { %v3921_v2 = vsel %vm1944_vm9, %v3889_v57, %v8424_v49  ;;  %v3922_v10 = vsel %vm1944_vm9, %v3890_v20, %v8425_v15  ;;  %v8418_v44 = vpop.permute.xlu1 %8417  ;;  %v5992_v40 = vsel %vm5931_vm15, %v5991_v6, %v5990_v9  ;;  %v5997_v53 = vrot.slane %v5898_v25, 2  ;;  %v5031_v6 = vld [vmem:[%s8829_s30 + $0xd8] sm:$0xff] }
 0x38f   : > { %v8433_v24 = vpop.permute.xlu0 %8432  ;;  %v8420_v59 = vunpack.i.h.bf16 %v8418_v44  ;;  %v8419_v18 = vunpack.i.l.bf16 %v8418_v44  ;;  %v5994_v1 = vsel %vm5934_vm1, %v5993_v51, %v5992_v40  ;;  %v5999_v33 = vrot.slane %v11344_v31, 1  ;;  %v5030_v44 = vld [vmem:[%s8829_s30 + $0xd0] sm:$0xff] }
 0x390   : > { %v8435_v29 = vunpack.i.h.bf16 %v8433_v24  ;;  %v8434_v52 = vunpack.i.l.bf16 %v8433_v24  ;;  %v5996_v20 = vsel %vm5937_vm3, %v5995_v62, %v5994_v1  ;;  %v6001_v56 = vrot.slane %v5901_v35, 7 }
 0x391   : > { %v3891_v45 = vsel %vm1911_vm8, %v3859_v58, %v8419_v18  ;;  %v3892_v47 = vsel %vm1911_vm8, %v3860_v26, %v8420_v59  ;;  %v5998_v23 = vsel %vm5940_vm2, %v5997_v53, %v5996_v20  ;;  %v6003_v25 = vrot.slane %v5902_v17, 6  ;;  %v5035_v53 = vld [vmem:[%s8829_s30 + $0xf8] sm:$0xff] }
 0x392   : > { %v3953_v5 = vsel %vm1977_vm10, %v3921_v2, %v8434_v52  ;;  %v3954_v37 = vsel %vm1977_vm10, %v3922_v10, %v8435_v29  ;;  %v8428_v8 = vpop.permute.xlu1 %8427  ;;  %v6002_v55 = vsel %vm5925_vm13, %v6001_v56, %v5900_v28  ;;  %v11380_v10 = vsel %vm5943_vm12, %v5999_v33, %v5998_v23  ;;  %v5028_v52 = vld [vmem:[%s8829_s30 + $0xc0] sm:$0xff] }
 0x393   : > { %v3975_v54 = vpack.c.bf16 %v3954_v37, %v3953_v5  ;;  %v8443_v34 = vpop.permute.xlu0 %8442  ;;  %v8430_v39 = vunpack.i.h.bf16 %v8428_v8  ;;  %v8429_v57 = vunpack.i.l.bf16 %v8428_v8  ;;  %v6004_v35 = vsel %vm5928_vm14, %v6003_v25, %v6002_v55 }
 0x394   : > { %v8445_v30 = vunpack.i.h.bf16 %v8443_v34  ;;  %v8444_v21 = vunpack.i.l.bf16 %v8443_v34  ;;  %v6007_v17 = vrot.slane %v11348_v43, 4  ;;  %v6009_v58 = vrot.slane %v11352_v32, 3  ;;  %v5029_v32 = vld [vmem:[%s8829_s30 + $0xc8] sm:$0xff]  ;;  %v5034_v34 = vld [vmem:[%s8829_s30 + $0xf0] sm:$0xff] }
 0x395   : > { %7235 = vmatprep.mubr.msk.bf16.mxu1 %vm2053_vm11, %v3975_v54  ;;  %v3923_v42 = vsel %vm1944_vm9, %v3891_v45, %v8429_v57  ;;  %v3924_v15 = vsel %vm1944_vm9, %v3892_v47, %v8430_v39  ;;  %v5032_v45 = vld [vmem:[%s8829_s30 + $0xe0] sm:$0xff]  ;;  %v5048_v9 = vadd.f32 %v5030_v44, %v5028_v52  ;;  %v5049_v47 = vadd.f32 %v5031_v6, %v5029_v32 }
 0x396   : > { %v3797_v4 = vsel %vm1812_vm5, %v11095_v22, %v8444_v21  ;;  %v3798_v27 = vsel %vm1812_vm5, %v11098_v3, %v8445_v30  ;;  %v8438_v22 = vpop.permute.xlu1 %8437  ;;  %v6005_v3 = vrot.slane %v5903_v11, 5  ;;  %v6011_v11 = vrot.slane %v11354_v50, 2 }
 0x397   : > { %v8453_v38 = vpop.permute.xlu0 %8452  ;;  %v8440_v31 = vunpack.i.h.bf16 %v8438_v22  ;;  %v8439_v14 = vunpack.i.l.bf16 %v8438_v22  ;;  %v6013_v50 = vrot.slane %v11360_v7, 1  ;;  %v5033_v7 = vld [vmem:[%s8829_s30 + $0xe8] sm:$0xff]  ;;  %v11415_v23 = vrot.slane %v5048_v9, %v10325_v13 }
 0x398   : > { %v8455_v49 = vunpack.i.h.bf16 %v8453_v38  ;;  %v8454_v19 = vunpack.i.l.bf16 %v8453_v38  ;;  %v6006_v29 = vsel %vm5931_vm15, %v6005_v3, %v6004_v35  ;;  %v5051_v38 = vadd.f32 %v5035_v53, %v5033_v7 }
 0x399   : > { %v3955_v26 = vsel %vm1977_vm10, %v3923_v42, %v8439_v14  ;;  %v3956_v28 = vsel %vm1977_vm10, %v3924_v15, %v8440_v31  ;;  %v6008_v43 = vsel %vm5934_vm1, %v6007_v17, %v6006_v29  ;;  %v5289_v25 = vcombine.high %v5049_v47, %v5049_v47 }
 0x39a   : > { %v3829_v2 = vsel %vm1845_vm6, %v3797_v4, %v8454_v19  ;;  %v3976_v46 = vpack.c.bf16 %v3956_v28, %v3955_v26  ;;  %v8448_v18 = vpop.permute.xlu1 %8447  ;;  %v6010_v37 = vsel %vm5937_vm3, %v6009_v58, %v6008_v43  ;;  %v3830_v61 = vsel %vm1845_vm6, %v3798_v27, %v8455_v49 }
 0x39b   : > { %v8463_v24 = vpop.permute.xlu0 %8462  ;;  %v8450_v51 = vunpack.i.h.bf16 %v8448_v18  ;;  %v8449_v5 = vunpack.i.l.bf16 %v8448_v18  ;;  %v6012_v54 = vsel %vm5940_vm2, %v6011_v11, %v6010_v37  ;;  %v5050_v27 = vadd.f32 %v5034_v34, %v5032_v45 }
 0x39c   : > { %v8465_v60 = vunpack.i.h.bf16 %v8463_v24  ;;  %v8464_v59 = vunpack.i.l.bf16 %v8463_v24  ;;  %7236 = vmatmul.mubr.msk.bf16.gmra.mrb[20].mxu1 %vm2053_vm11, %v3976_v46  ;;  %v11405_v40 = vsel %vm5943_vm12, %v6013_v50, %v6012_v54  ;;  %v11425_v55 = vrot.slane %v5049_v47, %v10325_v13 }
 0x39d   : > { %v3799_v21 = vsel %vm1812_vm5, %v11216_v16, %v8449_v5  ;;  %v3800_v39 = vsel %vm1812_vm5, %v11219_v36, %v8450_v51  ;;  %v6045_v20 = vpack.c.b16 %v11405_v40, %v11380_v10  ;;  %v5272_v16 = vcombine.high %v5048_v9, %v5048_v9  ;;  %v11566_v10 = vld [vmem:[%s11971_s4] ss:$0 sm:$0xff] }
 0x39e   : > { %v3861_v62 = vsel %vm1878_vm7, %v3829_v2, %v8464_v59  ;;  %v3862_v30 = vsel %vm1878_vm7, %v3830_v61, %v8465_v60  ;;  %v8458_v4 = vpop.permute.xlu1 %8457  ;;  %v11431_v17 = vrot.slane %v5289_v25, %v10325_v13  ;;  %v11437_v24 = vcombine.high %v11415_v23, %v11415_v23 }
 0x39f   : > { %v8473_v8 = vpop.permute.xlu0 %8472  ;;  %v8460_v33 = vunpack.i.h.bf16 %v8458_v4  ;;  %v8459_v56 = vunpack.i.l.bf16 %v8458_v4  ;;  %v11417_v15 = vpop.f32.mrb[32].mxu0  ;;  %v11422_v22 = vrot.slane %v5272_v16, %v10325_v13  ;;  %v11449_v46 = vcombine.high %v11425_v55, %v11425_v55 }
 0x3a0   : > { %v8475_v57 = vunpack.i.h.bf16 %v8473_v8  ;;  %v8474_v1 = vunpack.i.l.bf16 %v8473_v8  ;;  %v11427_v31 = vpop.f32.mrb[33].mxu0  ;;  %v5306_v60 = vcombine.high %v5050_v27, %v5050_v27  ;;  %v11454_v43 = vcombine.high %v11431_v17, %v11431_v17 }
 0x3a1   : > { %v3831_v49 = vsel %vm1845_vm6, %v3799_v21, %v8459_v56  ;;  %v3832_v14 = vsel %vm1845_vm6, %v3800_v39, %v8460_v33  ;;  %v11433_v58 = vpop.f32.mrb[34].mxu0  ;;  %v11441_v29 = vcombine.high %v11422_v22, %v11422_v22  ;;  %v11457_v32 = vrot.slane %v5050_v27, %v10325_v13 }
 0x3a2   : > { %v3893_v42 = vsel %vm1911_vm8, %v3861_v62, %v8474_v1  ;;  %v3894_v36 = vsel %vm1911_vm8, %v3862_v30, %v8475_v57  ;;  %v8468_v2 = vpop.permute.xlu1 %8467  ;;  %v11443_v11 = vpop.f32.mrb[35].mxu0  ;;  %v5323_v6 = vcombine.high %v5051_v38, %v5051_v38  ;;  %v11460_v50 = vrot.slane %v5306_v60, %v10325_v13 }
 0x3a3   : > { %v8483_v19 = vpop.permute.xlu0 %8482  ;;  %v8470_v26 = vunpack.i.h.bf16 %v8468_v2  ;;  %v8469_v28 = vunpack.i.l.bf16 %v8468_v2  ;;  %v11463_v61 = vrot.slane %v5051_v38, %v10325_v13  ;;  %v11473_v21 = vcombine.high %v11457_v32, %v11457_v32 }
 0x3a4   : > { %v8485_v35 = vunpack.i.h.bf16 %v8483_v19  ;;  %v8484_v3 = vunpack.i.l.bf16 %v8483_v19  ;;  %v11467_v34 = vrot.slane %v5323_v6, %v10325_v13  ;;  %v11477_v8 = vcombine.high %v11460_v50, %v11460_v50 }
 0x3a5   : > { %v3863_v59 = vsel %vm1878_vm7, %v3831_v49, %v8469_v28  ;;  %v3864_v62 = vsel %vm1878_vm7, %v3832_v14, %v8470_v26  ;;  %v11483_v57 = vcombine.high %v11463_v61, %v11463_v61  ;;  %v7103_v27 = vrot.slane %v11415_v23, 9 }
 0x3a6   : > { %v3925_v52 = vsel %vm1944_vm9, %v3893_v42, %v8484_v3  ;;  %v3926_v44 = vsel %vm1944_vm9, %v3894_v36, %v8485_v35  ;;  %v8478_v37 = vpop.permute.xlu1 %8477  ;;  %v11487_v56 = vcombine.high %v11467_v34, %v11467_v34  ;;  %v7104_v38 = vrot.slane %v11437_v24, 9 }
 0x3a7   : > { %v8493_v18 = vpop.permute.xlu0 %8492  ;;  %v8480_v54 = vunpack.i.h.bf16 %v8478_v37  ;;  %v8479_v45 = vunpack.i.l.bf16 %v8478_v37  ;;  %v7105_v25 = vrot.slane %v11422_v22, 9  ;;  %v7106_v19 = vrot.slane %v11441_v29, 9 }
 0x3a8   : > { %v8495_v51 = vunpack.i.h.bf16 %v8493_v18  ;;  %v8494_v5 = vunpack.i.l.bf16 %v8493_v18  ;;  %v7107_v14 = vrot.slane %v11425_v55, 9  ;;  %v7108_v26 = vrot.slane %v11449_v46, 9 }
 0x3a9   : > { %v3895_v53 = vsel %vm1911_vm8, %v3863_v59, %v8479_v45  ;;  %v3896_v47 = vsel %vm1911_vm8, %v3864_v62, %v8480_v54  ;;  %v7109_v28 = vrot.slane %v11431_v17, 9  ;;  %v7112_v6 = vrot.slane %v11473_v21, 9 }
 0x3aa   : > { %v3957_v9 = vsel %vm1977_vm10, %v3925_v52, %v8494_v5  ;;  %v3958_v30 = vsel %vm1977_vm10, %v3926_v44, %v8495_v51  ;;  %v8488_v33 = vpop.permute.xlu1 %8487  ;;  %v7113_v51 = vrot.slane %v11460_v50, 9  ;;  %v7114_v62 = vrot.slane %v11477_v8, 9 }
 0x3ab   : > { %v3977_v7 = vpack.c.bf16 %v3958_v30, %v3957_v9  ;;  %v8503_v39 = vpop.permute.xlu0 %8502  ;;  %v8490_v16 = vunpack.i.h.bf16 %v8488_v33  ;;  %v8489_v42 = vunpack.i.l.bf16 %v8488_v33  ;;  %v7115_v54 = vrot.slane %v11463_v61, 9 }
 0x3ac   : > { %v8505_v1 = vunpack.i.h.bf16 %v8503_v39  ;;  %v8504_v4 = vunpack.i.l.bf16 %v8503_v39  ;;  %v7118_v33 = vrot.slane %v11487_v56, 9 }
 0x3ad   : > { %7239 = vmatprep.mubr.msk.bf16.mxu1 %vm2053_vm11, %v3977_v7  ;;  %v3927_v35 = vsel %vm1944_vm9, %v3895_v53, %v8489_v42  ;;  %v3928_v3 = vsel %vm1944_vm9, %v3896_v47, %v8490_v16  ;;  %v7116_v7 = vrot.slane %v11483_v57, 9  ;;  %v7117_v53 = vrot.slane %v11467_v34, 9 }
 0x3ae   : > { %v3801_v36 = vsel %vm1812_vm5, %v11139_v63, %v8504_v4  ;;  %v3802_v49 = vsel %vm1812_vm5, %v11142_v48, %v8505_v1  ;;  %v8498_v60 = vpop.permute.xlu1 %8497  ;;  %v7110_v63 = vrot.slane %v11454_v43, 9  ;;  %v7111_v48 = vrot.slane %v11457_v32, 9 }
 0x3af   : > { %v8513_v2 = vpop.permute.xlu0 %8512  ;;  %v8500_v59 = vunpack.i.h.bf16 %v8498_v60  ;;  %v8499_v18 = vunpack.i.l.bf16 %v8498_v60 }
 0x3b0   : > { %v8515_v52 = vunpack.i.h.bf16 %v8513_v2  ;;  %v8514_v44 = vunpack.i.l.bf16 %v8513_v2  ;;  %v5646_v2 = vadd.f32 %v7105_v25, %v11422_v22  ;;  %v5651_v22 = vadd.f32 %v7110_v63, %v11454_v43 }
 0x3b1   : > { %v3959_v45 = vsel %vm1977_vm10, %v3927_v35, %v8499_v18  ;;  %v3960_v9 = vsel %vm1977_vm10, %v3928_v3, %v8500_v59  ;;  %v5656_v43 = vadd.f32 %v7115_v54, %v11463_v61 }
 0x3b2   : > { %v3833_v5 = vsel %vm1845_vm6, %v3801_v36, %v8514_v44  ;;  %v3834_v37 = vsel %vm1845_vm6, %v3802_v49, %v8515_v52  ;;  %v3978_v47 = vpack.c.bf16 %v3960_v9, %v3959_v45  ;;  %v8508_v4 = vpop.permute.xlu1 %8507  ;;  %v5644_v36 = vadd.f32 %v7103_v27, %v11415_v23 }
 0x3b3   : > { %v8523_v30 = vpop.permute.xlu0 %8522  ;;  %v8510_v16 = vunpack.i.h.bf16 %v8508_v4  ;;  %v8509_v42 = vunpack.i.l.bf16 %v8508_v4  ;;  %v5645_v49 = vadd.f32 %v7104_v38, %v11437_v24  ;;  %v5647_v52 = vadd.f32 %v7106_v19, %v11441_v29 }
 0x3b4   : > { %v8525_v39 = vunpack.i.h.bf16 %v8523_v30  ;;  %v8524_v1 = vunpack.i.l.bf16 %v8523_v30  ;;  %7240 = vmatmul.mubr.msk.bf16.gmra.mrb[24].mxu1 %vm2053_vm11, %v3978_v47  ;;  %v5648_v23 = vadd.f32 %v7107_v14, %v11425_v55  ;;  %v5649_v24 = vadd.f32 %v7108_v26, %v11449_v46 }
 0x3b5   : > { %v3803_v44 = vsel %vm1812_vm5, %v11246_v41, %v8509_v42  ;;  %v3804_v60 = vsel %vm1812_vm5, %v11249_v12, %v8510_v16  ;;  %v5652_v19 = vadd.f32 %v7111_v48, %v11457_v32  ;;  %v5653_v41 = vadd.f32 %v7112_v6, %v11473_v21 }
 0x3b6   : > { %v3865_v35 = vsel %vm1878_vm7, %v3833_v5, %v8524_v1  ;;  %v3866_v3 = vsel %vm1878_vm7, %v3834_v37, %v8525_v39  ;;  %v8518_v18 = vpop.permute.xlu1 %8517  ;;  %v5650_v5 = vadd.f32 %v7109_v28, %v11431_v17  ;;  %v5654_v55 = vadd.f32 %v7113_v51, %v11460_v50 }
 0x3b7   : > { %v8533_v59 = vpop.permute.xlu0 %8532  ;;  %v8520_v25 = vunpack.i.h.bf16 %v8518_v18  ;;  %v8519_v29 = vunpack.i.l.bf16 %v8518_v18  ;;  %v5655_v46 = vadd.f32 %v7114_v62, %v11477_v8  ;;  %v5657_v28 = vadd.f32 %v7116_v7, %v11483_v57 }
 0x3b8   : > { %v8535_v27 = vunpack.i.h.bf16 %v8533_v59  ;;  %v8534_v38 = vunpack.i.l.bf16 %v8533_v59  ;;  %v5658_v48 = vadd.f32 %v7117_v53, %v11467_v34  ;;  %v5659_v6 = vadd.f32 %v7118_v33, %v11487_v56 }
 0x3b9   : > { %v3835_v14 = vsel %vm1845_vm6, %v3803_v44, %v8519_v29  ;;  %v3836_v17 = vsel %vm1845_vm6, %v3804_v60, %v8520_v25  ;;  %v5708_v51 = vmul.f32 0.25, %v5644_v36  ;;  %v5709_v8 = vmul.f32 0.25, %v5645_v49 }
 0x3ba   : > { %v3897_v12 = vsel %vm1911_vm8, %v3865_v35, %v8534_v38  ;;  %v3898_v37 = vsel %vm1911_vm8, %v3866_v3, %v8535_v27  ;;  %v8528_v21 = vpop.permute.xlu1 %8527  ;;  %v5710_v30 = vmul.f32 0.25, %v5646_v2  ;;  %v5711_v47 = vmul.f32 0.25, %v5647_v52 }
 0x3bb   : > { %v8543_v26 = vpop.permute.xlu0 %8542  ;;  %v8530_v45 = vunpack.i.h.bf16 %v8528_v21  ;;  %v8529_v50 = vunpack.i.l.bf16 %v8528_v21  ;;  %v5712_v7 = vmul.f32 0.25, %v5648_v23  ;;  %v5713_v39 = vmul.f32 0.25, %v5649_v24 }
 0x3bc   : > { %v8545_v32 = vunpack.i.h.bf16 %v8543_v26  ;;  %v8544_v63 = vunpack.i.l.bf16 %v8543_v26  ;;  %v5714_v1 = vmul.f32 0.25, %v5650_v5  ;;  %v5715_v4 = vmul.f32 0.25, %v5651_v22 }
 0x3bd   : > { %v3867_v61 = vsel %vm1878_vm7, %v3835_v14, %v8529_v50  ;;  %v3868_v57 = vsel %vm1878_vm7, %v3836_v17, %v8530_v45  ;;  %v5716_v42 = vmul.f32 0.25, %v5652_v19  ;;  %v5717_v36 = vmul.f32 0.25, %v5653_v41 }
 0x3be   : > { %v3929_v62 = vsel %vm1944_vm9, %v3897_v12, %v8544_v63  ;;  %v3930_v9 = vsel %vm1944_vm9, %v3898_v37, %v8545_v32  ;;  %v8538_v56 = vpop.permute.xlu1 %8537  ;;  %v5718_v3 = vmul.f32 0.25, %v5654_v55  ;;  %v5719_v2 = vmul.f32 0.25, %v5655_v46 }
 0x3bf   : > { %v8553_v54 = vpop.permute.xlu0 %8552  ;;  %v8540_v33 = vunpack.i.h.bf16 %v8538_v56  ;;  %v8539_v16 = vunpack.i.l.bf16 %v8538_v56  ;;  %v5720_v59 = vmul.f32 0.25, %v5656_v43  ;;  %v5721_v24 = vmul.f32 0.25, %v5657_v28 }
 0x3c0   : > { %v8555_v34 = vunpack.i.h.bf16 %v8553_v54  ;;  %v8554_v53 = vunpack.i.l.bf16 %v8553_v54  ;;  %v5722_v27 = vmul.f32 0.25, %v5658_v48  ;;  %v5723_v38 = vmul.f32 0.25, %v5659_v6 }
 0x3c1   : > { %v3899_v44 = vsel %vm1911_vm8, %v3867_v61, %v8539_v16  ;;  %v3900_v60 = vsel %vm1911_vm8, %v3868_v57, %v8540_v33  ;;  %v5772_v18 = vpack.c.bf16 %v5708_v51, %v5708_v51  ;;  %v5773_v25 = vpack.c.bf16 %v5709_v8, %v5709_v8 }
 0x3c2   : > { %v3961_v49 = vsel %vm1977_vm10, %v3929_v62, %v8554_v53  ;;  %v3962_v35 = vsel %vm1977_vm10, %v3930_v9, %v8555_v34  ;;  %v8548_v23 = vpop.permute.xlu1 %8547  ;;  %v5774_v29 = vpack.c.bf16 %v5710_v30, %v5710_v30  ;;  %v5775_v19 = vpack.c.bf16 %v5711_v47, %v5711_v47 }
 0x3c3   : > { %v3979_v52 = vpack.c.bf16 %v3962_v35, %v3961_v49  ;;  %v8550_v5 = vunpack.i.h.bf16 %v8548_v23  ;;  %v8549_v22 = vunpack.i.l.bf16 %v8548_v23  ;;  %v5776_v41 = vpack.c.bf16 %v5712_v7, %v5712_v7 }
 0x3c4   : > { %v5777_v12 = vpack.c.bf16 %v5713_v39, %v5713_v39  ;;  %v5778_v37 = vpack.c.bf16 %v5714_v1, %v5714_v1  ;;  %v5779_v14 = vpack.c.bf16 %v5715_v4, %v5715_v4  ;;  %v5780_v17 = vpack.c.bf16 %v5716_v42, %v5716_v42 }
 0x3c5   : > { %7243 = vmatprep.mubr.msk.bf16.mxu1 %vm2053_vm11, %v3979_v52  ;;  %v3931_v55 = vsel %vm1944_vm9, %v3899_v44, %v8549_v22  ;;  %v3932_v46 = vsel %vm1944_vm9, %v3900_v60, %v8550_v5  ;;  %v5781_v43 = vpack.c.bf16 %v5717_v36, %v5717_v36  ;;  %v5782_v28 = vpack.c.bf16 %v5718_v3, %v5718_v3 }
 0x3c6   : > { %v8558_v26 = vpop.permute.xlu1 %8557  ;;  %v5783_v32 = vpack.c.bf16 %v5719_v2, %v5719_v2  ;;  %v5784_v63 = vpack.c.bf16 %v5720_v59, %v5720_v59  ;;  %v5785_v6 = vpack.c.bf16 %v5721_v24, %v5721_v24  ;;  %v5786_v45 = vpack.c.bf16 %v5722_v27, %v5722_v27 }
 0x3c7   : > { %v8560_v21 = vunpack.i.h.bf16 %v8558_v26  ;;  %v8559_v48 = vunpack.i.l.bf16 %v8558_v26  ;;  %v5787_v50 = vpack.c.bf16 %v5723_v38, %v5723_v38  ;;  %v5908_v51 = vunpack.c.l.b16 %v5772_v18 }
 0x3c8   : > { %v5909_v8 = vunpack.c.l.b16 %v5773_v25  ;;  %v5910_v62 = vunpack.c.l.b16 %v5774_v29  ;;  %v5911_v47 = vunpack.c.l.b16 %v5775_v19  ;;  %v5912_v61 = vunpack.c.l.b16 %v5776_v41  ;;  %v11575_v29 = vld [vmem:[%s11973_s6] ss:$0 sm:$0xff] }
 0x3c9   : > { %v3963_v9 = vsel %vm1977_vm10, %v3931_v55, %v8559_v48  ;;  %v3964_v30 = vsel %vm1977_vm10, %v3932_v46, %v8560_v21  ;;  %v5913_v54 = vunpack.c.l.b16 %v5777_v12  ;;  %v5914_v7 = vunpack.c.l.b16 %v5778_v37 }
 0x3ca   : > { %v3980_v57 = vpack.c.bf16 %v3964_v30, %v3963_v9  ;;  %v5915_v39 = vunpack.c.l.b16 %v5779_v14  ;;  %v5917_v34 = vunpack.c.l.b16 %v5781_v43  ;;  %v5918_v53 = vunpack.c.l.b16 %v5782_v28 }
 0x3cb   : > { %v5919_v56 = vunpack.c.l.b16 %v5783_v32  ;;  %v5920_v1 = vunpack.c.l.b16 %v5784_v63  ;;  %v5916_v4 = vunpack.c.l.b16 %v5780_v17  ;;  %v5921_v33 = vunpack.c.l.b16 %v5785_v6 }
 0x3cc   : > { %7244 = vmatmul.mubr.msk.bf16.gmra.mrb[28].mxu1 %vm2053_vm11, %v3980_v57  ;;  %v5922_v16 = vunpack.c.l.b16 %v5786_v45  ;;  %v6015_v42 = vrot.slane %v5909_v8, 7  ;;  %v5923_v36 = vunpack.c.l.b16 %v5787_v50  ;;  %v6017_v49 = vrot.slane %v5910_v62, 6 }
 0x3cd   : > { %7253 = vmatprep.mubr.msk.bf16.mxu1 %vm280_vm0, %v6045_v20  ;;  %v6019_v35 = vrot.slane %v5911_v47, 5  ;;  %v6021_v3 = vrot.slane %v5912_v61, 4  ;;  %v6023_v52 = vrot.slane %v5913_v54, 3  ;;  %v6025_v44 = vrot.slane %v5914_v7, 2 }
 0x3ce   : > { %v6016_v2 = vsel %vm5925_vm13, %v6015_v42, %v5908_v51  ;;  %v6029_v60 = vrot.slane %v5917_v34, 7  ;;  %v6031_v23 = vrot.slane %v5918_v53, 6  ;;  %v6033_v24 = vrot.slane %v5919_v56, 5 }
 0x3cf   : > { %v6018_v59 = vsel %vm5928_vm14, %v6017_v49, %v6016_v2  ;;  %v6035_v27 = vrot.slane %v5920_v1, 4  ;;  %v6027_v20 = vrot.slane %v5915_v39, 1  ;;  %v6037_v18 = vrot.slane %v5921_v33, 3 }
 0x3d0   : > { %v6020_v40 = vsel %vm5931_vm15, %v6019_v35, %v6018_v59  ;;  %v6030_v38 = vsel %vm5925_vm13, %v6029_v60, %v5916_v4  ;;  %v6039_v25 = vrot.slane %v5922_v16, 2  ;;  %v6041_v37 = vrot.slane %v5923_v36, 1 }
 0x3d1   : > { %v6022_v5 = vsel %vm5934_vm1, %v6021_v3, %v6020_v40  ;;  %v6032_v22 = vsel %vm5928_vm14, %v6031_v23, %v6030_v38  ;;  %v6097_v63 = vadd.f32 %v11575_v29, %v11427_v31  ;;  %v11596_v4 = vsub.s32 0, %v10300_v0 }
 0x3d2   : > { %v6024_v41 = vsel %vm5937_vm3, %v6023_v52, %v6022_v5  ;;  %v6034_v12 = vsel %vm5931_vm15, %v6033_v24, %v6032_v22 }
 0x3d3   : > { %v6026_v14 = vsel %vm5940_vm2, %v6025_v44, %v6024_v41  ;;  %v6036_v17 = vsel %vm5934_vm1, %v6035_v27, %v6034_v12  ;;  %v6135_v7 = vcombine.high %v6097_v63, %v6097_v63  ;;  %v6142_v56 = vrot.slane %v6097_v63, %v10325_v13 }
 0x3d4   : > { %v7217_v19 = vpop.f32.mrb[0].mxu1  ;;  %v6028_v43 = vsel %vm5943_vm12, %v6027_v20, %v6026_v14  ;;  %v6038_v28 = vsel %vm5937_vm3, %v6037_v18, %v6036_v17 }
 0x3d5   : > { %v4102_v55 = vadd.f32 %v7217_v19, %v11566_v10  ;;  %v4093_v46 = vpop.f32.mrb[1].mxu1  ;;  %v6040_v48 = vsel %vm5940_vm2, %v6039_v25, %v6038_v28  ;;  %v6149_v1 = vrot.slane %v6135_v7, %v10325_v13  ;;  %v6150_v35 = vcombine.high %v6142_v56, %v6142_v56 }
 0x3d6   : > { %v4094_v26 = vadd.f32 %v11566_v10, %v4093_v46  ;;  %v7218_v32 = vpop.f32.mrb[2].mxu1  ;;  %v6042_v51 = vsel %vm5943_vm12, %v6041_v37, %v6040_v48  ;;  %v6271_v2 = vrot.slane %v6142_v56, 1 }
 0x3d7   : > { %vm4222_vm5 = vcmp.gt.f32.partialorder %v4102_v55, 0.0  ;;  %v4254_v21 = vmul.f32 0.2, %v4102_v55  ;;  %v4105_v6 = vadd.f32 %v7218_v32, %v11566_v10  ;;  %v4096_v45 = vpop.f32.mrb[3].mxu1  ;;  %v6046_v9 = vpack.c.b16 %v6042_v51, %v6028_v43 }
 0x3d8   : > { %vm4220_vm6 = vcmp.gt.f32.partialorder %v4094_v26, 0.0  ;;  %v4252_v50 = vmul.f32 0.2, %v4094_v26  ;;  %v4097_v8 = vadd.f32 %v11566_v10, %v4096_v45  ;;  %v6151_v3 = vcombine.high %v6149_v1, %v6149_v1 }
 0x3d9   : > { %v4286_v62 = vsel %vm4222_vm5, %v4102_v55, %v4254_v21  ;;  %vm4223_vm7 = vcmp.gt.f32.partialorder %v4105_v6, 0.0  ;;  %v4255_v30 = vmul.f32 0.2, %v4105_v6  ;;  %7254 = vmatmul.mubr.msk.bf16.vlgmr.msra.gmra.mrb[32].mxu1 %vm280_vm0, %v6046_v9  ;;  %v6272_v0 = vrot.slane %v6150_v35, 1 }
 0x3da   : > { %v4284_v47 = vsel %vm4220_vm6, %v4094_v26, %v4252_v50  ;;  %vm4221_vm8 = vcmp.gt.f32.partialorder %v4097_v8, 0.0  ;;  %v4253_v31 = vmul.f32 0.2, %v4097_v8  ;;  %v6273_v26 = vrot.slane %v6149_v1, 1 }
 0x3db   : > { %v4316_v61 = vadd.f32 %v4286_v62, %v4284_v47  ;;  %v4287_v57 = vsel %vm4223_vm7, %v4105_v6, %v4255_v30  ;;  %v6274_v21 = vrot.slane %v6151_v3, 1 }
 0x3dc   : > { %v4285_v54 = vsel %vm4221_vm8, %v4097_v8, %v4253_v31 }
 0x3dd   : > { %v4348_v39 = vcombine.high %v4316_v61, %v4316_v61  ;;  %v4355_v34 = vrot.slane %v4316_v61, %v10325_v13  ;;  %v4317_v53 = vadd.f32 %v4287_v57, %v4285_v54 }
 0x3df   : > { %v4362_v33 = vrot.slane %v4348_v39, %v10325_v13  ;;  %v4363_v16 = vcombine.high %v4355_v34, %v4355_v34  ;;  %v4365_v42 = vcombine.high %v4317_v53, %v4317_v53  ;;  %v4372_v36 = vrot.slane %v4317_v53, %v10325_v13 }
 0x3e0   : > { %v6991_v49 = vrot.slane %v4355_v34, 9 }
 0x3e1   : > { %v4364_v52 = vcombine.high %v4362_v33, %v4362_v33  ;;  %v4379_v44 = vrot.slane %v4365_v42, %v10325_v13  ;;  %v4380_v60 = vcombine.high %v4372_v36, %v4372_v36  ;;  %v6995_v59 = vrot.slane %v4372_v36, 9 }
 0x3e2   : > { %v6992_v23 = vrot.slane %v4363_v16, 9  ;;  %v6993_v24 = vrot.slane %v4362_v33, 9  ;;  %v4876_v27 = vadd.f32 %v6991_v49, %v4355_v34 }
 0x3e3   : > { %v4381_v40 = vcombine.high %v4379_v44, %v4379_v44  ;;  %v6996_v20 = vrot.slane %v4380_v60, 9  ;;  %v6997_v38 = vrot.slane %v4379_v44, 9  ;;  %v6994_v18 = vrot.slane %v4364_v52, 9 }
 0x3e4   : > { %v4877_v5 = vadd.f32 %v6992_v23, %v4363_v16  ;;  %v4878_v22 = vadd.f32 %v6993_v24, %v4362_v33  ;;  %v4880_v25 = vadd.f32 %v6995_v59, %v4372_v36  ;;  %v4940_v19 = vmul.f32 0.25, %v4876_v27 }
 0x3e5   : > { %v6998_v41 = vrot.slane %v4381_v40, 9  ;;  %v4879_v12 = vadd.f32 %v6994_v18, %v4364_v52  ;;  %v4881_v37 = vadd.f32 %v6996_v20, %v4380_v60  ;;  %v4882_v55 = vadd.f32 %v6997_v38, %v4379_v44 }
 0x3e6   : > { %v4941_v46 = vmul.f32 0.25, %v4877_v5  ;;  %v4942_v14 = vmul.f32 0.25, %v4878_v22  ;;  %v4944_v17 = vmul.f32 0.25, %v4880_v25  ;;  %v6367_v48 = vadd.f32 %v6142_v56, %v4940_v19 }
 0x3e7   : > { %v4883_v43 = vadd.f32 %v6998_v41, %v4381_v40  ;;  %v4943_v28 = vmul.f32 0.25, %v4879_v12  ;;  %v4945_v32 = vmul.f32 0.25, %v4881_v37  ;;  %v4946_v63 = vmul.f32 0.25, %v4882_v55 }
 0x3e8   : > { %v6368_v6 = vadd.f32 %v6271_v2, %v4941_v46  ;;  %v6369_v45 = vadd.f32 %v6150_v35, %v4942_v14  ;;  %v6371_v8 = vadd.f32 %v6149_v1, %v4944_v17  ;;  %v6431_v30 = vmul.f32 0.70710677, %v6367_v48 }
 0x3e9   : > { %v4947_v50 = vmul.f32 0.25, %v4883_v43  ;;  %v6370_v51 = vadd.f32 %v6272_v0, %v4943_v28  ;;  %v6372_v62 = vadd.f32 %v6273_v26, %v4945_v32  ;;  %v6373_v9 = vadd.f32 %v6151_v3, %v4946_v63 }
 0x3ea   : > { %v6432_v47 = vmul.f32 0.70710677, %v6368_v6  ;;  %v6433_v31 = vmul.f32 0.70710677, %v6369_v45  ;;  %v6435_v54 = vmul.f32 0.70710677, %v6371_v8  ;;  %v6562_v39 = vrot.slane %v6431_v30, %v11596_v4 }
 0x3eb   : > { %v6374_v61 = vadd.f32 %v6274_v21, %v4947_v50  ;;  %v6434_v57 = vmul.f32 0.70710677, %v6370_v51  ;;  %v6436_v7 = vmul.f32 0.70710677, %v6372_v62  ;;  %v6437_v56 = vmul.f32 0.70710677, %v6373_v9 }
 0x3ec   : > { %v6566_v34 = vrot.slane %v6432_v47, %v11596_v4  ;;  %v6570_v53 = vrot.slane %v6433_v31, %v11596_v4  ;;  %v6578_v42 = vrot.slane %v6435_v54, %v11596_v4  ;;  %v6100_v23 = vadd.f32 %v11575_v29, %v11443_v11 }
 0x3ed   : > { %v6574_v33 = vrot.slane %v6434_v57, %v11596_v4  ;;  %v6438_v1 = vmul.f32 0.70710677, %v6374_v61  ;;  %v6582_v49 = vrot.slane %v6436_v7, %v11596_v4  ;;  %v6586_v3 = vrot.slane %v6437_v56, %v11596_v4 }
 0x3ee   : > { %v6815_v16 = vsel %vm5925_vm13, %v6566_v34, %v6562_v39  ;;  %v6152_v38 = vcombine.high %v6100_v23, %v6100_v23  ;;  %v6159_v41 = vrot.slane %v6100_v23, %v10325_v13 }
 0x3ef   : > { %v6816_v36 = vsel %vm5928_vm14, %v6570_v53, %v6815_v16  ;;  %v6590_v52 = vrot.slane %v6438_v1, %v11596_v4 }
 0x3f0   : > { %v6817_v35 = vsel %vm5931_vm15, %v6574_v33, %v6816_v36  ;;  %v6166_v46 = vrot.slane %v6152_v38, %v10325_v13  ;;  %v6167_v43 = vcombine.high %v6159_v41, %v6159_v41  ;;  %v6275_v8 = vrot.slane %v6159_v41, 1 }
 0x3f1   : > { %v6818_v2 = vsel %vm5934_vm1, %v6578_v42, %v6817_v35 }
 0x3f2   : > { %v6819_v44 = vsel %vm5937_vm3, %v6582_v49, %v6818_v2  ;;  %v6168_v21 = vcombine.high %v6166_v46, %v6166_v46  ;;  %v6276_v62 = vrot.slane %v6167_v43, 1  ;;  %v6277_v9 = vrot.slane %v6166_v46, 1 }
 0x3f3   : > { %v6820_v60 = vsel %vm5940_vm2, %v6586_v3, %v6819_v44 }
 0x3f4   : > { %v6821_v59 = vsel %vm5943_vm12, %v6590_v52, %v6820_v60  ;;  %v6278_v39 = vrot.slane %v6168_v21, 1 }
 0x3f5   : > { %6879 = vst.msk [vmem:[%s11616_s18] sm:$0xff] %vm1779_vm4, %v6821_v59 }
 0x3f8   : > { %v7221_v24 = vpop.f32.mrb[4].mxu1 }
 0x3f9   : > { %v4118_v27 = vadd.f32 %v7221_v24, %v11566_v10  ;;  %v4109_v0 = vpop.f32.mrb[5].mxu1 }
 0x3fa   : > { %v4110_v40 = vadd.f32 %v11566_v10, %v4109_v0  ;;  %v7222_v20 = vpop.f32.mrb[6].mxu1 }
 0x3fb   : > { %vm4226_vm0 = vcmp.gt.f32.partialorder %v4118_v27, 0.0  ;;  %v4258_v18 = vmul.f32 0.2, %v4118_v27  ;;  %v4121_v5 = vadd.f32 %v7222_v20, %v11566_v10  ;;  %v4112_v22 = vpop.f32.mrb[7].mxu1 }
 0x3fc   : > { %vm4224_vm9 = vcmp.gt.f32.partialorder %v4110_v40, 0.0  ;;  %v4256_v25 = vmul.f32 0.2, %v4110_v40  ;;  %v4113_v19 = vadd.f32 %v11566_v10, %v4112_v22 }
 0x3fd   : > { %v4290_v11 = vsel %vm4226_vm0, %v4118_v27, %v4258_v18  ;;  %vm4227_vm10 = vcmp.gt.f32.partialorder %v4121_v5, 0.0  ;;  %v4259_v12 = vmul.f32 0.2, %v4121_v5 }
 0x3fe   : > { %v4288_v37 = vsel %vm4224_vm9, %v4110_v40, %v4256_v25  ;;  %vm4225_vm11 = vcmp.gt.f32.partialorder %v4113_v19, 0.0  ;;  %v4257_v55 = vmul.f32 0.2, %v4113_v19 }
 0x3ff   : > { %v4318_v14 = vadd.f32 %v4290_v11, %v4288_v37  ;;  %v4291_v17 = vsel %vm4227_vm10, %v4121_v5, %v4259_v12  ;;  %v6105_v11 = vadd.f32 %v11417_v15, %v11575_v29 }
 0x400   : > { %v4289_v26 = vsel %vm4225_vm11, %v4113_v19, %v4257_v55 }
 0x401   : > { %v4382_v28 = vcombine.high %v4318_v14, %v4318_v14  ;;  %v4389_v32 = vrot.slane %v4318_v14, %v10325_v13  ;;  %v4319_v63 = vadd.f32 %v4291_v17, %v4289_v26 }
 0x403   : > { %v4396_v48 = vrot.slane %v4382_v28, %v10325_v13  ;;  %v4397_v6 = vcombine.high %v4389_v32, %v4389_v32  ;;  %v4399_v45 = vcombine.high %v4319_v63, %v4319_v63  ;;  %v4406_v50 = vrot.slane %v4319_v63, %v10325_v13 }
 0x404   : > { %v6999_v51 = vrot.slane %v4389_v32, 9  ;;  %v6169_v63 = vcombine.high %v6105_v11, %v6105_v11 }
 0x405   : > { %v4398_v30 = vcombine.high %v4396_v48, %v4396_v48  ;;  %v4413_v47 = vrot.slane %v4399_v45, %v10325_v13  ;;  %v4414_v31 = vcombine.high %v4406_v50, %v4406_v50  ;;  %v7003_v61 = vrot.slane %v4406_v50, 9 }
 0x406   : > { %v7000_v57 = vrot.slane %v4397_v6, 9  ;;  %v7001_v54 = vrot.slane %v4396_v48, 9  ;;  %v4884_v7 = vadd.f32 %v6999_v51, %v4389_v32 }
 0x407   : > { %v4415_v34 = vcombine.high %v4413_v47, %v4413_v47  ;;  %v7004_v53 = vrot.slane %v4414_v31, 9  ;;  %v7005_v56 = vrot.slane %v4413_v47, 9  ;;  %v7002_v33 = vrot.slane %v4398_v30, 9 }
 0x408   : > { %v4885_v1 = vadd.f32 %v7000_v57, %v4397_v6  ;;  %v4886_v16 = vadd.f32 %v7001_v54, %v4396_v48  ;;  %v4888_v42 = vadd.f32 %v7003_v61, %v4406_v50  ;;  %v4948_v36 = vmul.f32 0.25, %v4884_v7 }
 0x409   : > { %v7006_v49 = vrot.slane %v4415_v34, 9  ;;  %v4887_v35 = vadd.f32 %v7002_v33, %v4398_v30  ;;  %v4889_v3 = vadd.f32 %v7004_v53, %v4414_v31  ;;  %v4890_v2 = vadd.f32 %v7005_v56, %v4413_v47 }
 0x40a   : > { %v4949_v52 = vmul.f32 0.25, %v4885_v1  ;;  %v4950_v44 = vmul.f32 0.25, %v4886_v16  ;;  %v4952_v60 = vmul.f32 0.25, %v4888_v42  ;;  %v6375_v59 = vadd.f32 %v6159_v41, %v4948_v36 }
 0x40b   : > { %v4891_v23 = vadd.f32 %v7006_v49, %v4415_v34  ;;  %v4951_v24 = vmul.f32 0.25, %v4887_v35  ;;  %v4953_v27 = vmul.f32 0.25, %v4889_v3  ;;  %v4954_v0 = vmul.f32 0.25, %v4890_v2 }
 0x40c   : > { %v6376_v40 = vadd.f32 %v6275_v8, %v4949_v52  ;;  %v6377_v20 = vadd.f32 %v6167_v43, %v4950_v44  ;;  %v6379_v38 = vadd.f32 %v6166_v46, %v4952_v60  ;;  %v6439_v18 = vmul.f32 0.70710677, %v6375_v59 }
 0x40d   : > { %v4955_v5 = vmul.f32 0.25, %v4891_v23  ;;  %v6378_v22 = vadd.f32 %v6276_v62, %v4951_v24  ;;  %v6380_v25 = vadd.f32 %v6277_v9, %v4953_v27  ;;  %v6381_v19 = vadd.f32 %v6168_v21, %v4954_v0 }
 0x40e   : > { %v6440_v12 = vmul.f32 0.70710677, %v6376_v40  ;;  %v6441_v37 = vmul.f32 0.70710677, %v6377_v20  ;;  %v6443_v41 = vmul.f32 0.70710677, %v6379_v38  ;;  %v6594_v26 = vrot.slane %v6439_v18, %v11596_v4 }
 0x40f   : > { %v6382_v55 = vadd.f32 %v6278_v39, %v4955_v5  ;;  %v6442_v14 = vmul.f32 0.70710677, %v6378_v22  ;;  %v6444_v17 = vmul.f32 0.70710677, %v6380_v25  ;;  %v6445_v43 = vmul.f32 0.70710677, %v6381_v19 }
 0x410   : > { %v6598_v28 = vrot.slane %v6440_v12, %v11596_v4  ;;  %v6602_v46 = vrot.slane %v6441_v37, %v11596_v4  ;;  %v6610_v15 = vrot.slane %v6443_v41, %v11596_v4  ;;  %v11648_v8 = vrot.slane %v6105_v11, %v10325_v13 }
 0x411   : > { %v6606_v32 = vrot.slane %v6442_v14, %v11596_v4  ;;  %v6446_v21 = vmul.f32 0.70710677, %v6382_v55  ;;  %v6614_v45 = vrot.slane %v6444_v17, %v11596_v4  ;;  %v6618_v62 = vrot.slane %v6445_v43, %v11596_v4 }
 0x412   : > { %v6822_v48 = vsel %vm5925_vm13, %v6598_v28, %v6594_v26  ;;  %v11654_v31 = vrot.slane %v6169_v63, %v10325_v13  ;;  %v6184_v52 = vcombine.high %v11648_v8, %v11648_v8  ;;  %v11673_v60 = vadd.f32 %v11433_v58, %v11575_v29 }
 0x413   : > { %v6823_v6 = vsel %vm5928_vm14, %v6602_v46, %v6822_v48  ;;  %v7225_v51 = vpop.f32.mrb[8].mxu1  ;;  %v6622_v61 = vrot.slane %v6446_v21, %v11596_v4  ;;  %v6279_v0 = vrot.slane %v11648_v8, 1 }
 0x414   : > { %v6824_v50 = vsel %vm5931_vm15, %v6606_v32, %v6823_v6  ;;  %v4134_v30 = vadd.f32 %v7225_v51, %v11566_v10  ;;  %v4125_v47 = vpop.f32.mrb[9].mxu1  ;;  %v11669_v44 = vcombine.high %v11654_v31, %v11654_v31  ;;  %v6281_v40 = vrot.slane %v11654_v31, 1 }
 0x415   : > { %v6825_v9 = vsel %vm5934_vm1, %v6610_v15, %v6824_v50  ;;  %v4126_v54 = vadd.f32 %v11566_v10, %v4125_v47  ;;  %v7226_v7 = vpop.f32.mrb[10].mxu1  ;;  %v6280_v22 = vrot.slane %v6184_v52, 1  ;;  %v6186_v58 = vcombine.high %v11673_v60, %v11673_v60 }
 0x416   : > { %v6826_v57 = vsel %vm5937_vm3, %v6614_v45, %v6825_v9  ;;  %vm4230_vm5 = vcmp.gt.f32.partialorder %v4134_v30, 0.0  ;;  %v4262_v34 = vmul.f32 0.2, %v4134_v30  ;;  %v4137_v53 = vadd.f32 %v7226_v7, %v11566_v10  ;;  %v4128_v56 = vpop.f32.mrb[11].mxu1 }
 0x417   : > { %v6827_v39 = vsel %vm5940_vm2, %v6618_v62, %v6826_v57  ;;  %vm4228_vm6 = vcmp.gt.f32.partialorder %v4126_v54, 0.0  ;;  %v4260_v1 = vmul.f32 0.2, %v4126_v54  ;;  %v4129_v16 = vadd.f32 %v11566_v10, %v4128_v56 }
 0x418   : > { %v6828_v33 = vsel %vm5943_vm12, %v6622_v61, %v6827_v39  ;;  %v4294_v42 = vsel %vm4230_vm5, %v4134_v30, %v4262_v34  ;;  %vm4231_vm7 = vcmp.gt.f32.partialorder %v4137_v53, 0.0  ;;  %v4263_v36 = vmul.f32 0.2, %v4137_v53 }
 0x419   : > { %6880 = vst.msk [vmem:[%s11616_s18 + $0x8] sm:$0xff] %vm1779_vm4, %v6828_v33  ;;  %v4292_v49 = vsel %vm4228_vm6, %v4126_v54, %v4260_v1  ;;  %vm4229_vm8 = vcmp.gt.f32.partialorder %v4129_v16, 0.0  ;;  %v4261_v35 = vmul.f32 0.2, %v4129_v16  ;;  %v6282_v25 = vrot.slane %v11669_v44, 1 }
 0x41a   : > { %v4320_v3 = vadd.f32 %v4294_v42, %v4292_v49  ;;  %v4295_v2 = vsel %vm4231_vm7, %v4137_v53, %v4263_v36  ;;  %v11685_v55 = vrot.slane %v11673_v60, %v10325_v13 }
 0x41b   : > { %v4293_v59 = vsel %vm4229_vm8, %v4129_v16, %v4261_v35 }
 0x41c   : > { %v4416_v23 = vcombine.high %v4320_v3, %v4320_v3  ;;  %v4423_v24 = vrot.slane %v4320_v3, %v10325_v13  ;;  %v4321_v27 = vadd.f32 %v4295_v2, %v4293_v59 }
 0x41e   : > { %v4430_v20 = vrot.slane %v4416_v23, %v10325_v13  ;;  %v4431_v38 = vcombine.high %v4423_v24, %v4423_v24  ;;  %v7007_v18 = vrot.slane %v4423_v24, 9  ;;  %v4433_v5 = vcombine.high %v4321_v27, %v4321_v27 }
 0x41f   : > { %v4440_v29 = vrot.slane %v4321_v27, %v10325_v13 }
 0x420   : > { %v4432_v19 = vcombine.high %v4430_v20, %v4430_v20  ;;  %v7008_v11 = vrot.slane %v4431_v38, 9  ;;  %v7009_v12 = vrot.slane %v4430_v20, 9  ;;  %v4892_v37 = vadd.f32 %v7007_v18, %v4423_v24 }
 0x421   : > { %v4447_v14 = vrot.slane %v4433_v5, %v10325_v13  ;;  %v4448_v41 = vcombine.high %v4440_v29, %v4440_v29  ;;  %v7011_v17 = vrot.slane %v4440_v29, 9  ;;  %v11696_v24 = vrot.slane %v6186_v58, %v10325_v13 }
 0x422   : > { %v7010_v26 = vrot.slane %v4432_v19, 9  ;;  %v4893_v28 = vadd.f32 %v7008_v11, %v4431_v38  ;;  %v4894_v46 = vadd.f32 %v7009_v12, %v4430_v20  ;;  %v4956_v43 = vmul.f32 0.25, %v4892_v37 }
 0x423   : > { %v4449_v32 = vcombine.high %v4447_v14, %v4447_v14  ;;  %v7012_v63 = vrot.slane %v4448_v41, 9  ;;  %v7013_v21 = vrot.slane %v4447_v14, 9  ;;  %v4896_v48 = vadd.f32 %v7011_v17, %v4440_v29 }
 0x424   : > { %v4895_v15 = vadd.f32 %v7010_v26, %v4432_v19  ;;  %v4957_v6 = vmul.f32 0.25, %v4893_v28  ;;  %v4958_v45 = vmul.f32 0.25, %v4894_v46  ;;  %v6383_v50 = vadd.f32 %v11648_v8, %v4956_v43 }
 0x425   : > { %v7014_v51 = vrot.slane %v4449_v32, 9  ;;  %v4897_v62 = vadd.f32 %v7012_v63, %v4448_v41  ;;  %v4898_v9 = vadd.f32 %v7013_v21, %v4447_v14  ;;  %v4960_v30 = vmul.f32 0.25, %v4896_v48 }
 0x426   : > { %v4959_v47 = vmul.f32 0.25, %v4895_v15  ;;  %v6384_v61 = vadd.f32 %v6279_v0, %v4957_v6  ;;  %v6385_v57 = vadd.f32 %v6184_v52, %v4958_v45  ;;  %v6447_v54 = vmul.f32 0.70710677, %v6383_v50 }
 0x427   : > { %v4899_v7 = vadd.f32 %v7014_v51, %v4449_v32  ;;  %v4961_v39 = vmul.f32 0.25, %v4897_v62  ;;  %v4962_v34 = vmul.f32 0.25, %v4898_v9  ;;  %v6387_v53 = vadd.f32 %v11654_v31, %v4960_v30  ;;  %v7229_v56 = vpop.f32.mrb[12].mxu1 }
 0x428   : > { %v6386_v33 = vadd.f32 %v6280_v22, %v4959_v47  ;;  %v6448_v1 = vmul.f32 0.70710677, %v6384_v61  ;;  %v6449_v16 = vmul.f32 0.70710677, %v6385_v57  ;;  %v6626_v42 = vrot.slane %v6447_v54, %v11596_v4  ;;  %v4141_v8 = vpop.f32.mrb[13].mxu1 }
 0x429   : > { %v4963_v36 = vmul.f32 0.25, %v4899_v7  ;;  %v6388_v49 = vadd.f32 %v6281_v40, %v4961_v39  ;;  %v6389_v35 = vadd.f32 %v11669_v44, %v4962_v34  ;;  %v6451_v3 = vmul.f32 0.70710677, %v6387_v53  ;;  %v7230_v2 = vpop.f32.mrb[14].mxu1 }
 0x42a   : > { %v6450_v52 = vmul.f32 0.70710677, %v6386_v33  ;;  %v6630_v60 = vrot.slane %v6448_v1, %v11596_v4  ;;  %v6634_v59 = vrot.slane %v6449_v16, %v11596_v4  ;;  %v4150_v31 = vadd.f32 %v7229_v56, %v11566_v10  ;;  %v4144_v23 = vpop.f32.mrb[15].mxu1 }
 0x42b   : > { %v6390_v27 = vadd.f32 %v6282_v25, %v4963_v36  ;;  %v6452_v0 = vmul.f32 0.70710677, %v6388_v49  ;;  %v6453_v20 = vmul.f32 0.70710677, %v6389_v35  ;;  %v6642_v22 = vrot.slane %v6451_v3, %v11596_v4 }
 0x42c   : > { %v6638_v40 = vrot.slane %v6450_v52, %v11596_v4  ;;  %v6829_v44 = vsel %vm5925_vm13, %v6630_v60, %v6626_v42  ;;  %vm4234_vm0 = vcmp.gt.f32.partialorder %v4150_v31, 0.0  ;;  %v4266_v38 = vmul.f32 0.2, %v4150_v31 }
 0x42d   : > { %v6830_v18 = vsel %vm5928_vm14, %v6634_v59, %v6829_v44  ;;  %v6454_v5 = vmul.f32 0.70710677, %v6390_v27  ;;  %v6646_v29 = vrot.slane %v6452_v0, %v11596_v4  ;;  %v6650_v19 = vrot.slane %v6453_v20, %v11596_v4 }
 0x42e   : > { %v6831_v58 = vsel %vm5931_vm15, %v6638_v40, %v6830_v18  ;;  %v4142_v25 = vadd.f32 %v11566_v10, %v4141_v8  ;;  %v4153_v11 = vadd.f32 %v7230_v2, %v11566_v10  ;;  %v4298_v14 = vsel %vm4234_vm0, %v4150_v31, %v4266_v38 }
 0x42f   : > { %v6654_v12 = vrot.slane %v6454_v5, %v11596_v4  ;;  %v6832_v37 = vsel %vm5934_vm1, %v6642_v22, %v6831_v58  ;;  %v4145_v41 = vadd.f32 %v11566_v10, %v4144_v23  ;;  %v6201_v32 = vcombine.high %v11685_v55, %v11685_v55 }
 0x430   : > { %v6833_v17 = vsel %vm5937_vm3, %v6646_v29, %v6832_v37  ;;  %vm4232_vm9 = vcmp.gt.f32.partialorder %v4142_v25, 0.0  ;;  %v4264_v26 = vmul.f32 0.2, %v4142_v25  ;;  %vm4235_vm10 = vcmp.gt.f32.partialorder %v4153_v11, 0.0 }
 0x431   : > { %v6834_v28 = vsel %vm5940_vm2, %v6650_v19, %v6833_v17  ;;  %v4267_v46 = vmul.f32 0.2, %v4153_v11  ;;  %vm4233_vm11 = vcmp.gt.f32.partialorder %v4145_v41, 0.0  ;;  %v4265_v43 = vmul.f32 0.2, %v4145_v41 }
 0x432   : > { %v6835_v63 = vsel %vm5943_vm12, %v6654_v12, %v6834_v28  ;;  %v4296_v21 = vsel %vm4232_vm9, %v4142_v25, %v4264_v26  ;;  %v6202_v45 = vcombine.high %v11696_v24, %v11696_v24  ;;  %v6283_v9 = vrot.slane %v11685_v55, 1 }
 0x433   : > { %6881 = vst.msk [vmem:[%s11616_s18 + $0x10] sm:$0xff] %vm1779_vm4, %v6835_v63  ;;  %v4322_v48 = vadd.f32 %v4298_v14, %v4296_v21  ;;  %v4299_v15 = vsel %vm4235_vm10, %v4153_v11, %v4267_v46  ;;  %v4297_v6 = vsel %vm4233_vm11, %v4145_v41, %v4265_v43  ;;  %v6284_v30 = vrot.slane %v6201_v32, 1 }
 0x434   : > { %v4323_v50 = vadd.f32 %v4299_v15, %v4297_v6  ;;  %v6285_v57 = vrot.slane %v11696_v24, 1  ;;  %v6286_v34 = vrot.slane %v6202_v45, 1 }
 0x435   : > { %v4450_v51 = vcombine.high %v4322_v48, %v4322_v48  ;;  %v4457_v62 = vrot.slane %v4322_v48, %v10325_v13 }
 0x436   : > { %v4467_v47 = vcombine.high %v4323_v50, %v4323_v50  ;;  %v4474_v61 = vrot.slane %v4323_v50, %v10325_v13 }
 0x437   : > { %v4464_v54 = vrot.slane %v4450_v51, %v10325_v13  ;;  %v4465_v7 = vcombine.high %v4457_v62, %v4457_v62  ;;  %v7015_v39 = vrot.slane %v4457_v62, 9 }
 0x438   : > { %v4481_v53 = vrot.slane %v4467_v47, %v10325_v13  ;;  %v4482_v56 = vcombine.high %v4474_v61, %v4474_v61  ;;  %v7019_v33 = vrot.slane %v4474_v61, 9 }
 0x439   : > { %v4466_v1 = vcombine.high %v4464_v54, %v4464_v54  ;;  %v7016_v16 = vrot.slane %v4465_v7, 9  ;;  %v7017_v42 = vrot.slane %v4464_v54, 9  ;;  %v4900_v8 = vadd.f32 %v7015_v39, %v4457_v62 }
 0x43a   : > { %v4483_v36 = vcombine.high %v4481_v53, %v4481_v53  ;;  %v7020_v49 = vrot.slane %v4482_v56, 9  ;;  %v7021_v35 = vrot.slane %v4481_v53, 9  ;;  %v4904_v3 = vadd.f32 %v7019_v33, %v4474_v61 }
 0x43b   : > { %v7018_v2 = vrot.slane %v4466_v1, 9  ;;  %v4901_v52 = vadd.f32 %v7016_v16, %v4465_v7  ;;  %v4902_v60 = vadd.f32 %v7017_v42, %v4464_v54  ;;  %v4964_v59 = vmul.f32 0.25, %v4900_v8 }
 0x43c   : > { %v7022_v31 = vrot.slane %v4483_v36, 9  ;;  %v4905_v23 = vadd.f32 %v7020_v49, %v4482_v56  ;;  %v4906_v27 = vadd.f32 %v7021_v35, %v4481_v53  ;;  %v4968_v0 = vmul.f32 0.25, %v4904_v3 }
 0x43d   : > { %v4903_v20 = vadd.f32 %v7018_v2, %v4466_v1  ;;  %v4965_v40 = vmul.f32 0.25, %v4901_v52  ;;  %v4966_v44 = vmul.f32 0.25, %v4902_v60  ;;  %v6391_v38 = vadd.f32 %v11685_v55, %v4964_v59 }
 0x43e   : > { %v4907_v18 = vadd.f32 %v7022_v31, %v4483_v36  ;;  %v4969_v5 = vmul.f32 0.25, %v4905_v23  ;;  %v4970_v22 = vmul.f32 0.25, %v4906_v27  ;;  %v6395_v29 = vadd.f32 %v11696_v24, %v4968_v0 }
 0x43f   : > { %v4967_v19 = vmul.f32 0.25, %v4903_v20  ;;  %v6392_v58 = vadd.f32 %v6283_v9, %v4965_v40  ;;  %v6393_v25 = vadd.f32 %v6201_v32, %v4966_v44  ;;  %v6455_v11 = vmul.f32 0.70710677, %v6391_v38 }
 0x440   : > { %v4971_v12 = vmul.f32 0.25, %v4907_v18  ;;  %v6396_v37 = vadd.f32 %v6285_v57, %v4969_v5  ;;  %v6397_v14 = vadd.f32 %v6202_v45, %v4970_v22  ;;  %v6459_v43 = vmul.f32 0.70710677, %v6395_v29 }
 0x441   : > { %v6394_v41 = vadd.f32 %v6284_v30, %v4967_v19  ;;  %v6456_v17 = vmul.f32 0.70710677, %v6392_v58  ;;  %v6457_v26 = vmul.f32 0.70710677, %v6393_v25  ;;  %v6658_v28 = vrot.slane %v6455_v11, %v11596_v4 }
 0x442   : > { %v6398_v46 = vadd.f32 %v6286_v34, %v4971_v12  ;;  %v6460_v24 = vmul.f32 0.70710677, %v6396_v37  ;;  %v6461_v48 = vmul.f32 0.70710677, %v6397_v14  ;;  %v6674_v50 = vrot.slane %v6459_v43, %v11596_v4 }
 0x443   : > { %v6458_v55 = vmul.f32 0.70710677, %v6394_v41  ;;  %v6662_v63 = vrot.slane %v6456_v17, %v11596_v4  ;;  %v6666_v21 = vrot.slane %v6457_v26, %v11596_v4 }
 0x444   : > { %v6462_v6 = vmul.f32 0.70710677, %v6398_v46  ;;  %v6678_v51 = vrot.slane %v6460_v24, %v11596_v4  ;;  %v6682_v9 = vrot.slane %v6461_v48, %v11596_v4 }
 0x445   : > { %v6670_v32 = vrot.slane %v6458_v55, %v11596_v4  ;;  %v6836_v15 = vsel %vm5925_vm13, %v6662_v63, %v6658_v28 }
 0x446   : > { %v6837_v45 = vsel %vm5928_vm14, %v6666_v21, %v6836_v15  ;;  %v6686_v47 = vrot.slane %v6462_v6, %v11596_v4 }
 0x447   : > { %v6838_v62 = vsel %vm5931_vm15, %v6670_v32, %v6837_v45 }
 0x448   : > { %v6839_v30 = vsel %vm5934_vm1, %v6674_v50, %v6838_v62 }
 0x449   : > { %v6840_v61 = vsel %vm5937_vm3, %v6678_v51, %v6839_v30 }
 0x44a   : > { %v6841_v57 = vsel %vm5940_vm2, %v6682_v9, %v6840_v61 }
 0x44b   : > { %v6842_v54 = vsel %vm5943_vm12, %v6686_v47, %v6841_v57 }
 0x44c   : > { %6882 = vst.msk [vmem:[%s11616_s18 + $0x18] sm:$0xff] %vm1779_vm4, %v6842_v54 }
 0x457   : > { %v7233_v7 = vpop.f32.mrb[16].mxu1 }
 0x458   : > { %v4166_v39 = vadd.f32 %v7233_v7, %v11566_v10  ;;  %v4157_v34 = vpop.f32.mrb[17].mxu1 }
 0x459   : > { %v4158_v53 = vadd.f32 %v11566_v10, %v4157_v34  ;;  %v7234_v56 = vpop.f32.mrb[18].mxu1 }
 0x45a   : > { %vm4238_vm5 = vcmp.gt.f32.partialorder %v4166_v39, 0.0  ;;  %v4270_v33 = vmul.f32 0.2, %v4166_v39  ;;  %v4169_v1 = vadd.f32 %v7234_v56, %v11566_v10  ;;  %v4160_v16 = vpop.f32.mrb[19].mxu1 }
 0x45b   : > { %vm4236_vm6 = vcmp.gt.f32.partialorder %v4158_v53, 0.0  ;;  %v4268_v42 = vmul.f32 0.2, %v4158_v53  ;;  %v4161_v8 = vadd.f32 %v11566_v10, %v4160_v16 }
 0x45c   : > { %v4302_v36 = vsel %vm4238_vm5, %v4166_v39, %v4270_v33  ;;  %vm4239_vm7 = vcmp.gt.f32.partialorder %v4169_v1, 0.0  ;;  %v4271_v49 = vmul.f32 0.2, %v4169_v1 }
 0x45d   : > { %v4300_v35 = vsel %vm4236_vm6, %v4158_v53, %v4268_v42  ;;  %vm4237_vm8 = vcmp.gt.f32.partialorder %v4161_v8, 0.0  ;;  %v4269_v3 = vmul.f32 0.2, %v4161_v8 }
 0x45e   : > { %v4324_v2 = vadd.f32 %v4302_v36, %v4300_v35  ;;  %v4303_v52 = vsel %vm4239_vm7, %v4169_v1, %v4271_v49 }
 0x45f   : > { %v4301_v60 = vsel %vm4237_vm8, %v4161_v8, %v4269_v3 }
 0x460   : > { %v4325_v59 = vadd.f32 %v4303_v52, %v4301_v60  ;;  %v4484_v14 = vcombine.high %v4324_v2, %v4324_v2  ;;  %v4491_v41 = vrot.slane %v4324_v2, %v10325_v13 }
 0x462   : > { %v4498_v26 = vrot.slane %v4484_v14, %v10325_v13  ;;  %v4499_v43 = vcombine.high %v4491_v41, %v4491_v41  ;;  %v4501_v55 = vcombine.high %v4325_v59, %v4325_v59  ;;  %v4508_v63 = vrot.slane %v4325_v59, %v10325_v13 }
 0x463   : > { %v7023_v6 = vrot.slane %v4491_v41, 9 }
 0x464   : > { %v4500_v62 = vcombine.high %v4498_v26, %v4498_v26  ;;  %v4515_v47 = vrot.slane %v4501_v55, %v10325_v13  ;;  %v4516_v54 = vcombine.high %v4508_v63, %v4508_v63  ;;  %v7027_v1 = vrot.slane %v4508_v63, 9 }
 0x465   : > { %v7024_v16 = vrot.slane %v4499_v43, 9  ;;  %v7025_v42 = vrot.slane %v4498_v26, 9  ;;  %v4908_v49 = vadd.f32 %v7023_v6, %v4491_v41 }
 0x466   : > { %v4517_v8 = vcombine.high %v4515_v47, %v4515_v47  ;;  %v7026_v36 = vrot.slane %v4500_v62, 9  ;;  %v7028_v35 = vrot.slane %v4516_v54, 9  ;;  %v7029_v3 = vrot.slane %v4515_v47, 9 }
 0x46f   : > { %v7237_v31 = vpop.f32.mrb[20].mxu1 }
 0x470   : > { %v4182_v23 = vadd.f32 %v7237_v31, %v11566_v10  ;;  %v4173_v27 = vpop.f32.mrb[21].mxu1  ;;  %v4909_v31 = vadd.f32 %v7024_v16, %v4499_v43 }
 0x471   : > { %v4174_v0 = vadd.f32 %v11566_v10, %v4173_v27  ;;  %v7238_v20 = vpop.f32.mrb[22].mxu1  ;;  %v4912_v27 = vadd.f32 %v7027_v1, %v4508_v63 }
 0x472   : > { %vm4242_vm0 = vcmp.gt.f32.partialorder %v4182_v23, 0.0  ;;  %v4274_v40 = vmul.f32 0.2, %v4182_v23  ;;  %v4185_v44 = vadd.f32 %v7238_v20, %v11566_v10  ;;  %v4176_v38 = vpop.f32.mrb[23].mxu1  ;;  %v4911_v20 = vadd.f32 %v7026_v36, %v4500_v62 }
 0x473   : > { %vm4240_vm9 = vcmp.gt.f32.partialorder %v4174_v0, 0.0  ;;  %v4272_v18 = vmul.f32 0.2, %v4174_v0  ;;  %v4177_v5 = vadd.f32 %v11566_v10, %v4176_v38  ;;  %v11770_v14 = vmul.f32 0.25, %v4912_v27 }
 0x474   : > { %v4306_v22 = vsel %vm4242_vm0, %v4182_v23, %v4274_v40  ;;  %vm4243_vm10 = vcmp.gt.f32.partialorder %v4185_v44, 0.0  ;;  %v4275_v29 = vmul.f32 0.2, %v4185_v44  ;;  %v4910_v23 = vadd.f32 %v7025_v42, %v4498_v26 }
 0x475   : > { %v4304_v19 = vsel %vm4240_vm9, %v4174_v0, %v4272_v18  ;;  %vm4241_vm11 = vcmp.gt.f32.partialorder %v4177_v5, 0.0  ;;  %v4273_v58 = vmul.f32 0.2, %v4177_v5  ;;  %v7030_v0 = vrot.slane %v4517_v8, 9 }
 0x476   : > { %v4326_v25 = vadd.f32 %v4306_v22, %v4304_v19  ;;  %v4307_v11 = vsel %vm4243_vm10, %v4185_v44, %v4275_v29  ;;  %v11764_v40 = vmul.f32 0.25, %v4908_v49  ;;  %v4913_v18 = vadd.f32 %v7028_v35, %v4516_v54 }
 0x477   : > { %v4305_v12 = vsel %vm4241_vm11, %v4177_v5, %v4273_v58  ;;  %v4914_v5 = vadd.f32 %v7029_v3, %v4515_v47  ;;  %v4915_v26 = vadd.f32 %v7030_v0, %v4517_v8  ;;  %v11775_v6 = vmul.f32 0.25, %v4911_v20 }
 0x478   : > { %v4327_v37 = vadd.f32 %v4307_v11, %v4305_v12  ;;  %v4518_v45 = vcombine.high %v4326_v25, %v4326_v25  ;;  %v4525_v7 = vrot.slane %v4326_v25, %v10325_v13  ;;  %v11766_v12 = vmul.f32 0.25, %v4909_v31 }
 0x47a   : > { %v4532_v53 = vrot.slane %v4518_v45, %v10325_v13  ;;  %v4535_v56 = vcombine.high %v4327_v37, %v4327_v37  ;;  %v4533_v2 = vcombine.high %v4525_v7, %v4525_v7  ;;  %v4542_v52 = vrot.slane %v4327_v37, %v10325_v13 }
 0x47b   : > { %v7031_v44 = vrot.slane %v4525_v7, 9  ;;  %v11768_v37 = vmul.f32 0.25, %v4910_v23  ;;  %v11777_v45 = vmul.f32 0.25, %v4913_v18 }
 0x47c   : > { %v4534_v60 = vcombine.high %v4532_v53, %v4532_v53  ;;  %v4549_v59 = vrot.slane %v4535_v56, %v10325_v13  ;;  %v4550_v38 = vcombine.high %v4542_v52, %v4542_v52  ;;  %v7032_v22 = vrot.slane %v4533_v2, 9 }
 0x47d   : > { %v7035_v19 = vrot.slane %v4542_v52, 9  ;;  %v7033_v58 = vrot.slane %v4532_v53, 9 }
 0x47e   : > { %v4551_v29 = vcombine.high %v4549_v59, %v4549_v59  ;;  %v7034_v25 = vrot.slane %v4534_v60, 9  ;;  %v7037_v43 = vrot.slane %v4549_v59, 9  ;;  %v4917_v63 = vadd.f32 %v7032_v22, %v4533_v2 }
 0x480   : > { %v11786_v54 = vmul.f32 0.25, %v4917_v63 }
 0x487   : > { %v7241_v17 = vpop.f32.mrb[24].mxu1 }
 0x488   : > { %v4198_v28 = vadd.f32 %v7241_v17, %v11566_v10  ;;  %v4189_v46 = vpop.f32.mrb[25].mxu1 }
 0x489   : > { %v4190_v21 = vadd.f32 %v11566_v10, %v4189_v46  ;;  %v7242_v24 = vpop.f32.mrb[26].mxu1  ;;  %v7036_v46 = vrot.slane %v4550_v38, 9 }
 0x48a   : > { %vm4246_vm5 = vcmp.gt.f32.partialorder %v4198_v28, 0.0  ;;  %v4278_v48 = vmul.f32 0.2, %v4198_v28  ;;  %v4201_v32 = vadd.f32 %v7242_v24, %v11566_v10  ;;  %v4192_v15 = vpop.f32.mrb[27].mxu1  ;;  %v4918_v24 = vadd.f32 %v7033_v58, %v4532_v53 }
 0x48b   : > { %vm4244_vm6 = vcmp.gt.f32.partialorder %v4190_v21, 0.0  ;;  %v4276_v50 = vmul.f32 0.2, %v4190_v21  ;;  %v4193_v51 = vadd.f32 %v11566_v10, %v4192_v15 }
 0x48c   : > { %v4310_v9 = vsel %vm4246_vm5, %v4198_v28, %v4278_v48  ;;  %vm4247_vm7 = vcmp.gt.f32.partialorder %v4201_v32, 0.0  ;;  %v4279_v30 = vmul.f32 0.2, %v4201_v32  ;;  %v4916_v28 = vadd.f32 %v7031_v44, %v4525_v7 }
 0x48d   : > { %v4308_v61 = vsel %vm4244_vm6, %v4190_v21, %v4276_v50  ;;  %vm4245_vm8 = vcmp.gt.f32.partialorder %v4193_v51, 0.0  ;;  %v4277_v57 = vmul.f32 0.2, %v4193_v51  ;;  %v7038_v21 = vrot.slane %v4551_v29, 9 }
 0x48e   : > { %v4328_v39 = vadd.f32 %v4310_v9, %v4308_v61  ;;  %v4311_v34 = vsel %vm4247_vm7, %v4201_v32, %v4279_v30  ;;  %v4919_v48 = vadd.f32 %v7034_v25, %v4534_v60  ;;  %v4920_v32 = vadd.f32 %v7035_v19, %v4542_v52 }
 0x48f   : > { %v4309_v33 = vsel %vm4245_vm8, %v4193_v51, %v4277_v57  ;;  %v11779_v50 = vmul.f32 0.25, %v4914_v5  ;;  %v11782_v9 = vmul.f32 0.25, %v4915_v26  ;;  %v11784_v30 = vmul.f32 0.25, %v4916_v28 }
 0x490   : > { %v4329_v10 = vadd.f32 %v4311_v34, %v4309_v33  ;;  %v4552_v11 = vcombine.high %v4328_v39, %v4328_v39  ;;  %v4559_v41 = vrot.slane %v4328_v39, %v10325_v13  ;;  %v4921_v61 = vadd.f32 %v7036_v46, %v4550_v38 }
 0x491   : > { %v4922_v57 = vadd.f32 %v7037_v43, %v4549_v59  ;;  %v4923_v39 = vadd.f32 %v7038_v21, %v4551_v29  ;;  %v11788_v34 = vmul.f32 0.25, %v4918_v24  ;;  %v11790_v53 = vmul.f32 0.25, %v4919_v48 }
 0x492   : > { %v4569_v17 = vcombine.high %v4329_v10, %v4329_v10  ;;  %v4576_v55 = vrot.slane %v4329_v10, %v10325_v13  ;;  %v4566_v15 = vrot.slane %v4552_v11, %v10325_v13  ;;  %v4567_v51 = vcombine.high %v4559_v41, %v4559_v41  ;;  %v8577_v10 = vld [vmem:[%s11971_s4] ss:$0 sm:$0xff] }
 0x493   : > { %v11792_v56 = vmul.f32 0.25, %v4920_v32  ;;  %v7039_v8 = vrot.slane %v4559_v41, 9  ;;  %v11797_v25 = vmul.f32 0.25, %v4921_v61 }
 0x494   : > { %v4583_v62 = vrot.slane %v4569_v17, %v10325_v13  ;;  %v4584_v47 = vcombine.high %v4576_v55, %v4576_v55  ;;  %v4568_v33 = vcombine.high %v4566_v15, %v4566_v15  ;;  %v7043_v1 = vrot.slane %v4576_v55, 9 }
 0x495   : > { %v7040_v3 = vrot.slane %v4567_v51, 9  ;;  %v7041_v2 = vrot.slane %v4566_v15, 9  ;;  %v4924_v58 = vadd.f32 %v7039_v8, %v4559_v41 }
 0x496   : > { %v4585_v36 = vcombine.high %v4583_v62, %v4583_v62  ;;  %v7044_v52 = vrot.slane %v4584_v47, 9  ;;  %v7045_v23 = vrot.slane %v4583_v62, 9  ;;  %v7042_v38 = vrot.slane %v4568_v33, 9 }
 0x497   : > { %v4925_v17 = vadd.f32 %v7040_v3, %v4567_v51  ;;  %v4926_v26 = vadd.f32 %v7041_v2, %v4566_v15  ;;  %v4928_v28 = vadd.f32 %v7043_v1, %v4576_v55  ;;  %v11810_v15 = vmul.f32 0.25, %v4923_v39 }
 0x498   : > { %v7046_v18 = vrot.slane %v4585_v36, 9  ;;  %v4927_v21 = vadd.f32 %v7042_v38, %v4568_v33  ;;  %v4929_v24 = vadd.f32 %v7044_v52, %v4584_v47  ;;  %v4930_v48 = vadd.f32 %v7045_v23, %v4583_v62 }
 0x499   : > { %v4988_v51 = vmul.f32 0.25, %v4924_v58  ;;  %v4989_v33 = vmul.f32 0.25, %v4925_v17  ;;  %v4990_v47 = vmul.f32 0.25, %v4926_v26 }
 0x49a   : > { %v4931_v32 = vadd.f32 %v7046_v18, %v4585_v36  ;;  %v4991_v1 = vmul.f32 0.25, %v4927_v21  ;;  %v4993_v8 = vmul.f32 0.25, %v4929_v24  ;;  %v4994_v39 = vmul.f32 0.25, %v4930_v48 }
 0x49c   : > { %v4995_v36 = vmul.f32 0.25, %v4931_v32 }
 0x49f   : > { %v7245_v7 = vpop.f32.mrb[28].mxu1 }
 0x4a0   : > { %v4214_v16 = vadd.f32 %v8577_v10, %v7245_v7  ;;  %v4205_v42 = vpop.f32.mrb[29].mxu1  ;;  %v11802_v7 = vmul.f32 0.25, %v4922_v57 }
 0x4a1   : > { %v4206_v49 = vadd.f32 %v8577_v10, %v4205_v42  ;;  %v7246_v35 = vpop.f32.mrb[30].mxu1 }
 0x4a2   : > { %vm4250_vm0 = vcmp.gt.f32.partialorder %v4214_v16, 0.0  ;;  %v4282_v60 = vmul.f32 0.2, %v4214_v16  ;;  %v4217_v59 = vadd.f32 %v8577_v10, %v7246_v35  ;;  %v4208_v31 = vpop.f32.mrb[31].mxu1 }
 0x4a3   : > { %vm4248_vm9 = vcmp.gt.f32.partialorder %v4206_v49, 0.0  ;;  %v4280_v27 = vmul.f32 0.2, %v4206_v49  ;;  %v4209_v0 = vadd.f32 %v8577_v10, %v4208_v31 }
 0x4a4   : > { %v4314_v20 = vsel %vm4250_vm0, %v4214_v16, %v4282_v60  ;;  %vm4251_vm10 = vcmp.gt.f32.partialorder %v4217_v59, 0.0  ;;  %v4283_v44 = vmul.f32 0.2, %v4217_v59  ;;  %v4992_v16 = vmul.f32 0.25, %v4928_v28 }
 0x4a5   : > { %v4312_v5 = vsel %vm4248_vm9, %v4206_v49, %v4280_v27  ;;  %vm4249_vm11 = vcmp.gt.f32.partialorder %v4209_v0, 0.0  ;;  %v4281_v22 = vmul.f32 0.2, %v4209_v0  ;;  %v11826_v49 = vld [vmem:[%s11973_s6] ss:$0 sm:$0xff] }
 0x4a6   : > { %v4330_v29 = vadd.f32 %v4314_v20, %v4312_v5  ;;  %v4315_v19 = vsel %vm4251_vm10, %v4217_v59, %v4283_v44 }
 0x4a7   : > { %v4313_v11 = vsel %vm4249_vm11, %v4209_v0, %v4281_v22 }
 0x4a8   : > { %v4586_v46 = vcombine.high %v4330_v29, %v4330_v29  ;;  %v11800_v43 = vrot.slane %v4330_v29, %v10325_v13  ;;  %v4331_v63 = vadd.f32 %v4315_v19, %v4313_v11 }
 0x4aa   : > { %v11805_v10 = vrot.slane %v4586_v46, %v10325_v13  ;;  %v4603_v41 = vcombine.high %v4331_v63, %v4331_v63  ;;  %v11808_v61 = vrot.slane %v4331_v63, %v10325_v13  ;;  %v11814_v55 = vcombine.high %v11800_v43, %v11800_v43 }
 0x4ac   : > { %v11818_v62 = vcombine.high %v11805_v10, %v11805_v10  ;;  %v11821_v57 = vrot.slane %v4603_v41, %v10325_v13  ;;  %v7255_v42 = vpop.f32.mrb[32].mxu1  ;;  %v11831_v2 = vcombine.high %v11808_v61, %v11808_v61 }
 0x4ad   : > { %v6121_v35 = vadd.f32 %v11826_v49, %v7255_v42  ;;  %v6112_v3 = vpop.f32.mrb[33].mxu1 }
 0x4ae   : > { %v6113_v60 = vadd.f32 %v11826_v49, %v6112_v3  ;;  %v11836_v31 = vpop.f32.mrb[34].mxu1  ;;  %v11845_v38 = vcombine.high %v11821_v57, %v11821_v57 }
 0x4af   : > { %v6237_v23 = vcombine.high %v6121_v35, %v6121_v35  ;;  %v6244_v27 = vrot.slane %v6121_v35, %v10325_v13  ;;  %v11841_v44 = vpop.f32.mrb[35].mxu1 }
 0x4b0   : > { %v6203_v18 = vcombine.high %v6113_v60, %v6113_v60  ;;  %v6210_v5 = vrot.slane %v6113_v60, %v10325_v13 }
 0x4b1   : > { %v6251_v29 = vrot.slane %v6237_v23, %v10325_v13  ;;  %v6252_v19 = vcombine.high %v6244_v27, %v6244_v27  ;;  %v6295_v58 = vrot.slane %v6244_v27, 1  ;;  %v6415_v11 = vadd.f32 %v6244_v27, %v4988_v51 }
 0x4b2   : > { %v6217_v17 = vrot.slane %v6203_v18, %v10325_v13  ;;  %v6218_v26 = vcombine.high %v6210_v5, %v6210_v5  ;;  %v6287_v28 = vrot.slane %v6210_v5, 1  ;;  %v6399_v46 = vadd.f32 %v6210_v5, %v11764_v40 }
 0x4b3   : > { %v6253_v63 = vcombine.high %v6251_v29, %v6251_v29  ;;  %v6296_v21 = vrot.slane %v6252_v19, 1  ;;  %v6297_v24 = vrot.slane %v6251_v29, 1  ;;  %v6416_v48 = vadd.f32 %v6295_v58, %v4989_v33 }
 0x4b4   : > { %v6417_v32 = vadd.f32 %v6252_v19, %v4990_v47  ;;  %v6419_v41 = vadd.f32 %v6251_v29, %v4992_v16  ;;  %v6479_v42 = vmul.f32 0.70710677, %v6415_v11  ;;  %v6219_v35 = vcombine.high %v6217_v17, %v6217_v17 }
 0x4b5   : > { %v6298_v3 = vrot.slane %v6253_v63, 1  ;;  %v6418_v60 = vadd.f32 %v6296_v21, %v4991_v1  ;;  %v6420_v23 = vadd.f32 %v6297_v24, %v4993_v8  ;;  %v6421_v52 = vadd.f32 %v6253_v63, %v4994_v39 }
 0x4b6   : > { %v6480_v22 = vmul.f32 0.70710677, %v6416_v48  ;;  %v6481_v51 = vmul.f32 0.70710677, %v6417_v32  ;;  %v6483_v27 = vmul.f32 0.70710677, %v6419_v41  ;;  %v6754_v18 = vrot.slane %v6479_v42, %v11596_v4 }
 0x4b7   : > { %v6422_v20 = vadd.f32 %v6298_v3, %v4995_v36  ;;  %v6482_v0 = vmul.f32 0.70710677, %v6418_v60  ;;  %v6484_v40 = vmul.f32 0.70710677, %v6420_v23  ;;  %v6485_v5 = vmul.f32 0.70710677, %v6421_v52 }
 0x4b8   : > { %v6758_v59 = vrot.slane %v6480_v22, %v11596_v4  ;;  %v6762_v33 = vrot.slane %v6481_v51, %v11596_v4  ;;  %v6770_v47 = vrot.slane %v6483_v27, %v11596_v4  ;;  %v6288_v16 = vrot.slane %v6218_v26, 1 }
 0x4b9   : > { %v6486_v29 = vmul.f32 0.70710677, %v6422_v20  ;;  %v6766_v1 = vrot.slane %v6482_v0, %v11596_v4  ;;  %v6774_v8 = vrot.slane %v6484_v40, %v11596_v4  ;;  %v6778_v39 = vrot.slane %v6485_v5, %v11596_v4 }
 0x4ba   : > { %v6857_v19 = vsel %vm5925_vm13, %v6758_v59, %v6754_v18  ;;  %v6289_v36 = vrot.slane %v6217_v17, 1  ;;  %v6290_v58 = vrot.slane %v6219_v35, 1  ;;  %v6400_v52 = vadd.f32 %v6287_v28, %v11766_v12 }
 0x4bb   : > { %v6782_v22 = vrot.slane %v6486_v29, %v11596_v4  ;;  %v6858_v11 = vsel %vm5928_vm14, %v6762_v33, %v6857_v19  ;;  %v6401_v63 = vadd.f32 %v6218_v26, %v11768_v37  ;;  %v6402_v20 = vadd.f32 %v6288_v16, %v11775_v6 }
 0x4bc   : > { %v6859_v0 = vsel %vm5931_vm15, %v6766_v1, %v6858_v11  ;;  %v6403_v21 = vadd.f32 %v6217_v17, %v11770_v14  ;;  %v6404_v24 = vadd.f32 %v6289_v36, %v11777_v45  ;;  %v6405_v59 = vadd.f32 %v6219_v35, %v11779_v50 }
 0x4bd   : > { %v6860_v48 = vsel %vm5934_vm1, %v6770_v47, %v6859_v0  ;;  %v6406_v12 = vadd.f32 %v6290_v58, %v11782_v9  ;;  %v6463_v28 = vmul.f32 0.70710677, %v6399_v46  ;;  %v6464_v32 = vmul.f32 0.70710677, %v6400_v52 }
 0x4be   : > { %v6861_v41 = vsel %vm5937_vm3, %v6774_v8, %v6860_v48  ;;  %v6465_v37 = vmul.f32 0.70710677, %v6401_v63  ;;  %v6466_v26 = vmul.f32 0.70710677, %v6402_v20  ;;  %v6467_v6 = vmul.f32 0.70710677, %v6403_v21 }
 0x4bf   : > { %v6862_v42 = vsel %vm5940_vm2, %v6778_v39, %v6861_v41  ;;  %v6468_v3 = vmul.f32 0.70710677, %v6404_v24  ;;  %v6469_v14 = vmul.f32 0.70710677, %v6405_v59  ;;  %v6470_v17 = vmul.f32 0.70710677, %v6406_v12 }
 0x4c0   : > { %v6863_v45 = vsel %vm5943_vm12, %v6782_v22, %v6862_v42  ;;  %v6690_v50 = vrot.slane %v6463_v28, %v11596_v4  ;;  %v6694_v35 = vrot.slane %v6464_v32, %v11596_v4  ;;  %v6698_v9 = vrot.slane %v6465_v37, %v11596_v4 }
 0x4c1   : > { %v7052_v46 = vrot.slane %v11831_v2, 9  ;;  %v7053_v60 = vrot.slane %v11821_v57, 9  ;;  %v7054_v23 = vrot.slane %v11845_v38, 9  ;;  %6885 = vst.msk [vmem:[%s11616_s18 + $0x30] sm:$0xff] %vm1779_vm4, %v6863_v45  ;;  %v6702_v51 = vrot.slane %v6466_v26, %v11596_v4 }
 0x4c2   : > { %v6843_v27 = vsel %vm5925_vm13, %v6694_v35, %v6690_v50  ;;  %v12178_v18 = vrot.slane %v11800_v43, 9  ;;  %v12179_v5 = vrot.slane %v11814_v55, 9  ;;  %v12180_v47 = vrot.slane %v11805_v10, 9 }
 0x4c3   : > { %v6706_v29 = vrot.slane %v6467_v6, %v11596_v4  ;;  %v6710_v1 = vrot.slane %v6468_v3, %v11596_v4  ;;  %v6844_v8 = vsel %vm5928_vm14, %v6698_v9, %v6843_v27  ;;  %v12181_v39 = vrot.slane %v11818_v62, 9 }
 0x4c4   : > { %v4932_v40 = vadd.f32 %v12178_v18, %v11800_v43  ;;  %v4933_v33 = vadd.f32 %v12179_v5, %v11814_v55  ;;  %v4934_v16 = vadd.f32 %v12180_v47, %v11805_v10  ;;  %v6714_v43 = vrot.slane %v6469_v14, %v11596_v4 }
 0x4c5   : > { %v4935_v19 = vadd.f32 %v12181_v39, %v11818_v62  ;;  %v6718_v36 = vrot.slane %v6470_v17, %v11596_v4  ;;  %v6845_v55 = vsel %vm5931_vm15, %v6702_v51, %v6844_v8  ;;  %v12182_v58 = vrot.slane %v11808_v61, 9 }
 0x4c6   : > { %v6846_v52 = vsel %vm5934_vm1, %v6706_v29, %v6845_v55  ;;  %v4937_v22 = vadd.f32 %v7052_v46, %v11831_v2  ;;  %v4938_v11 = vadd.f32 %v7053_v60, %v11821_v57  ;;  %v4939_v63 = vadd.f32 %v7054_v23, %v11845_v38 }
 0x4c7   : > { %v4936_v10 = vadd.f32 %v12182_v58, %v11808_v61  ;;  %v6847_v62 = vsel %vm5937_vm3, %v6710_v1, %v6846_v52  ;;  %v4996_v20 = vmul.f32 0.25, %v4932_v40  ;;  %v4997_v0 = vmul.f32 0.25, %v4933_v33 }
 0x4c8   : > { %v6124_v21 = vadd.f32 %v11826_v49, %v11836_v31  ;;  %v6848_v24 = vsel %vm5940_vm2, %v6714_v43, %v6847_v62  ;;  %v4998_v59 = vmul.f32 0.25, %v4934_v16  ;;  %v4999_v61 = vmul.f32 0.25, %v4935_v19 }
 0x4c9   : > { %v6116_v48 = vadd.f32 %v11826_v49, %v11841_v44  ;;  %v6849_v2 = vsel %vm5943_vm12, %v6718_v36, %v6848_v24  ;;  %v5000_v12 = vmul.f32 0.25, %v4936_v10  ;;  %v5001_v28 = vmul.f32 0.25, %v4937_v22 }
 0x4ca   : > { %v6254_v57 = vcombine.high %v6124_v21, %v6124_v21  ;;  %v6261_v38 = vrot.slane %v6124_v21, %v10325_v13  ;;  %6883 = vst.msk [vmem:[%s11616_s18 + $0x20] sm:$0xff] %vm1779_vm4, %v6849_v2  ;;  %v5002_v32 = vmul.f32 0.25, %v4938_v11  ;;  %v5003_v3 = vmul.f32 0.25, %v4939_v63 }
 0x4cb   : > { %v6220_v41 = vcombine.high %v6116_v48, %v6116_v48  ;;  %v6227_v31 = vrot.slane %v6116_v48, %v10325_v13 }
 0x4cc   : > { %v6268_v37 = vrot.slane %v6254_v57, %v10325_v13  ;;  %v6269_v26 = vcombine.high %v6261_v38, %v6261_v38  ;;  %v6299_v6 = vrot.slane %v6261_v38, 1  ;;  %v6423_v42 = vadd.f32 %v6261_v38, %v4996_v20 }
 0x4cd   : > { %v6234_v49 = vrot.slane %v6220_v41, %v10325_v13  ;;  %v6235_v44 = vcombine.high %v6227_v31, %v6227_v31  ;;  %v6407_v14 = vadd.f32 %v6227_v31, %v11784_v30  ;;  %v6291_v23 = vrot.slane %v6227_v31, 1 }
 0x4ce   : > { %v6270_v17 = vcombine.high %v6268_v37, %v6268_v37  ;;  %v6300_v45 = vrot.slane %v6269_v26, 1  ;;  %v6301_v50 = vrot.slane %v6268_v37, 1  ;;  %v6424_v35 = vadd.f32 %v6299_v6, %v4997_v0 }
 0x4cf   : > { %v6425_v9 = vadd.f32 %v6269_v26, %v4998_v59  ;;  %v6427_v46 = vadd.f32 %v6268_v37, %v5000_v12  ;;  %v6487_v60 = vmul.f32 0.70710677, %v6423_v42  ;;  %v6236_v16 = vcombine.high %v6234_v49, %v6234_v49 }
 0x4d0   : > { %v6302_v51 = vrot.slane %v6270_v17, 1  ;;  %v6426_v27 = vadd.f32 %v6300_v45, %v4999_v61  ;;  %v6428_v18 = vadd.f32 %v6301_v50, %v5001_v28  ;;  %v6429_v40 = vadd.f32 %v6270_v17, %v5002_v32 }
 0x4d1   : > { %v6488_v5 = vmul.f32 0.70710677, %v6424_v35  ;;  %v6489_v33 = vmul.f32 0.70710677, %v6425_v9  ;;  %v6491_v47 = vmul.f32 0.70710677, %v6427_v46  ;;  %v6786_v8 = vrot.slane %v6487_v60, %v11596_v4 }
 0x4d2   : > { %v6430_v13 = vadd.f32 %v6302_v51, %v5003_v3  ;;  %v6490_v29 = vmul.f32 0.70710677, %v6426_v27  ;;  %v6492_v1 = vmul.f32 0.70710677, %v6428_v18  ;;  %v6493_v30 = vmul.f32 0.70710677, %v6429_v40 }
 0x4d3   : > { %v6790_v39 = vrot.slane %v6488_v5, %v11596_v4  ;;  %v6794_v19 = vrot.slane %v6489_v33, %v11596_v4  ;;  %v6292_v43 = vrot.slane %v6235_v44, 1  ;;  %v6802_v58 = vrot.slane %v6491_v47, %v11596_v4 }
 0x4d4   : > { %v6494_v36 = vmul.f32 0.70710677, %v6430_v13  ;;  %v6798_v55 = vrot.slane %v6490_v29, %v11596_v4  ;;  %v6806_v10 = vrot.slane %v6492_v1, %v11596_v4  ;;  %v6293_v22 = vrot.slane %v6234_v49, 1 }
 0x4d5   : > { %v6864_v52 = vsel %vm5925_vm13, %v6790_v39, %v6786_v8  ;;  %v6294_v11 = vrot.slane %v6236_v16, 1  ;;  %v6408_v63 = vadd.f32 %v6291_v23, %v11786_v54  ;;  %v6810_v62 = vrot.slane %v6493_v30, %v11596_v4 }
 0x4d6   : > { %v6865_v20 = vsel %vm5928_vm14, %v6794_v19, %v6864_v52  ;;  %v6409_v0 = vadd.f32 %v6235_v44, %v11788_v34  ;;  %v6410_v21 = vadd.f32 %v6292_v43, %v11790_v53  ;;  %v6411_v59 = vadd.f32 %v6234_v49, %v11792_v56 }
 0x4d7   : > { %v6866_v24 = vsel %vm5931_vm15, %v6798_v55, %v6865_v20  ;;  %v6412_v61 = vadd.f32 %v6293_v22, %v11797_v25  ;;  %v6413_v48 = vadd.f32 %v6236_v16, %v11802_v7  ;;  %v6414_v54 = vadd.f32 %v6294_v11, %v11810_v15 }
 0x4d8   : > { %v6867_v2 = vsel %vm5934_vm1, %v6802_v58, %v6866_v24  ;;  %v6471_v12 = vmul.f32 0.70710677, %v6407_v14  ;;  %v6472_v57 = vmul.f32 0.70710677, %v6408_v63  ;;  %v6814_v38 = vrot.slane %v6494_v36, %v11596_v4 }
 0x4d9   : > { %v6868_v34 = vsel %vm5937_vm3, %v6806_v10, %v6867_v2  ;;  %v6473_v53 = vmul.f32 0.70710677, %v6409_v0  ;;  %v6474_v28 = vmul.f32 0.70710677, %v6410_v21  ;;  %v6475_v56 = vmul.f32 0.70710677, %v6411_v59 }
 0x4da   : > { %v6869_v32 = vsel %vm5940_vm2, %v6810_v62, %v6868_v34  ;;  %v6476_v41 = vmul.f32 0.70710677, %v6412_v61  ;;  %v6722_v7 = vrot.slane %v6471_v12, %v11596_v4  ;;  %v6726_v31 = vrot.slane %v6472_v57, %v11596_v4 }
 0x4db   : > { %v6870_v25 = vsel %vm5943_vm12, %v6814_v38, %v6869_v32  ;;  %v6730_v15 = vrot.slane %v6473_v53, %v11596_v4  ;;  %v6477_v37 = vmul.f32 0.70710677, %v6413_v48  ;;  %v6734_v26 = vrot.slane %v6474_v28, %v11596_v4 }
 0x4dc   : > { %6886 = vst.msk [vmem:[%s11616_s18 + $0x38] sm:$0xff] %vm1779_vm4, %v6870_v25  ;;  %v6478_v6 = vmul.f32 0.70710677, %v6414_v54  ;;  %v6850_v42 = vsel %vm5925_vm13, %v6726_v31, %v6722_v7  ;;  %v6738_v3 = vrot.slane %v6475_v56, %v11596_v4  ;;  %v6742_v44 = vrot.slane %v6476_v41, %v11596_v4 }
 0x4dd   : > { %v6851_v49 = vsel %vm5928_vm14, %v6730_v15, %v6850_v42  ;;  %v6746_v17 = vrot.slane %v6477_v37, %v11596_v4 }
 0x4de   : > { %v6852_v14 = vsel %vm5931_vm15, %v6734_v26, %v6851_v49  ;;  %v6750_v50 = vrot.slane %v6478_v6, %v11596_v4 }
 0x4df   : > { %v6853_v45 = vsel %vm5934_vm1, %v6738_v3, %v6852_v14 }
 0x4e0   : > { %v6854_v35 = vsel %vm5937_vm3, %v6742_v44, %v6853_v45 }
 0x4e1   : > { %v6855_v9 = vsel %vm5940_vm2, %v6746_v17, %v6854_v35 }
 0x4e2   : > { %v6856_v46 = vsel %vm5943_vm12, %v6750_v50, %v6855_v9 }
 0x4e3   : > { %6884 = vst.msk [vmem:[%s11616_s18 + $0x28] sm:$0xff] %vm1779_vm4, %v6856_v46 }
 0x4e4 PF: > { %s17_s24 = sadd.s32 1, %s8585_s24  }
 0x4e5   : > { %p14_p4 = scmp.ge.s32.totalorder %s17_s24, 4  }
 0x4e7   :  { %16 = sbr.rel (!%p14_p4) target bundleno = 1 (0x1), region = 84 }

</bundles_post_ra>
